<compile_context>
chip_gen: v6e
topology: v6e:2x2x1
jax: 0.10.0
libtpu: 0.0.40
codegen_flags: <defaults>
</compile_context>

<pallas_src>
import jax
import jax.numpy as jnp
from jax.experimental import pallas as pl
from jax.experimental.pallas import tpu as pltpu


def _round_up(x, m):
    return (x + m - 1) // m * m


def _cdiv(a, b):
    return -(-a // b)


def _k_tiling(dim, k_tile_max):
    """Split a contraction dim into nk tiles of width tk (tk multiple of 128)."""
    nk = max(1, _cdiv(dim, k_tile_max))
    tk = _round_up(_cdiv(dim, nk), 128)
    return tk, nk


# --------------------------------------------------------------------------- #
# Kernel
# --------------------------------------------------------------------------- #
def _make_kernel(nk_wav, nk_spec, nk):
    """Kernel closure over the (static) per-input K-tile counts."""

    def kernel(wav_ref, spec_ref,
               lw_ref, sw_ref, lb_ref, sb_ref,
               w1a_ref, w1b_ref, b1_ref,
               w2_ref, b2_ref, w3_ref, b3_ref, w4_ref, b4_ref,
               w5_ref, b5_ref, wf_ref, bf_ref,
               out_ref,
               lcnn_acc, spec_acc):
        k = pl.program_id(1)

        @pl.when(k == 0)
        def _init():
            lcnn_acc[...] = jnp.zeros_like(lcnn_acc)
            spec_acc[...] = jnp.zeros_like(spec_acc)

        # K-tiled extractor GEMMs: f32 tiles cast to bf16 in-register, bf16
        # weights, f32 accumulation on the MXU into VMEM scratch.
        def wav_step():
            lcnn_acc[...] += jnp.dot(wav_ref[...].astype(jnp.bfloat16), lw_ref[...],
                                     preferred_element_type=jnp.float32)

        def spec_step():
            spec_acc[...] += jnp.dot(spec_ref[...].astype(jnp.bfloat16), sw_ref[...],
                                     preferred_element_type=jnp.float32)

        # Only gate the side whose K-extent is smaller than the grid K-extent.
        if nk_wav == nk:
            wav_step()
        else:
            pl.when(k < nk_wav)(wav_step)
        if nk_spec == nk:
            spec_step()
        else:
            pl.when(k < nk_spec)(spec_step)

        @pl.when(k == nk - 1)
        def _finalize():
            lcnn_feat = lcnn_acc[...] + lb_ref[...]          # (tb, 512) f32
            spec_feat = spec_acc[...] + sb_ref[...]          # (tb, 512) f32

            # Concat-free fusion layer 1: cat(l, s) @ w1 == l @ w1a + s @ w1b.
            # All fusion matmuls in bf16 (native MXU), biases/ReLU in f32.
            h = jnp.maximum(
                jnp.dot(lcnn_feat.astype(jnp.bfloat16), w1a_ref[...],
                        preferred_element_type=jnp.float32)
                + jnp.dot(spec_feat.astype(jnp.bfloat16), w1b_ref[...],
                          preferred_element_type=jnp.float32)
                + b1_ref[...], 0.0)
            h = jnp.maximum(
                jnp.dot(h.astype(jnp.bfloat16), w2_ref[...],
                        preferred_element_type=jnp.float32) + b2_ref[...], 0.0)
            h = jnp.maximum(
                jnp.dot(h.astype(jnp.bfloat16), w3_ref[...],
                        preferred_element_type=jnp.float32) + b3_ref[...], 0.0)
            h = jnp.maximum(
                jnp.dot(h.astype(jnp.bfloat16), w4_ref[...],
                        preferred_element_type=jnp.float32) + b4_ref[...], 0.0)
            scores = jax.nn.sigmoid(
                jnp.dot(h.astype(jnp.bfloat16), w5_ref[...],
                        preferred_element_type=jnp.float32) + b5_ref[...])

            # final_classifier Linear(5,1)+Sigmoid on the VPU/XLU (broadcast-mul
            # + lane reduce) -- avoids a degenerate K=5,N=1 MXU matmul.
            pred = jax.nn.sigmoid(
                jnp.sum(scores * wf_ref[...], axis=-1, keepdims=True) + bf_ref[...])

            tb = scores.shape[0]
            # Single lane-packed (tb, 8) slab: [scores(5) | pred(1) | zeros(2)].
            out_ref[:, 0:5] = scores
            out_ref[:, 5:6] = pred
            out_ref[:, 6:8] = jnp.zeros((tb, 2), jnp.float32)

    return kernel


# --------------------------------------------------------------------------- #
# Parameters
# --------------------------------------------------------------------------- #
def init_params(key, wav_dim, spec_dim):
    """Deterministic parameter init (uniform ~ +/- 1/sqrt(fan_in), like nn.Linear)."""
    dims = [
        ("lcnn", wav_dim, 512),
        ("spec", spec_dim, 512),
        ("f1", 1024, 512),
        ("f2", 512, 256),
        ("f3", 256, 128),
        ("f4", 128, 64),
        ("f5", 64, 5),
        ("final", 5, 1),
    ]
    params = []
    keys = jax.random.split(key, 2 * len(dims))
    for i, (_, fan_in, fan_out) in enumerate(dims):
        bound = 1.0 / jnp.sqrt(jnp.float32(fan_in))
        w = jax.random.uniform(keys[2 * i], (fan_in, fan_out),
                               jnp.float32, -bound, bound)
        b = jax.random.uniform(keys[2 * i + 1], (1, fan_out),
                               jnp.float32, -bound, bound)
        params.append(w)
        params.append(b)
    return params


def prepare_params(params, wav_dim, spec_dim, *, k_tile_max=2048):
    """One-time kernel-ready preprocessing (hoisted out of the forward pass):
    K-pad + bf16-cast the extractor weights, split w1 (concat elimination),
    bf16-cast the fusion weights, transpose wf. Biases stay f32."""
    (lw, lb, sw, sb, w1, b1, w2, b2, w3, b3, w4, b4, w5, b5, wf, bf) = params

    tkw, nk_wav = _k_tiling(wav_dim, k_tile_max)
    tks, nk_spec = _k_tiling(spec_dim, k_tile_max)

    lw_p = jnp.pad(lw, ((0, nk_wav * tkw - wav_dim), (0, 0))).astype(jnp.bfloat16)
    sw_p = jnp.pad(sw, ((0, nk_spec * tks - spec_dim), (0, 0))).astype(jnp.bfloat16)

    return dict(
        lw=lw_p, sw=sw_p, lb=lb, sb=sb,
        w1a=w1[:512].astype(jnp.bfloat16), w1b=w1[512:].astype(jnp.bfloat16), b1=b1,
        w2=w2.astype(jnp.bfloat16), b2=b2,
        w3=w3.astype(jnp.bfloat16), b3=b3,
        w4=w4.astype(jnp.bfloat16), b4=b4,
        w5=w5.astype(jnp.bfloat16), b5=b5,
        wf_t=wf.T, bf=bf,
        wav_dim=wav_dim, spec_dim=spec_dim,
        tkw=tkw, nk_wav=nk_wav, tks=tks, nk_spec=nk_spec)


# --------------------------------------------------------------------------- #
# Forward
# --------------------------------------------------------------------------- #
def hybrid_forward(waveform, spectrogram, prepared, *,
                   batch_tile=256, vmem_limit_bytes=None):
    """waveform: (B, T) f32; spectrogram: (B, C, H, W) f32 (flattened here)."""
    B = waveform.shape[0]
    wav = waveform.reshape(B, -1).astype(jnp.float32)
    spec = spectrogram.reshape(B, -1).astype(jnp.float32)

    p = prepared
    wav_dim, spec_dim = p["wav_dim"], p["spec_dim"]
    assert wav.shape[1] == wav_dim and spec.shape[1] == spec_dim

    tkw, nk_wav = p["tkw"], p["nk_wav"]
    tks, nk_spec = p["tks"], p["nk_spec"]
    nk = max(nk_wav, nk_spec)

    # ---- batch tiling: always >= 2 tiles so the "parallel" axis can feed both
    # TensorCores on v7x; tb kept a multiple of 16. ----
    if B <= batch_tile:
        tb = max(16, _round_up(_cdiv(B, 2), 16))
        nbt = 2
    else:
        tb = batch_tile
        nbt = _cdiv(B, tb)
    bp = nbt * tb

    # ---- activations stay f32 (cast to bf16 in-kernel); pad only when needed.
    pad_w = nk_wav * tkw - wav_dim
    pad_s = nk_spec * tks - spec_dim
    wav_p = wav if (pad_w == 0 and bp == B) else jnp.pad(wav, ((0, bp - B), (0, pad_w)))
    spec_p = spec if (pad_s == 0 and bp == B) else jnp.pad(spec, ((0, bp - B), (0, pad_s)))

    # ---- generation-aware VMEM budget (v7x has 64 MiB/TC; v5e/v6e have 128). ----
    if vmem_limit_bytes is None:
        try:
            kind = jax.devices()[0].device_kind.lower()
        except Exception:
            kind = ""
        vmem_limit_bytes = (96 << 20) if ("v5" in kind or "v6" in kind) else (48 << 20)

    # ---- index maps: clamp the smaller K-extent side (pipeline skips re-DMA
    # of an unchanged block index). ----
    if nk_wav == nk:
        wav_map = lambda i, k: (i, k)
        lw_map = lambda i, k: (k, 0)
    else:
        wav_map = lambda i, k: (i, jnp.minimum(k, nk_wav - 1))
        lw_map = lambda i, k: (jnp.minimum(k, nk_wav - 1), 0)
    if nk_spec == nk:
        spec_map = lambda i, k: (i, k)
        sw_map = lambda i, k: (k, 0)
    else:
        spec_map = lambda i, k: (i, jnp.minimum(k, nk_spec - 1))
        sw_map = lambda i, k: (jnp.minimum(k, nk_spec - 1), 0)

    resident_args = (p["lb"], p["sb"], p["w1a"], p["w1b"], p["b1"],
                     p["w2"], p["b2"], p["w3"], p["b3"], p["w4"], p["b4"],
                     p["w5"], p["b5"], p["wf_t"], p["bf"])
    call_args = (wav_p, spec_p, p["lw"], p["sw"]) + resident_args

    def build(single_buffer_residents):
        if single_buffer_residents:
            # Constant block index -> single-buffer the resident weights/biases.
            def resident(x):
                return pl.BlockSpec(x.shape, lambda i, k: (0,) * x.ndim,
                                    pipeline_mode=pl.Buffered(1))
        else:
            def resident(x):
                return pl.BlockSpec(x.shape, lambda i, k: (0,) * x.ndim)

        in_specs = [
            pl.BlockSpec((tb, tkw), wav_map),     # waveform tile (f32)
            pl.BlockSpec((tb, tks), spec_map),    # spectrogram tile (f32)
            pl.BlockSpec((tkw, 512), lw_map),     # lcnn weight K-slice (bf16)
            pl.BlockSpec((tks, 512), sw_map),     # spec weight K-slice (bf16)
        ] + [resident(x) for x in resident_args]

        return pl.pallas_call(
            _make_kernel(nk_wav, nk_spec, nk),
            out_shape=jax.ShapeDtypeStruct((bp, 8), jnp.float32),
            grid_spec=pltpu.PrefetchScalarGridSpec(
                num_scalar_prefetch=0,
                grid=(nbt, nk),
                in_specs=in_specs,
                out_specs=pl.BlockSpec((tb, 8), lambda i, k: (i, 0)),
                scratch_shapes=[pltpu.VMEM((tb, 512), jnp.float32),
                                pltpu.VMEM((tb, 512), jnp.float32)]),
            compiler_params=pltpu.CompilerParams(
                dimension_semantics=("parallel", "arbitrary"),
                vmem_limit_bytes=vmem_limit_bytes),
        )

    try:
        out = build(True)(*call_args)
    except Exception:
        # pipeline_mode=pl.Buffered(1) not supported by this JAX version;
        # fall back to default double-buffered resident blocks.
        out = build(False)(*call_args)

    scores = out[:B, :5]
    pred = out[:B, 5:6]
    return pred, scores


# --------------------------------------------------------------------------- #
# Pure-JAX reference (same mixed precision policy as the kernel)
# --------------------------------------------------------------------------- #
def reference_forward(waveform, spectrogram, params):
    B = waveform.shape[0]
    wav = waveform.reshape(B, -1).astype(jnp.float32)
    spec = spectrogram.reshape(B, -1).astype(jnp.float32)
    (lw, lb, sw, sb, w1, b1, w2, b2, w3, b3, w4, b4, w5, b5, wf, bf) = params

    def mm(x, w):
        return jnp.dot(x.astype(jnp.bfloat16), w.astype(jnp.bfloat16),
                       preferred_element_type=jnp.float32)

    lcnn_feat = mm(wav, lw) + lb
    spec_feat = mm(spec, sw) + sb
    combined = jnp.concatenate([lcnn_feat, spec_feat], axis=1)
    h = jnp.maximum(mm(combined, w1) + b1, 0.0)
    h = jnp.maximum(mm(h, w2) + b2, 0.0)
    h = jnp.maximum(mm(h, w3) + b3, 0.0)
    h = jnp.maximum(mm(h, w4) + b4, 0.0)
    scores = jax.nn.sigmoid(mm(h, w5) + b5)
    pred = jax.nn.sigmoid(scores @ wf + bf)
    return pred, scores


if __name__ == "__main__":
    key = jax.random.PRNGKey(0)
    k_wav, k_spec, k_par = jax.random.split(key, 3)

    B = 2
    WAV_DIM = 256               # small stand-in waveform length
    C, H, W = 1, 32, 32         # small NCHW spectrogram -> 1024 flat features

    waveform = jax.random.normal(k_wav, (B, WAV_DIM), jnp.float32)
    spectrogram = jax.random.normal(k_spec, (B, C, H, W), jnp.float32)

    params = init_params(k_par, WAV_DIM, C * H * W)
    prepared = prepare_params(params, WAV_DIM, C * H * W)   # one-time preprocessing

    pred, scores = hybrid_forward(waveform, spectrogram, prepared)
    pred = jax.block_until_ready(pred)
    scores = jax.block_until_ready(scores)

    ref_pred, ref_scores = reference_forward(waveform, spectrogram, params)
    assert pred.shape == (B, 1) and scores.shape == (B, 5)
    assert jnp.allclose(scores, ref_scores, atol=2e-3, rtol=2e-3)
    assert jnp.allclose(pred, ref_pred, atol=2e-3, rtol=2e-3)

    print("KERNEL_OK")
</pallas_src>

<mosaic_0001>
module attributes {stable_mosaic.version = 11 : i64} {
  func.func @kernel(%arg0: i32, %arg1: i32, %arg2: memref<16x256xf32, #tpu.memory_space<vmem>>, %arg3: memref<16x1024xf32, #tpu.memory_space<vmem>>, %arg4: memref<256x512xbf16, #tpu.memory_space<vmem>>, %arg5: memref<1024x512xbf16, #tpu.memory_space<vmem>>, %arg6: memref<1x512xf32, #tpu.memory_space<vmem>>, %arg7: memref<1x512xf32, #tpu.memory_space<vmem>>, %arg8: memref<512x512xbf16, #tpu.memory_space<vmem>>, %arg9: memref<512x512xbf16, #tpu.memory_space<vmem>>, %arg10: memref<1x512xf32, #tpu.memory_space<vmem>>, %arg11: memref<512x256xbf16, #tpu.memory_space<vmem>>, %arg12: memref<1x256xf32, #tpu.memory_space<vmem>>, %arg13: memref<256x128xbf16, #tpu.memory_space<vmem>>, %arg14: memref<1x128xf32, #tpu.memory_space<vmem>>, %arg15: memref<128x64xbf16, #tpu.memory_space<vmem>>, %arg16: memref<1x64xf32, #tpu.memory_space<vmem>>, %arg17: memref<64x5xbf16, #tpu.memory_space<vmem>>, %arg18: memref<1x5xf32, #tpu.memory_space<vmem>>, %arg19: memref<1x5xf32, #tpu.memory_space<vmem>>, %arg20: memref<1x1xf32, #tpu.memory_space<vmem>>, %arg21: memref<16x8xf32, #tpu.memory_space<vmem>>, %arg22: memref<16x512xf32, #tpu.memory_space<vmem>>, %arg23: memref<16x512xf32, #tpu.memory_space<vmem>>) attributes {dimension_semantics = [#tpu.dimension_semantics<parallel>, #tpu.dimension_semantics<arbitrary>], iteration_bounds = array<i64: 2, 1>, scalar_prefetch = 0 : i64, scratch_operands = 2 : i64, tpu.core_type = #tpu.core_type<tc>, window_params = [{transform_indices = @transform_0, window_bounds = array<i64: 16, 256>}, {transform_indices = @transform_1, window_bounds = array<i64: 16, 1024>}, {transform_indices = @transform_2, window_bounds = array<i64: 256, 512>}, {transform_indices = @transform_3, window_bounds = array<i64: 1024, 512>}, {pipeline_mode = #tpu.pipeline_mode<synchronous>, transform_indices = @transform_4, window_bounds = array<i64: 1, 512>}, {pipeline_mode = #tpu.pipeline_mode<synchronous>, transform_indices = @transform_5, window_bounds = array<i64: 1, 512>}, {pipeline_mode = #tpu.pipeline_mode<synchronous>, transform_indices = @transform_6, window_bounds = array<i64: 512, 512>}, {pipeline_mode = #tpu.pipeline_mode<synchronous>, transform_indices = @transform_7, window_bounds = array<i64: 512, 512>}, {pipeline_mode = #tpu.pipeline_mode<synchronous>, transform_indices = @transform_8, window_bounds = array<i64: 1, 512>}, {pipeline_mode = #tpu.pipeline_mode<synchronous>, transform_indices = @transform_9, window_bounds = array<i64: 512, 256>}, {pipeline_mode = #tpu.pipeline_mode<synchronous>, transform_indices = @transform_10, window_bounds = array<i64: 1, 256>}, {pipeline_mode = #tpu.pipeline_mode<synchronous>, transform_indices = @transform_11, window_bounds = array<i64: 256, 128>}, {pipeline_mode = #tpu.pipeline_mode<synchronous>, transform_indices = @transform_12, window_bounds = array<i64: 1, 128>}, {pipeline_mode = #tpu.pipeline_mode<synchronous>, transform_indices = @transform_13, window_bounds = array<i64: 128, 64>}, {pipeline_mode = #tpu.pipeline_mode<synchronous>, transform_indices = @transform_14, window_bounds = array<i64: 1, 64>}, {pipeline_mode = #tpu.pipeline_mode<synchronous>, transform_indices = @transform_15, window_bounds = array<i64: 64, 5>}, {pipeline_mode = #tpu.pipeline_mode<synchronous>, transform_indices = @transform_16, window_bounds = array<i64: 1, 5>}, {pipeline_mode = #tpu.pipeline_mode<synchronous>, transform_indices = @transform_17, window_bounds = array<i64: 1, 5>}, {pipeline_mode = #tpu.pipeline_mode<synchronous>, transform_indices = @transform_18, window_bounds = array<i64: 1, 1>}, {transform_indices = @transform_19, window_bounds = array<i64: 16, 8>}]} {
    %c0_i32 = arith.constant 0 : i32
    %0 = arith.cmpi eq, %arg1, %c0_i32 : i32
    %1 = arith.extui %0 : i1 to i32
    %c0_i32_0 = arith.constant 0 : i32
    %2 = arith.cmpi ne, %1, %c0_i32_0 : i32
    scf.if %2 {
      %cst_19 = arith.constant 0.000000e+00 : f32
      %20 = vector.broadcast %cst_19 : f32 to vector<16x512xf32>
      %c0_20 = arith.constant 0 : index
      %c0_21 = arith.constant 0 : index
      %21 = vector.load %arg22[%c0_20, %c0_21] : memref<16x512xf32, #tpu.memory_space<vmem>>, vector<16x512xf32>
      tpu.vector_store %arg22[%c0_20, %c0_21], %20 {strides = array<i32>} : memref<16x512xf32, #tpu.memory_space<vmem>>, vector<16x512xf32>,
      %cst_22 = arith.constant 0.000000e+00 : f32
      %22 = vector.broadcast %cst_22 : f32 to vector<16x512xf32>
      %c0_23 = arith.constant 0 : index
      %c0_24 = arith.constant 0 : index
      %23 = vector.load %arg23[%c0_23, %c0_24] : memref<16x512xf32, #tpu.memory_space<vmem>>, vector<16x512xf32>
      tpu.vector_store %arg23[%c0_23, %c0_24], %22 {strides = array<i32>} : memref<16x512xf32, #tpu.memory_space<vmem>>, vector<16x512xf32>,
    } else {
    }
    %c0 = arith.constant 0 : index
    %c0_1 = arith.constant 0 : index
    %3 = vector.load %arg22[%c0, %c0_1] : memref<16x512xf32, #tpu.memory_space<vmem>>, vector<16x512xf32>
    %c0_2 = arith.constant 0 : index
    %c0_3 = arith.constant 0 : index
    %4 = vector.load %arg2[%c0_2, %c0_3] : memref<16x256xf32, #tpu.memory_space<vmem>>, vector<16x256xf32>
    %5 = arith.truncf %4 : vector<16x256xf32> to vector<16x256xbf16>
    %c0_4 = arith.constant 0 : index
    %c0_5 = arith.constant 0 : index
    %6 = vector.load %arg4[%c0_4, %c0_5] : memref<256x512xbf16, #tpu.memory_space<vmem>>, vector<256x512xbf16>
    %cst = arith.constant dense<0.000000e+00> : vector<16x512xf32>
    %7 = tpu.matmul %5, %6, %cst {dimension_numbers = #tpu.dot_dimension_numbers<[1], [0], [0], [1], [0, 0, 1, 1], [], []>} : vector<16x256xbf16>, vector<256x512xbf16>, vector<16x512xf32> -> vector<16x512xf32>
    %8 = arith.addf %3, %7 : vector<16x512xf32>
    %c0_6 = arith.constant 0 : index
    %c0_7 = arith.constant 0 : index
    %9 = vector.load %arg22[%c0_6, %c0_7] : memref<16x512xf32, #tpu.memory_space<vmem>>, vector<16x512xf32>
    tpu.vector_store %arg22[%c0_6, %c0_7], %8 {strides = array<i32>} : memref<16x512xf32, #tpu.memory_space<vmem>>, vector<16x512xf32>,
    %c0_8 = arith.constant 0 : index
    %c0_9 = arith.constant 0 : index
    %10 = vector.load %arg23[%c0_8, %c0_9] : memref<16x512xf32, #tpu.memory_space<vmem>>, vector<16x512xf32>
    %c0_10 = arith.constant 0 : index
    %c0_11 = arith.constant 0 : index
    %11 = vector.load %arg3[%c0_10, %c0_11] : memref<16x1024xf32, #tpu.memory_space<vmem>>, vector<16x1024xf32>
    %12 = arith.truncf %11 : vector<16x1024xf32> to vector<16x1024xbf16>
    %c0_12 = arith.constant 0 : index
    %c0_13 = arith.constant 0 : index
    %13 = vector.load %arg5[%c0_12, %c0_13] : memref<1024x512xbf16, #tpu.memory_space<vmem>>, vector<1024x512xbf16>
    %cst_14 = arith.constant dense<0.000000e+00> : vector<16x512xf32>
    %14 = tpu.matmul %12, %13, %cst_14 {dimension_numbers = #tpu.dot_dimension_numbers<[1], [0], [0], [1], [0, 0, 1, 1], [], []>} : vector<16x1024xbf16>, vector<1024x512xbf16>, vector<16x512xf32> -> vector<16x512xf32>
    %15 = arith.addf %10, %14 : vector<16x512xf32>
    %c0_15 = arith.constant 0 : index
    %c0_16 = arith.constant 0 : index
    %16 = vector.load %arg23[%c0_15, %c0_16] : memref<16x512xf32, #tpu.memory_space<vmem>>, vector<16x512xf32>
    tpu.vector_store %arg23[%c0_15, %c0_16], %15 {strides = array<i32>} : memref<16x512xf32, #tpu.memory_space<vmem>>, vector<16x512xf32>,
    %c0_i32_17 = arith.constant 0 : i32
    %17 = arith.cmpi eq, %arg1, %c0_i32_17 : i32
    %18 = arith.extui %17 : i1 to i32
    %c0_i32_18 = arith.constant 0 : i32
    %19 = arith.cmpi ne, %18, %c0_i32_18 : i32
    scf.if %19 {
      %c0_19 = arith.constant 0 : index
      %c0_20 = arith.constant 0 : index
      %20 = vector.load %arg22[%c0_19, %c0_20] : memref<16x512xf32, #tpu.memory_space<vmem>>, vector<16x512xf32>
      %c0_21 = arith.constant 0 : index
      %c0_22 = arith.constant 0 : index
      %21 = vector.load %arg6[%c0_21, %c0_22] : memref<1x512xf32, #tpu.memory_space<vmem>>, vector<1x512xf32>
      %22 = vector.broadcast %21 : vector<1x512xf32> to vector<16x512xf32>
      %23 = arith.addf %20, %22 : vector<16x512xf32>
      %c0_23 = arith.constant 0 : index
      %c0_24 = arith.constant 0 : index
      %24 = vector.load %arg23[%c0_23, %c0_24] : memref<16x512xf32, #tpu.memory_space<vmem>>, vector<16x512xf32>
      %c0_25 = arith.constant 0 : index
      %c0_26 = arith.constant 0 : index
      %25 = vector.load %arg7[%c0_25, %c0_26] : memref<1x512xf32, #tpu.memory_space<vmem>>, vector<1x512xf32>
      %26 = vector.broadcast %25 : vector<1x512xf32> to vector<16x512xf32>
      %27 = arith.addf %24, %26 : vector<16x512xf32>
      %28 = arith.truncf %23 : vector<16x512xf32> to vector<16x512xbf16>
      %c0_27 = arith.constant 0 : index
      %c0_28 = arith.constant 0 : index
      %29 = vector.load %arg8[%c0_27, %c0_28] : memref<512x512xbf16, #tpu.memory_space<vmem>>, vector<512x512xbf16>
      %cst_29 = arith.constant dense<0.000000e+00> : vector<16x512xf32>
      %30 = tpu.matmul %28, %29, %cst_29 {dimension_numbers = #tpu.dot_dimension_numbers<[1], [0], [0], [1], [0, 0, 1, 1], [], []>} : vector<16x512xbf16>, vector<512x512xbf16>, vector<16x512xf32> -> vector<16x512xf32>
      %31 = arith.truncf %27 : vector<16x512xf32> to vector<16x512xbf16>
      %c0_30 = arith.constant 0 : index
      %c0_31 = arith.constant 0 : index
      %32 = vector.load %arg9[%c0_30, %c0_31] : memref<512x512xbf16, #tpu.memory_space<vmem>>, vector<512x512xbf16>
      %cst_32 = arith.constant dense<0.000000e+00> : vector<16x512xf32>
      %33 = tpu.matmul %31, %32, %cst_32 {dimension_numbers = #tpu.dot_dimension_numbers<[1], [0], [0], [1], [0, 0, 1, 1], [], []>} : vector<16x512xbf16>, vector<512x512xbf16>, vector<16x512xf32> -> vector<16x512xf32>
      %34 = arith.addf %30, %33 : vector<16x512xf32>
      %c0_33 = arith.constant 0 : index
      %c0_34 = arith.constant 0 : index
      %35 = vector.load %arg10[%c0_33, %c0_34] : memref<1x512xf32, #tpu.memory_space<vmem>>, vector<1x512xf32>
      %36 = vector.broadcast %35 : vector<1x512xf32> to vector<16x512xf32>
      %37 = arith.addf %34, %36 : vector<16x512xf32>
      %cst_35 = arith.constant 0.000000e+00 : f32
      %38 = vector.broadcast %cst_35 : f32 to vector<16x512xf32>
      %39 = arith.maximumf %37, %38 : vector<16x512xf32>
      %40 = arith.truncf %39 : vector<16x512xf32> to vector<16x512xbf16>
      %c0_36 = arith.constant 0 : index
      %c0_37 = arith.constant 0 : index
      %41 = vector.load %arg11[%c0_36, %c0_37] : memref<512x256xbf16, #tpu.memory_space<vmem>>, vector<512x256xbf16>
      %cst_38 = arith.constant dense<0.000000e+00> : vector<16x256xf32>
      %42 = tpu.matmul %40, %41, %cst_38 {dimension_numbers = #tpu.dot_dimension_numbers<[1], [0], [0], [1], [0, 0, 1, 1], [], []>} : vector<16x512xbf16>, vector<512x256xbf16>, vector<16x256xf32> -> vector<16x256xf32>
      %c0_39 = arith.constant 0 : index
      %c0_40 = arith.constant 0 : index
      %43 = vector.load %arg12[%c0_39, %c0_40] : memref<1x256xf32, #tpu.memory_space<vmem>>, vector<1x256xf32>
      %44 = vector.broadcast %43 : vector<1x256xf32> to vector<16x256xf32>
      %45 = arith.addf %42, %44 : vector<16x256xf32>
      %cst_41 = arith.constant 0.000000e+00 : f32
      %46 = vector.broadcast %cst_41 : f32 to vector<16x256xf32>
      %47 = arith.maximumf %45, %46 : vector<16x256xf32>
      %48 = arith.truncf %47 : vector<16x256xf32> to vector<16x256xbf16>
      %c0_42 = arith.constant 0 : index
      %c0_43 = arith.constant 0 : index
      %49 = vector.load %arg13[%c0_42, %c0_43] : memref<256x128xbf16, #tpu.memory_space<vmem>>, vector<256x128xbf16>
      %cst_44 = arith.constant dense<0.000000e+00> : vector<16x128xf32>
      %50 = tpu.matmul %48, %49, %cst_44 {dimension_numbers = #tpu.dot_dimension_numbers<[1], [0], [0], [1], [0, 0, 1, 1], [], []>} : vector<16x256xbf16>, vector<256x128xbf16>, vector<16x128xf32> -> vector<16x128xf32>
      %c0_45 = arith.constant 0 : index
      %c0_46 = arith.constant 0 : index
      %51 = vector.load %arg14[%c0_45, %c0_46] : memref<1x128xf32, #tpu.memory_space<vmem>>, vector<1x128xf32>
      %52 = vector.broadcast %51 : vector<1x128xf32> to vector<16x128xf32>
      %53 = arith.addf %50, %52 : vector<16x128xf32>
      %cst_47 = arith.constant 0.000000e+00 : f32
      %54 = vector.broadcast %cst_47 : f32 to vector<16x128xf32>
      %55 = arith.maximumf %53, %54 : vector<16x128xf32>
      %56 = arith.truncf %55 : vector<16x128xf32> to vector<16x128xbf16>
      %c0_48 = arith.constant 0 : index
      %c0_49 = arith.constant 0 : index
      %57 = vector.load %arg15[%c0_48, %c0_49] : memref<128x64xbf16, #tpu.memory_space<vmem>>, vector<128x64xbf16>
      %cst_50 = arith.constant dense<0.000000e+00> : vector<16x64xf32>
      %58 = tpu.matmul %56, %57, %cst_50 {dimension_numbers = #tpu.dot_dimension_numbers<[1], [0], [0], [1], [0, 0, 1, 1], [], []>} : vector<16x128xbf16>, vector<128x64xbf16>, vector<16x64xf32> -> vector<16x64xf32>
      %c0_51 = arith.constant 0 : index
      %c0_52 = arith.constant 0 : index
      %59 = vector.load %arg16[%c0_51, %c0_52] : memref<1x64xf32, #tpu.memory_space<vmem>>, vector<1x64xf32>
      %60 = vector.broadcast %59 : vector<1x64xf32> to vector<16x64xf32>
      %61 = arith.addf %58, %60 : vector<16x64xf32>
      %cst_53 = arith.constant 0.000000e+00 : f32
      %62 = vector.broadcast %cst_53 : f32 to vector<16x64xf32>
      %63 = arith.maximumf %61, %62 : vector<16x64xf32>
      %64 = arith.truncf %63 : vector<16x64xf32> to vector<16x64xbf16>
      %c0_54 = arith.constant 0 : index
      %c0_55 = arith.constant 0 : index
      %65 = vector.load %arg17[%c0_54, %c0_55] : memref<64x5xbf16, #tpu.memory_space<vmem>>, vector<64x5xbf16>
      %cst_56 = arith.constant dense<0.000000e+00> : vector<16x5xf32>
      %66 = tpu.matmul %64, %65, %cst_56 {dimension_numbers = #tpu.dot_dimension_numbers<[1], [0], [0], [1], [0, 0, 1, 1], [], []>} : vector<16x64xbf16>, vector<64x5xbf16>, vector<16x5xf32> -> vector<16x5xf32>
      %c0_57 = arith.constant 0 : index
      %c0_58 = arith.constant 0 : index
      %67 = vector.load %arg18[%c0_57, %c0_58] : memref<1x5xf32, #tpu.memory_space<vmem>>, vector<1x5xf32>
      %68 = vector.broadcast %67 : vector<1x5xf32> to vector<16x5xf32>
      %69 = arith.addf %66, %68 : vector<16x5xf32>
      %70 = arith.negf %69 : vector<16x5xf32>
      %71 = math.exp %70 : vector<16x5xf32>
      %cst_59 = arith.constant 1.000000e+00 : f32
      %72 = vector.broadcast %cst_59 : f32 to vector<16x5xf32>
      %73 = arith.addf %72, %71 : vector<16x5xf32>
      %74 = arith.divf %72, %73 : vector<16x5xf32>
      %c0_60 = arith.constant 0 : index
      %c0_61 = arith.constant 0 : index
      %75 = vector.load %arg19[%c0_60, %c0_61] : memref<1x5xf32, #tpu.memory_space<vmem>>, vector<1x5xf32>
      %76 = vector.broadcast %75 : vector<1x5xf32> to vector<16x5xf32>
      %77 = arith.mulf %74, %76 : vector<16x5xf32>
      %cst_62 = arith.constant dense<0.000000e+00> : vector<16xf32>
      %78 = vector.multi_reduction <add>, %77, %cst_62 [1] : vector<16x5xf32> to vector<16xf32>
      %79 = vector.shape_cast %78 : vector<16xf32> to vector<16x1xf32>
      %c0_63 = arith.constant 0 : index
      %c0_64 = arith.constant 0 : index
      %80 = vector.load %arg20[%c0_63, %c0_64] : memref<1x1xf32, #tpu.memory_space<vmem>>, vector<1x1xf32>
      %81 = vector.broadcast %80 : vector<1x1xf32> to vector<16x1xf32>
      %82 = arith.addf %79, %81 : vector<16x1xf32>
      %83 = arith.negf %82 : vector<16x1xf32>
      %84 = math.exp %83 : vector<16x1xf32>
      %cst_65 = arith.constant 1.000000e+00 : f32
      %85 = vector.broadcast %cst_65 : f32 to vector<16x1xf32>
      %86 = arith.addf %85, %84 : vector<16x1xf32>
      %87 = arith.divf %85, %86 : vector<16x1xf32>
      %c0_66 = arith.constant 0 : index
      %c0_67 = arith.constant 0 : index
      %88 = vector.load %arg21[%c0_66, %c0_67] : memref<16x8xf32, #tpu.memory_space<vmem>>, vector<16x5xf32>
      tpu.vector_store %arg21[%c0_66, %c0_67], %74 {strides = array<i32>} : memref<16x8xf32, #tpu.memory_space<vmem>>, vector<16x5xf32>,
      %c0_68 = arith.constant 0 : index
      %c5 = arith.constant 5 : index
      %89 = vector.load %arg21[%c0_68, %c5] : memref<16x8xf32, #tpu.memory_space<vmem>>, vector<16x1xf32>
      tpu.vector_store %arg21[%c0_68, %c5], %87 {strides = array<i32>} : memref<16x8xf32, #tpu.memory_space<vmem>>, vector<16x1xf32>,
      %cst_69 = arith.constant 0.000000e+00 : f32
      %90 = vector.broadcast %cst_69 : f32 to vector<16x2xf32>
      %c0_70 = arith.constant 0 : index
      %c6 = arith.constant 6 : index
      %91 = vector.load %arg21[%c0_70, %c6] : memref<16x8xf32, #tpu.memory_space<vmem>>, vector<16x2xf32>
      tpu.vector_store %arg21[%c0_70, %c6], %90 {strides = array<i32>} : memref<16x8xf32, #tpu.memory_space<vmem>>, vector<16x2xf32>,
    } else {
    }
    return
  }
  func.func @transform_0(%arg0: i32, %arg1: i32) -> (i32, i32) {
    %c0_i32 = arith.constant 0 : i32
    return %arg0, %arg1 : i32, i32
  }
  func.func @transform_1(%arg0: i32, %arg1: i32) -> (i32, i32) {
    %c0_i32 = arith.constant 0 : i32
    return %arg0, %arg1 : i32, i32
  }
  func.func @transform_2(%arg0: i32, %arg1: i32) -> (i32, i32) {
    %c0_i32 = arith.constant 0 : i32
    %c0_i32_0 = arith.constant 0 : i32
    return %arg1, %c0_i32 : i32, i32
  }
  func.func @transform_3(%arg0: i32, %arg1: i32) -> (i32, i32) {
    %c0_i32 = arith.constant 0 : i32
    %c0_i32_0 = arith.constant 0 : i32
    return %arg1, %c0_i32 : i32, i32
  }
  func.func @transform_4(%arg0: i32, %arg1: i32) -> (i32, i32) {
    %c0_i32 = arith.constant 0 : i32
    %c0_i32_0 = arith.constant 0 : i32
    %c0_i32_1 = arith.constant 0 : i32
    return %c0_i32, %c0_i32_0 : i32, i32
  }
  func.func @transform_5(%arg0: i32, %arg1: i32) -> (i32, i32) {
    %c0_i32 = arith.constant 0 : i32
    %c0_i32_0 = arith.constant 0 : i32
    %c0_i32_1 = arith.constant 0 : i32
    return %c0_i32, %c0_i32_0 : i32, i32
  }
  func.func @transform_6(%arg0: i32, %arg1: i32) -> (i32, i32) {
    %c0_i32 = arith.constant 0 : i32
    %c0_i32_0 = arith.constant 0 : i32
    %c0_i32_1 = arith.constant 0 : i32
    return %c0_i32, %c0_i32_0 : i32, i32
  }
  func.func @transform_7(%arg0: i32, %arg1: i32) -> (i32, i32) {
    %c0_i32 = arith.constant 0 : i32
    %c0_i32_0 = arith.constant 0 : i32
    %c0_i32_1 = arith.constant 0 : i32
    return %c0_i32, %c0_i32_0 : i32, i32
  }
  func.func @transform_8(%arg0: i32, %arg1: i32) -> (i32, i32) {
    %c0_i32 = arith.constant 0 : i32
    %c0_i32_0 = arith.constant 0 : i32
    %c0_i32_1 = arith.constant 0 : i32
    return %c0_i32, %c0_i32_0 : i32, i32
  }
  func.func @transform_9(%arg0: i32, %arg1: i32) -> (i32, i32) {
    %c0_i32 = arith.constant 0 : i32
    %c0_i32_0 = arith.constant 0 : i32
    %c0_i32_1 = arith.constant 0 : i32
    return %c0_i32, %c0_i32_0 : i32, i32
  }
  func.func @transform_10(%arg0: i32, %arg1: i32) -> (i32, i32) {
    %c0_i32 = arith.constant 0 : i32
    %c0_i32_0 = arith.constant 0 : i32
    %c0_i32_1 = arith.constant 0 : i32
    return %c0_i32, %c0_i32_0 : i32, i32
  }
  func.func @transform_11(%arg0: i32, %arg1: i32) -> (i32, i32) {
    %c0_i32 = arith.constant 0 : i32
    %c0_i32_0 = arith.constant 0 : i32
    %c0_i32_1 = arith.constant 0 : i32
    return %c0_i32, %c0_i32_0 : i32, i32
  }
  func.func @transform_12(%arg0: i32, %arg1: i32) -> (i32, i32) {
    %c0_i32 = arith.constant 0 : i32
    %c0_i32_0 = arith.constant 0 : i32
    %c0_i32_1 = arith.constant 0 : i32
    return %c0_i32, %c0_i32_0 : i32, i32
  }
  func.func @transform_13(%arg0: i32, %arg1: i32) -> (i32, i32) {
    %c0_i32 = arith.constant 0 : i32
    %c0_i32_0 = arith.constant 0 : i32
    %c0_i32_1 = arith.constant 0 : i32
    return %c0_i32, %c0_i32_0 : i32, i32
  }
  func.func @transform_14(%arg0: i32, %arg1: i32) -> (i32, i32) {
    %c0_i32 = arith.constant 0 : i32
    %c0_i32_0 = arith.constant 0 : i32
    %c0_i32_1 = arith.constant 0 : i32
    return %c0_i32, %c0_i32_0 : i32, i32
  }
  func.func @transform_15(%arg0: i32, %arg1: i32) -> (i32, i32) {
    %c0_i32 = arith.constant 0 : i32
    %c0_i32_0 = arith.constant 0 : i32
    %c0_i32_1 = arith.constant 0 : i32
    return %c0_i32, %c0_i32_0 : i32, i32
  }
  func.func @transform_16(%arg0: i32, %arg1: i32) -> (i32, i32) {
    %c0_i32 = arith.constant 0 : i32
    %c0_i32_0 = arith.constant 0 : i32
    %c0_i32_1 = arith.constant 0 : i32
    return %c0_i32, %c0_i32_0 : i32, i32
  }
  func.func @transform_17(%arg0: i32, %arg1: i32) -> (i32, i32) {
    %c0_i32 = arith.constant 0 : i32
    %c0_i32_0 = arith.constant 0 : i32
    %c0_i32_1 = arith.constant 0 : i32
    return %c0_i32, %c0_i32_0 : i32, i32
  }
  func.func @transform_18(%arg0: i32, %arg1: i32) -> (i32, i32) {
    %c0_i32 = arith.constant 0 : i32
    %c0_i32_0 = arith.constant 0 : i32
    %c0_i32_1 = arith.constant 0 : i32
    return %c0_i32, %c0_i32_0 : i32, i32
  }
  func.func @transform_19(%arg0: i32, %arg1: i32) -> (i32, i32) {
    %c0_i32 = arith.constant 0 : i32
    %c0_i32_0 = arith.constant 0 : i32
    return %arg0, %c0_i32 : i32, i32
  }
}

module attributes {stable_mosaic.version = 11 : i64} {
  func.func @kernel(%arg0: i32, %arg1: i32, %arg2: memref<16x256xf32, #tpu.memory_space<vmem>>, %arg3: memref<16x1024xf32, #tpu.memory_space<vmem>>, %arg4: memref<256x512xbf16, #tpu.memory_space<vmem>>, %arg5: memref<1024x512xbf16, #tpu.memory_space<vmem>>, %arg6: memref<1x512xf32, #tpu.memory_space<vmem>>, %arg7: memref<1x512xf32, #tpu.memory_space<vmem>>, %arg8: memref<512x512xbf16, #tpu.memory_space<vmem>>, %arg9: memref<512x512xbf16, #tpu.memory_space<vmem>>, %arg10: memref<1x512xf32, #tpu.memory_space<vmem>>, %arg11: memref<512x256xbf16, #tpu.memory_space<vmem>>, %arg12: memref<1x256xf32, #tpu.memory_space<vmem>>, %arg13: memref<256x128xbf16, #tpu.memory_space<vmem>>, %arg14: memref<1x128xf32, #tpu.memory_space<vmem>>, %arg15: memref<128x64xbf16, #tpu.memory_space<vmem>>, %arg16: memref<1x64xf32, #tpu.memory_space<vmem>>, %arg17: memref<64x5xbf16, #tpu.memory_space<vmem>>, %arg18: memref<1x5xf32, #tpu.memory_space<vmem>>, %arg19: memref<1x5xf32, #tpu.memory_space<vmem>>, %arg20: memref<1x1xf32, #tpu.memory_space<vmem>>, %arg21: memref<16x8xf32, #tpu.memory_space<vmem>>, %arg22: memref<16x512xf32, #tpu.memory_space<vmem>>, %arg23: memref<16x512xf32, #tpu.memory_space<vmem>>) attributes {dimension_semantics = [#tpu.dimension_semantics<parallel>, #tpu.dimension_semantics<arbitrary>], iteration_bounds = array<i64: 2, 1>, scalar_prefetch = 0 : i64, scratch_operands = 2 : i64, tpu.core_type = #tpu.core_type<tc>, window_params = [{transform_indices = @transform_0, window_bounds = array<i64: 16, 256>}, {transform_indices = @transform_1, window_bounds = array<i64: 16, 1024>}, {transform_indices = @transform_2, window_bounds = array<i64: 256, 512>}, {transform_indices = @transform_3, window_bounds = array<i64: 1024, 512>}, {pipeline_mode = #tpu.pipeline_mode<synchronous>, transform_indices = @transform_4, window_bounds = array<i64: 1, 512>}, {pipeline_mode = #tpu.pipeline_mode<synchronous>, transform_indices = @transform_5, window_bounds = array<i64: 1, 512>}, {pipeline_mode = #tpu.pipeline_mode<synchronous>, transform_indices = @transform_6, window_bounds = array<i64: 512, 512>}, {pipeline_mode = #tpu.pipeline_mode<synchronous>, transform_indices = @transform_7, window_bounds = array<i64: 512, 512>}, {pipeline_mode = #tpu.pipeline_mode<synchronous>, transform_indices = @transform_8, window_bounds = array<i64: 1, 512>}, {pipeline_mode = #tpu.pipeline_mode<synchronous>, transform_indices = @transform_9, window_bounds = array<i64: 512, 256>}, {pipeline_mode = #tpu.pipeline_mode<synchronous>, transform_indices = @transform_10, window_bounds = array<i64: 1, 256>}, {pipeline_mode = #tpu.pipeline_mode<synchronous>, transform_indices = @transform_11, window_bounds = array<i64: 256, 128>}, {pipeline_mode = #tpu.pipeline_mode<synchronous>, transform_indices = @transform_12, window_bounds = array<i64: 1, 128>}, {pipeline_mode = #tpu.pipeline_mode<synchronous>, transform_indices = @transform_13, window_bounds = array<i64: 128, 64>}, {pipeline_mode = #tpu.pipeline_mode<synchronous>, transform_indices = @transform_14, window_bounds = array<i64: 1, 64>}, {pipeline_mode = #tpu.pipeline_mode<synchronous>, transform_indices = @transform_15, window_bounds = array<i64: 64, 5>}, {pipeline_mode = #tpu.pipeline_mode<synchronous>, transform_indices = @transform_16, window_bounds = array<i64: 1, 5>}, {pipeline_mode = #tpu.pipeline_mode<synchronous>, transform_indices = @transform_17, window_bounds = array<i64: 1, 5>}, {pipeline_mode = #tpu.pipeline_mode<synchronous>, transform_indices = @transform_18, window_bounds = array<i64: 1, 1>}, {transform_indices = @transform_19, window_bounds = array<i64: 16, 8>}]} {
    %c0_i32 = arith.constant 0 : i32
    %0 = arith.cmpi eq, %arg1, %c0_i32 : i32
    %1 = arith.extui %0 : i1 to i32
    %c0_i32_0 = arith.constant 0 : i32
    %2 = arith.cmpi ne, %1, %c0_i32_0 : i32
    scf.if %2 {
      %cst_19 = arith.constant 0.000000e+00 : f32
      %20 = vector.broadcast %cst_19 : f32 to vector<16x512xf32>
      %c0_20 = arith.constant 0 : index
      %c0_21 = arith.constant 0 : index
      %21 = vector.load %arg22[%c0_20, %c0_21] : memref<16x512xf32, #tpu.memory_space<vmem>>, vector<16x512xf32>
      tpu.vector_store %arg22[%c0_20, %c0_21], %20 {strides = array<i32>} : memref<16x512xf32, #tpu.memory_space<vmem>>, vector<16x512xf32>,
      %cst_22 = arith.constant 0.000000e+00 : f32
      %22 = vector.broadcast %cst_22 : f32 to vector<16x512xf32>
      %c0_23 = arith.constant 0 : index
      %c0_24 = arith.constant 0 : index
      %23 = vector.load %arg23[%c0_23, %c0_24] : memref<16x512xf32, #tpu.memory_space<vmem>>, vector<16x512xf32>
      tpu.vector_store %arg23[%c0_23, %c0_24], %22 {strides = array<i32>} : memref<16x512xf32, #tpu.memory_space<vmem>>, vector<16x512xf32>,
    } else {
    }
    %c0 = arith.constant 0 : index
    %c0_1 = arith.constant 0 : index
    %3 = vector.load %arg22[%c0, %c0_1] : memref<16x512xf32, #tpu.memory_space<vmem>>, vector<16x512xf32>
    %c0_2 = arith.constant 0 : index
    %c0_3 = arith.constant 0 : index
    %4 = vector.load %arg2[%c0_2, %c0_3] : memref<16x256xf32, #tpu.memory_space<vmem>>, vector<16x256xf32>
    %5 = arith.truncf %4 : vector<16x256xf32> to vector<16x256xbf16>
    %c0_4 = arith.constant 0 : index
    %c0_5 = arith.constant 0 : index
    %6 = vector.load %arg4[%c0_4, %c0_5] : memref<256x512xbf16, #tpu.memory_space<vmem>>, vector<256x512xbf16>
    %cst = arith.constant dense<0.000000e+00> : vector<16x512xf32>
    %7 = tpu.matmul %5, %6, %cst {dimension_numbers = #tpu.dot_dimension_numbers<[1], [0], [0], [1], [0, 0, 1, 1], [], []>} : vector<16x256xbf16>, vector<256x512xbf16>, vector<16x512xf32> -> vector<16x512xf32>
    %8 = arith.addf %3, %7 : vector<16x512xf32>
    %c0_6 = arith.constant 0 : index
    %c0_7 = arith.constant 0 : index
    %9 = vector.load %arg22[%c0_6, %c0_7] : memref<16x512xf32, #tpu.memory_space<vmem>>, vector<16x512xf32>
    tpu.vector_store %arg22[%c0_6, %c0_7], %8 {strides = array<i32>} : memref<16x512xf32, #tpu.memory_space<vmem>>, vector<16x512xf32>,
    %c0_8 = arith.constant 0 : index
    %c0_9 = arith.constant 0 : index
    %10 = vector.load %arg23[%c0_8, %c0_9] : memref<16x512xf32, #tpu.memory_space<vmem>>, vector<16x512xf32>
    %c0_10 = arith.constant 0 : index
    %c0_11 = arith.constant 0 : index
    %11 = vector.load %arg3[%c0_10, %c0_11] : memref<16x1024xf32, #tpu.memory_space<vmem>>, vector<16x1024xf32>
    %12 = arith.truncf %11 : vector<16x1024xf32> to vector<16x1024xbf16>
    %c0_12 = arith.constant 0 : index
    %c0_13 = arith.constant 0 : index
    %13 = vector.load %arg5[%c0_12, %c0_13] : memref<1024x512xbf16, #tpu.memory_space<vmem>>, vector<1024x512xbf16>
    %cst_14 = arith.constant dense<0.000000e+00> : vector<16x512xf32>
    %14 = tpu.matmul %12, %13, %cst_14 {dimension_numbers = #tpu.dot_dimension_numbers<[1], [0], [0], [1], [0, 0, 1, 1], [], []>} : vector<16x1024xbf16>, vector<1024x512xbf16>, vector<16x512xf32> -> vector<16x512xf32>
    %15 = arith.addf %10, %14 : vector<16x512xf32>
    %c0_15 = arith.constant 0 : index
    %c0_16 = arith.constant 0 : index
    %16 = vector.load %arg23[%c0_15, %c0_16] : memref<16x512xf32, #tpu.memory_space<vmem>>, vector<16x512xf32>
    tpu.vector_store %arg23[%c0_15, %c0_16], %15 {strides = array<i32>} : memref<16x512xf32, #tpu.memory_space<vmem>>, vector<16x512xf32>,
    %c0_i32_17 = arith.constant 0 : i32
    %17 = arith.cmpi eq, %arg1, %c0_i32_17 : i32
    %18 = arith.extui %17 : i1 to i32
    %c0_i32_18 = arith.constant 0 : i32
    %19 = arith.cmpi ne, %18, %c0_i32_18 : i32
    scf.if %19 {
      %c0_19 = arith.constant 0 : index
      %c0_20 = arith.constant 0 : index
      %20 = vector.load %arg22[%c0_19, %c0_20] : memref<16x512xf32, #tpu.memory_space<vmem>>, vector<16x512xf32>
      %c0_21 = arith.constant 0 : index
      %c0_22 = arith.constant 0 : index
      %21 = vector.load %arg6[%c0_21, %c0_22] : memref<1x512xf32, #tpu.memory_space<vmem>>, vector<1x512xf32>
      %22 = vector.broadcast %21 : vector<1x512xf32> to vector<16x512xf32>
      %23 = arith.addf %20, %22 : vector<16x512xf32>
      %c0_23 = arith.constant 0 : index
      %c0_24 = arith.constant 0 : index
      %24 = vector.load %arg23[%c0_23, %c0_24] : memref<16x512xf32, #tpu.memory_space<vmem>>, vector<16x512xf32>
      %c0_25 = arith.constant 0 : index
      %c0_26 = arith.constant 0 : index
      %25 = vector.load %arg7[%c0_25, %c0_26] : memref<1x512xf32, #tpu.memory_space<vmem>>, vector<1x512xf32>
      %26 = vector.broadcast %25 : vector<1x512xf32> to vector<16x512xf32>
      %27 = arith.addf %24, %26 : vector<16x512xf32>
      %28 = arith.truncf %23 : vector<16x512xf32> to vector<16x512xbf16>
      %c0_27 = arith.constant 0 : index
      %c0_28 = arith.constant 0 : index
      %29 = vector.load %arg8[%c0_27, %c0_28] : memref<512x512xbf16, #tpu.memory_space<vmem>>, vector<512x512xbf16>
      %cst_29 = arith.constant dense<0.000000e+00> : vector<16x512xf32>
      %30 = tpu.matmul %28, %29, %cst_29 {dimension_numbers = #tpu.dot_dimension_numbers<[1], [0], [0], [1], [0, 0, 1, 1], [], []>} : vector<16x512xbf16>, vector<512x512xbf16>, vector<16x512xf32> -> vector<16x512xf32>
      %31 = arith.truncf %27 : vector<16x512xf32> to vector<16x512xbf16>
      %c0_30 = arith.constant 0 : index
      %c0_31 = arith.constant 0 : index
      %32 = vector.load %arg9[%c0_30, %c0_31] : memref<512x512xbf16, #tpu.memory_space<vmem>>, vector<512x512xbf16>
      %cst_32 = arith.constant dense<0.000000e+00> : vector<16x512xf32>
      %33 = tpu.matmul %31, %32, %cst_32 {dimension_numbers = #tpu.dot_dimension_numbers<[1], [0], [0], [1], [0, 0, 1, 1], [], []>} : vector<16x512xbf16>, vector<512x512xbf16>, vector<16x512xf32> -> vector<16x512xf32>
      %34 = arith.addf %30, %33 : vector<16x512xf32>
      %c0_33 = arith.constant 0 : index
      %c0_34 = arith.constant 0 : index
      %35 = vector.load %arg10[%c0_33, %c0_34] : memref<1x512xf32, #tpu.memory_space<vmem>>, vector<1x512xf32>
      %36 = vector.broadcast %35 : vector<1x512xf32> to vector<16x512xf32>
      %37 = arith.addf %34, %36 : vector<16x512xf32>
      %cst_35 = arith.constant 0.000000e+00 : f32
      %38 = vector.broadcast %cst_35 : f32 to vector<16x512xf32>
      %39 = arith.maximumf %37, %38 : vector<16x512xf32>
      %40 = arith.truncf %39 : vector<16x512xf32> to vector<16x512xbf16>
      %c0_36 = arith.constant 0 : index
      %c0_37 = arith.constant 0 : index
      %41 = vector.load %arg11[%c0_36, %c0_37] : memref<512x256xbf16, #tpu.memory_space<vmem>>, vector<512x256xbf16>
      %cst_38 = arith.constant dense<0.000000e+00> : vector<16x256xf32>
      %42 = tpu.matmul %40, %41, %cst_38 {dimension_numbers = #tpu.dot_dimension_numbers<[1], [0], [0], [1], [0, 0, 1, 1], [], []>} : vector<16x512xbf16>, vector<512x256xbf16>, vector<16x256xf32> -> vector<16x256xf32>
      %c0_39 = arith.constant 0 : index
      %c0_40 = arith.constant 0 : index
      %43 = vector.load %arg12[%c0_39, %c0_40] : memref<1x256xf32, #tpu.memory_space<vmem>>, vector<1x256xf32>
      %44 = vector.broadcast %43 : vector<1x256xf32> to vector<16x256xf32>
      %45 = arith.addf %42, %44 : vector<16x256xf32>
      %cst_41 = arith.constant 0.000000e+00 : f32
      %46 = vector.broadcast %cst_41 : f32 to vector<16x256xf32>
      %47 = arith.maximumf %45, %46 : vector<16x256xf32>
      %48 = arith.truncf %47 : vector<16x256xf32> to vector<16x256xbf16>
      %c0_42 = arith.constant 0 : index
      %c0_43 = arith.constant 0 : index
      %49 = vector.load %arg13[%c0_42, %c0_43] : memref<256x128xbf16, #tpu.memory_space<vmem>>, vector<256x128xbf16>
      %cst_44 = arith.constant dense<0.000000e+00> : vector<16x128xf32>
      %50 = tpu.matmul %48, %49, %cst_44 {dimension_numbers = #tpu.dot_dimension_numbers<[1], [0], [0], [1], [0, 0, 1, 1], [], []>} : vector<16x256xbf16>, vector<256x128xbf16>, vector<16x128xf32> -> vector<16x128xf32>
      %c0_45 = arith.constant 0 : index
      %c0_46 = arith.constant 0 : index
      %51 = vector.load %arg14[%c0_45, %c0_46] : memref<1x128xf32, #tpu.memory_space<vmem>>, vector<1x128xf32>
      %52 = vector.broadcast %51 : vector<1x128xf32> to vector<16x128xf32>
      %53 = arith.addf %50, %52 : vector<16x128xf32>
      %cst_47 = arith.constant 0.000000e+00 : f32
      %54 = vector.broadcast %cst_47 : f32 to vector<16x128xf32>
      %55 = arith.maximumf %53, %54 : vector<16x128xf32>
      %56 = arith.truncf %55 : vector<16x128xf32> to vector<16x128xbf16>
      %c0_48 = arith.constant 0 : index
      %c0_49 = arith.constant 0 : index
      %57 = vector.load %arg15[%c0_48, %c0_49] : memref<128x64xbf16, #tpu.memory_space<vmem>>, vector<128x64xbf16>
      %cst_50 = arith.constant dense<0.000000e+00> : vector<16x64xf32>
      %58 = tpu.matmul %56, %57, %cst_50 {dimension_numbers = #tpu.dot_dimension_numbers<[1], [0], [0], [1], [0, 0, 1, 1], [], []>} : vector<16x128xbf16>, vector<128x64xbf16>, vector<16x64xf32> -> vector<16x64xf32>
      %c0_51 = arith.constant 0 : index
      %c0_52 = arith.constant 0 : index
      %59 = vector.load %arg16[%c0_51, %c0_52] : memref<1x64xf32, #tpu.memory_space<vmem>>, vector<1x64xf32>
      %60 = vector.broadcast %59 : vector<1x64xf32> to vector<16x64xf32>
      %61 = arith.addf %58, %60 : vector<16x64xf32>
      %cst_53 = arith.constant 0.000000e+00 : f32
      %62 = vector.broadcast %cst_53 : f32 to vector<16x64xf32>
      %63 = arith.maximumf %61, %62 : vector<16x64xf32>
      %64 = arith.truncf %63 : vector<16x64xf32> to vector<16x64xbf16>
      %c0_54 = arith.constant 0 : index
      %c0_55 = arith.constant 0 : index
      %65 = vector.load %arg17[%c0_54, %c0_55] : memref<64x5xbf16, #tpu.memory_space<vmem>>, vector<64x5xbf16>
      %cst_56 = arith.constant dense<0.000000e+00> : vector<16x5xf32>
      %66 = tpu.matmul %64, %65, %cst_56 {dimension_numbers = #tpu.dot_dimension_numbers<[1], [0], [0], [1], [0, 0, 1, 1], [], []>} : vector<16x64xbf16>, vector<64x5xbf16>, vector<16x5xf32> -> vector<16x5xf32>
      %c0_57 = arith.constant 0 : index
      %c0_58 = arith.constant 0 : index
      %67 = vector.load %arg18[%c0_57, %c0_58] : memref<1x5xf32, #tpu.memory_space<vmem>>, vector<1x5xf32>
      %68 = vector.broadcast %67 : vector<1x5xf32> to vector<16x5xf32>
      %69 = arith.addf %66, %68 : vector<16x5xf32>
      %70 = arith.negf %69 : vector<16x5xf32>
      %71 = math.exp %70 : vector<16x5xf32>
      %cst_59 = arith.constant 1.000000e+00 : f32
      %72 = vector.broadcast %cst_59 : f32 to vector<16x5xf32>
      %73 = arith.addf %72, %71 : vector<16x5xf32>
      %74 = arith.divf %72, %73 : vector<16x5xf32>
      %c0_60 = arith.constant 0 : index
      %c0_61 = arith.constant 0 : index
      %75 = vector.load %arg19[%c0_60, %c0_61] : memref<1x5xf32, #tpu.memory_space<vmem>>, vector<1x5xf32>
      %76 = vector.broadcast %75 : vector<1x5xf32> to vector<16x5xf32>
      %77 = arith.mulf %74, %76 : vector<16x5xf32>
      %cst_62 = arith.constant dense<0.000000e+00> : vector<16xf32>
      %78 = vector.multi_reduction <add>, %77, %cst_62 [1] : vector<16x5xf32> to vector<16xf32>
      %79 = vector.shape_cast %78 : vector<16xf32> to vector<16x1xf32>
      %c0_63 = arith.constant 0 : index
      %c0_64 = arith.constant 0 : index
      %80 = vector.load %arg20[%c0_63, %c0_64] : memref<1x1xf32, #tpu.memory_space<vmem>>, vector<1x1xf32>
      %81 = vector.broadcast %80 : vector<1x1xf32> to vector<16x1xf32>
      %82 = arith.addf %79, %81 : vector<16x1xf32>
      %83 = arith.negf %82 : vector<16x1xf32>
      %84 = math.exp %83 : vector<16x1xf32>
      %cst_65 = arith.constant 1.000000e+00 : f32
      %85 = vector.broadcast %cst_65 : f32 to vector<16x1xf32>
      %86 = arith.addf %85, %84 : vector<16x1xf32>
      %87 = arith.divf %85, %86 : vector<16x1xf32>
      %c0_66 = arith.constant 0 : index
      %c0_67 = arith.constant 0 : index
      %88 = vector.load %arg21[%c0_66, %c0_67] : memref<16x8xf32, #tpu.memory_space<vmem>>, vector<16x5xf32>
      tpu.vector_store %arg21[%c0_66, %c0_67], %74 {strides = array<i32>} : memref<16x8xf32, #tpu.memory_space<vmem>>, vector<16x5xf32>,
      %c0_68 = arith.constant 0 : index
      %c5 = arith.constant 5 : index
      %89 = vector.load %arg21[%c0_68, %c5] : memref<16x8xf32, #tpu.memory_space<vmem>>, vector<16x1xf32>
      tpu.vector_store %arg21[%c0_68, %c5], %87 {strides = array<i32>} : memref<16x8xf32, #tpu.memory_space<vmem>>, vector<16x1xf32>,
      %cst_69 = arith.constant 0.000000e+00 : f32
      %90 = vector.broadcast %cst_69 : f32 to vector<16x2xf32>
      %c0_70 = arith.constant 0 : index
      %c6 = arith.constant 6 : index
      %91 = vector.load %arg21[%c0_70, %c6] : memref<16x8xf32, #tpu.memory_space<vmem>>, vector<16x2xf32>
      tpu.vector_store %arg21[%c0_70, %c6], %90 {strides = array<i32>} : memref<16x8xf32, #tpu.memory_space<vmem>>, vector<16x2xf32>,
    } else {
    }
    return
  }
  func.func @transform_0(%arg0: i32, %arg1: i32) -> (i32, i32) {
    %c0_i32 = arith.constant 0 : i32
    return %arg0, %arg1 : i32, i32
  }
  func.func @transform_1(%arg0: i32, %arg1: i32) -> (i32, i32) {
    %c0_i32 = arith.constant 0 : i32
    return %arg0, %arg1 : i32, i32
  }
  func.func @transform_2(%arg0: i32, %arg1: i32) -> (i32, i32) {
    %c0_i32 = arith.constant 0 : i32
    %c0_i32_0 = arith.constant 0 : i32
    return %arg1, %c0_i32 : i32, i32
  }
  func.func @transform_3(%arg0: i32, %arg1: i32) -> (i32, i32) {
    %c0_i32 = arith.constant 0 : i32
    %c0_i32_0 = arith.constant 0 : i32
    return %arg1, %c0_i32 : i32, i32
  }
  func.func @transform_4(%arg0: i32, %arg1: i32) -> (i32, i32) {
    %c0_i32 = arith.constant 0 : i32
    %c0_i32_0 = arith.constant 0 : i32
    %c0_i32_1 = arith.constant 0 : i32
    return %c0_i32, %c0_i32_0 : i32, i32
  }
  func.func @transform_5(%arg0: i32, %arg1: i32) -> (i32, i32) {
    %c0_i32 = arith.constant 0 : i32
    %c0_i32_0 = arith.constant 0 : i32
    %c0_i32_1 = arith.constant 0 : i32
    return %c0_i32, %c0_i32_0 : i32, i32
  }
  func.func @transform_6(%arg0: i32, %arg1: i32) -> (i32, i32) {
    %c0_i32 = arith.constant 0 : i32
    %c0_i32_0 = arith.constant 0 : i32
    %c0_i32_1 = arith.constant 0 : i32
    return %c0_i32, %c0_i32_0 : i32, i32
  }
  func.func @transform_7(%arg0: i32, %arg1: i32) -> (i32, i32) {
    %c0_i32 = arith.constant 0 : i32
    %c0_i32_0 = arith.constant 0 : i32
    %c0_i32_1 = arith.constant 0 : i32
    return %c0_i32, %c0_i32_0 : i32, i32
  }
  func.func @transform_8(%arg0: i32, %arg1: i32) -> (i32, i32) {
    %c0_i32 = arith.constant 0 : i32
    %c0_i32_0 = arith.constant 0 : i32
    %c0_i32_1 = arith.constant 0 : i32
    return %c0_i32, %c0_i32_0 : i32, i32
  }
  func.func @transform_9(%arg0: i32, %arg1: i32) -> (i32, i32) {
    %c0_i32 = arith.constant 0 : i32
    %c0_i32_0 = arith.constant 0 : i32
    %c0_i32_1 = arith.constant 0 : i32
    return %c0_i32, %c0_i32_0 : i32, i32
  }
  func.func @transform_10(%arg0: i32, %arg1: i32) -> (i32, i32) {
    %c0_i32 = arith.constant 0 : i32
    %c0_i32_0 = arith.constant 0 : i32
    %c0_i32_1 = arith.constant 0 : i32
    return %c0_i32, %c0_i32_0 : i32, i32
  }
  func.func @transform_11(%arg0: i32, %arg1: i32) -> (i32, i32) {
    %c0_i32 = arith.constant 0 : i32
    %c0_i32_0 = arith.constant 0 : i32
    %c0_i32_1 = arith.constant 0 : i32
    return %c0_i32, %c0_i32_0 : i32, i32
  }
  func.func @transform_12(%arg0: i32, %arg1: i32) -> (i32, i32) {
    %c0_i32 = arith.constant 0 : i32
    %c0_i32_0 = arith.constant 0 : i32
    %c0_i32_1 = arith.constant 0 : i32
    return %c0_i32, %c0_i32_0 : i32, i32
  }
  func.func @transform_13(%arg0: i32, %arg1: i32) -> (i32, i32) {
    %c0_i32 = arith.constant 0 : i32
    %c0_i32_0 = arith.constant 0 : i32
    %c0_i32_1 = arith.constant 0 : i32
    return %c0_i32, %c0_i32_0 : i32, i32
  }
  func.func @transform_14(%arg0: i32, %arg1: i32) -> (i32, i32) {
    %c0_i32 = arith.constant 0 : i32
    %c0_i32_0 = arith.constant 0 : i32
    %c0_i32_1 = arith.constant 0 : i32
    return %c0_i32, %c0_i32_0 : i32, i32
  }
  func.func @transform_15(%arg0: i32, %arg1: i32) -> (i32, i32) {
    %c0_i32 = arith.constant 0 : i32
    %c0_i32_0 = arith.constant 0 : i32
    %c0_i32_1 = arith.constant 0 : i32
    return %c0_i32, %c0_i32_0 : i32, i32
  }
  func.func @transform_16(%arg0: i32, %arg1: i32) -> (i32, i32) {
    %c0_i32 = arith.constant 0 : i32
    %c0_i32_0 = arith.constant 0 : i32
    %c0_i32_1 = arith.constant 0 : i32
    return %c0_i32, %c0_i32_0 : i32, i32
  }
  func.func @transform_17(%arg0: i32, %arg1: i32) -> (i32, i32) {
    %c0_i32 = arith.constant 0 : i32
    %c0_i32_0 = arith.constant 0 : i32
    %c0_i32_1 = arith.constant 0 : i32
    return %c0_i32, %c0_i32_0 : i32, i32
  }
  func.func @transform_18(%arg0: i32, %arg1: i32) -> (i32, i32) {
    %c0_i32 = arith.constant 0 : i32
    %c0_i32_0 = arith.constant 0 : i32
    %c0_i32_1 = arith.constant 0 : i32
    return %c0_i32, %c0_i32_0 : i32, i32
  }
  func.func @transform_19(%arg0: i32, %arg1: i32) -> (i32, i32) {
    %c0_i32 = arith.constant 0 : i32
    %c0_i32_0 = arith.constant 0 : i32
    return %arg0, %c0_i32 : i32, i32
  }
}

</mosaic_0001>

<bundles_post_ra>
// kernel: tpu_custom_call.1
= control target key start
LH: loop header
LB: loop body
LE: loop exit
PB: predicated region body
PF: predicated region fallthrough
CT: control target
= control target key end

     0   :  { %s9057_s0 = inlined_call_operand.hbm [shape: f32[32,256], index: 0, kind: input, shape index: {}]   ;;  %s9058_s1 = inlined_call_operand.hbm [shape: f32[32,1024], index: 1, kind: input, shape index: {}]   ;;  %s9059_s2 = inlined_call_operand.hbm [shape: bf16[256,512], index: 2, kind: input, shape index: {}]   ;;  %s9060_s3 = inlined_call_operand.hbm [shape: bf16[1024,512], index: 3, kind: input, shape index: {}]   ;;  %s9061_s4 = inlined_call_operand.vmem [shape: f32[1,512], index: 4, kind: input, shape index: {}]   ;;  %s9062_s5 = inlined_call_operand.vmem [shape: f32[1,512], index: 5, kind: input, shape index: {}]   ;;  %s9063_s6 = inlined_call_operand.hbm [shape: bf16[512,512], index: 6, kind: input, shape index: {}]   ;;  %s9064_s7 = inlined_call_operand.hbm [shape: bf16[512,512], index: 7, kind: input, shape index: {}]   ;;  %s9065_s8 = inlined_call_operand.vmem [shape: f32[1,512], index: 8, kind: input, shape index: {}]   ;;  %s9066_s9 = inlined_call_operand.hbm [shape: bf16[512,256], index: 9, kind: input, shape index: {}]   ;;  %s9067_s10 = inlined_call_operand.vmem [shape: f32[1,256], index: 10, kind: input, shape index: {}]   ;;  %s9068_s11 = inlined_call_operand.vmem [shape: bf16[256,128], index: 11, kind: input, shape index: {}]   ;;  %s9069_s12 = inlined_call_operand.vmem [shape: f32[1,128], index: 12, kind: input, shape index: {}]   ;;  %s9070_s13 = inlined_call_operand.vmem [shape: bf16[128,64], index: 13, kind: input, shape index: {}]   ;;  %s9071_s14 = inlined_call_operand.vmem [shape: f32[1,64], index: 14, kind: input, shape index: {}]   ;;  %s9072_s15 = inlined_call_operand.vmem [shape: bf16[64,5], index: 15, kind: input, shape index: {}]   ;;  %s9073_s16 = inlined_call_operand.vmem [shape: f32[1,5], index: 16, kind: input, shape index: {}]   ;;  %s9074_s17 = inlined_call_operand.vmem [shape: f32[1,5], index: 17, kind: input, shape index: {}]   ;;  %s9075_s18 = inlined_call_operand.<no memory space> [shape: f32[1,1], index: 18, kind: input, shape index: {}]   ;;  %s9076_s19 = inlined_call_operand.vmem [shape: f32[32,8], index: 19, kind: output, shape index: {}]  }
   0x1   :  { %9083 = sst [smem:[#allocation25_spill]] %s9057_s0  ;;  %v24_v0 = vstv %s9075_s18 }
   0x2   :  { %9084 = sst [smem:[#allocation26_spill]] %s9058_s1  ;;  %25 = vst [vmem:[#allocation4] sm:$0x1] %v24_v0 }
   0x3   :  { %9085 = sst [smem:[#allocation27_spill]] %s9059_s2 }
   0x4   :  { %9086 = sst [smem:[#allocation28_spill]] %s9060_s3 }
   0x5   :  { %9087 = sst [smem:[#allocation29_spill]] %s9063_s6 }
   0x6   :  { %9088 = sst [smem:[#allocation30_spill]] %s9064_s7 }
   0x7   :  { %9089 = sst [smem:[#allocation31_spill]] %s9066_s9 }
   0x8   :  { %9090 = sst [smem:[#allocation32_spill]] %s9067_s10 }
   0x9   :  { %9091 = sst [smem:[#allocation33_spill]] %s9069_s12 }
   0xa   :  { %9092 = sst [smem:[#allocation34_spill]] %s9071_s14 }
   0xb   :  { %9093 = sst [smem:[#allocation35_spill]] %s9072_s15 }
   0xc   :  { %9094 = sst [smem:[#allocation36_spill]] %s9073_s16 }
   0xd   :  { %9095 = sst [smem:[#allocation37_spill]] %s9074_s17 }
   0xe   :  { %9096 = sst [smem:[#allocation38_spill]] %s9076_s19 }
   0xf   :  { %26 = vsyncpa [#allocation6], 0 }
  0x10   :  { %28 = vsyncpa [#allocation6 + $0x1], 0 }
  0x11   :  { %29 = vsyncpa [#allocation8], 0 }
  0x12   :  { %31 = vsyncpa [#allocation8 + $0x1], 0 }
  0x13   :  { %32 = vsyncpa [#allocation11], 0 }
  0x14   :  { %33 = vsyncpa [#allocation14], 0  ;;  %s8605_s20 = smov 0   ;;  %s8607_s21 = smov 0  }
  0x15   :  { %s8609_s1 = smov 0   ;;  %s8611_s22 = smov 0  }
  0x16   :  { %s8613_s2 = smov 0   ;;  %s8615_s23 = smov 0  }
  0x17 LB: > { %9097 = sst [smem:[#allocation21_spill]] %s8472_s1  ;;  %s9077_s18 = sadd.s32 4294967295, %s8484_s23   ;;  %s8484_s23 = sphi %s8615_s23, %s39_s23   ;;  %s8480_s2 = sphi %s8613_s2, %s9132_s2   ;;  %s8476_s22 = sphi %s8611_s22, %s9131_s22   ;;  %s8472_s1 = sphi %s8609_s1, %s9127_s1   ;;  %s8468_s21 = sphi %s8607_s21, %s9130_s21   ;;  %s8464_s20 = sphi %s8605_s20, %s9129_s20  }
  0x18   : > { %9098 = sst [smem:[#allocation22_spill]] %s8476_s22  ;;  %p6331_p0 = scmp.ge.s32.totalorder %s8484_s23, 1 }
  0x19   : > { %p8639_p1 = scmp.eq.s32.totalorder %s9077_s18, 0  ;;  %p505_p2 = scmp.lt.s32.totalorder %s8484_s23, 3 }
  0x1a   : > { %s8486_s3 = smov [#allocation9]   ;;  %s8487_s28 = smov [#allocation10]  }
  0x1b   : > { %p8644_p3 = pnand %p6331_p0, %p505_p2  ;;  %s521_s26 = sshll.u32 %s8486_s3, 4  ;;  %s522_s26 = int_to_ptr.vmem [resolvable:$true] %s521_s26 }
  0x1c   : > { %s538_s29 = sshll.u32 %s8487_s28, 4  ;;  %s8488_s0 = smov [#allocation13]   ;;  %s539_s29 = int_to_ptr.vmem [resolvable:$true] %s538_s29 }
  0x1d   : > { %p7132_p4 = pneg %p8644_p3  ;;  %s570_s30 = sshll.u32 %s8488_s0, 4  ;;  %s571_s30 = int_to_ptr.vmem [resolvable:$true] %s570_s30 }
  0x1e   : > { %s8243_s3 = scalar_lea.vmem %s522_s26, 8192  ;;  %p8251_p10 = scmp.lt.s32.totalorder %s522_s26, %s522_s26 }
  0x1f   : > { %p8652_p5 = pnand %p7132_p4, %p8639_p1  ;;  %p8244_p7 = scmp.ne.s32.totalorder %s522_s26, %s8243_s3 }
  0x20   : > { %p8252_p11 = scmp.lt.s32.totalorder %s8243_s3, %s8243_s3 }
  0x21   : > { %p8658_p6 = pneg %p8652_p5 }
  0x22   : > { %p8253_p12 = por %p8252_p11, %p8251_p10 }
  0x23   : > { %p8246_p8 = pnand %p8244_p7, %p8658_p6 }
  0x25   : > { %p8247_p9 = pneg %p8246_p8 }
  0x27   : > { %p8254_p13 = pnand %p8253_p12, %p8247_p9 }
  0x29   : > { %8257 = shalt.err (!%p8254_p13)
}
  0x2a   : > { %s9078_s28 = smov 256   ;;  %s9079_s0 = smov 16  }
  0x2b   : > { %s9103_s16 = sld [smem:[#allocation27_spill]]  ;;  %s8269_s22 = scalar_lea.vmem %s539_s29, 32768 }
  0x2c   : > { %p8270_p0 = scmp.ne.s32.totalorder %s539_s29, %s8269_s22  ;;  %p8277_p7 = scmp.lt.s32.totalorder %s539_s29, %s539_s29 }
  0x2d   : > { %p8278_p8 = scmp.lt.s32.totalorder %s8269_s22, %s8269_s22 }
  0x2e   : > { %p8272_p2 = pnand %p8270_p0, %p8658_p6 }
  0x2f   : > { %p8279_p9 = por %p8278_p8, %p8277_p7 }
  0x30   : > { %p8273_p4 = pneg %p8272_p2 }
  0x31   : > { %7135 = dma.hbm_to_vmem [thread:$0]  (!%p8652_p5), %s9103_s16, 8192, %s522_s26, [#allocation8], %s9078_s28, %s9078_s28, %s9079_s0  }
  0x32   : > { %p8280_p10 = pnand %p8279_p9, %p8273_p4 }
  0x34   : > { %8283 = shalt.err (!%p8280_p10)
}
  0x35   : > { %s9104_s12 = sld [smem:[#allocation28_spill]]  ;;  %s8295_s16 = scalar_lea.vmem %s571_s30, 16384 }
  0x36   : > { %p8296_p11 = scmp.ne.s32.totalorder %s571_s30, %s8295_s16  ;;  %p8303_p0 = scmp.lt.s32.totalorder %s571_s30, %s571_s30 }
  0x37   : > { %p8304_p2 = scmp.lt.s32.totalorder %s8295_s16, %s8295_s16 }
  0x38   : > { %p8298_p12 = pnand %p8296_p11, %p8658_p6 }
  0x39   : > { %p8305_p4 = por %p8304_p2, %p8303_p0 }
  0x3a   : > { %p8299_p13 = pneg %p8298_p12 }
  0x3b   : > { %7138 = dma.hbm_to_vmem [thread:$0]  (!%p8652_p5), %s9104_s12, 32768, %s539_s29, [#allocation11], %s9078_s28, %s9078_s28, %s9079_s0  }
  0x3c   : > { %p8306_p7 = pnand %p8305_p4, %p8299_p13 }
  0x3e   : > { %8309 = shalt.err (!%p8306_p7)
}
  0x3f   : > { %s9105_s7 = sld [smem:[#allocation30_spill]]  ;;  %s8491_s12 = smov [#allocation12]  }
  0x40   : > { %s557_s19 = sshll.u32 %s8491_s12, 4  ;;  %s8492_s22 = smov [#allocation15]   ;;  %s558_s19 = int_to_ptr.vmem [resolvable:$true] %s557_s19 }
  0x41   : > { %s586_s26 = sshll.u32 %s8492_s22, 4  ;;  %s8321_s29 = scalar_lea.vmem %s558_s19, 16384  ;;  %s587_s26 = int_to_ptr.vmem [resolvable:$true] %s586_s26 }
  0x42   : > { %p8322_p8 = scmp.ne.s32.totalorder %s558_s19, %s8321_s29  ;;  %p8329_p11 = scmp.lt.s32.totalorder %s558_s19, %s558_s19 }
  0x43   : > { %p8330_p12 = scmp.lt.s32.totalorder %s8321_s29, %s8321_s29 }
  0x44   : > { %p8324_p9 = pnand %p8322_p8, %p8658_p6 }
  0x45   : > { %7144 = dma.hbm_to_vmem [thread:$0]  (!%p8652_p5), %s9105_s7, 16384, %s571_s30, [#allocation14], %s9078_s28, %s9078_s28, %s9079_s0  }
  0x46   : > { %p8325_p10 = pneg %p8324_p9  ;;  %p8331_p13 = por %p8330_p12, %p8329_p11 }
  0x48   : > { %p8332_p0 = pnand %p8331_p13, %p8325_p10 }
  0x4a   : > { %8335 = shalt.err (!%p8332_p0)
}
  0x4b   : > { %s9106_s6 = sld [smem:[#allocation29_spill]]  ;;  %s8347_s16 = scalar_lea.vmem %s587_s26, 8192 }
  0x4c   : > { %p8348_p2 = scmp.ne.s32.totalorder %s587_s26, %s8347_s16  ;;  %p8355_p8 = scmp.lt.s32.totalorder %s587_s26, %s587_s26 }
  0x4d   : > { %p8356_p9 = scmp.lt.s32.totalorder %s8347_s16, %s8347_s16 }
  0x4e   : > { %p8350_p4 = pnand %p8348_p2, %p8658_p6 }
  0x4f   : > { %p8357_p10 = por %p8356_p9, %p8355_p8 }
  0x50   : > { %p8351_p7 = pneg %p8350_p4 }
  0x51   : > { %7141 = dma.hbm_to_vmem [thread:$0]  (!%p8652_p5), %s9106_s6, 16384, %s558_s19, [#allocation11], %s9078_s28, %s9078_s28, %s9079_s0  }
  0x52   : > { %p8358_p11 = pnand %p8357_p10, %p8351_p7 }
  0x54   : > { %8361 = shalt.err (!%p8358_p11)
}
  0x55   : > { %s8493_s17 = smov 128   ;;  %s8494_s18 = smov 8  }
  0x56   : > { %s9107_s9 = sld [smem:[#allocation31_spill]]  ;;  %s51_s19 = sadd.s32 1, %s8480_s2 }
  0x57   : > { %p53_p6 = scmp.ge.s32.totalorder %s51_s19, 2  ;;  %s60_s22 = sadd.s32 1, %s8472_s1 }
  0x58   : > { %p67_p12 = scmp.ne.s32.totalorder %s8472_s1, %s8468_s21  ;;  %p68_p13 = scmp.eq.s32.totalorder %s8484_s23, 0 }
  0x59   : > { %s9134_s19 = smov (%p53_p6, %s51_s19), 0  ;;  %p73_p2 = scmp.ne.s32.totalorder %s8468_s21, %s8464_s20 }
  0x5a   : > { %9108 = sst [smem:[#allocation23_spill]] %s9134_s19  ;;  %p8716_p0 = por %p68_p13, %p67_p12 }
  0x5b   : > { %s55_s27 = ssub.s32 %s8480_s2, %s9134_s19  ;;  %p7160_p4 = scmp.lt.s32.totalorder %s8484_s23, 2 }
  0x5c   : > { %7147 = dma.hbm_to_vmem [thread:$0]  (!%p8652_p5), %s9107_s9, 8192, %s587_s26, [#allocation14], %s8493_s17, %s8493_s17, %s8494_s18  }
  0x5d   : > { %p58_p7 = scmp.eq.s32.totalorder %s55_s27, 0  ;;  %p8727_p5 = por %p8639_p1, %p73_p2 }
  0x5e   : > { %s8732_s30 = sand.u32 1, %s8472_s1   ;;  %s7037_s3 = sshll.u32 %s8480_s2, 9 }
  0x5f   : > { %s8736_s16 = scalar_select %p58_p7, %s8472_s1, %s60_s22  }
  0x60   : > { %s6338_s17 = sshll.u32 %s8732_s30, 5  ;;  %s9112_s12 = sld [smem:[#allocation25_spill]] }
  0x61   : > { %9111 = sst [smem:[#allocation24_spill]] %s8736_s16  ;;  %s631_s28 = scalar_lea.vmem [#allocation5], %s6338_s17 }
  0x62   : > { %s641_s0 = sshll.u32 %s631_s28, 4  ;;  %p8744_p8 = pnand %p7160_p4, %p8716_p0  ;;  %s642_s0 = int_to_ptr.vmem [resolvable:$true] %s641_s0 }
  0x63   : > { %s651_s6 = sand.u32 1, %s8484_s23   ;;  %s628_s7 = scalar_lea.sflag [#allocation6], %s8732_s30 }
  0x64   : > { %p8364_p9 = pneg %p8744_p8  ;;  %s8375_s22 = scalar_lea.vmem %s642_s0, 512 }
  0x65   : > { %p8376_p10 = scmp.ne.s32.totalorder %s642_s0, %s8375_s22 }
  0x66   : > { %s640_s20 = scalar_lea.hbm %s9112_s12, %s7037_s3  ;;  %s8495_s3 = smov [#allocation5]  }
  0x67   : > { %p8378_p11 = pnand %p8376_p10, %p8364_p9  ;;  %s8380_s28 = sshll.u32 %s8495_s3, 4  ;;  %s8381_s28 = int_to_ptr.vmem [resolvable:$false] %s8380_s28 }
  0x68   : > { %s8382_s29 = scalar_lea.vmem %s8381_s28, 1024  ;;  %p8383_p12 = scmp.lt.s32.totalorder %s642_s0, %s8381_s28 }
  0x69   : > { %p8379_p6 = pneg %p8378_p11  ;;  %p8384_p13 = scmp.lt.s32.totalorder %s8382_s29, %s8375_s22 }
  0x6b   : > { %p8385_p0 = por %p8384_p13, %p8383_p12 }
  0x6d   : > { %p8386_p2 = pnand %p8385_p0, %p8379_p6 }
  0x6f   : > { %8389 = shalt.err (!%p8386_p2)
}
  0x70   : > { %s9114_s17 = smov 16   ;;  %s9115_s18 = smov 256  }
  0x71   : > { %7151 = dma.hbm_to_vmem [thread:$0]  (!%p8744_p8), %s640_s20, 512, %s642_s0, %s628_s7, %s9115_s18, %s9115_s18, %s9114_s17  }
  0x72   : > { %s6342_s14 = sshll.u32 %s8732_s30, 7  ;;  %s7039_s12 = sshll.u32 %s8480_s2, 11 }
  0x73   : > { %s9116_s19 = sld [smem:[#allocation26_spill]]  ;;  %s655_s28 = scalar_lea.vmem [#allocation7], %s6342_s14 }
  0x74   : > { %s665_s22 = sshll.u32 %s655_s28, 4  ;;  %s652_s29 = scalar_lea.sflag [#allocation8], %s651_s6  ;;  %s666_s22 = int_to_ptr.vmem [resolvable:$true] %s665_s22 }
  0x75   : > { %s8403_s1 = scalar_lea.vmem %s666_s22, 2048  ;;  %s8496_s15 = smov [#allocation7]  }
  0x76   : > { %p8404_p4 = scmp.ne.s32.totalorder %s666_s22, %s8403_s1  ;;  %s8408_s10 = sshll.u32 %s8496_s15, 4  ;;  %s8409_s10 = int_to_ptr.vmem [resolvable:$false] %s8408_s10 }
  0x77   : > { %s8410_s7 = scalar_lea.vmem %s8409_s10, 4096  ;;  %p8411_p11 = scmp.lt.s32.totalorder %s666_s22, %s8409_s10 }
  0x78   : > { %p8406_p7 = pnand %p8404_p4, %p8364_p9  ;;  %p8412_p6 = scmp.lt.s32.totalorder %s8410_s7, %s8403_s1 }
  0x79   : > { %s664_s16 = scalar_lea.hbm %s9116_s19, %s7039_s12 }
  0x7a   : > { %p8407_p10 = pneg %p8406_p7  ;;  %p8413_p12 = por %p8412_p6, %p8411_p11 }
  0x7c   : > { %p8414_p13 = pnand %p8413_p12, %p8407_p10 }
  0x7e   : > { %8417 = shalt.err (!%p8414_p13)
}
  0x7f   : > { %s8497_s9 = smov 1024   ;;  %s8498_s0 = smov 64  }
  0x80   : > { %7154 = dma.hbm_to_vmem [thread:$0]  (!%p8744_p8), %s664_s16, 2048, %s666_s22, %s652_s29, %s8497_s9, %s8497_s9, %s8498_s0  }
  0x81   : > { %677 = sbr.rel (%p8644_p3) target bundleno = 2213 (0x8a5), region = 96  ;;  %s679_s6 = sand.u32 (!%p8644_p3), 1, %s8468_s21  }
  0x82   : > { %s6347_s19 = sshll.u32 (!%p8644_p3), %s679_s6, 5  ;;  %s680_s15 = scalar_lea.sflag (!%p8644_p3), [#allocation6], %s679_s6 }
  0x83   : > { %s8773_s30 = scalar_lea.vmem (!%p8644_p3), [#allocation5], %s6347_s19 }
  0x86   : > { %8443 = dma.done.wait (%p8727_p5), %s680_s15, 512  }
  0x87   : > { %8445 = vsyncadd (%p8727_p5), %s680_s15, 4294966784  ;;  %s9117_s10 = sadd.s32 4294967295, %s8484_s23   ;;  %s6348_s16 = sshll.u32 %s679_s6, 7 }
  0x88   : > { %s688_s1 = sand.u32 1, %s9117_s10   ;;  %s8781_s25 = scalar_lea.vmem [#allocation7], %s6348_s16 }
  0x89   : > { %s689_s20 = scalar_lea.sflag [#allocation8], %s688_s1 }
  0x8a   : > { %8447 = dma.done.wait (%p8727_p5), %s689_s20, 2048  }
  0x8b   : > { %8449 = vsyncadd (%p8727_p5), %s689_s20, 4294965248 }
  0x8c   : > { %8451 = dma.done.wait (%p8639_p1), [#allocation8], 8192  }
  0x8d   : > { %8453 = vsyncadd (%p8639_p1), [#allocation8], 4294959104 }
  0x8e   : > { %8455 = dma.done.wait (%p8639_p1), [#allocation11], 49152  }
  0x8f   : > { %8457 = vsyncadd (%p8639_p1), [#allocation11], 4294918144 }
  0x90   : > { %8459 = dma.done.wait (%p8639_p1), [#allocation14], 24576  }
  0x91   : > { %8461 = vsyncadd (%p8639_p1), [#allocation14], 4294942720  ;;  %v7228_v1 = vld [vmem:[#allocation9 + $0xe4] ss:$16 sps:$4 sm:$0xff]   ;;  %v7230_v2 = vld [vmem:[#allocation9 + $0xec] ss:$16 sps:$4 sm:$0xff]  }
  0x92   : > { %1203 = vmatprep.subr.bf16.mxu0 %v7228_v1  ;;  %v7232_v3 = vld [vmem:[#allocation9 + $0xe0] ss:$16 sps:$4 sm:$0xff]   ;;  %v7233_v4 = vld [vmem:[#allocation9 + $0xe8] ss:$16 sps:$4 sm:$0xff]   ;;  %1246 = vmatprep.subr.bf16.mxu1 %v7230_v2  ;;  %v7234_v5 = vld [vmem:[#allocation9 + $0xc4] ss:$16 sps:$4 sm:$0xff]  }
  0x93   : > { %1204 = vmatpush1.bf16.msra.mxu0 %v7232_v3  ;;  %1247 = vmatpush1.bf16.msra.mxu1 %v7233_v4  ;;  %v7236_v6 = vld [vmem:[#allocation9 + $0xcc] ss:$16 sps:$4 sm:$0xff]   ;;  %v7238_v7 = vld [vmem:[#allocation9 + $0xc0] ss:$16 sps:$4 sm:$0xff]   ;;  %v7239_v8 = vld [vmem:[#allocation9 + $0xc8] ss:$16 sps:$4 sm:$0xff]  }
  0x94   : > { %1205 = vmatprep.subr.bf16.mxu0 %v7234_v5  ;;  %1248 = vmatprep.subr.bf16.mxu1 %v7236_v6  ;;  %v7240_v9 = vld [vmem:[#allocation9 + $0xa4] ss:$16 sps:$4 sm:$0xff]   ;;  %v7242_v10 = vld [vmem:[#allocation9 + $0xac] ss:$16 sps:$4 sm:$0xff]   ;;  %v7244_v11 = vld [vmem:[#allocation9 + $0xa0] ss:$16 sps:$4 sm:$0xff]  }
  0x95   : > { %v7245_v12 = vld [vmem:[#allocation9 + $0xa8] ss:$16 sps:$4 sm:$0xff]   ;;  %v7246_v13 = vld [vmem:[#allocation9 + $0x84] ss:$16 sps:$4 sm:$0xff]   ;;  %v7248_v14 = vld [vmem:[#allocation9 + $0x8c] ss:$16 sps:$4 sm:$0xff]  }
  0x96   : > { %v7250_v15 = vld [vmem:[#allocation9 + $0x80] ss:$16 sps:$4 sm:$0xff]   ;;  %v7251_v16 = vld [vmem:[#allocation9 + $0x88] ss:$16 sps:$4 sm:$0xff]   ;;  %v7252_v17 = vld [vmem:[#allocation9 + $0x64] ss:$16 sps:$4 sm:$0xff]  }
  0x97   : > { %1206 = vmatpush1.bf16.msra.mxu0 %v7238_v7  ;;  %1249 = vmatpush1.bf16.msra.mxu1 %v7239_v8  ;;  %v7254_v18 = vld [vmem:[#allocation9 + $0x6c] ss:$16 sps:$4 sm:$0xff]   ;;  %v7256_v19 = vld [vmem:[#allocation9 + $0x60] ss:$16 sps:$4 sm:$0xff]   ;;  %v7257_v20 = vld [vmem:[#allocation9 + $0x68] ss:$16 sps:$4 sm:$0xff]  }
  0x98   : > { %1207 = vmatprep.subr.bf16.mxu0 %v7240_v9  ;;  %1250 = vmatprep.subr.bf16.mxu1 %v7242_v10  ;;  %v7258_v21 = vld [vmem:[#allocation9 + $0x44] ss:$16 sps:$4 sm:$0xff]   ;;  %v7260_v22 = vld [vmem:[#allocation9 + $0x4c] ss:$16 sps:$4 sm:$0xff]   ;;  %v7262_v23 = vld [vmem:[#allocation9 + $0x40] ss:$16 sps:$4 sm:$0xff]  }
  0x99   : > { %v7263_v24 = vld [vmem:[#allocation9 + $0x48] ss:$16 sps:$4 sm:$0xff]   ;;  %v7264_v25 = vld [vmem:[#allocation9 + $0x24] ss:$16 sps:$4 sm:$0xff]   ;;  %v7266_v26 = vld [vmem:[#allocation9 + $0x2c] ss:$16 sps:$4 sm:$0xff]  }
  0x9a   : > { %v7268_v27 = vld [vmem:[#allocation9 + $0x20] ss:$16 sps:$4 sm:$0xff]   ;;  %v7269_v28 = vld [vmem:[#allocation9 + $0x28] ss:$16 sps:$4 sm:$0xff]   ;;  %v7270_v29 = vld [vmem:[#allocation9 + $0x4] ss:$16 sps:$4 sm:$0xff]  }
  0x9b   : > { %1208 = vmatpush1.bf16.msra.mxu0 %v7244_v11  ;;  %1251 = vmatpush1.bf16.msra.mxu1 %v7245_v12  ;;  %v7272_v30 = vld [vmem:[#allocation9 + $0xc] ss:$16 sps:$4 sm:$0xff]   ;;  %v7274_v31 = vld [vmem:[#allocation9] ss:$16 sps:$4 sm:$0xff]   ;;  %v7275_v32 = vld [vmem:[#allocation9 + $0x8] ss:$16 sps:$4 sm:$0xff]  }
  0x9c   : > { %1209 = vmatprep.subr.bf16.mxu0 %v7246_v13  ;;  %1252 = vmatprep.subr.bf16.mxu1 %v7248_v14  ;;  %v7276_v33 = vld [vmem:[#allocation9 + $0x1e4] ss:$16 sps:$4 sm:$0xff]   ;;  %v7278_v34 = vld [vmem:[#allocation9 + $0x1ec] ss:$16 sps:$4 sm:$0xff]   ;;  %v7280_v35 = vld [vmem:[#allocation9 + $0x1e0] ss:$16 sps:$4 sm:$0xff]  }
  0x9d   : > { %v7281_v36 = vld [vmem:[#allocation9 + $0x1e8] ss:$16 sps:$4 sm:$0xff]   ;;  %v7282_v37 = vld [vmem:[#allocation9 + $0x1c4] ss:$16 sps:$4 sm:$0xff]   ;;  %v7284_v38 = vld [vmem:[#allocation9 + $0x1cc] ss:$16 sps:$4 sm:$0xff]  }
  0x9e   : > { %v7286_v39 = vld [vmem:[#allocation9 + $0x1c0] ss:$16 sps:$4 sm:$0xff]   ;;  %v7287_v40 = vld [vmem:[#allocation9 + $0x1c8] ss:$16 sps:$4 sm:$0xff]   ;;  %v7288_v41 = vld [vmem:[#allocation9 + $0x1a4] ss:$16 sps:$4 sm:$0xff]  }
  0x9f   : > { %1210 = vmatpush1.bf16.msra.mxu0 %v7250_v15  ;;  %1253 = vmatpush1.bf16.msra.mxu1 %v7251_v16  ;;  %v7290_v42 = vld [vmem:[#allocation9 + $0x1ac] ss:$16 sps:$4 sm:$0xff]   ;;  %v7292_v43 = vld [vmem:[#allocation9 + $0x1a0] ss:$16 sps:$4 sm:$0xff]   ;;  %v7293_v44 = vld [vmem:[#allocation9 + $0x1a8] ss:$16 sps:$4 sm:$0xff]  }
  0xa0   : > { %1211 = vmatprep.subr.bf16.mxu0 %v7252_v17  ;;  %1254 = vmatprep.subr.bf16.mxu1 %v7254_v18  ;;  %v7294_v45 = vld [vmem:[#allocation9 + $0x184] ss:$16 sps:$4 sm:$0xff]   ;;  %v7296_v46 = vld [vmem:[#allocation9 + $0x18c] ss:$16 sps:$4 sm:$0xff]   ;;  %v7298_v48 = vld [vmem:[#allocation9 + $0x180] ss:$16 sps:$4 sm:$0xff]  }
  0xa1   : > { %v814_v47 = vld [vmem:[%s8773_s30 + $0x8] sm:$0xff]  ;;  %v816_v50 = vld [vmem:[%s8773_s30 + $0x18] sm:$0xff]  ;;  %v7300_v51 = vld [vmem:[#allocation9 + $0x164] ss:$16 sps:$4 sm:$0xff]   ;;  %s9118_s27 = sld [smem:[#allocation32_spill]]  ;;  %vm8500_vm0 = vmmov 0  }
  0xa2   : > { %v7299_v49 = vld [vmem:[#allocation9 + $0x188] ss:$16 sps:$4 sm:$0xff]   ;;  %v818_v52 = vpack.c.bf16 %v816_v50, %v814_v47  ;;  %v7302_v53 = vld [vmem:[#allocation9 + $0x16c] ss:$16 sps:$4 sm:$0xff]   ;;  %v7304_v54 = vld [vmem:[#allocation9 + $0x160] ss:$16 sps:$4 sm:$0xff]  }
  0xa3   : > { %1212 = vmatpush1.bf16.msra.mxu0 %v7256_v19  ;;  %1255 = vmatpush1.bf16.msra.mxu1 %v7257_v20  ;;  %v7305_v55 = vld [vmem:[#allocation9 + $0x168] ss:$16 sps:$4 sm:$0xff]   ;;  %v7306_v56 = vld [vmem:[#allocation9 + $0x144] ss:$16 sps:$4 sm:$0xff]   ;;  %v7308_v57 = vld [vmem:[#allocation9 + $0x14c] ss:$16 sps:$4 sm:$0xff]  }
  0xa4   : > { %1213 = vmatprep.subr.bf16.mxu0 %v7258_v21  ;;  %1256 = vmatprep.subr.bf16.mxu1 %v7260_v22  ;;  %v7310_v58 = vld [vmem:[#allocation9 + $0x140] ss:$16 sps:$4 sm:$0xff]   ;;  %v7311_v59 = vld [vmem:[#allocation9 + $0x148] ss:$16 sps:$4 sm:$0xff]   ;;  %v7312_v60 = vld [vmem:[#allocation9 + $0x124] ss:$16 sps:$4 sm:$0xff]  }
  0xa5   : > { %1235 = vmatprep.mubr.bf16.mxu0 %v818_v52  ;;  %1278 = vmatprep.mubr.bf16.mxu1 %v818_v52  ;;  %v7314_v61 = vld [vmem:[#allocation9 + $0x12c] ss:$16 sps:$4 sm:$0xff]   ;;  %v7316_v62 = vld [vmem:[#allocation9 + $0x120] ss:$16 sps:$4 sm:$0xff]   ;;  %v7317_v63 = vld [vmem:[#allocation9 + $0x128] ss:$16 sps:$4 sm:$0xff]  }
  0xa6   : > { %v7318_v0 = vld [vmem:[#allocation9 + $0x104] ss:$16 sps:$4 sm:$0xff]   ;;  %v7320_v1 = vld [vmem:[#allocation9 + $0x10c] ss:$16 sps:$4 sm:$0xff]   ;;  %v7322_v2 = vld [vmem:[#allocation9 + $0x100] ss:$16 sps:$4 sm:$0xff]  }
  0xa7   : > { %1214 = vmatpush1.bf16.msra.mxu0 %v7262_v23  ;;  %1257 = vmatpush1.bf16.msra.mxu1 %v7263_v24  ;;  %v7323_v3 = vld [vmem:[#allocation9 + $0x108] ss:$16 sps:$4 sm:$0xff]   ;;  %v813_v4 = vld [vmem:[%s8773_s30] sm:$0xff]  ;;  %v815_v5 = vld [vmem:[%s8773_s30 + $0x10] sm:$0xff]  ;;  %s9119_s0 = sld [smem:[#allocation35_spill]]  ;;  %vm6063_vm1 = vcmask 523264  }
  0xa8   : > { %1215 = vmatprep.subr.bf16.mxu0 %v7264_v25  ;;  %1258 = vmatprep.subr.bf16.mxu1 %v7266_v26  ;;  %v7326_v6 = vld [vmem:[#allocation10 + $0xe4] ss:$16 sps:$4 sm:$0xff]   ;;  %v817_v8 = vpack.c.bf16 %v815_v5, %v813_v4  ;;  %v7324_v9 = vld [vmem:[#allocation10 + $0xe0] ss:$16 sps:$4 sm:$0xff]   ;;  %s9120_s15 = sld [smem:[#allocation33_spill]]  ;;  %vm6129_vm2 = vcmask 39936  }
  0xa9   : > { %v7329_v7 = vld [vmem:[#allocation10 + $0x2e4] ss:$16 sps:$4 sm:$0xff]   ;;  %v7327_v10 = vld [vmem:[#allocation10 + $0x2e0] ss:$16 sps:$4 sm:$0xff]   ;;  %s9122_s17 = sld [smem:[#allocation22_spill]]  ;;  %s8501_s30 = smov 5  }
  0xaa   : > { %v7332_v11 = vld [vmem:[#allocation10 + $0xc4] ss:$16 sps:$4 sm:$0xff]   ;;  %v7330_v13 = vld [vmem:[#allocation10 + $0xc0] ss:$16 sps:$4 sm:$0xff]   ;;  %s9123_s12 = sld [smem:[#allocation36_spill]]  ;;  %vm6167_vm3 = vcmask 48168  }
  0xab   : > { %1216 = vmatpush1.bf16.msra.mxu0 %v7268_v27  ;;  %1259 = vmatpush1.bf16.msra.mxu1 %v7269_v28  ;;  %v7335_v12 = vld [vmem:[#allocation10 + $0x2c4] ss:$16 sps:$4 sm:$0xff]   ;;  %v7333_v14 = vld [vmem:[#allocation10 + $0x2c0] ss:$16 sps:$4 sm:$0xff]   ;;  %s9124_s7 = sld [smem:[#allocation38_spill]]  ;;  %vm6170_vm4 = vcmask 64560  }
  0xac   : > { %1217 = vmatprep.subr.bf16.mxu0 %v7270_v29  ;;  %1260 = vmatprep.subr.bf16.mxu1 %v7272_v30  ;;  %v7338_v15 = vld [vmem:[#allocation10 + $0xa4] ss:$16 sps:$4 sm:$0xff]   ;;  %v7336_v17 = vld [vmem:[#allocation10 + $0xa0] ss:$16 sps:$4 sm:$0xff]  }
  0xad   : > { %v7341_v16 = vld [vmem:[#allocation10 + $0x2a4] ss:$16 sps:$4 sm:$0xff]   ;;  %v7339_v18 = vld [vmem:[#allocation10 + $0x2a0] ss:$16 sps:$4 sm:$0xff]  }
  0xae   : > { %v7344_v19 = vld [vmem:[#allocation10 + $0x84] ss:$16 sps:$4 sm:$0xff]   ;;  %v7342_v21 = vld [vmem:[#allocation10 + $0x80] ss:$16 sps:$4 sm:$0xff]  }
  0xaf   : > { %1218 = vmatpush1.bf16.msra.mxu0 %v7274_v31  ;;  %1261 = vmatpush1.bf16.msra.mxu1 %v7275_v32  ;;  %v7347_v20 = vld [vmem:[#allocation10 + $0x284] ss:$16 sps:$4 sm:$0xff]   ;;  %v7345_v22 = vld [vmem:[#allocation10 + $0x280] ss:$16 sps:$4 sm:$0xff]   ;;  %s6354_s3 = sshll.u32 %s9122_s17, 1 }
  0xb0   : > { %1219 = vmatprep.subr.bf16.mxu0 %v7276_v33  ;;  %1262 = vmatprep.subr.bf16.mxu1 %v7278_v34  ;;  %v7350_v23 = vld [vmem:[#allocation10 + $0x64] ss:$16 sps:$4 sm:$0xff]   ;;  %v7348_v25 = vld [vmem:[#allocation10 + $0x60] ss:$16 sps:$4 sm:$0xff]   ;;  %v1314_v33 = vld [vmem:[%s8781_s25 + $0x8] sm:$0xff]  ;;  %p779_p1 = scmp.lt.s32.totalorder %s6354_s3, 3 }
  0xb1   : > { %v7353_v24 = vld [vmem:[#allocation10 + $0x264] ss:$16 sps:$4 sm:$0xff]   ;;  %v7351_v26 = vld [vmem:[#allocation10 + $0x260] ss:$16 sps:$4 sm:$0xff]   ;;  %v1322_v34 = vld [vmem:[%s8781_s25 + $0x48] sm:$0xff] }
  0xb2   : > { %v7356_v27 = vld [vmem:[#allocation10 + $0x44] ss:$16 sps:$4 sm:$0xff]   ;;  %v7354_v29 = vld [vmem:[#allocation10 + $0x40] ss:$16 sps:$4 sm:$0xff]   ;;  %s9136_s3 = smov (!%p779_p1, %s6354_s3), 3 }
  0xb3   : > { %1220 = vmatpush2.bf16.msra.mxu0 %v7280_v35  ;;  %1263 = vmatpush2.bf16.msra.mxu1 %v7281_v36  ;;  %v7359_v28 = vld [vmem:[#allocation10 + $0x244] ss:$16 sps:$4 sm:$0xff]   ;;  %v7357_v30 = vld [vmem:[#allocation10 + $0x240] ss:$16 sps:$4 sm:$0xff]   ;;  %v1316_v35 = vld [vmem:[%s8781_s25 + $0x18] sm:$0xff]  ;;  %s6355_s28 = sshll.u32 %s9136_s3, 3 }
  0xb4   : > { %1221 = vmatprep.subr.bf16.mxu0 %v7282_v37  ;;  %1264 = vmatprep.subr.bf16.mxu1 %v7284_v38  ;;  %v7362_v31 = vld [vmem:[#allocation10 + $0x24] ss:$16 sps:$4 sm:$0xff]   ;;  %v1324_v36 = vld [vmem:[%s8781_s25 + $0x58] sm:$0xff]  ;;  %v7360_v37 = vld [vmem:[#allocation10 + $0x20] ss:$16 sps:$4 sm:$0xff]   ;;  %s9026_s9 = scalar_lea.vmem %s9124_s7, %s6355_s28 }
  0xb5   : > { %v7365_v32 = vld [vmem:[#allocation10 + $0x224] ss:$16 sps:$4 sm:$0xff]   ;;  %v7363_v38 = vld [vmem:[#allocation10 + $0x220] ss:$16 sps:$4 sm:$0xff]  }
  0xb6   : > { %v7372_v47 = vld [vmem:[#allocation10 + $0x1e0] ss:$16 sps:$4 sm:$0xff]   ;;  %v7383_v50 = vld [vmem:[#allocation10 + $0x3c4] ss:$16 sps:$4 sm:$0xff]  }
  0xb7   : > { %1222 = vmatpush2.bf16.msra.mxu0 %v7286_v39  ;;  %1265 = vmatpush2.bf16.msra.mxu1 %v7287_v40  ;;  %v7368_v39 = vld [vmem:[#allocation10 + $0x4] ss:$16 sps:$4 sm:$0xff]   ;;  %v8807_v40 = vpack.c.bf16 %v1322_v34, %v1314_v33  ;;  %v7381_v52 = vld [vmem:[#allocation10 + $0x3c0] ss:$16 sps:$4 sm:$0xff]   ;;  %v1328_v33 = vld [vmem:[%s8781_s25 + $0x78] sm:$0xff] }
  0xb8   : > { %1223 = vmatprep.subr.bf16.mxu0 %v7288_v41  ;;  %1266 = vmatprep.subr.bf16.mxu1 %v7290_v42  ;;  %v8809_v41 = vpack.c.bf16 %v1324_v36, %v1316_v35  ;;  %v7371_v42 = vld [vmem:[#allocation10 + $0x204] ss:$16 sps:$4 sm:$0xff]   ;;  %v7405_v4 = vld [vmem:[#allocation10 + $0x340] ss:$16 sps:$4 sm:$0xff]  }
  0xb9   : > { %v7410_v5 = vld [vmem:[#allocation10 + $0x124] ss:$16 sps:$4 sm:$0xff]   ;;  %v7432_v35 = vld [vmem:[#allocation10 + $0x4a0] ss:$16 sps:$4 sm:$0xff]  }
  0xba   : > { %v7435_v36 = vld [vmem:[#allocation10 + $0x6a0] ss:$16 sps:$4 sm:$0xff]  }
  0xbb   : > { %1224 = vmatpush2.bf16.msra.mxu0 %v7292_v43  ;;  %1267 = vmatpush2.bf16.msra.mxu1 %v7293_v44  ;;  %v7366_v43 = vld [vmem:[#allocation10] ss:$16 sps:$4 sm:$0xff]  }
  0xbc   : > { %1225 = vmatprep.subr.bf16.mxu0 %v7294_v45  ;;  %1268 = vmatprep.subr.bf16.mxu1 %v7296_v46  ;;  %v7369_v44 = vld [vmem:[#allocation10 + $0x200] ss:$16 sps:$4 sm:$0xff]   ;;  %v7374_v45 = vld [vmem:[#allocation10 + $0x1e4] ss:$16 sps:$4 sm:$0xff]  }
  0xbd   : > { %v7377_v46 = vld [vmem:[#allocation10 + $0x3e4] ss:$16 sps:$4 sm:$0xff]  }
  0xbf   : > { %1226 = vmatpush2.bf16.msra.mxu0 %v7298_v48  ;;  %1269 = vmatpush2.bf16.msra.mxu1 %v7299_v49  ;;  %v7375_v48 = vld [vmem:[#allocation10 + $0x3e0] ss:$16 sps:$4 sm:$0xff]   ;;  %v7380_v49 = vld [vmem:[#allocation10 + $0x1c4] ss:$16 sps:$4 sm:$0xff]  }
  0xc0   : > { %1227 = vmatprep.subr.bf16.mxu0 %v7300_v51  ;;  %1270 = vmatprep.subr.bf16.mxu1 %v7302_v53  ;;  %v7378_v51 = vld [vmem:[#allocation10 + $0x1c0] ss:$16 sps:$4 sm:$0xff]   ;;  %v7386_v53 = vld [vmem:[#allocation10 + $0x1a4] ss:$16 sps:$4 sm:$0xff]  }
  0xc3   : > { %1228 = vmatpush2.bf16.msra.mxu0 %v7304_v54  ;;  %1271 = vmatpush2.bf16.msra.mxu1 %v7305_v55  ;;  %v7389_v54 = vld [vmem:[#allocation10 + $0x3a4] ss:$16 sps:$4 sm:$0xff]   ;;  %v7384_v55 = vld [vmem:[#allocation10 + $0x1a0] ss:$16 sps:$4 sm:$0xff]  }
  0xc4   : > { %1229 = vmatprep.subr.bf16.mxu0 %v7306_v56  ;;  %1272 = vmatprep.subr.bf16.mxu1 %v7308_v57  ;;  %v7387_v56 = vld [vmem:[#allocation10 + $0x3a0] ss:$16 sps:$4 sm:$0xff]   ;;  %v7392_v57 = vld [vmem:[#allocation10 + $0x184] ss:$16 sps:$4 sm:$0xff]  }
  0xc7   : > { %1230 = vmatpush2.bf16.msra.mxu0 %v7310_v58  ;;  %1273 = vmatpush2.bf16.msra.mxu1 %v7311_v59  ;;  %v7395_v58 = vld [vmem:[#allocation10 + $0x384] ss:$16 sps:$4 sm:$0xff]   ;;  %v7390_v59 = vld [vmem:[#allocation10 + $0x180] ss:$16 sps:$4 sm:$0xff]  }
  0xc8   : > { %1231 = vmatprep.subr.bf16.mxu0 %v7312_v60  ;;  %1274 = vmatprep.subr.bf16.mxu1 %v7314_v61  ;;  %v7393_v60 = vld [vmem:[#allocation10 + $0x380] ss:$16 sps:$4 sm:$0xff]   ;;  %v7398_v61 = vld [vmem:[#allocation10 + $0x164] ss:$16 sps:$4 sm:$0xff]  }
  0xcb   : > { %1232 = vmatpush2.bf16.msra.mxu0 %v7316_v62  ;;  %1275 = vmatpush2.bf16.msra.mxu1 %v7317_v63  ;;  %v7401_v62 = vld [vmem:[#allocation10 + $0x364] ss:$16 sps:$4 sm:$0xff]   ;;  %v7396_v63 = vld [vmem:[#allocation10 + $0x160] ss:$16 sps:$4 sm:$0xff]  }
  0xcc   : > { %1233 = vmatprep.subr.bf16.mxu0 %v7318_v0  ;;  %1276 = vmatprep.subr.bf16.mxu1 %v7320_v1  ;;  %v7399_v0 = vld [vmem:[#allocation10 + $0x360] ss:$16 sps:$4 sm:$0xff]   ;;  %v7404_v1 = vld [vmem:[#allocation10 + $0x144] ss:$16 sps:$4 sm:$0xff]  }
  0xcf   : > { %1234 = vmatpush2.bf16.msra.mxu0 %v7322_v2  ;;  %1277 = vmatpush2.bf16.msra.mxu1 %v7323_v3  ;;  %v7407_v2 = vld [vmem:[#allocation10 + $0x344] ss:$16 sps:$4 sm:$0xff]   ;;  %v7402_v3 = vld [vmem:[#allocation10 + $0x140] ss:$16 sps:$4 sm:$0xff]  }
  0xd0   : > { %2873 = vmatprep.subr.bf16.mxu0 %v7326_v6  ;;  %2916 = vmatprep.subr.bf16.mxu1 %v7329_v7  ;;  %v7413_v6 = vld [vmem:[#allocation10 + $0x324] ss:$16 sps:$4 sm:$0xff]   ;;  %v7408_v7 = vld [vmem:[#allocation10 + $0x120] ss:$16 sps:$4 sm:$0xff]  }
  0xd2   : > { %1236 = vmatmul.mubr.bf16.vlgmr.msra.gmra.mxu0 %v817_v8  ;;  %1279 = vmatmul.mubr.bf16.vlgmr.msra.gmra.mxu1 %v817_v8  ;;  %v7411_v8 = vld [vmem:[#allocation10 + $0x320] ss:$16 sps:$4 sm:$0xff]  }
  0xd3   : > { %2874 = vmatpush1.bf16.msra.mxu0 %v7324_v9  ;;  %2917 = vmatpush1.bf16.msra.mxu1 %v7327_v10  ;;  %v7416_v9 = vld [vmem:[#allocation10 + $0x104] ss:$16 sps:$4 sm:$0xff]  }
  0xd4   : > { %2875 = vmatprep.subr.bf16.mxu0 %v7332_v11  ;;  %2918 = vmatprep.subr.bf16.mxu1 %v7335_v12  ;;  %v7419_v10 = vld [vmem:[#allocation10 + $0x304] ss:$16 sps:$4 sm:$0xff]   ;;  %v7414_v11 = vld [vmem:[#allocation10 + $0x100] ss:$16 sps:$4 sm:$0xff]  }
  0xd5   : > { %2905 = vmatprep.mubr.bf16.mxu0 %v8807_v40  ;;  %2948 = vmatprep.mubr.bf16.mxu1 %v8809_v41  ;;  %v7417_v12 = vld [vmem:[#allocation10 + $0x300] ss:$16 sps:$4 sm:$0xff]  }
  0xd7   : > { %2876 = vmatpush1.bf16.msra.mxu0 %v7330_v13  ;;  %2919 = vmatpush1.bf16.msra.mxu1 %v7333_v14  ;;  %v1313_v13 = vld [vmem:[%s8781_s25] sm:$0xff] }
  0xd8   : > { %2877 = vmatprep.subr.bf16.mxu0 %v7338_v15  ;;  %2920 = vmatprep.subr.bf16.mxu1 %v7341_v16  ;;  %v1321_v14 = vld [vmem:[%s8781_s25 + $0x40] sm:$0xff]  ;;  %v1315_v15 = vld [vmem:[%s8781_s25 + $0x10] sm:$0xff] }
  0xd9   : > { %v1323_v16 = vld [vmem:[%s8781_s25 + $0x50] sm:$0xff] }
  0xdb   : > { %2878 = vmatpush1.bf16.msra.mxu0 %v7336_v17  ;;  %2921 = vmatpush1.bf16.msra.mxu1 %v7339_v18  ;;  %v7422_v17 = vld [vmem:[#allocation10 + $0x4e4] ss:$16 sps:$4 sm:$0xff]  }
  0xdc   : > { %2879 = vmatprep.subr.bf16.mxu0 %v7344_v19  ;;  %2922 = vmatprep.subr.bf16.mxu1 %v7347_v20  ;;  %v7425_v18 = vld [vmem:[#allocation10 + $0x6e4] ss:$16 sps:$4 sm:$0xff]   ;;  %v8817_v19 = vpack.c.bf16 %v1321_v14, %v1313_v13  ;;  %v8819_v20 = vpack.c.bf16 %v1323_v16, %v1315_v15  ;;  %v7492_v13 = vld [vmem:[#allocation10 + $0x560] ss:$16 sps:$4 sm:$0xff]  }
  0xdd   : > { %v7495_v14 = vld [vmem:[#allocation10 + $0x760] ss:$16 sps:$4 sm:$0xff]   ;;  %v7500_v15 = vld [vmem:[#allocation10 + $0x544] ss:$16 sps:$4 sm:$0xff]  }
  0xde   : > { %v7503_v16 = vld [vmem:[#allocation10 + $0x744] ss:$16 sps:$4 sm:$0xff]  }
  0xdf   : > { %2880 = vmatpush1.bf16.msra.mxu0 %v7342_v21  ;;  %2923 = vmatpush1.bf16.msra.mxu1 %v7345_v22  ;;  %v7420_v21 = vld [vmem:[#allocation10 + $0x4e0] ss:$16 sps:$4 sm:$0xff]  }
  0xe0   : > { %2881 = vmatprep.subr.bf16.mxu0 %v7350_v23  ;;  %2924 = vmatprep.subr.bf16.mxu1 %v7353_v24  ;;  %v7423_v22 = vld [vmem:[#allocation10 + $0x6e0] ss:$16 sps:$4 sm:$0xff]   ;;  %v7428_v23 = vld [vmem:[#allocation10 + $0x4c4] ss:$16 sps:$4 sm:$0xff]  }
  0xe1   : > { %v7431_v24 = vld [vmem:[#allocation10 + $0x6c4] ss:$16 sps:$4 sm:$0xff]  }
  0xe3   : > { %2882 = vmatpush1.bf16.msra.mxu0 %v7348_v25  ;;  %2925 = vmatpush1.bf16.msra.mxu1 %v7351_v26  ;;  %v7426_v25 = vld [vmem:[#allocation10 + $0x4c0] ss:$16 sps:$4 sm:$0xff]  }
  0xe4   : > { %2883 = vmatprep.subr.bf16.mxu0 %v7356_v27  ;;  %2926 = vmatprep.subr.bf16.mxu1 %v7359_v28  ;;  %v7429_v26 = vld [vmem:[#allocation10 + $0x6c0] ss:$16 sps:$4 sm:$0xff]   ;;  %v1318_v27 = vld [vmem:[%s8781_s25 + $0x28] sm:$0xff] }
  0xe5   : > { %v1326_v28 = vld [vmem:[%s8781_s25 + $0x68] sm:$0xff] }
  0xe7   : > { %2884 = vmatpush1.bf16.msra.mxu0 %v7354_v29  ;;  %2927 = vmatpush1.bf16.msra.mxu1 %v7357_v30  ;;  %v1320_v29 = vld [vmem:[%s8781_s25 + $0x38] sm:$0xff]  ;;  %v7434_v30 = vld [vmem:[#allocation10 + $0x4a4] ss:$16 sps:$4 sm:$0xff]  }
  0xe8   : > { %2885 = vmatprep.subr.bf16.mxu0 %v7362_v31  ;;  %2928 = vmatprep.subr.bf16.mxu1 %v7365_v32  ;;  %v7437_v31 = vld [vmem:[#allocation10 + $0x6a4] ss:$16 sps:$4 sm:$0xff]   ;;  %v8826_v32 = vpack.c.bf16 %v1326_v28, %v1318_v27  ;;  %v8829_v34 = vpack.c.bf16 %v1328_v33, %v1320_v29  ;;  %v7510_v27 = vld [vmem:[#allocation10 + $0x500] ss:$16 sps:$4 sm:$0xff]  }
  0xe9   : > { %v7513_v28 = vld [vmem:[#allocation10 + $0x700] ss:$16 sps:$4 sm:$0xff]  }
  0xea   : > { %v1317_v29 = vld [vmem:[%s8781_s25 + $0x20] sm:$0xff]  ;;  %v1327_v33 = vld [vmem:[%s8781_s25 + $0x70] sm:$0xff] }
  0xeb   : > { %2886 = vmatpush1.bf16.msra.mxu0 %v7360_v37  ;;  %2929 = vmatpush1.bf16.msra.mxu1 %v7363_v38  ;;  %v7440_v37 = vld [vmem:[#allocation10 + $0x484] ss:$16 sps:$4 sm:$0xff]  }
  0xec   : > { %2887 = vmatprep.subr.bf16.mxu0 %v7368_v39  ;;  %2930 = vmatprep.subr.bf16.mxu1 %v7371_v42  ;;  %v7443_v38 = vld [vmem:[#allocation10 + $0x684] ss:$16 sps:$4 sm:$0xff]   ;;  %v7438_v39 = vld [vmem:[#allocation10 + $0x480] ss:$16 sps:$4 sm:$0xff]  }
  0xed   : > { %v7441_v42 = vld [vmem:[#allocation10 + $0x680] ss:$16 sps:$4 sm:$0xff]  }
  0xef   : > { %2888 = vmatpush1.bf16.msra.mxu0 %v7366_v43  ;;  %2931 = vmatpush1.bf16.msra.mxu1 %v7369_v44  ;;  %v7446_v43 = vld [vmem:[#allocation10 + $0x464] ss:$16 sps:$4 sm:$0xff]  }
  0xf0   : > { %2889 = vmatprep.subr.bf16.mxu0 %v7374_v45  ;;  %2932 = vmatprep.subr.bf16.mxu1 %v7377_v46  ;;  %v7449_v44 = vld [vmem:[#allocation10 + $0x664] ss:$16 sps:$4 sm:$0xff]   ;;  %v7444_v45 = vld [vmem:[#allocation10 + $0x460] ss:$16 sps:$4 sm:$0xff]  }
  0xf1   : > { %v7447_v46 = vld [vmem:[#allocation10 + $0x660] ss:$16 sps:$4 sm:$0xff]  }
  0xf3   : > { %2890 = vmatpush2.bf16.msra.mxu0 %v7372_v47  ;;  %2933 = vmatpush2.bf16.msra.mxu1 %v7375_v48  ;;  %v7452_v47 = vld [vmem:[#allocation10 + $0x444] ss:$16 sps:$4 sm:$0xff]  }
  0xf4   : > { %2891 = vmatprep.subr.bf16.mxu0 %v7380_v49  ;;  %2934 = vmatprep.subr.bf16.mxu1 %v7383_v50  ;;  %v7455_v48 = vld [vmem:[#allocation10 + $0x644] ss:$16 sps:$4 sm:$0xff]   ;;  %v7450_v49 = vld [vmem:[#allocation10 + $0x440] ss:$16 sps:$4 sm:$0xff]  }
  0xf5   : > { %v7453_v50 = vld [vmem:[#allocation10 + $0x640] ss:$16 sps:$4 sm:$0xff]  }
  0xf7   : > { %2892 = vmatpush2.bf16.msra.mxu0 %v7378_v51  ;;  %2935 = vmatpush2.bf16.msra.mxu1 %v7381_v52  ;;  %v7458_v51 = vld [vmem:[#allocation10 + $0x424] ss:$16 sps:$4 sm:$0xff]  }
  0xf8   : > { %2893 = vmatprep.subr.bf16.mxu0 %v7386_v53  ;;  %2936 = vmatprep.subr.bf16.mxu1 %v7389_v54  ;;  %v7461_v52 = vld [vmem:[#allocation10 + $0x624] ss:$16 sps:$4 sm:$0xff]   ;;  %v7456_v53 = vld [vmem:[#allocation10 + $0x420] ss:$16 sps:$4 sm:$0xff]  }
  0xf9   : > { %v7459_v54 = vld [vmem:[#allocation10 + $0x620] ss:$16 sps:$4 sm:$0xff]  }
  0xfb   : > { %2894 = vmatpush2.bf16.msra.mxu0 %v7384_v55  ;;  %2937 = vmatpush2.bf16.msra.mxu1 %v7387_v56  ;;  %v7464_v55 = vld [vmem:[#allocation10 + $0x404] ss:$16 sps:$4 sm:$0xff]  }
  0xfc   : > { %2895 = vmatprep.subr.bf16.mxu0 %v7392_v57  ;;  %2938 = vmatprep.subr.bf16.mxu1 %v7395_v58  ;;  %v7467_v56 = vld [vmem:[#allocation10 + $0x604] ss:$16 sps:$4 sm:$0xff]   ;;  %v7462_v57 = vld [vmem:[#allocation10 + $0x400] ss:$16 sps:$4 sm:$0xff]  }
  0xfd   : > { %v7465_v58 = vld [vmem:[#allocation10 + $0x600] ss:$16 sps:$4 sm:$0xff]  }
  0xff   : > { %2896 = vmatpush2.bf16.msra.mxu0 %v7390_v59  ;;  %2939 = vmatpush2.bf16.msra.mxu1 %v7393_v60  ;;  %v7470_v59 = vld [vmem:[#allocation10 + $0x5e4] ss:$16 sps:$4 sm:$0xff]  }
 0x100   : > { %2897 = vmatprep.subr.bf16.mxu0 %v7398_v61  ;;  %2940 = vmatprep.subr.bf16.mxu1 %v7401_v62  ;;  %v7473_v60 = vld [vmem:[#allocation10 + $0x7e4] ss:$16 sps:$4 sm:$0xff]   ;;  %v7468_v61 = vld [vmem:[#allocation10 + $0x5e0] ss:$16 sps:$4 sm:$0xff]  }
 0x101   : > { %v7471_v62 = vld [vmem:[#allocation10 + $0x7e0] ss:$16 sps:$4 sm:$0xff]  }
 0x103   : > { %2898 = vmatpush2.bf16.msra.mxu0 %v7396_v63  ;;  %2941 = vmatpush2.bf16.msra.mxu1 %v7399_v0  ;;  %v7476_v63 = vld [vmem:[#allocation10 + $0x5c4] ss:$16 sps:$4 sm:$0xff]  }
 0x104   : > { %2899 = vmatprep.subr.bf16.mxu0 %v7404_v1  ;;  %2942 = vmatprep.subr.bf16.mxu1 %v7407_v2  ;;  %v7479_v0 = vld [vmem:[#allocation10 + $0x7c4] ss:$16 sps:$4 sm:$0xff]   ;;  %v7474_v1 = vld [vmem:[#allocation10 + $0x5c0] ss:$16 sps:$4 sm:$0xff]  }
 0x105   : > { %v7477_v2 = vld [vmem:[#allocation10 + $0x7c0] ss:$16 sps:$4 sm:$0xff]  }
 0x107   : > { %2900 = vmatpush2.bf16.msra.mxu0 %v7402_v3  ;;  %2943 = vmatpush2.bf16.msra.mxu1 %v7405_v4  ;;  %v7482_v3 = vld [vmem:[#allocation10 + $0x5a4] ss:$16 sps:$4 sm:$0xff]  }
 0x108   : > { %2901 = vmatprep.subr.bf16.mxu0 %v7410_v5  ;;  %2944 = vmatprep.subr.bf16.mxu1 %v7413_v6  ;;  %v7485_v4 = vld [vmem:[#allocation10 + $0x7a4] ss:$16 sps:$4 sm:$0xff]   ;;  %v7480_v5 = vld [vmem:[#allocation10 + $0x5a0] ss:$16 sps:$4 sm:$0xff]  }
 0x109   : > { %v7483_v6 = vld [vmem:[#allocation10 + $0x7a0] ss:$16 sps:$4 sm:$0xff]  }
 0x10b   : > { %2902 = vmatpush2.bf16.msra.mxu0 %v7408_v7  ;;  %2945 = vmatpush2.bf16.msra.mxu1 %v7411_v8  ;;  %v7488_v7 = vld [vmem:[#allocation10 + $0x584] ss:$16 sps:$4 sm:$0xff]  }
 0x10c   : > { %2903 = vmatprep.subr.bf16.mxu0 %v7416_v9  ;;  %2946 = vmatprep.subr.bf16.mxu1 %v7419_v10  ;;  %v7491_v8 = vld [vmem:[#allocation10 + $0x784] ss:$16 sps:$4 sm:$0xff]   ;;  %v7486_v9 = vld [vmem:[#allocation10 + $0x580] ss:$16 sps:$4 sm:$0xff]  }
 0x10d   : > { %v7489_v10 = vld [vmem:[#allocation10 + $0x780] ss:$16 sps:$4 sm:$0xff]  }
 0x10f   : > { %2904 = vmatpush2.bf16.msra.mxu0 %v7414_v11  ;;  %2947 = vmatpush2.bf16.msra.mxu1 %v7417_v12  ;;  %v7494_v11 = vld [vmem:[#allocation10 + $0x564] ss:$16 sps:$4 sm:$0xff]  }
 0x110   : > { %2959 = vmatprep.subr.bf16.mxu0 %v7422_v17  ;;  %3002 = vmatprep.subr.bf16.mxu1 %v7425_v18  ;;  %v7497_v12 = vld [vmem:[#allocation10 + $0x764] ss:$16 sps:$4 sm:$0xff]   ;;  %v7498_v17 = vld [vmem:[#allocation10 + $0x540] ss:$16 sps:$4 sm:$0xff]  }
 0x111   : > { %v7501_v18 = vld [vmem:[#allocation10 + $0x740] ss:$16 sps:$4 sm:$0xff]  }
 0x112   : > { %2906 = vmatmul.mubr.bf16.vlgmr.msra.gmra.mxu0 %v8817_v19  ;;  %2949 = vmatmul.mubr.bf16.vlgmr.msra.gmra.mxu1 %v8819_v20 }
 0x113   : > { %2960 = vmatpush1.bf16.msra.mxu0 %v7420_v21  ;;  %3003 = vmatpush1.bf16.msra.mxu1 %v7423_v22  ;;  %v7506_v21 = vld [vmem:[#allocation10 + $0x524] ss:$16 sps:$4 sm:$0xff]  }
 0x114   : > { %2961 = vmatprep.subr.bf16.mxu0 %v7428_v23  ;;  %3004 = vmatprep.subr.bf16.mxu1 %v7431_v24  ;;  %v7509_v22 = vld [vmem:[#allocation10 + $0x724] ss:$16 sps:$4 sm:$0xff]   ;;  %v7504_v23 = vld [vmem:[#allocation10 + $0x520] ss:$16 sps:$4 sm:$0xff]  }
 0x115   : > { %2991 = vmatprep.mubr.bf16.mxu0 %v8826_v32  ;;  %3034 = vmatprep.mubr.bf16.mxu1 %v8829_v34  ;;  %v7507_v24 = vld [vmem:[#allocation10 + $0x720] ss:$16 sps:$4 sm:$0xff]  }
 0x117   : > { %2962 = vmatpush1.bf16.msra.mxu0 %v7426_v25  ;;  %3005 = vmatpush1.bf16.msra.mxu1 %v7429_v26  ;;  %v7512_v25 = vld [vmem:[#allocation10 + $0x504] ss:$16 sps:$4 sm:$0xff]  }
 0x118   : > { %2963 = vmatprep.subr.bf16.mxu0 %v7434_v30  ;;  %3006 = vmatprep.subr.bf16.mxu1 %v7437_v31  ;;  %v7515_v26 = vld [vmem:[#allocation10 + $0x704] ss:$16 sps:$4 sm:$0xff]  }
 0x119   : > { %v1325_v30 = vld [vmem:[%s8781_s25 + $0x60] sm:$0xff]  ;;  %v1319_v31 = vld [vmem:[%s8781_s25 + $0x30] sm:$0xff] }
 0x11b   : > { %2964 = vmatpush1.bf16.msra.mxu0 %v7432_v35  ;;  %3007 = vmatpush1.bf16.msra.mxu1 %v7435_v36  ;;  %v7518_v35 = vld [vmem:[#allocation10 + $0xec] ss:$16 sps:$4 sm:$0xff]  }
 0x11c   : > { %2965 = vmatprep.subr.bf16.mxu0 %v7440_v37  ;;  %3008 = vmatprep.subr.bf16.mxu1 %v7443_v38  ;;  %v7521_v36 = vld [vmem:[#allocation10 + $0x2ec] ss:$16 sps:$4 sm:$0xff]   ;;  %v8837_v37 = vpack.c.bf16 %v1325_v30, %v1317_v29  ;;  %v8839_v38 = vpack.c.bf16 %v1327_v33, %v1319_v31  ;;  %v7594_v29 = vld [vmem:[#allocation10 + $0x148] ss:$16 sps:$4 sm:$0xff]  }
 0x11d   : > { %v7597_v30 = vld [vmem:[#allocation10 + $0x348] ss:$16 sps:$4 sm:$0xff]   ;;  %v7602_v31 = vld [vmem:[#allocation10 + $0x12c] ss:$16 sps:$4 sm:$0xff]  }
 0x11e   : > { %v7605_v33 = vld [vmem:[#allocation10 + $0x32c] ss:$16 sps:$4 sm:$0xff]  }
 0x11f   : > { %2966 = vmatpush1.bf16.msra.mxu0 %v7438_v39  ;;  %3009 = vmatpush1.bf16.msra.mxu1 %v7441_v42  ;;  %v7516_v39 = vld [vmem:[#allocation10 + $0xe8] ss:$16 sps:$4 sm:$0xff]  }
 0x120   : > { %2967 = vmatprep.subr.bf16.mxu0 %v7446_v43  ;;  %3010 = vmatprep.subr.bf16.mxu1 %v7449_v44  ;;  %v7519_v42 = vld [vmem:[#allocation10 + $0x2e8] ss:$16 sps:$4 sm:$0xff]   ;;  %v7524_v43 = vld [vmem:[#allocation10 + $0xcc] ss:$16 sps:$4 sm:$0xff]  }
 0x121   : > { %v7527_v44 = vld [vmem:[#allocation10 + $0x2cc] ss:$16 sps:$4 sm:$0xff]  }
 0x123   : > { %2968 = vmatpush1.bf16.msra.mxu0 %v7444_v45  ;;  %3011 = vmatpush1.bf16.msra.mxu1 %v7447_v46  ;;  %v7522_v45 = vld [vmem:[#allocation10 + $0xc8] ss:$16 sps:$4 sm:$0xff]  }
 0x124   : > { %2969 = vmatprep.subr.bf16.mxu0 %v7452_v47  ;;  %3012 = vmatprep.subr.bf16.mxu1 %v7455_v48  ;;  %v7525_v46 = vld [vmem:[#allocation10 + $0x2c8] ss:$16 sps:$4 sm:$0xff]   ;;  %v7530_v47 = vld [vmem:[#allocation10 + $0xac] ss:$16 sps:$4 sm:$0xff]  }
 0x125   : > { %v7533_v48 = vld [vmem:[#allocation10 + $0x2ac] ss:$16 sps:$4 sm:$0xff]  }
 0x127   : > { %2970 = vmatpush1.bf16.msra.mxu0 %v7450_v49  ;;  %3013 = vmatpush1.bf16.msra.mxu1 %v7453_v50  ;;  %v7528_v49 = vld [vmem:[#allocation10 + $0xa8] ss:$16 sps:$4 sm:$0xff]  }
 0x128   : > { %2971 = vmatprep.subr.bf16.mxu0 %v7458_v51  ;;  %3014 = vmatprep.subr.bf16.mxu1 %v7461_v52  ;;  %v7531_v50 = vld [vmem:[#allocation10 + $0x2a8] ss:$16 sps:$4 sm:$0xff]   ;;  %v7536_v51 = vld [vmem:[#allocation10 + $0x8c] ss:$16 sps:$4 sm:$0xff]  }
 0x129   : > { %v7539_v52 = vld [vmem:[#allocation10 + $0x28c] ss:$16 sps:$4 sm:$0xff]  }
 0x12b   : > { %2972 = vmatpush1.bf16.msra.mxu0 %v7456_v53  ;;  %3015 = vmatpush1.bf16.msra.mxu1 %v7459_v54  ;;  %v7534_v53 = vld [vmem:[#allocation10 + $0x88] ss:$16 sps:$4 sm:$0xff]  }
 0x12c   : > { %2973 = vmatprep.subr.bf16.mxu0 %v7464_v55  ;;  %3016 = vmatprep.subr.bf16.mxu1 %v7467_v56  ;;  %v7537_v54 = vld [vmem:[#allocation10 + $0x288] ss:$16 sps:$4 sm:$0xff]   ;;  %v7542_v55 = vld [vmem:[#allocation10 + $0x6c] ss:$16 sps:$4 sm:$0xff]  }
 0x12d   : > { %v7545_v56 = vld [vmem:[#allocation10 + $0x26c] ss:$16 sps:$4 sm:$0xff]  }
 0x12f   : > { %2974 = vmatpush1.bf16.msra.mxu0 %v7462_v57  ;;  %3017 = vmatpush1.bf16.msra.mxu1 %v7465_v58  ;;  %v7540_v57 = vld [vmem:[#allocation10 + $0x68] ss:$16 sps:$4 sm:$0xff]   ;;  %v7551_v58 = vld [vmem:[#allocation10 + $0x24c] ss:$16 sps:$4 sm:$0xff]  }
 0x130   : > { %2975 = vmatprep.subr.bf16.mxu0 %v7470_v59  ;;  %3018 = vmatprep.subr.bf16.mxu1 %v7473_v60  ;;  %v7546_v59 = vld [vmem:[#allocation10 + $0x48] ss:$16 sps:$4 sm:$0xff]  }
 0x131   : > { %v7549_v60 = vld [vmem:[#allocation10 + $0x248] ss:$16 sps:$4 sm:$0xff]  }
 0x133   : > { %2976 = vmatpush2.bf16.msra.mxu0 %v7468_v61  ;;  %3019 = vmatpush2.bf16.msra.mxu1 %v7471_v62  ;;  %v7554_v61 = vld [vmem:[#allocation10 + $0x2c] ss:$16 sps:$4 sm:$0xff]  }
 0x134   : > { %2977 = vmatprep.subr.bf16.mxu0 %v7476_v63  ;;  %3020 = vmatprep.subr.bf16.mxu1 %v7479_v0  ;;  %v7557_v62 = vld [vmem:[#allocation10 + $0x22c] ss:$16 sps:$4 sm:$0xff]   ;;  %v7552_v63 = vld [vmem:[#allocation10 + $0x28] ss:$16 sps:$4 sm:$0xff]  }
 0x135   : > { %v7555_v0 = vld [vmem:[#allocation10 + $0x228] ss:$16 sps:$4 sm:$0xff]  }
 0x137   : > { %2978 = vmatpush2.bf16.msra.mxu0 %v7474_v1  ;;  %3021 = vmatpush2.bf16.msra.mxu1 %v7477_v2  ;;  %v7560_v1 = vld [vmem:[#allocation10 + $0xc] ss:$16 sps:$4 sm:$0xff]  }
 0x138   : > { %2979 = vmatprep.subr.bf16.mxu0 %v7482_v3  ;;  %3022 = vmatprep.subr.bf16.mxu1 %v7485_v4  ;;  %v7563_v2 = vld [vmem:[#allocation10 + $0x20c] ss:$16 sps:$4 sm:$0xff]   ;;  %v7558_v3 = vld [vmem:[#allocation10 + $0x8] ss:$16 sps:$4 sm:$0xff]  }
 0x139   : > { %v7561_v4 = vld [vmem:[#allocation10 + $0x208] ss:$16 sps:$4 sm:$0xff]  }
 0x13b   : > { %2980 = vmatpush2.bf16.msra.mxu0 %v7480_v5  ;;  %3023 = vmatpush2.bf16.msra.mxu1 %v7483_v6  ;;  %v7566_v5 = vld [vmem:[#allocation10 + $0x1ec] ss:$16 sps:$4 sm:$0xff]  }
 0x13c   : > { %2981 = vmatprep.subr.bf16.mxu0 %v7488_v7  ;;  %3024 = vmatprep.subr.bf16.mxu1 %v7491_v8  ;;  %v7569_v6 = vld [vmem:[#allocation10 + $0x3ec] ss:$16 sps:$4 sm:$0xff]   ;;  %v7564_v7 = vld [vmem:[#allocation10 + $0x1e8] ss:$16 sps:$4 sm:$0xff]  }
 0x13d   : > { %v7567_v8 = vld [vmem:[#allocation10 + $0x3e8] ss:$16 sps:$4 sm:$0xff]  }
 0x13f   : > { %2982 = vmatpush2.bf16.msra.mxu0 %v7486_v9  ;;  %3025 = vmatpush2.bf16.msra.mxu1 %v7489_v10  ;;  %v7572_v9 = vld [vmem:[#allocation10 + $0x1cc] ss:$16 sps:$4 sm:$0xff]  }
 0x140   : > { %2983 = vmatprep.subr.bf16.mxu0 %v7494_v11  ;;  %3026 = vmatprep.subr.bf16.mxu1 %v7497_v12  ;;  %v7575_v10 = vld [vmem:[#allocation10 + $0x3cc] ss:$16 sps:$4 sm:$0xff]   ;;  %v7570_v11 = vld [vmem:[#allocation10 + $0x1c8] ss:$16 sps:$4 sm:$0xff]  }
 0x141   : > { %v7573_v12 = vld [vmem:[#allocation10 + $0x3c8] ss:$16 sps:$4 sm:$0xff]  }
 0x143   : > { %2984 = vmatpush2.bf16.msra.mxu0 %v7492_v13  ;;  %3027 = vmatpush2.bf16.msra.mxu1 %v7495_v14  ;;  %v7578_v13 = vld [vmem:[#allocation10 + $0x1ac] ss:$16 sps:$4 sm:$0xff]  }
 0x144   : > { %2985 = vmatprep.subr.bf16.mxu0 %v7500_v15  ;;  %3028 = vmatprep.subr.bf16.mxu1 %v7503_v16  ;;  %v7581_v14 = vld [vmem:[#allocation10 + $0x3ac] ss:$16 sps:$4 sm:$0xff]   ;;  %v7576_v15 = vld [vmem:[#allocation10 + $0x1a8] ss:$16 sps:$4 sm:$0xff]  }
 0x145   : > { %v7579_v16 = vld [vmem:[#allocation10 + $0x3a8] ss:$16 sps:$4 sm:$0xff]  }
 0x147   : > { %2986 = vmatpush2.bf16.msra.mxu0 %v7498_v17  ;;  %3029 = vmatpush2.bf16.msra.mxu1 %v7501_v18  ;;  %v7584_v17 = vld [vmem:[#allocation10 + $0x18c] ss:$16 sps:$4 sm:$0xff]  }
 0x148   : > { %2987 = vmatprep.subr.bf16.mxu0 %v7506_v21  ;;  %3030 = vmatprep.subr.bf16.mxu1 %v7509_v22  ;;  %v7587_v18 = vld [vmem:[#allocation10 + $0x38c] ss:$16 sps:$4 sm:$0xff]   ;;  %v7582_v21 = vld [vmem:[#allocation10 + $0x188] ss:$16 sps:$4 sm:$0xff]  }
 0x149   : > { %v7585_v22 = vld [vmem:[#allocation10 + $0x388] ss:$16 sps:$4 sm:$0xff]  }
 0x14b   : > { %2988 = vmatpush2.bf16.msra.mxu0 %v7504_v23  ;;  %3031 = vmatpush2.bf16.msra.mxu1 %v7507_v24  ;;  %v7590_v23 = vld [vmem:[#allocation10 + $0x16c] ss:$16 sps:$4 sm:$0xff]  }
 0x14c   : > { %2989 = vmatprep.subr.bf16.mxu0 %v7512_v25  ;;  %3032 = vmatprep.subr.bf16.mxu1 %v7515_v26  ;;  %v7593_v24 = vld [vmem:[#allocation10 + $0x36c] ss:$16 sps:$4 sm:$0xff]   ;;  %v7588_v25 = vld [vmem:[#allocation10 + $0x168] ss:$16 sps:$4 sm:$0xff]  }
 0x14d   : > { %v7591_v26 = vld [vmem:[#allocation10 + $0x368] ss:$16 sps:$4 sm:$0xff]  }
 0x14f   : > { %2990 = vmatpush2.bf16.msra.mxu0 %v7510_v27  ;;  %3033 = vmatpush2.bf16.msra.mxu1 %v7513_v28  ;;  %v7596_v27 = vld [vmem:[#allocation10 + $0x14c] ss:$16 sps:$4 sm:$0xff]  }
 0x150   : > { %3045 = vmatprep.subr.bf16.mxu0 %v7518_v35  ;;  %3088 = vmatprep.subr.bf16.mxu1 %v7521_v36  ;;  %v7599_v28 = vld [vmem:[#allocation10 + $0x34c] ss:$16 sps:$4 sm:$0xff]   ;;  %v7600_v35 = vld [vmem:[#allocation10 + $0x128] ss:$16 sps:$4 sm:$0xff]  }
 0x151   : > { %v7603_v36 = vld [vmem:[#allocation10 + $0x328] ss:$16 sps:$4 sm:$0xff]  }
 0x152   : > { %2992 = vmatmul.mubr.bf16.vlgmr.msra.gmra.mxu0 %v8837_v37  ;;  %3035 = vmatmul.mubr.bf16.vlgmr.msra.gmra.mxu1 %v8839_v38 }
 0x153   : > { %3046 = vmatpush1.bf16.msra.mxu0 %v7516_v39  ;;  %3089 = vmatpush1.bf16.msra.mxu1 %v7519_v42  ;;  %v3246_v39 = vlaneseq  ;;  %v7608_v42 = vld [vmem:[#allocation10 + $0x10c] ss:$16 sps:$4 sm:$0xff]  }
 0x154   : > { %3047 = vmatprep.subr.bf16.mxu0 %v7524_v43  ;;  %3090 = vmatprep.subr.bf16.mxu1 %v7527_v44  ;;  %v7611_v43 = vld [vmem:[#allocation10 + $0x30c] ss:$16 sps:$4 sm:$0xff]   ;;  %v7606_v44 = vld [vmem:[#allocation10 + $0x108] ss:$16 sps:$4 sm:$0xff]  }
 0x155   : > { %3077 = vmatprep.mubr.bf16.mxu0 %v8807_v40  ;;  %3120 = vmatprep.mubr.bf16.mxu1 %v8809_v41  ;;  %v7543_v40 = vld [vmem:[#allocation10 + $0x268] ss:$16 sps:$4 sm:$0xff]   ;;  %v7548_v41 = vld [vmem:[#allocation10 + $0x4c] ss:$16 sps:$4 sm:$0xff]  }
 0x157   : > { %3048 = vmatpush1.bf16.msra.mxu0 %v7522_v45  ;;  %3091 = vmatpush1.bf16.msra.mxu1 %v7525_v46  ;;  %v7609_v45 = vld [vmem:[#allocation10 + $0x308] ss:$16 sps:$4 sm:$0xff]   ;;  %v3247_v46 = vshrl.u32 %v3246_v39, 7 }
 0x158   : > { %3049 = vmatprep.subr.bf16.mxu0 %v7530_v47  ;;  %3092 = vmatprep.subr.bf16.mxu1 %v7533_v48  ;;  %v7614_v47 = vld [vmem:[#allocation10 + $0x4ec] ss:$16 sps:$4 sm:$0xff]   ;;  %v7651_v39 = vld [vmem:[#allocation10 + $0x628] ss:$16 sps:$4 sm:$0xff]  }
 0x159   : > { %v7617_v48 = vld [vmem:[#allocation10 + $0x6ec] ss:$16 sps:$4 sm:$0xff]  }
 0x15b   : > { %3050 = vmatpush1.bf16.msra.mxu0 %v7528_v49  ;;  %3093 = vmatpush1.bf16.msra.mxu1 %v7531_v50  ;;  %v8845_v49 = vsub.s32 2, %v3247_v46  ;;  %v3244_v50 = vld [vmem:[%s9061_s4] sm:$0xf] }
 0x15c   : > { %3051 = vmatprep.subr.bf16.mxu0 %v7536_v51  ;;  %3094 = vmatprep.subr.bf16.mxu1 %v7539_v52  ;;  %v7612_v51 = vld [vmem:[#allocation10 + $0x4e8] ss:$16 sps:$4 sm:$0xff]  }
 0x15d   : > { %v7615_v52 = vld [vmem:[#allocation10 + $0x6e8] ss:$16 sps:$4 sm:$0xff]  }
 0x15f   : > { %3052 = vmatpush1.bf16.msra.mxu0 %v7534_v53  ;;  %3095 = vmatpush1.bf16.msra.mxu1 %v7537_v54  ;;  %v8850_v53 = vsub.s32 3, %v3247_v46  ;;  %v7620_v54 = vld [vmem:[#allocation10 + $0x4cc] ss:$16 sps:$4 sm:$0xff]  }
 0x160   : > { %3053 = vmatprep.subr.bf16.mxu0 %v7542_v55  ;;  %3096 = vmatprep.subr.bf16.mxu1 %v7545_v56  ;;  %v7623_v55 = vld [vmem:[#allocation10 + $0x6cc] ss:$16 sps:$4 sm:$0xff]   ;;  %v8852_v56 = vsub.s32 0, %v3247_v46 }
 0x163   : > { %3054 = vmatpush1.bf16.msra.mxu0 %v7540_v57  ;;  %3097 = vmatpush1.bf16.msra.mxu1 %v7543_v40  ;;  %v3257_v57 = vrot.slane %v3244_v50, %v8845_v49  ;;  %v8855_v40 = vsub.s32 1, %v3247_v46  ;;  %v7662_v46 = vld [vmem:[#allocation10 + $0x5ec] ss:$16 sps:$4 sm:$0xff]  }
 0x164   : > { %3055 = vmatprep.subr.bf16.mxu0 %v7548_v41  ;;  %3098 = vmatprep.subr.bf16.mxu1 %v7551_v58  ;;  %v3261_v41 = vrot.slane %v3244_v50, %v8850_v53  ;;  %v7618_v58 = vld [vmem:[#allocation10 + $0x4c8] ss:$16 sps:$4 sm:$0xff]  }
 0x167   : > { %3056 = vmatpush1.bf16.msra.mxu0 %v7546_v59  ;;  %3099 = vmatpush1.bf16.msra.mxu1 %v7549_v60 }
 0x168   : > { %3057 = vmatprep.subr.bf16.mxu0 %v7554_v61  ;;  %3100 = vmatprep.subr.bf16.mxu1 %v7557_v62  ;;  %v3249_v61 = vrot.slane %v3244_v50, %v8852_v56 }
 0x16b   : > { %3058 = vmatpush1.bf16.msra.mxu0 %v7552_v63  ;;  %3101 = vmatpush1.bf16.msra.mxu1 %v7555_v0  ;;  %v7621_v63 = vld [vmem:[#allocation10 + $0x6c8] ss:$16 sps:$4 sm:$0xff]  }
 0x16c   : > { %3059 = vmatprep.subr.bf16.mxu0 %v7560_v1  ;;  %3102 = vmatprep.subr.bf16.mxu1 %v7563_v2  ;;  %v3253_v1 = vrot.slane %v3244_v50, %v8855_v40  ;;  %v7663_v50 = vld [vmem:[#allocation10 + $0x7e8] ss:$16 sps:$4 sm:$0xff]  }
 0x16f   : > { %3060 = vmatpush1.bf16.msra.mxu0 %v7558_v3  ;;  %3103 = vmatpush1.bf16.msra.mxu1 %v7561_v4  ;;  %v7626_v3 = vld [vmem:[#allocation10 + $0x4ac] ss:$16 sps:$4 sm:$0xff]  }
 0x170   : > { %3061 = vmatprep.subr.bf16.mxu0 %v7566_v5  ;;  %3104 = vmatprep.subr.bf16.mxu1 %v7569_v6  ;;  %v7629_v4 = vld [vmem:[#allocation10 + $0x6ac] ss:$16 sps:$4 sm:$0xff]   ;;  %v7624_v6 = vld [vmem:[#allocation10 + $0x4a8] ss:$16 sps:$4 sm:$0xff]  }
 0x173   : > { %3062 = vmatpush2.bf16.msra.mxu0 %v7564_v7  ;;  %3105 = vmatpush2.bf16.msra.mxu1 %v7567_v8  ;;  %v7627_v7 = vld [vmem:[#allocation10 + $0x6a8] ss:$16 sps:$4 sm:$0xff]  }
 0x174   : > { %3063 = vmatprep.subr.bf16.mxu0 %v7572_v9  ;;  %3106 = vmatprep.subr.bf16.mxu1 %v7575_v10 }
 0x177   : > { %3064 = vmatpush2.bf16.msra.mxu0 %v7570_v11  ;;  %3107 = vmatpush2.bf16.msra.mxu1 %v7573_v12  ;;  %v7632_v11 = vld [vmem:[#allocation10 + $0x48c] ss:$16 sps:$4 sm:$0xff]  }
 0x178   : > { %3065 = vmatprep.subr.bf16.mxu0 %v7578_v13  ;;  %3108 = vmatprep.subr.bf16.mxu1 %v7581_v14 }
 0x17b   : > { %3066 = vmatpush2.bf16.msra.mxu0 %v7576_v15  ;;  %3109 = vmatpush2.bf16.msra.mxu1 %v7579_v16  ;;  %v7635_v15 = vld [vmem:[#allocation10 + $0x68c] ss:$16 sps:$4 sm:$0xff]  }
 0x17c   : > { %3067 = vmatprep.subr.bf16.mxu0 %v7584_v17  ;;  %3110 = vmatprep.subr.bf16.mxu1 %v7587_v18  ;;  %v7630_v18 = vld [vmem:[#allocation10 + $0x488] ss:$16 sps:$4 sm:$0xff]  }
 0x17f   : > { %3068 = vmatpush2.bf16.msra.mxu0 %v7582_v21  ;;  %3111 = vmatpush2.bf16.msra.mxu1 %v7585_v22  ;;  %v7633_v21 = vld [vmem:[#allocation10 + $0x688] ss:$16 sps:$4 sm:$0xff]  }
 0x180   : > { %3069 = vmatprep.subr.bf16.mxu0 %v7590_v23  ;;  %3112 = vmatprep.subr.bf16.mxu1 %v7593_v24  ;;  %v7638_v24 = vld [vmem:[#allocation10 + $0x46c] ss:$16 sps:$4 sm:$0xff]  }
 0x183   : > { %3070 = vmatpush2.bf16.msra.mxu0 %v7588_v25  ;;  %3113 = vmatpush2.bf16.msra.mxu1 %v7591_v26  ;;  %v7641_v25 = vld [vmem:[#allocation10 + $0x66c] ss:$16 sps:$4 sm:$0xff]   ;;  %v7636_v26 = vld [vmem:[#allocation10 + $0x468] ss:$16 sps:$4 sm:$0xff]  }
 0x184   : > { %3071 = vmatprep.subr.bf16.mxu0 %v7596_v27  ;;  %3114 = vmatprep.subr.bf16.mxu1 %v7599_v28  ;;  %v7639_v27 = vld [vmem:[#allocation10 + $0x668] ss:$16 sps:$4 sm:$0xff]   ;;  %v7644_v28 = vld [vmem:[#allocation10 + $0x44c] ss:$16 sps:$4 sm:$0xff]  }
 0x187   : > { %3072 = vmatpush2.bf16.msra.mxu0 %v7594_v29  ;;  %3115 = vmatpush2.bf16.msra.mxu1 %v7597_v30  ;;  %v7647_v29 = vld [vmem:[#allocation10 + $0x64c] ss:$16 sps:$4 sm:$0xff]   ;;  %v7642_v30 = vld [vmem:[#allocation10 + $0x448] ss:$16 sps:$4 sm:$0xff]  }
 0x188   : > { %3073 = vmatprep.subr.bf16.mxu0 %v7602_v31  ;;  %3116 = vmatprep.subr.bf16.mxu1 %v7605_v33  ;;  %v7645_v31 = vld [vmem:[#allocation10 + $0x648] ss:$16 sps:$4 sm:$0xff]   ;;  %v7650_v33 = vld [vmem:[#allocation10 + $0x42c] ss:$16 sps:$4 sm:$0xff]  }
 0x18b   : > { %3074 = vmatpush2.bf16.msra.mxu0 %v7600_v35  ;;  %3117 = vmatpush2.bf16.msra.mxu1 %v7603_v36  ;;  %v7653_v35 = vld [vmem:[#allocation10 + $0x62c] ss:$16 sps:$4 sm:$0xff]   ;;  %v7648_v36 = vld [vmem:[#allocation10 + $0x428] ss:$16 sps:$4 sm:$0xff]  }
 0x18c   : > { %3075 = vmatprep.subr.bf16.mxu0 %v7608_v42  ;;  %3118 = vmatprep.subr.bf16.mxu1 %v7611_v43  ;;  %v7656_v42 = vld [vmem:[#allocation10 + $0x40c] ss:$16 sps:$4 sm:$0xff]  }
 0x18d   : > { %v7659_v43 = vld [vmem:[#allocation10 + $0x60c] ss:$16 sps:$4 sm:$0xff]  }
 0x18f   : > { %3076 = vmatpush2.bf16.msra.mxu0 %v7606_v44  ;;  %3119 = vmatpush2.bf16.msra.mxu1 %v7609_v45  ;;  %v7654_v44 = vld [vmem:[#allocation10 + $0x408] ss:$16 sps:$4 sm:$0xff]  }
 0x190   : > { %3131 = vmatprep.subr.bf16.mxu0 %v7614_v47  ;;  %3174 = vmatprep.subr.bf16.mxu1 %v7617_v48  ;;  %v7657_v45 = vld [vmem:[#allocation10 + $0x608] ss:$16 sps:$4 sm:$0xff]   ;;  %v7665_v47 = vld [vmem:[#allocation10 + $0x7ec] ss:$16 sps:$4 sm:$0xff]  }
 0x191   : > { %v7660_v48 = vld [vmem:[#allocation10 + $0x5e8] ss:$16 sps:$4 sm:$0xff]  }
 0x192   : > { %v1237_v59 = vpop.f32.mrf.mxu0  ;;  %v1280_v60 = vpop.f32.mrf.mxu1  ;;  %3078 = vmatmul.mubr.bf16.vlgmr.msra.gmra.mxu0 %v8817_v19  ;;  %3121 = vmatmul.mubr.bf16.vlgmr.msra.gmra.mxu1 %v8819_v20 }
 0x193   : > { %v3268_v62 = vadd.f32 %v3257_v57, %v1280_v60  ;;  %3132 = vmatpush1.bf16.msra.mxu0 %v7612_v51  ;;  %3175 = vmatpush1.bf16.msra.mxu1 %v7615_v52  ;;  %v3266_v8 = vadd.f32 %v3249_v61, %v1237_v59  ;;  %v7668_v51 = vld [vmem:[#allocation10 + $0x5cc] ss:$16 sps:$4 sm:$0xff]   ;;  %v7675_v59 = vld [vmem:[#allocation10 + $0x7a8] ss:$16 sps:$4 sm:$0xff]  }
 0x194   : > { %v1239_v0 = vpop.f32.mrf.mxu0  ;;  %v1282_v2 = vpop.f32.mrf.mxu1  ;;  %3133 = vmatprep.subr.bf16.mxu0 %v7620_v54  ;;  %3176 = vmatprep.subr.bf16.mxu1 %v7623_v55  ;;  %v7671_v52 = vld [vmem:[#allocation10 + $0x7cc] ss:$16 sps:$4 sm:$0xff]   ;;  %v7666_v54 = vld [vmem:[#allocation10 + $0x5c8] ss:$16 sps:$4 sm:$0xff]  }
 0x195   : > { %v3269_v5 = vadd.f32 %v3261_v41, %v1282_v2  ;;  %3163 = vmatprep.mubr.bf16.mxu0 %v8826_v32  ;;  %3206 = vmatprep.mubr.bf16.mxu1 %v8829_v34  ;;  %v3267_v12 = vadd.f32 %v3253_v1, %v1239_v0  ;;  %v7669_v55 = vld [vmem:[#allocation10 + $0x7c8] ss:$16 sps:$4 sm:$0xff]   ;;  %v7680_v60 = vld [vmem:[#allocation10 + $0x58c] ss:$16 sps:$4 sm:$0xff]  }
 0x196   : > { %v1241_v19 = vpop.f32.mrf.mxu0  ;;  %v1284_v20 = vpop.f32.mrf.mxu1  ;;  %v7686_v0 = vld [vmem:[#allocation10 + $0x56c] ss:$16 sps:$4 sm:$0xff]   ;;  %v7684_v2 = vld [vmem:[#allocation10 + $0x568] ss:$16 sps:$4 sm:$0xff]  }
 0x197   : > { %v3270_v9 = vadd.f32 %v3249_v61, %v1241_v19  ;;  %v3272_v10 = vadd.f32 %v3257_v57, %v1284_v20  ;;  %3134 = vmatpush1.bf16.msra.mxu0 %v7618_v58  ;;  %3177 = vmatpush1.bf16.msra.mxu1 %v7621_v63  ;;  %v7674_v57 = vld [vmem:[#allocation10 + $0x5ac] ss:$16 sps:$4 sm:$0xff]   ;;  %v7672_v58 = vld [vmem:[#allocation10 + $0x5a8] ss:$16 sps:$4 sm:$0xff]  }
 0x198   : > { %v1243_v13 = vpop.f32.mrf.mxu0  ;;  %v1286_v14 = vpop.f32.mrf.mxu1  ;;  %3135 = vmatprep.subr.bf16.mxu0 %v7626_v3  ;;  %3178 = vmatprep.subr.bf16.mxu1 %v7629_v4  ;;  %v7683_v61 = vld [vmem:[#allocation10 + $0x78c] ss:$16 sps:$4 sm:$0xff]   ;;  %v7681_v63 = vld [vmem:[#allocation10 + $0x788] ss:$16 sps:$4 sm:$0xff]  }
 0x199   : > { %v8864_v16 = vpack.c.bf16 %v3270_v9, %v3266_v8  ;;  %v8866_v17 = vpack.c.bf16 %v3272_v10, %v3268_v62  ;;  %v3271_v32 = vadd.f32 %v3253_v1, %v1243_v13  ;;  %v3273_v34 = vadd.f32 %v3261_v41, %v1286_v14  ;;  %v7677_v41 = vld [vmem:[#allocation10 + $0x7ac] ss:$16 sps:$4 sm:$0xff]   ;;  %v7678_v62 = vld [vmem:[#allocation10 + $0x588] ss:$16 sps:$4 sm:$0xff]   ;;  %v7710_v14 = vld [vmem:[#allocation13 + $0xe4] ss:$16 sps:$4 sm:$0xff]  }
 0x19a   : > { %v7689_v1 = vld [vmem:[#allocation10 + $0x76c] ss:$16 sps:$4 sm:$0xff]   ;;  %v7687_v3 = vld [vmem:[#allocation10 + $0x768] ss:$16 sps:$4 sm:$0xff]  }
 0x19b   : > { %v8868_v22 = vpack.c.bf16 %v3271_v32, %v3267_v12  ;;  %v8870_v23 = vpack.c.bf16 %v3273_v34, %v3269_v5  ;;  %3136 = vmatpush1.bf16.msra.mxu0 %v7624_v6  ;;  %3179 = vmatpush1.bf16.msra.mxu1 %v7627_v7  ;;  %v7692_v4 = vld [vmem:[#allocation10 + $0x54c] ss:$16 sps:$4 sm:$0xff]   ;;  %v7690_v6 = vld [vmem:[#allocation10 + $0x548] ss:$16 sps:$4 sm:$0xff]   ;;  %v7713_v32 = vld [vmem:[#allocation13 + $0xc4] ss:$16 sps:$4 sm:$0xff]  }
 0x19c   : > { %3137 = vmatprep.subr.bf16.mxu0 %v7632_v11  ;;  %3180 = vmatprep.subr.bf16.mxu1 %v7635_v15  ;;  %v7695_v5 = vld [vmem:[#allocation10 + $0x74c] ss:$16 sps:$4 sm:$0xff]   ;;  %v7693_v7 = vld [vmem:[#allocation10 + $0x748] ss:$16 sps:$4 sm:$0xff]   ;;  %v7708_v15 = vld [vmem:[#allocation13 + $0xe0] ss:$16 sps:$4 sm:$0xff]  }
 0x19d   : > { %v7698_v19 = vld [vmem:[#allocation10 + $0x52c] ss:$16 sps:$4 sm:$0xff]   ;;  %v7696_v8 = vld [vmem:[#allocation10 + $0x528] ss:$16 sps:$4 sm:$0xff]   ;;  %v7711_v34 = vld [vmem:[#allocation13 + $0xc0] ss:$16 sps:$4 sm:$0xff]  }
 0x19e   : > { %v7701_v20 = vld [vmem:[#allocation10 + $0x72c] ss:$16 sps:$4 sm:$0xff]   ;;  %v7699_v9 = vld [vmem:[#allocation10 + $0x728] ss:$16 sps:$4 sm:$0xff]  }
 0x19f   : > { %3138 = vmatpush1.bf16.msra.mxu0 %v7630_v18  ;;  %3181 = vmatpush1.bf16.msra.mxu1 %v7633_v21  ;;  %v7704_v10 = vld [vmem:[#allocation10 + $0x50c] ss:$16 sps:$4 sm:$0xff]   ;;  %v7702_v12 = vld [vmem:[#allocation10 + $0x508] ss:$16 sps:$4 sm:$0xff]   ;;  %v7716_v18 = vld [vmem:[#allocation13 + $0xa4] ss:$16 sps:$4 sm:$0xff]  }
 0x1a0   : > { %3139 = vmatprep.subr.bf16.mxu0 %v7638_v24  ;;  %3182 = vmatprep.subr.bf16.mxu1 %v7641_v25  ;;  %v7707_v11 = vld [vmem:[#allocation10 + $0x70c] ss:$16 sps:$4 sm:$0xff]   ;;  %v7705_v13 = vld [vmem:[#allocation10 + $0x708] ss:$16 sps:$4 sm:$0xff]   ;;  %v7714_v21 = vld [vmem:[#allocation13 + $0xa0] ss:$16 sps:$4 sm:$0xff]  }
 0x1a1   : > { %v7719_v24 = vld [vmem:[#allocation13 + $0x84] ss:$16 sps:$4 sm:$0xff]   ;;  %v7717_v25 = vld [vmem:[#allocation13 + $0x80] ss:$16 sps:$4 sm:$0xff]  }
 0x1a3   : > { %3140 = vmatpush1.bf16.msra.mxu0 %v7636_v26  ;;  %3183 = vmatpush1.bf16.msra.mxu1 %v7639_v27  ;;  %v7722_v26 = vld [vmem:[#allocation13 + $0x64] ss:$16 sps:$4 sm:$0xff]   ;;  %v7720_v27 = vld [vmem:[#allocation13 + $0x60] ss:$16 sps:$4 sm:$0xff]  }
 0x1a4   : > { %3141 = vmatprep.subr.bf16.mxu0 %v7644_v28  ;;  %3184 = vmatprep.subr.bf16.mxu1 %v7647_v29  ;;  %v7804_v28 = vld [vmem:[#allocation13 + $0x2e0] ss:$16 sps:$4 sm:$0xff]   ;;  %v7806_v29 = vld [vmem:[#allocation13 + $0x2e4] ss:$16 sps:$4 sm:$0xff]  }
 0x1a7   : > { %3142 = vmatpush1.bf16.msra.mxu0 %v7642_v30  ;;  %3185 = vmatpush1.bf16.msra.mxu1 %v7645_v31  ;;  %v7725_v30 = vld [vmem:[#allocation13 + $0x44] ss:$16 sps:$4 sm:$0xff]  }
 0x1a8   : > { %3143 = vmatprep.subr.bf16.mxu0 %v7650_v33  ;;  %3186 = vmatprep.subr.bf16.mxu1 %v7653_v35  ;;  %v7812_v31 = vld [vmem:[#allocation13 + $0x2c4] ss:$16 sps:$4 sm:$0xff]   ;;  %v7726_v35 = vld [vmem:[#allocation13 + $0x20] ss:$16 sps:$4 sm:$0xff]  }
 0x1a9   : > { %v7728_v33 = vld [vmem:[#allocation13 + $0x24] ss:$16 sps:$4 sm:$0xff]  }
 0x1ab   : > { %3144 = vmatpush1.bf16.msra.mxu0 %v7648_v36  ;;  %3187 = vmatpush1.bf16.msra.mxu1 %v7651_v39  ;;  %v7816_v36 = vld [vmem:[#allocation13 + $0x2a0] ss:$16 sps:$4 sm:$0xff]   ;;  %v7818_v39 = vld [vmem:[#allocation13 + $0x2a4] ss:$16 sps:$4 sm:$0xff]  }
 0x1ac   : > { %3145 = vmatprep.subr.bf16.mxu0 %v7656_v42  ;;  %3188 = vmatprep.subr.bf16.mxu1 %v7659_v43  ;;  %v7731_v42 = vld [vmem:[#allocation13 + $0x4] ss:$16 sps:$4 sm:$0xff]   ;;  %v7729_v43 = vld [vmem:[#allocation13] ss:$16 sps:$4 sm:$0xff]  }
 0x1af   : > { %3146 = vmatpush1.bf16.msra.mxu0 %v7654_v44  ;;  %3189 = vmatpush1.bf16.msra.mxu1 %v7657_v45  ;;  %v7822_v44 = vld [vmem:[#allocation13 + $0x280] ss:$16 sps:$4 sm:$0xff]   ;;  %v7824_v45 = vld [vmem:[#allocation13 + $0x284] ss:$16 sps:$4 sm:$0xff]  }
 0x1b0   : > { %3147 = vmatprep.subr.bf16.mxu0 %v7662_v46  ;;  %3190 = vmatprep.subr.bf16.mxu1 %v7665_v47  ;;  %v7734_v46 = vld [vmem:[#allocation13 + $0x1e4] ss:$16 sps:$4 sm:$0xff]   ;;  %v7732_v47 = vld [vmem:[#allocation13 + $0x1e0] ss:$16 sps:$4 sm:$0xff]  }
 0x1b3   : > { %3148 = vmatpush2.bf16.msra.mxu0 %v7660_v48  ;;  %3191 = vmatpush2.bf16.msra.mxu1 %v7663_v50  ;;  %v7828_v48 = vld [vmem:[#allocation13 + $0x260] ss:$16 sps:$4 sm:$0xff]   ;;  %v7830_v50 = vld [vmem:[#allocation13 + $0x264] ss:$16 sps:$4 sm:$0xff]  }
 0x1b4   : > { %3149 = vmatprep.subr.bf16.mxu0 %v7668_v51  ;;  %3192 = vmatprep.subr.bf16.mxu1 %v7671_v52  ;;  %v7737_v51 = vld [vmem:[#allocation13 + $0x1c4] ss:$16 sps:$4 sm:$0xff]   ;;  %v7735_v52 = vld [vmem:[#allocation13 + $0x1c0] ss:$16 sps:$4 sm:$0xff]  }
 0x1b7   : > { %3150 = vmatpush2.bf16.msra.mxu0 %v7666_v54  ;;  %3193 = vmatpush2.bf16.msra.mxu1 %v7669_v55  ;;  %v7834_v54 = vld [vmem:[#allocation13 + $0x240] ss:$16 sps:$4 sm:$0xff]   ;;  %v7836_v55 = vld [vmem:[#allocation13 + $0x244] ss:$16 sps:$4 sm:$0xff]  }
 0x1b8   : > { %3151 = vmatprep.subr.bf16.mxu0 %v7674_v57  ;;  %3194 = vmatprep.subr.bf16.mxu1 %v7677_v41  ;;  %v7740_v57 = vld [vmem:[#allocation13 + $0x1a4] ss:$16 sps:$4 sm:$0xff]   ;;  %v7738_v41 = vld [vmem:[#allocation13 + $0x1a0] ss:$16 sps:$4 sm:$0xff]  }
 0x1bb   : > { %3152 = vmatpush2.bf16.msra.mxu0 %v7672_v58  ;;  %3195 = vmatpush2.bf16.msra.mxu1 %v7675_v59  ;;  %v7840_v58 = vld [vmem:[#allocation13 + $0x220] ss:$16 sps:$4 sm:$0xff]   ;;  %v7842_v59 = vld [vmem:[#allocation13 + $0x224] ss:$16 sps:$4 sm:$0xff]  }
 0x1bc   : > { %3153 = vmatprep.subr.bf16.mxu0 %v7680_v60  ;;  %3196 = vmatprep.subr.bf16.mxu1 %v7683_v61  ;;  %v7743_v60 = vld [vmem:[#allocation13 + $0x184] ss:$16 sps:$4 sm:$0xff]   ;;  %v7741_v61 = vld [vmem:[#allocation13 + $0x180] ss:$16 sps:$4 sm:$0xff]  }
 0x1bf   : > { %3154 = vmatpush2.bf16.msra.mxu0 %v7678_v62  ;;  %3197 = vmatpush2.bf16.msra.mxu1 %v7681_v63  ;;  %v7846_v62 = vld [vmem:[#allocation13 + $0x200] ss:$16 sps:$4 sm:$0xff]   ;;  %v7848_v63 = vld [vmem:[#allocation13 + $0x204] ss:$16 sps:$4 sm:$0xff]  }
 0x1c0   : > { %3155 = vmatprep.subr.bf16.mxu0 %v7686_v0  ;;  %3198 = vmatprep.subr.bf16.mxu1 %v7689_v1  ;;  %v7746_v0 = vld [vmem:[#allocation13 + $0x164] ss:$16 sps:$4 sm:$0xff]   ;;  %v7744_v1 = vld [vmem:[#allocation13 + $0x160] ss:$16 sps:$4 sm:$0xff]  }
 0x1c3   : > { %3156 = vmatpush2.bf16.msra.mxu0 %v7684_v2  ;;  %3199 = vmatpush2.bf16.msra.mxu1 %v7687_v3  ;;  %v7852_v2 = vld [vmem:[#allocation13 + $0x3e0] ss:$16 sps:$4 sm:$0xff]   ;;  %v7854_v3 = vld [vmem:[#allocation13 + $0x3e4] ss:$16 sps:$4 sm:$0xff]  }
 0x1c4   : > { %3157 = vmatprep.subr.bf16.mxu0 %v7692_v4  ;;  %3200 = vmatprep.subr.bf16.mxu1 %v7695_v5  ;;  %v7749_v4 = vld [vmem:[#allocation13 + $0x144] ss:$16 sps:$4 sm:$0xff]   ;;  %v7747_v5 = vld [vmem:[#allocation13 + $0x140] ss:$16 sps:$4 sm:$0xff]  }
 0x1c7   : > { %3158 = vmatpush2.bf16.msra.mxu0 %v7690_v6  ;;  %3201 = vmatpush2.bf16.msra.mxu1 %v7693_v7  ;;  %v7858_v6 = vld [vmem:[#allocation13 + $0x3c0] ss:$16 sps:$4 sm:$0xff]   ;;  %v7860_v7 = vld [vmem:[#allocation13 + $0x3c4] ss:$16 sps:$4 sm:$0xff]  }
 0x1c8   : > { %3159 = vmatprep.subr.bf16.mxu0 %v7698_v19  ;;  %3202 = vmatprep.subr.bf16.mxu1 %v7701_v20 }
 0x1cb   : > { %3160 = vmatpush2.bf16.msra.mxu0 %v7696_v8  ;;  %3203 = vmatpush2.bf16.msra.mxu1 %v7699_v9  ;;  %v7752_v8 = vld [vmem:[#allocation13 + $0x124] ss:$16 sps:$4 sm:$0xff]   ;;  %v7750_v9 = vld [vmem:[#allocation13 + $0x120] ss:$16 sps:$4 sm:$0xff]  }
 0x1cc   : > { %3161 = vmatprep.subr.bf16.mxu0 %v7704_v10  ;;  %3204 = vmatprep.subr.bf16.mxu1 %v7707_v11  ;;  %v7864_v10 = vld [vmem:[#allocation13 + $0x3a0] ss:$16 sps:$4 sm:$0xff]   ;;  %v7866_v11 = vld [vmem:[#allocation13 + $0x3a4] ss:$16 sps:$4 sm:$0xff]  }
 0x1cf   : > { %3162 = vmatpush2.bf16.msra.mxu0 %v7702_v12  ;;  %3205 = vmatpush2.bf16.msra.mxu1 %v7705_v13 }
 0x1d0   : > { %4216 = vmatprep.subr.bf16.mxu0 %v7710_v14  ;;  %4259 = vmatprep.subr.bf16.mxu1 %v7806_v29  ;;  %v7755_v14 = vld [vmem:[#allocation13 + $0x104] ss:$16 sps:$4 sm:$0xff]  }
 0x1d2   : > { %3164 = vmatmul.mubr.bf16.vlgmr.msra.gmra.mxu0 %v8837_v37  ;;  %3207 = vmatmul.mubr.bf16.vlgmr.msra.gmra.mxu1 %v8839_v38  ;;  %v7723_v37 = vld [vmem:[#allocation13 + $0x40] ss:$16 sps:$4 sm:$0xff]   ;;  %v2907_v19 = vpop.f32.mrf.mxu0  ;;  %v2950_v20 = vpop.f32.mrf.mxu1 }
 0x1d3   : > { %4217 = vmatpush1.bf16.msra.mxu0 %v7708_v15  ;;  %4260 = vmatpush1.bf16.msra.mxu1 %v7804_v28  ;;  %v7810_v38 = vld [vmem:[#allocation13 + $0x2c0] ss:$16 sps:$4 sm:$0xff]  }
 0x1d4   : > { %4218 = vmatprep.subr.bf16.mxu0 %v7713_v32  ;;  %4261 = vmatprep.subr.bf16.mxu1 %v7812_v31  ;;  %v2909_v12 = vpop.f32.mrf.mxu0  ;;  %v2952_v13 = vpop.f32.mrf.mxu1  ;;  %v7753_v15 = vld [vmem:[#allocation13 + $0x100] ss:$16 sps:$4 sm:$0xff]  }
 0x1d5   : > { %v7870_v32 = vld [vmem:[#allocation13 + $0x380] ss:$16 sps:$4 sm:$0xff]  }
 0x1d7   : > { %4219 = vmatpush1.bf16.msra.mxu0 %v7711_v34  ;;  %4262 = vmatpush1.bf16.msra.mxu1 %v7810_v38  ;;  %v7872_v34 = vld [vmem:[#allocation13 + $0x384] ss:$16 sps:$4 sm:$0xff]   ;;  %v2951_v38 = vadd.f32 %v2950_v20, %v2907_v19  ;;  %v7902_v19 = vld [vmem:[#allocation13 + $0x2ec] ss:$16 sps:$4 sm:$0xff]   ;;  %v7759_v20 = vld [vmem:[#allocation13 + $0xc8] ss:$16 sps:$4 sm:$0xff]  }
 0x1d8   : > { %4220 = vmatprep.subr.bf16.mxu0 %v7716_v18  ;;  %4263 = vmatprep.subr.bf16.mxu1 %v7818_v39  ;;  %v2911_v18 = vpop.f32.mrf.mxu0 }
 0x1db   : > { %4221 = vmatpush1.bf16.msra.mxu0 %v7714_v21  ;;  %4264 = vmatpush1.bf16.msra.mxu1 %v7816_v36  ;;  %v2954_v21 = vpop.f32.mrf.mxu1 }
 0x1dc   : > { %4222 = vmatprep.subr.bf16.mxu0 %v7719_v24  ;;  %4265 = vmatprep.subr.bf16.mxu1 %v7824_v45  ;;  %v7758_v24 = vld [vmem:[#allocation13 + $0xec] ss:$16 sps:$4 sm:$0xff]   ;;  %v2955_v36 = vadd.f32 %v2954_v21, %v2911_v18  ;;  %v7777_v21 = vld [vmem:[#allocation13 + $0x8] ss:$16 sps:$4 sm:$0xff]  }
 0x1dd   : > { %v2956_v28 = vpop.f32.mrf.mxu1  ;;  %v7779_v18 = vld [vmem:[#allocation13 + $0xc] ss:$16 sps:$4 sm:$0xff]  }
 0x1df   : > { %4223 = vmatpush1.bf16.msra.mxu0 %v7717_v25  ;;  %4266 = vmatpush1.bf16.msra.mxu1 %v7822_v44  ;;  %v7876_v25 = vld [vmem:[#allocation13 + $0x360] ss:$16 sps:$4 sm:$0xff]  }
 0x1e0   : > { %4224 = vmatprep.subr.bf16.mxu0 %v7722_v26  ;;  %4267 = vmatprep.subr.bf16.mxu1 %v7830_v50  ;;  %v7878_v26 = vld [vmem:[#allocation13 + $0x364] ss:$16 sps:$4 sm:$0xff]  }
 0x1e3   : > { %4225 = vmatpush1.bf16.msra.mxu0 %v7720_v27  ;;  %4268 = vmatpush1.bf16.msra.mxu1 %v7828_v48  ;;  %v2913_v27 = vpop.f32.mrf.mxu0 }
 0x1e4   : > { %4226 = vmatprep.subr.bf16.mxu0 %v7725_v30  ;;  %4269 = vmatprep.subr.bf16.mxu1 %v7836_v55 }
 0x1e7   : > { %4227 = vmatpush1.bf16.msra.mxu0 %v7723_v37  ;;  %4270 = vmatpush1.bf16.msra.mxu1 %v7834_v54  ;;  %v2953_v37 = vadd.f32 %v2952_v13, %v2909_v12  ;;  %v7770_v12 = vld [vmem:[#allocation13 + $0x6c] ss:$16 sps:$4 sm:$0xff]   ;;  %v7768_v13 = vld [vmem:[#allocation13 + $0x68] ss:$16 sps:$4 sm:$0xff]  }
 0x1e8   : > { %4228 = vmatprep.subr.bf16.mxu0 %v7728_v33  ;;  %4271 = vmatprep.subr.bf16.mxu1 %v7842_v59 }
 0x1eb   : > { %4229 = vmatpush1.bf16.msra.mxu0 %v7726_v35  ;;  %4272 = vmatpush1.bf16.msra.mxu1 %v7840_v58  ;;  %v7884_v35 = vld [vmem:[#allocation13 + $0x344] ss:$16 sps:$4 sm:$0xff]  }
 0x1ec   : > { %4230 = vmatprep.subr.bf16.mxu0 %v7731_v42  ;;  %4273 = vmatprep.subr.bf16.mxu1 %v7848_v63  ;;  %v7882_v42 = vld [vmem:[#allocation13 + $0x340] ss:$16 sps:$4 sm:$0xff]   ;;  %v7896_v63 = vld [vmem:[#allocation13 + $0x304] ss:$16 sps:$4 sm:$0xff]  }
 0x1ef   : > { %4231 = vmatpush1.bf16.msra.mxu0 %v7729_v43  ;;  %4274 = vmatpush1.bf16.msra.mxu1 %v7846_v62 }
 0x1f0   : > { %4232 = vmatprep.subr.bf16.mxu0 %v7734_v46  ;;  %4275 = vmatprep.subr.bf16.mxu1 %v7854_v3  ;;  %v2957_v46 = vadd.f32 %v2956_v28, %v2913_v27  ;;  %v7783_v27 = vld [vmem:[#allocation13 + $0x1c8] ss:$16 sps:$4 sm:$0xff]   ;;  %v7788_v28 = vld [vmem:[#allocation13 + $0x1ac] ss:$16 sps:$4 sm:$0xff]  }
 0x1f3   : > { %4233 = vmatpush2.bf16.msra.mxu0 %v7732_v47  ;;  %4276 = vmatpush2.bf16.msra.mxu1 %v7852_v2  ;;  %v8877_v47 = vld [vmem:[%s9062_s5] sm:$0xf] }
 0x1f4   : > { %4234 = vmatprep.subr.bf16.mxu0 %v7737_v51  ;;  %4277 = vmatprep.subr.bf16.mxu1 %v7860_v7  ;;  %v7890_v51 = vld [vmem:[#allocation13 + $0x324] ss:$16 sps:$4 sm:$0xff]   ;;  %v3291_v54 = vrot.slane %v8877_v47, %v8855_v40  ;;  %v3287_v59 = vrot.slane %v8877_v47, %v8852_v56  ;;  %v7894_v2 = vld [vmem:[#allocation13 + $0x300] ss:$16 sps:$4 sm:$0xff]   ;;  %v7761_v7 = vld [vmem:[#allocation13 + $0xcc] ss:$16 sps:$4 sm:$0xff]  }
 0x1f7   : > { %4235 = vmatpush2.bf16.msra.mxu0 %v7735_v52  ;;  %4278 = vmatpush2.bf16.msra.mxu1 %v7858_v6 }
 0x1f8   : > { %4236 = vmatprep.subr.bf16.mxu0 %v7740_v57  ;;  %4279 = vmatprep.subr.bf16.mxu1 %v7866_v11  ;;  %v7765_v11 = vld [vmem:[#allocation13 + $0x88] ss:$16 sps:$4 sm:$0xff]  }
 0x1fb   : > { %4237 = vmatpush2.bf16.msra.mxu0 %v7738_v41  ;;  %4280 = vmatpush2.bf16.msra.mxu1 %v7864_v10  ;;  %v7888_v41 = vld [vmem:[#allocation13 + $0x320] ss:$16 sps:$4 sm:$0xff]   ;;  %v7767_v10 = vld [vmem:[#allocation13 + $0x8c] ss:$16 sps:$4 sm:$0xff]  }
 0x1fc   : > { %4238 = vmatprep.subr.bf16.mxu0 %v7743_v60  ;;  %4281 = vmatprep.subr.bf16.mxu1 %v7872_v34  ;;  %v7774_v34 = vld [vmem:[#allocation13 + $0x28] ss:$16 sps:$4 sm:$0xff]  }
 0x1ff   : > { %4239 = vmatpush2.bf16.msra.mxu0 %v7741_v61  ;;  %4282 = vmatpush2.bf16.msra.mxu1 %v7870_v32  ;;  %v7776_v32 = vld [vmem:[#allocation13 + $0x2c] ss:$16 sps:$4 sm:$0xff]  }
 0x200   : > { %4240 = vmatprep.subr.bf16.mxu0 %v7746_v0  ;;  %4283 = vmatprep.subr.bf16.mxu1 %v7878_v26  ;;  %v7785_v26 = vld [vmem:[#allocation13 + $0x1cc] ss:$16 sps:$4 sm:$0xff]  }
 0x203   : > { %4241 = vmatpush2.bf16.msra.mxu0 %v7744_v1  ;;  %4284 = vmatpush2.bf16.msra.mxu1 %v7876_v25  ;;  %v7780_v25 = vld [vmem:[#allocation13 + $0x1e8] ss:$16 sps:$4 sm:$0xff]  }
 0x204   : > { %4242 = vmatprep.subr.bf16.mxu0 %v7749_v4  ;;  %4285 = vmatprep.subr.bf16.mxu1 %v7884_v35  ;;  %v7795_v35 = vld [vmem:[#allocation13 + $0x148] ss:$16 sps:$4 sm:$0xff]  }
 0x207   : > { %4243 = vmatpush2.bf16.msra.mxu0 %v7747_v5  ;;  %4286 = vmatpush2.bf16.msra.mxu1 %v7882_v42  ;;  %v7756_v5 = vld [vmem:[#allocation13 + $0xe8] ss:$16 sps:$4 sm:$0xff]   ;;  %v7803_v42 = vld [vmem:[#allocation13 + $0x10c] ss:$16 sps:$4 sm:$0xff]  }
 0x208   : > { %4244 = vmatprep.subr.bf16.mxu0 %v7752_v8  ;;  %4287 = vmatprep.subr.bf16.mxu1 %v7890_v51  ;;  %v7764_v8 = vld [vmem:[#allocation13 + $0xac] ss:$16 sps:$4 sm:$0xff]   ;;  %v7819_v51 = vld [vmem:[#allocation12 + $0xa0] ss:$16 sps:$4 sm:$0xff]  }
 0x20b   : > { %4245 = vmatpush2.bf16.msra.mxu0 %v7750_v9  ;;  %4288 = vmatpush2.bf16.msra.mxu1 %v7888_v41  ;;  %v7762_v9 = vld [vmem:[#allocation13 + $0xa8] ss:$16 sps:$4 sm:$0xff]   ;;  %v7839_v41 = vld [vmem:[#allocation12 + $0x44] ss:$16 sps:$4 sm:$0xff]  }
 0x20c   : > { %4246 = vmatprep.subr.bf16.mxu0 %v7755_v14  ;;  %4289 = vmatprep.subr.bf16.mxu1 %v7896_v63  ;;  %v7773_v14 = vld [vmem:[#allocation13 + $0x4c] ss:$16 sps:$4 sm:$0xff]   ;;  %v7857_v63 = vld [vmem:[#allocation12 + $0x1e4] ss:$16 sps:$4 sm:$0xff]  }
 0x20f   : > { %4247 = vmatpush2.bf16.msra.mxu0 %v7753_v15  ;;  %4290 = vmatpush2.bf16.msra.mxu1 %v7894_v2  ;;  %v7771_v15 = vld [vmem:[#allocation13 + $0x48] ss:$16 sps:$4 sm:$0xff]   ;;  %v7861_v2 = vld [vmem:[#allocation12 + $0x1c0] ss:$16 sps:$4 sm:$0xff]  }
 0x210   : > { %4302 = vmatprep.subr.bf16.mxu0 %v7758_v24  ;;  %4345 = vmatprep.subr.bf16.mxu1 %v7902_v19  ;;  %v7782_v24 = vld [vmem:[#allocation13 + $0x1ec] ss:$16 sps:$4 sm:$0xff]  }
 0x212   : > { %v2993_v29 = vpop.f32.mrf.mxu0  ;;  %v3036_v30 = vpop.f32.mrf.mxu1 }
 0x213   : > { %v2994_v43 = vadd.f32 %v2993_v29, %v2951_v38  ;;  %v7786_v29 = vld [vmem:[#allocation13 + $0x1a8] ss:$16 sps:$4 sm:$0xff]   ;;  %v7794_v38 = vld [vmem:[#allocation13 + $0x16c] ss:$16 sps:$4 sm:$0xff]  }
 0x214   : > { %v2995_v31 = vpop.f32.mrf.mxu0  ;;  %v3038_v33 = vpop.f32.mrf.mxu1 }
 0x215   : > { %v2996_v39 = vadd.f32 %v2995_v31, %v2953_v37  ;;  %v3037_v58 = vadd.f32 %v3036_v30, %v2994_v43  ;;  %v7791_v30 = vld [vmem:[#allocation13 + $0x18c] ss:$16 sps:$4 sm:$0xff]   ;;  %v7789_v37 = vld [vmem:[#allocation13 + $0x188] ss:$16 sps:$4 sm:$0xff]  }
 0x216   : > { %v2997_v44 = vpop.f32.mrf.mxu0  ;;  %v3040_v45 = vpop.f32.mrf.mxu1  ;;  %v7792_v31 = vld [vmem:[#allocation13 + $0x168] ss:$16 sps:$4 sm:$0xff]  }
 0x217   : > { %v2998_v48 = vadd.f32 %v2997_v44, %v2955_v36  ;;  %v3039_v52 = vadd.f32 %v3038_v33, %v2996_v39  ;;  %v3304_v3 = vadd.f32 %v3287_v59, %v3037_v58  ;;  %v7797_v33 = vld [vmem:[#allocation13 + $0x14c] ss:$16 sps:$4 sm:$0xff]   ;;  %v7798_v39 = vld [vmem:[#allocation13 + $0x128] ss:$16 sps:$4 sm:$0xff]   ;;  %v7809_v44 = vld [vmem:[#allocation12 + $0xe4] ss:$16 sps:$4 sm:$0xff]  }
 0x218   : > { %v2999_v50 = vpop.f32.mrf.mxu0  ;;  %v3042_v60 = vpop.f32.mrf.mxu1  ;;  %v7800_v36 = vld [vmem:[#allocation13 + $0x12c] ss:$16 sps:$4 sm:$0xff]   ;;  %v7801_v43 = vld [vmem:[#allocation13 + $0x108] ss:$16 sps:$4 sm:$0xff]   ;;  %v7837_v58 = vld [vmem:[#allocation12 + $0x40] ss:$16 sps:$4 sm:$0xff]  }
 0x219   : > { %v3041_v55 = vadd.f32 %v3040_v45, %v2998_v48  ;;  %v3000_v57 = vadd.f32 %v2999_v50, %v2957_v46  ;;  %v3305_v0 = vadd.f32 %v3291_v54, %v3039_v52  ;;  %v7807_v45 = vld [vmem:[#allocation12 + $0xe0] ss:$16 sps:$4 sm:$0xff]   ;;  %v7815_v46 = vld [vmem:[#allocation12 + $0xc4] ss:$16 sps:$4 sm:$0xff]  }
 0x21a   : > { %v7813_v48 = vld [vmem:[#allocation12 + $0xc0] ss:$16 sps:$4 sm:$0xff]   ;;  %v7821_v50 = vld [vmem:[#allocation12 + $0xa4] ss:$16 sps:$4 sm:$0xff]  }
 0x21b   : > { %v3043_v61 = vadd.f32 %v3042_v60, %v3000_v57  ;;  %v3308_v62 = vadd.f32 %v3287_v59, %v3041_v55  ;;  %v7827_v52 = vld [vmem:[#allocation12 + $0x84] ss:$16 sps:$4 sm:$0xff]   ;;  %v7831_v57 = vld [vmem:[#allocation12 + $0x60] ss:$16 sps:$4 sm:$0xff]  }
 0x21c   : > { %v7833_v55 = vld [vmem:[#allocation12 + $0x64] ss:$16 sps:$4 sm:$0xff]   ;;  %v7843_v60 = vld [vmem:[#allocation12 + $0x20] ss:$16 sps:$4 sm:$0xff]  }
 0x21d   : > { %v3309_v1 = vadd.f32 %v3291_v54, %v3043_v61  ;;  %v8883_v6 = vpack.c.bf16 %v3308_v62, %v3304_v3  ;;  %v7825_v54 = vld [vmem:[#allocation12 + $0x80] ss:$16 sps:$4 sm:$0xff]   ;;  %v7845_v59 = vld [vmem:[#allocation12 + $0x24] ss:$16 sps:$4 sm:$0xff]  }
 0x21e   : > { %v7851_v61 = vld [vmem:[#allocation12 + $0x4] ss:$16 sps:$4 sm:$0xff]   ;;  %v7849_v62 = vld [vmem:[#allocation12] ss:$16 sps:$4 sm:$0xff]  }
 0x21f   : > { %v3445_v4 = vpack.c.bf16 %v3309_v1, %v3305_v0  ;;  %v7855_v0 = vld [vmem:[#allocation12 + $0x1e0] ss:$16 sps:$4 sm:$0xff]   ;;  %v7863_v1 = vld [vmem:[#allocation12 + $0x1c4] ss:$16 sps:$4 sm:$0xff]  }
 0x221   : > { %4248 = vmatprep.mubr.bf16.mxu0 %v3445_v4 }
 0x222   : > { %4249 = vmatmul.mubr.bf16.vlgmr.msra.gmra.mxu0 %v8883_v6 }
 0x223   : > { %4303 = vmatpush1.bf16.msra.mxu0 %v7756_v5  ;;  %4334 = vmatprep.mubr.bf16.mxu0 %v3445_v4  ;;  %v7869_v5 = vld [vmem:[#allocation12 + $0x1a4] ss:$16 sps:$4 sm:$0xff]  }
 0x224   : > { %4304 = vmatprep.subr.bf16.mxu0 %v7761_v7 }
 0x227   : > { %4305 = vmatpush1.bf16.msra.mxu0 %v7759_v20  ;;  %v7875_v20 = vld [vmem:[#allocation12 + $0x184] ss:$16 sps:$4 sm:$0xff]  }
 0x228   : > { %4306 = vmatprep.subr.bf16.mxu0 %v7764_v8  ;;  %v7873_v8 = vld [vmem:[#allocation12 + $0x180] ss:$16 sps:$4 sm:$0xff]  }
 0x22b   : > { %4307 = vmatpush1.bf16.msra.mxu0 %v7762_v9 }
 0x22c   : > { %4308 = vmatprep.subr.bf16.mxu0 %v7767_v10 }
 0x22f   : > { %4309 = vmatpush1.bf16.msra.mxu0 %v7765_v11  ;;  %v7881_v11 = vld [vmem:[#allocation12 + $0x164] ss:$16 sps:$4 sm:$0xff]  }
 0x230   : > { %4310 = vmatprep.subr.bf16.mxu0 %v7770_v12  ;;  %v7879_v12 = vld [vmem:[#allocation12 + $0x160] ss:$16 sps:$4 sm:$0xff]  }
 0x233   : > { %4311 = vmatpush1.bf16.msra.mxu0 %v7768_v13 }
 0x234   : > { %4312 = vmatprep.subr.bf16.mxu0 %v7773_v14 }
 0x237   : > { %4313 = vmatpush1.bf16.msra.mxu0 %v7771_v15  ;;  %v7887_v15 = vld [vmem:[#allocation12 + $0x144] ss:$16 sps:$4 sm:$0xff]  }
 0x238   : > { %4314 = vmatprep.subr.bf16.mxu0 %v7776_v32 }
 0x23b   : > { %4315 = vmatpush1.bf16.msra.mxu0 %v7774_v34 }
 0x23c   : > { %4316 = vmatprep.subr.bf16.mxu0 %v7779_v18 }
 0x23f   : > { %4317 = vmatpush1.bf16.msra.mxu0 %v7777_v21  ;;  %v7885_v21 = vld [vmem:[#allocation12 + $0x140] ss:$16 sps:$4 sm:$0xff]  }
 0x240   : > { %4318 = vmatprep.subr.bf16.mxu0 %v7782_v24 }
 0x243   : > { %4319 = vmatpush2.bf16.msra.mxu0 %v7780_v25 }
 0x244   : > { %4320 = vmatprep.subr.bf16.mxu0 %v7785_v26 }
 0x247   : > { %4321 = vmatpush2.bf16.msra.mxu0 %v7783_v27  ;;  %v7893_v27 = vld [vmem:[#allocation12 + $0x124] ss:$16 sps:$4 sm:$0xff]  }
 0x248   : > { %4322 = vmatprep.subr.bf16.mxu0 %v7788_v28 }
 0x24b   : > { %4323 = vmatpush2.bf16.msra.mxu0 %v7786_v29 }
 0x24c   : > { %4324 = vmatprep.subr.bf16.mxu0 %v7791_v30 }
 0x24f   : > { %4325 = vmatpush2.bf16.msra.mxu0 %v7789_v37 }
 0x250   : > { %4326 = vmatprep.subr.bf16.mxu0 %v7794_v38 }
 0x252   : > { %v3079_v3 = vpop.f32.mrf.mxu0  ;;  %v3122_v4 = vpop.f32.mrf.mxu1 }
 0x253   : > { %4327 = vmatpush2.bf16.msra.mxu0 %v7792_v31  ;;  %v3123_v24 = vadd.f32 %v3122_v4, %v3079_v3  ;;  %v7917_v3 = vld [vmem:[#allocation12 + $0xac] ss:$16 sps:$4 sm:$0xff]   ;;  %v7912_v4 = vld [vmem:[#allocation13 + $0x2a8] ss:$16 sps:$4 sm:$0xff]  }
 0x254   : > { %4328 = vmatprep.subr.bf16.mxu0 %v7797_v33  ;;  %v3081_v7 = vpop.f32.mrf.mxu0  ;;  %v3124_v19 = vpop.f32.mrf.mxu1 }
 0x255   : > { %v3125_v18 = vadd.f32 %v3124_v19, %v3081_v7  ;;  %v7923_v7 = vld [vmem:[#allocation12 + $0x8c] ss:$16 sps:$4 sm:$0xff]   ;;  %v7918_v19 = vld [vmem:[#allocation13 + $0x288] ss:$16 sps:$4 sm:$0xff]  }
 0x256   : > { %v3083_v9 = vpop.f32.mrf.mxu0  ;;  %v3126_v10 = vpop.f32.mrf.mxu1 }
 0x257   : > { %4329 = vmatpush2.bf16.msra.mxu0 %v7795_v35  ;;  %v3127_v28 = vadd.f32 %v3126_v10, %v3083_v9  ;;  %v7891_v35 = vld [vmem:[#allocation12 + $0x120] ss:$16 sps:$4 sm:$0xff]   ;;  %v7924_v9 = vld [vmem:[#allocation13 + $0x268] ss:$16 sps:$4 sm:$0xff]  }
 0x258   : > { %4330 = vmatprep.subr.bf16.mxu0 %v7800_v36  ;;  %v3085_v13 = vpop.f32.mrf.mxu0  ;;  %v3128_v14 = vpop.f32.mrf.mxu1  ;;  %v7927_v10 = vld [vmem:[#allocation12 + $0x68] ss:$16 sps:$4 sm:$0xff]  }
 0x259   : > { %v3129_v31 = vadd.f32 %v3128_v14, %v3085_v13  ;;  %v7930_v13 = vld [vmem:[#allocation13 + $0x248] ss:$16 sps:$4 sm:$0xff]  }
 0x25a   : > { %v7933_v14 = vld [vmem:[#allocation12 + $0x48] ss:$16 sps:$4 sm:$0xff]  }
 0x25b   : > { %4331 = vmatpush2.bf16.msra.mxu0 %v7798_v39  ;;  %v7899_v39 = vld [vmem:[#allocation12 + $0x104] ss:$16 sps:$4 sm:$0xff]  }
 0x25c   : > { %4332 = vmatprep.subr.bf16.mxu0 %v7803_v42 }
 0x25f   : > { %4333 = vmatpush2.bf16.msra.mxu0 %v7801_v43  ;;  %v3299_v43 = vrot.slane %v8877_v47, %v8850_v53 }
 0x260   : > { %5028 = vmatprep.subr.bf16.mxu0 %v7809_v44 }
 0x262   : > { %4335 = vmatmul.mubr.bf16.vlgmr.msra.gmra.mxu0 %v8883_v6  ;;  %v7867_v6 = vld [vmem:[#allocation12 + $0x1a0] ss:$16 sps:$4 sm:$0xff]  }
 0x263   : > { %5029 = vmatpush1.bf16.msra.mxu0 %v7807_v45  ;;  %5060 = vmatprep.mubr.bf16.mxu0 %v8868_v22 }
 0x264   : > { %5030 = vmatprep.subr.bf16.mxu0 %v7815_v46 }
 0x267   : > { %5031 = vmatpush1.bf16.msra.mxu0 %v7813_v48  ;;  %v3295_v48 = vrot.slane %v8877_v47, %v8845_v49  ;;  %v7911_v47 = vld [vmem:[#allocation12 + $0xcc] ss:$16 sps:$4 sm:$0xff]  }
 0x268   : > { %5032 = vmatprep.subr.bf16.mxu0 %v7821_v50 }
 0x26b   : > { %5033 = vmatpush1.bf16.msra.mxu0 %v7819_v51 }
 0x26c   : > { %5034 = vmatprep.subr.bf16.mxu0 %v7827_v52  ;;  %v7897_v52 = vld [vmem:[#allocation12 + $0x100] ss:$16 sps:$4 sm:$0xff]  }
 0x26f   : > { %5035 = vmatpush1.bf16.msra.mxu0 %v7825_v54 }
 0x270   : > { %5036 = vmatprep.subr.bf16.mxu0 %v7833_v55  ;;  %v7905_v55 = vld [vmem:[#allocation12 + $0xec] ss:$16 sps:$4 sm:$0xff]  }
 0x273   : > { %5037 = vmatpush1.bf16.msra.mxu0 %v7831_v57 }
 0x274   : > { %5038 = vmatprep.subr.bf16.mxu0 %v7839_v41 }
 0x277   : > { %5039 = vmatpush1.bf16.msra.mxu0 %v7837_v58 }
 0x278   : > { %5040 = vmatprep.subr.bf16.mxu0 %v7845_v59 }
 0x27b   : > { %5041 = vmatpush1.bf16.msra.mxu0 %v7843_v60  ;;  %v7900_v60 = vld [vmem:[#allocation13 + $0x2e8] ss:$16 sps:$4 sm:$0xff]  }
 0x27c   : > { %5042 = vmatprep.subr.bf16.mxu0 %v7851_v61  ;;  %v7903_v61 = vld [vmem:[#allocation12 + $0xe8] ss:$16 sps:$4 sm:$0xff]  }
 0x27f   : > { %5043 = vmatpush1.bf16.msra.mxu0 %v7849_v62 }
 0x280   : > { %5044 = vmatprep.subr.bf16.mxu0 %v7857_v63  ;;  %v7908_v63 = vld [vmem:[#allocation13 + $0x2cc] ss:$16 sps:$4 sm:$0xff]  }
 0x283   : > { %5045 = vmatpush2.bf16.msra.mxu0 %v7855_v0  ;;  %v7906_v0 = vld [vmem:[#allocation13 + $0x2c8] ss:$16 sps:$4 sm:$0xff]  }
 0x284   : > { %5046 = vmatprep.subr.bf16.mxu0 %v7863_v1  ;;  %v7909_v1 = vld [vmem:[#allocation12 + $0xc8] ss:$16 sps:$4 sm:$0xff]  }
 0x287   : > { %5047 = vmatpush2.bf16.msra.mxu0 %v7861_v2  ;;  %v7914_v2 = vld [vmem:[#allocation13 + $0x2ac] ss:$16 sps:$4 sm:$0xff]  }
 0x288   : > { %5048 = vmatprep.subr.bf16.mxu0 %v7869_v5  ;;  %v7915_v5 = vld [vmem:[#allocation12 + $0xa8] ss:$16 sps:$4 sm:$0xff]  }
 0x28b   : > { %5049 = vmatpush2.bf16.msra.mxu0 %v7867_v6  ;;  %v7920_v6 = vld [vmem:[#allocation13 + $0x28c] ss:$16 sps:$4 sm:$0xff]  }
 0x28c   : > { %5050 = vmatprep.subr.bf16.mxu0 %v7875_v20  ;;  %v7921_v20 = vld [vmem:[#allocation12 + $0x88] ss:$16 sps:$4 sm:$0xff]  }
 0x28f   : > { %5051 = vmatpush2.bf16.msra.mxu0 %v7873_v8  ;;  %v7929_v8 = vld [vmem:[#allocation12 + $0x6c] ss:$16 sps:$4 sm:$0xff]  }
 0x290   : > { %5052 = vmatprep.subr.bf16.mxu0 %v7881_v11  ;;  %v7932_v11 = vld [vmem:[#allocation13 + $0x24c] ss:$16 sps:$4 sm:$0xff]  }
 0x292   : > { %v3165_v32 = vpop.f32.mrf.mxu0  ;;  %v3208_v34 = vpop.f32.mrf.mxu1 }
 0x293   : > { %5053 = vmatpush2.bf16.msra.mxu0 %v7879_v12  ;;  %v3166_v30 = vadd.f32 %v3165_v32, %v3123_v24  ;;  %v7935_v12 = vld [vmem:[#allocation12 + $0x4c] ss:$16 sps:$4 sm:$0xff]  }
 0x294   : > { %v3167_v25 = vpop.f32.mrf.mxu0  ;;  %v3210_v26 = vpop.f32.mrf.mxu1  ;;  %5054 = vmatprep.subr.bf16.mxu0 %v7887_v15  ;;  %v7938_v15 = vld [vmem:[#allocation13 + $0x22c] ss:$16 sps:$4 sm:$0xff]  }
 0x295   : > { %v3168_v29 = vadd.f32 %v3167_v25, %v3125_v18  ;;  %v3209_v46 = vadd.f32 %v3208_v34, %v3166_v30  ;;  %v7941_v32 = vld [vmem:[#allocation12 + $0x2c] ss:$16 sps:$4 sm:$0xff]   ;;  %v7936_v34 = vld [vmem:[#allocation13 + $0x228] ss:$16 sps:$4 sm:$0xff]  }
 0x296   : > { %v3169_v37 = vpop.f32.mrf.mxu0  ;;  %v3212_v38 = vpop.f32.mrf.mxu1  ;;  %v7939_v18 = vld [vmem:[#allocation12 + $0x28] ss:$16 sps:$4 sm:$0xff]   ;;  %v7947_v24 = vld [vmem:[#allocation12 + $0xc] ss:$16 sps:$4 sm:$0xff]  }
 0x297   : > { %v3170_v33 = vadd.f32 %v3169_v37, %v3127_v28  ;;  %5055 = vmatpush2.bf16.msra.mxu0 %v7885_v21  ;;  %v3211_v42 = vadd.f32 %v3210_v26, %v3168_v29  ;;  %v3306_v58 = vadd.f32 %v3295_v48, %v3209_v46  ;;  %v7944_v21 = vld [vmem:[#allocation13 + $0x20c] ss:$16 sps:$4 sm:$0xff]   ;;  %v7942_v25 = vld [vmem:[#allocation13 + $0x208] ss:$16 sps:$4 sm:$0xff]  }
 0x298   : > { %v3171_v36 = vpop.f32.mrf.mxu0  ;;  %5056 = vmatprep.subr.bf16.mxu0 %v7893_v27  ;;  %v3214_v50 = vpop.f32.mrf.mxu1  ;;  %v7945_v26 = vld [vmem:[#allocation12 + $0x8] ss:$16 sps:$4 sm:$0xff]   ;;  %v7950_v27 = vld [vmem:[#allocation13 + $0x3ec] ss:$16 sps:$4 sm:$0xff]  }
 0x299   : > { %v3213_v44 = vadd.f32 %v3212_v38, %v3170_v33  ;;  %v3172_v45 = vadd.f32 %v3171_v36, %v3129_v31  ;;  %v3307_v57 = vadd.f32 %v3299_v43, %v3211_v42  ;;  %v7953_v28 = vld [vmem:[#allocation12 + $0x1ec] ss:$16 sps:$4 sm:$0xff]   ;;  %v7948_v29 = vld [vmem:[#allocation13 + $0x3e8] ss:$16 sps:$4 sm:$0xff]  }
 0x29a   : > { %v7951_v30 = vld [vmem:[#allocation12 + $0x1e8] ss:$16 sps:$4 sm:$0xff]   ;;  %v7956_v37 = vld [vmem:[#allocation13 + $0x3cc] ss:$16 sps:$4 sm:$0xff]  }
 0x29b   : > { %v3215_v51 = vadd.f32 %v3214_v50, %v3172_v45  ;;  %5057 = vmatpush2.bf16.msra.mxu0 %v7891_v35  ;;  %v3310_v54 = vadd.f32 %v3295_v48, %v3213_v44  ;;  %v7959_v38 = vld [vmem:[#allocation12 + $0x1cc] ss:$16 sps:$4 sm:$0xff]   ;;  %v7954_v31 = vld [vmem:[#allocation13 + $0x3c8] ss:$16 sps:$4 sm:$0xff]  }
 0x29c   : > { %5058 = vmatprep.subr.bf16.mxu0 %v7899_v39  ;;  %v7957_v33 = vld [vmem:[#allocation12 + $0x1c8] ss:$16 sps:$4 sm:$0xff]   ;;  %v7962_v35 = vld [vmem:[#allocation13 + $0x3ac] ss:$16 sps:$4 sm:$0xff]  }
 0x29d   : > { %v3311_v41 = vadd.f32 %v3299_v43, %v3215_v51  ;;  %v8892_v62 = vpack.c.bf16 %v3310_v54, %v3306_v58  ;;  %v7965_v36 = vld [vmem:[#allocation12 + $0x1ac] ss:$16 sps:$4 sm:$0xff]   ;;  %v7960_v39 = vld [vmem:[#allocation13 + $0x3a8] ss:$16 sps:$4 sm:$0xff]  }
 0x29e   : > { %v7963_v42 = vld [vmem:[#allocation12 + $0x1a8] ss:$16 sps:$4 sm:$0xff]   ;;  %v7968_v43 = vld [vmem:[#allocation13 + $0x38c] ss:$16 sps:$4 sm:$0xff]  }
 0x29f   : > { %5059 = vmatpush2.bf16.msra.mxu0 %v7897_v52  ;;  %v3447_v59 = vpack.c.bf16 %v3311_v41, %v3307_v57  ;;  %v7971_v44 = vld [vmem:[#allocation12 + $0x18c] ss:$16 sps:$4 sm:$0xff]   ;;  %v7966_v45 = vld [vmem:[#allocation13 + $0x388] ss:$16 sps:$4 sm:$0xff]  }
 0x2a0   : > { %5114 = vmatprep.subr.bf16.mxu0 %v7905_v55  ;;  %v7969_v46 = vld [vmem:[#allocation12 + $0x188] ss:$16 sps:$4 sm:$0xff]   ;;  %v7974_v48 = vld [vmem:[#allocation13 + $0x36c] ss:$16 sps:$4 sm:$0xff]  }
 0x2a1   : > { %4291 = vmatprep.mubr.bf16.mxu1 %v3447_v59  ;;  %v7977_v50 = vld [vmem:[#allocation12 + $0x16c] ss:$16 sps:$4 sm:$0xff]   ;;  %v7972_v51 = vld [vmem:[#allocation13 + $0x368] ss:$16 sps:$4 sm:$0xff]  }
 0x2a2   : > { %5061 = vmatmul.mubr.bf16.vlgmr.msra.gmra.mxu0 %v8864_v16  ;;  %4292 = vmatmul.mubr.bf16.vlgmr.msra.gmra.mxu1 %v8892_v62  ;;  %v7975_v52 = vld [vmem:[#allocation12 + $0x168] ss:$16 sps:$4 sm:$0xff]   ;;  %v7980_v54 = vld [vmem:[#allocation13 + $0x34c] ss:$16 sps:$4 sm:$0xff]  }
 0x2a3   : > { %4346 = vmatpush1.bf16.msra.mxu1 %v7900_v60  ;;  %5115 = vmatpush1.bf16.msra.mxu0 %v7903_v61  ;;  %v7983_v55 = vld [vmem:[#allocation12 + $0x14c] ss:$16 sps:$4 sm:$0xff]   ;;  %v7978_v57 = vld [vmem:[#allocation13 + $0x348] ss:$16 sps:$4 sm:$0xff]  }
 0x2a4   : > { %5146 = vmatprep.mubr.bf16.mxu0 %v8868_v22  ;;  %4377 = vmatprep.mubr.bf16.mxu1 %v3447_v59  ;;  %v7926_v22 = vld [vmem:[#allocation13 + $0x26c] ss:$16 sps:$4 sm:$0xff]   ;;  %v7981_v41 = vld [vmem:[#allocation12 + $0x148] ss:$16 sps:$4 sm:$0xff]  }
 0x2a5   : > { %4347 = vmatprep.subr.bf16.mxu1 %v7908_v63  ;;  %5116 = vmatprep.subr.bf16.mxu0 %v7911_v47  ;;  %v7986_v58 = vld [vmem:[#allocation13 + $0x32c] ss:$16 sps:$4 sm:$0xff]   ;;  %v7984_v60 = vld [vmem:[#allocation13 + $0x328] ss:$16 sps:$4 sm:$0xff]  }
 0x2a6   : > { %v7989_v59 = vld [vmem:[#allocation12 + $0x12c] ss:$16 sps:$4 sm:$0xff]   ;;  %v7987_v61 = vld [vmem:[#allocation12 + $0x128] ss:$16 sps:$4 sm:$0xff]  }
 0x2a7   : > { %4348 = vmatpush1.bf16.msra.mxu1 %v7906_v0  ;;  %5117 = vmatpush1.bf16.msra.mxu0 %v7909_v1  ;;  %v7992_v63 = vld [vmem:[#allocation13 + $0x30c] ss:$16 sps:$4 sm:$0xff]   ;;  %v7990_v0 = vld [vmem:[#allocation13 + $0x308] ss:$16 sps:$4 sm:$0xff]  }
 0x2a8   : > { %4349 = vmatprep.subr.bf16.mxu1 %v7914_v2  ;;  %5118 = vmatprep.subr.bf16.mxu0 %v7917_v3  ;;  %v7995_v47 = vld [vmem:[#allocation12 + $0x10c] ss:$16 sps:$4 sm:$0xff]   ;;  %v7993_v1 = vld [vmem:[#allocation12 + $0x108] ss:$16 sps:$4 sm:$0xff]   ;;  %v7998_v2 = vld [vmem:[#allocation12 + $0x2e4] ss:$16 sps:$4 sm:$0xff]  }
 0x2a9   : > { %v7996_v3 = vld [vmem:[#allocation12 + $0x2e0] ss:$16 sps:$4 sm:$0xff]  }
 0x2ab   : > { %4350 = vmatpush1.bf16.msra.mxu1 %v7912_v4  ;;  %5119 = vmatpush1.bf16.msra.mxu0 %v7915_v5  ;;  %v8001_v4 = vld [vmem:[#allocation12 + $0x2c4] ss:$16 sps:$4 sm:$0xff]   ;;  %v7999_v5 = vld [vmem:[#allocation12 + $0x2c0] ss:$16 sps:$4 sm:$0xff]  }
 0x2ac   : > { %4351 = vmatprep.subr.bf16.mxu1 %v7920_v6  ;;  %5120 = vmatprep.subr.bf16.mxu0 %v7923_v7  ;;  %v8004_v6 = vld [vmem:[#allocation12 + $0x2a4] ss:$16 sps:$4 sm:$0xff]   ;;  %v8002_v7 = vld [vmem:[#allocation12 + $0x2a0] ss:$16 sps:$4 sm:$0xff]  }
 0x2af   : > { %4352 = vmatpush1.bf16.msra.mxu1 %v7918_v19  ;;  %5121 = vmatpush1.bf16.msra.mxu0 %v7921_v20  ;;  %v8007_v19 = vld [vmem:[#allocation12 + $0x284] ss:$16 sps:$4 sm:$0xff]   ;;  %v8005_v20 = vld [vmem:[#allocation12 + $0x280] ss:$16 sps:$4 sm:$0xff]  }
 0x2b0   : > { %4353 = vmatprep.subr.bf16.mxu1 %v7926_v22  ;;  %5122 = vmatprep.subr.bf16.mxu0 %v7929_v8  ;;  %v8010_v22 = vld [vmem:[#allocation12 + $0x264] ss:$16 sps:$4 sm:$0xff]   ;;  %v8008_v8 = vld [vmem:[#allocation12 + $0x260] ss:$16 sps:$4 sm:$0xff]  }
 0x2b3   : > { %4354 = vmatpush1.bf16.msra.mxu1 %v7924_v9  ;;  %5123 = vmatpush1.bf16.msra.mxu0 %v7927_v10  ;;  %v8016_v9 = vld [vmem:[#allocation12 + $0x224] ss:$16 sps:$4 sm:$0xff]   ;;  %v8014_v10 = vld [vmem:[#allocation12 + $0x220] ss:$16 sps:$4 sm:$0xff]  }
 0x2b4   : > { %4355 = vmatprep.subr.bf16.mxu1 %v7932_v11  ;;  %5124 = vmatprep.subr.bf16.mxu0 %v7935_v12  ;;  %v8019_v11 = vld [vmem:[#allocation12 + $0x204] ss:$16 sps:$4 sm:$0xff]   ;;  %v8017_v12 = vld [vmem:[#allocation12 + $0x200] ss:$16 sps:$4 sm:$0xff]  }
 0x2b7   : > { %4356 = vmatpush1.bf16.msra.mxu1 %v7930_v13  ;;  %5125 = vmatpush1.bf16.msra.mxu0 %v7933_v14  ;;  %v8022_v13 = vld [vmem:[#allocation12 + $0x3e4] ss:$16 sps:$4 sm:$0xff]   ;;  %v8020_v14 = vld [vmem:[#allocation12 + $0x3e0] ss:$16 sps:$4 sm:$0xff]  }
 0x2b8   : > { %4357 = vmatprep.subr.bf16.mxu1 %v7938_v15  ;;  %5126 = vmatprep.subr.bf16.mxu0 %v7941_v32  ;;  %v8025_v15 = vld [vmem:[#allocation12 + $0x3c4] ss:$16 sps:$4 sm:$0xff]   ;;  %v8023_v32 = vld [vmem:[#allocation12 + $0x3c0] ss:$16 sps:$4 sm:$0xff]  }
 0x2bb   : > { %4358 = vmatpush1.bf16.msra.mxu1 %v7936_v34  ;;  %5127 = vmatpush1.bf16.msra.mxu0 %v7939_v18  ;;  %v8028_v34 = vld [vmem:[#allocation12 + $0x3a4] ss:$16 sps:$4 sm:$0xff]   ;;  %v8026_v18 = vld [vmem:[#allocation12 + $0x3a0] ss:$16 sps:$4 sm:$0xff]  }
 0x2bc   : > { %4359 = vmatprep.subr.bf16.mxu1 %v7944_v21  ;;  %5128 = vmatprep.subr.bf16.mxu0 %v7947_v24  ;;  %v8031_v21 = vld [vmem:[#allocation12 + $0x384] ss:$16 sps:$4 sm:$0xff]   ;;  %v8029_v24 = vld [vmem:[#allocation12 + $0x380] ss:$16 sps:$4 sm:$0xff]  }
 0x2bf   : > { %4360 = vmatpush1.bf16.msra.mxu1 %v7942_v25  ;;  %5129 = vmatpush1.bf16.msra.mxu0 %v7945_v26  ;;  %v8034_v25 = vld [vmem:[#allocation12 + $0x364] ss:$16 sps:$4 sm:$0xff]   ;;  %v8032_v26 = vld [vmem:[#allocation12 + $0x360] ss:$16 sps:$4 sm:$0xff]  }
 0x2c0   : > { %4361 = vmatprep.subr.bf16.mxu1 %v7950_v27  ;;  %5130 = vmatprep.subr.bf16.mxu0 %v7953_v28  ;;  %v8037_v27 = vld [vmem:[#allocation12 + $0x344] ss:$16 sps:$4 sm:$0xff]   ;;  %v8035_v28 = vld [vmem:[#allocation12 + $0x340] ss:$16 sps:$4 sm:$0xff]  }
 0x2c3   : > { %4362 = vmatpush2.bf16.msra.mxu1 %v7948_v29  ;;  %5131 = vmatpush2.bf16.msra.mxu0 %v7951_v30  ;;  %v8040_v29 = vld [vmem:[#allocation12 + $0x324] ss:$16 sps:$4 sm:$0xff]   ;;  %v8038_v30 = vld [vmem:[#allocation12 + $0x320] ss:$16 sps:$4 sm:$0xff]  }
 0x2c4   : > { %4363 = vmatprep.subr.bf16.mxu1 %v7956_v37  ;;  %5132 = vmatprep.subr.bf16.mxu0 %v7959_v38  ;;  %v8043_v37 = vld [vmem:[#allocation12 + $0x304] ss:$16 sps:$4 sm:$0xff]   ;;  %v8041_v38 = vld [vmem:[#allocation12 + $0x300] ss:$16 sps:$4 sm:$0xff]  }
 0x2c7   : > { %4364 = vmatpush2.bf16.msra.mxu1 %v7954_v31  ;;  %5133 = vmatpush2.bf16.msra.mxu0 %v7957_v33  ;;  %v8046_v31 = vld [vmem:[#allocation12 + $0x2ec] ss:$16 sps:$4 sm:$0xff]   ;;  %v8044_v33 = vld [vmem:[#allocation12 + $0x2e8] ss:$16 sps:$4 sm:$0xff]  }
 0x2c8   : > { %4365 = vmatprep.subr.bf16.mxu1 %v7962_v35  ;;  %5134 = vmatprep.subr.bf16.mxu0 %v7965_v36  ;;  %v8049_v35 = vld [vmem:[#allocation12 + $0x2cc] ss:$16 sps:$4 sm:$0xff]   ;;  %v8047_v36 = vld [vmem:[#allocation12 + $0x2c8] ss:$16 sps:$4 sm:$0xff]  }
 0x2cb   : > { %4366 = vmatpush2.bf16.msra.mxu1 %v7960_v39  ;;  %5135 = vmatpush2.bf16.msra.mxu0 %v7963_v42  ;;  %v8052_v39 = vld [vmem:[#allocation12 + $0x2ac] ss:$16 sps:$4 sm:$0xff]   ;;  %v8050_v42 = vld [vmem:[#allocation12 + $0x2a8] ss:$16 sps:$4 sm:$0xff]  }
 0x2cc   : > { %4367 = vmatprep.subr.bf16.mxu1 %v7968_v43  ;;  %5136 = vmatprep.subr.bf16.mxu0 %v7971_v44  ;;  %v8055_v43 = vld [vmem:[#allocation12 + $0x28c] ss:$16 sps:$4 sm:$0xff]   ;;  %v8053_v44 = vld [vmem:[#allocation12 + $0x288] ss:$16 sps:$4 sm:$0xff]  }
 0x2cf   : > { %4368 = vmatpush2.bf16.msra.mxu1 %v7966_v45  ;;  %5137 = vmatpush2.bf16.msra.mxu0 %v7969_v46  ;;  %v8092_v45 = vld [vmem:[#allocation15 + $0x70] ss:$8 sps:$4 sm:$0xff]   ;;  %v8094_v46 = vld [vmem:[#allocation15 + $0x74] ss:$8 sps:$4 sm:$0xff]  }
 0x2d0   : > { %4369 = vmatprep.subr.bf16.mxu1 %v7974_v48  ;;  %5138 = vmatprep.subr.bf16.mxu0 %v7977_v50  ;;  %v8058_v48 = vld [vmem:[#allocation12 + $0x26c] ss:$16 sps:$4 sm:$0xff]  }
 0x2d1   : > { %v8097_v50 = vld [vmem:[#allocation15 + $0x64] ss:$8 sps:$4 sm:$0xff]  }
 0x2d3   : > { %4370 = vmatpush2.bf16.msra.mxu1 %v7972_v51  ;;  %5139 = vmatpush2.bf16.msra.mxu0 %v7975_v52  ;;  %v8095_v51 = vld [vmem:[#allocation15 + $0x60] ss:$8 sps:$4 sm:$0xff]  }
 0x2d4   : > { %4371 = vmatprep.subr.bf16.mxu1 %v7980_v54  ;;  %5140 = vmatprep.subr.bf16.mxu0 %v7983_v55  ;;  %v8056_v52 = vld [vmem:[#allocation12 + $0x268] ss:$16 sps:$4 sm:$0xff]   ;;  %v8061_v54 = vld [vmem:[#allocation12 + $0x24c] ss:$16 sps:$4 sm:$0xff]  }
 0x2d5   : > { %v8098_v55 = vld [vmem:[#allocation15 + $0x50] ss:$8 sps:$4 sm:$0xff]  }
 0x2d7   : > { %4372 = vmatpush2.bf16.msra.mxu1 %v7978_v57  ;;  %5141 = vmatpush2.bf16.msra.mxu0 %v7981_v41  ;;  %v8059_v57 = vld [vmem:[#allocation12 + $0x248] ss:$16 sps:$4 sm:$0xff]   ;;  %v8103_v41 = vld [vmem:[#allocation15 + $0x44] ss:$8 sps:$4 sm:$0xff]  }
 0x2d8   : > { %4373 = vmatprep.subr.bf16.mxu1 %v7986_v58  ;;  %5142 = vmatprep.subr.bf16.mxu0 %v7989_v59  ;;  %v8064_v58 = vld [vmem:[#allocation12 + $0x22c] ss:$16 sps:$4 sm:$0xff]   ;;  %v8101_v59 = vld [vmem:[#allocation15 + $0x40] ss:$8 sps:$4 sm:$0xff]  }
 0x2db   : > { %4374 = vmatpush2.bf16.msra.mxu1 %v7984_v60  ;;  %5143 = vmatpush2.bf16.msra.mxu0 %v7987_v61  ;;  %v8062_v60 = vld [vmem:[#allocation12 + $0x228] ss:$16 sps:$4 sm:$0xff]   ;;  %v8106_v61 = vld [vmem:[#allocation15 + $0x34] ss:$8 sps:$4 sm:$0xff]  }
 0x2dc   : > { %4375 = vmatprep.subr.bf16.mxu1 %v7992_v63  ;;  %5144 = vmatprep.subr.bf16.mxu0 %v7995_v47  ;;  %v8067_v63 = vld [vmem:[#allocation12 + $0x20c] ss:$16 sps:$4 sm:$0xff]   ;;  %v8104_v47 = vld [vmem:[#allocation15 + $0x30] ss:$8 sps:$4 sm:$0xff]  }
 0x2df   : > { %4376 = vmatpush2.bf16.msra.mxu1 %v7990_v0  ;;  %5145 = vmatpush2.bf16.msra.mxu0 %v7993_v1  ;;  %v8065_v0 = vld [vmem:[#allocation12 + $0x208] ss:$16 sps:$4 sm:$0xff]   ;;  %v8109_v1 = vld [vmem:[#allocation15 + $0x24] ss:$8 sps:$4 sm:$0xff]  }
 0x2e0   : > { %5071 = vmatprep.subr.bf16.mxu1 %v7998_v2  ;;  %5638 = vmatprep.subr.bf16.mxu0 %v8094_v46  ;;  %v8070_v2 = vld [vmem:[#allocation12 + $0x3ec] ss:$16 sps:$4 sm:$0xff]   ;;  %v8146_v46 = vld [vmem:[#allocation15 + $0x150] ss:$8 sps:$4 sm:$0xff]  }
 0x2e2   : > { %4378 = vmatmul.mubr.bf16.vlgmr.msra.gmra.mxu1 %v8892_v62  ;;  %5147 = vmatmul.mubr.bf16.vlgmr.msra.gmra.mxu0 %v8864_v16  ;;  %v8013_v62 = vld [vmem:[#allocation12 + $0x244] ss:$16 sps:$4 sm:$0xff]   ;;  %v8011_v16 = vld [vmem:[#allocation12 + $0x240] ss:$16 sps:$4 sm:$0xff]  }
 0x2e3   : > { %5072 = vmatpush1.bf16.msra.mxu1 %v7996_v3  ;;  %5103 = vmatprep.mubr.bf16.mxu1 %v8870_v23  ;;  %v8107_v3 = vld [vmem:[#allocation15 + $0x20] ss:$8 sps:$4 sm:$0xff]  }
 0x2e4   : > { %5073 = vmatprep.subr.bf16.mxu1 %v8001_v4  ;;  %5639 = vmatpush1.bf16.msra.mxu0 %v8092_v45  ;;  %v8068_v4 = vld [vmem:[#allocation12 + $0x3e8] ss:$16 sps:$4 sm:$0xff]   ;;  %v8148_v45 = vld [vmem:[#allocation15 + $0x154] ss:$8 sps:$4 sm:$0xff]  }
 0x2e5   : > { %5640 = vmatprep.subr.bf16.mxu0 %v8097_v50  ;;  %v8149_v50 = vld [vmem:[#allocation15 + $0x140] ss:$8 sps:$4 sm:$0xff]  }
 0x2e7   : > { %5074 = vmatpush1.bf16.msra.mxu1 %v7999_v5  ;;  %v8112_v5 = vld [vmem:[#allocation15 + $0x14] ss:$8 sps:$4 sm:$0xff]  }
 0x2e8   : > { %5075 = vmatprep.subr.bf16.mxu1 %v8004_v6  ;;  %5641 = vmatpush1.bf16.msra.mxu0 %v8095_v51  ;;  %v8073_v6 = vld [vmem:[#allocation12 + $0x3cc] ss:$16 sps:$4 sm:$0xff]  }
 0x2e9   : > { %v8154_v51 = vld [vmem:[#allocation15 + $0x134] ss:$8 sps:$4 sm:$0xff]  }
 0x2eb   : > { %5076 = vmatpush1.bf16.msra.mxu1 %v8002_v7  ;;  %v8110_v7 = vld [vmem:[#allocation15 + $0x10] ss:$8 sps:$4 sm:$0xff]  }
 0x2ec   : > { %5077 = vmatprep.subr.bf16.mxu1 %v8007_v19  ;;  %v8071_v19 = vld [vmem:[#allocation12 + $0x3c8] ss:$16 sps:$4 sm:$0xff]  }
 0x2ef   : > { %5078 = vmatpush1.bf16.msra.mxu1 %v8005_v20  ;;  %v8115_v20 = vld [vmem:[#allocation15 + $0x4] ss:$8 sps:$4 sm:$0xff]  }
 0x2f0   : > { %5079 = vmatprep.subr.bf16.mxu1 %v8010_v22  ;;  %v8076_v22 = vld [vmem:[#allocation12 + $0x3ac] ss:$16 sps:$4 sm:$0xff]  }
 0x2f3   : > { %5080 = vmatpush1.bf16.msra.mxu1 %v8008_v8  ;;  %v8113_v8 = vld [vmem:[#allocation15] ss:$8 sps:$4 sm:$0xff]  }
 0x2f4   : > { %5081 = vmatprep.subr.bf16.mxu1 %v8013_v62  ;;  %v8074_v62 = vld [vmem:[#allocation12 + $0x3a8] ss:$16 sps:$4 sm:$0xff]  }
 0x2f7   : > { %5082 = vmatpush1.bf16.msra.mxu1 %v8011_v16  ;;  %v8118_v16 = vld [vmem:[#allocation15 + $0xf4] ss:$8 sps:$4 sm:$0xff]  }
 0x2f8   : > { %5083 = vmatprep.subr.bf16.mxu1 %v8016_v9  ;;  %v8079_v9 = vld [vmem:[#allocation12 + $0x38c] ss:$16 sps:$4 sm:$0xff]  }
 0x2fb   : > { %5084 = vmatpush1.bf16.msra.mxu1 %v8014_v10  ;;  %v8116_v10 = vld [vmem:[#allocation15 + $0xf0] ss:$8 sps:$4 sm:$0xff]  }
 0x2fc   : > { %5085 = vmatprep.subr.bf16.mxu1 %v8019_v11  ;;  %v8077_v11 = vld [vmem:[#allocation12 + $0x388] ss:$16 sps:$4 sm:$0xff]  }
 0x2ff   : > { %5086 = vmatpush1.bf16.msra.mxu1 %v8017_v12  ;;  %v8121_v12 = vld [vmem:[#allocation15 + $0xe4] ss:$8 sps:$4 sm:$0xff]  }
 0x300   : > { %5087 = vmatprep.subr.bf16.mxu1 %v8022_v13  ;;  %v8082_v13 = vld [vmem:[#allocation12 + $0x36c] ss:$16 sps:$4 sm:$0xff]  }
 0x303   : > { %5088 = vmatpush2.bf16.msra.mxu1 %v8020_v14  ;;  %v8119_v14 = vld [vmem:[#allocation15 + $0xe0] ss:$8 sps:$4 sm:$0xff]  }
 0x304   : > { %5089 = vmatprep.subr.bf16.mxu1 %v8025_v15  ;;  %v8080_v15 = vld [vmem:[#allocation12 + $0x368] ss:$16 sps:$4 sm:$0xff]  }
 0x307   : > { %5090 = vmatpush2.bf16.msra.mxu1 %v8023_v32  ;;  %v8124_v32 = vld [vmem:[#allocation15 + $0xd4] ss:$8 sps:$4 sm:$0xff]  }
 0x308   : > { %5091 = vmatprep.subr.bf16.mxu1 %v8028_v34  ;;  %v8085_v34 = vld [vmem:[#allocation12 + $0x34c] ss:$16 sps:$4 sm:$0xff]  }
 0x30b   : > { %5092 = vmatpush2.bf16.msra.mxu1 %v8026_v18  ;;  %v8122_v18 = vld [vmem:[#allocation15 + $0xd0] ss:$8 sps:$4 sm:$0xff]  }
 0x30c   : > { %5093 = vmatprep.subr.bf16.mxu1 %v8031_v21  ;;  %v8083_v21 = vld [vmem:[#allocation12 + $0x348] ss:$16 sps:$4 sm:$0xff]  }
 0x30f   : > { %5094 = vmatpush2.bf16.msra.mxu1 %v8029_v24  ;;  %v8127_v24 = vld [vmem:[#allocation15 + $0xc4] ss:$8 sps:$4 sm:$0xff]  }
 0x310   : > { %5095 = vmatprep.subr.bf16.mxu1 %v8034_v25  ;;  %v8088_v25 = vld [vmem:[#allocation12 + $0x32c] ss:$16 sps:$4 sm:$0xff]  }
 0x313   : > { %5096 = vmatpush2.bf16.msra.mxu1 %v8032_v26  ;;  %v8125_v26 = vld [vmem:[#allocation15 + $0xc0] ss:$8 sps:$4 sm:$0xff]  }
 0x314   : > { %5097 = vmatprep.subr.bf16.mxu1 %v8037_v27  ;;  %v8086_v27 = vld [vmem:[#allocation12 + $0x328] ss:$16 sps:$4 sm:$0xff]  }
 0x317   : > { %5098 = vmatpush2.bf16.msra.mxu1 %v8035_v28  ;;  %v8091_v28 = vld [vmem:[#allocation12 + $0x30c] ss:$16 sps:$4 sm:$0xff]  }
 0x318   : > { %5099 = vmatprep.subr.bf16.mxu1 %v8040_v29  ;;  %v8089_v29 = vld [vmem:[#allocation12 + $0x308] ss:$16 sps:$4 sm:$0xff]  }
 0x31b   : > { %5100 = vmatpush2.bf16.msra.mxu1 %v8038_v30  ;;  %v8130_v30 = vld [vmem:[#allocation15 + $0xb4] ss:$8 sps:$4 sm:$0xff]  }
 0x31c   : > { %5101 = vmatprep.subr.bf16.mxu1 %v8043_v37  ;;  %v8128_v37 = vld [vmem:[#allocation15 + $0xb0] ss:$8 sps:$4 sm:$0xff]  }
 0x31f   : > { %5102 = vmatpush2.bf16.msra.mxu1 %v8041_v38  ;;  %v8133_v38 = vld [vmem:[#allocation15 + $0xa4] ss:$8 sps:$4 sm:$0xff]  }
 0x320   : > { %5157 = vmatprep.subr.bf16.mxu1 %v8046_v31  ;;  %v8131_v31 = vld [vmem:[#allocation15 + $0xa0] ss:$8 sps:$4 sm:$0xff]  }
 0x322   : > { %5104 = vmatmul.mubr.bf16.vlgmr.msra.gmra.mxu1 %v8866_v17 }
 0x323   : > { %5158 = vmatpush1.bf16.msra.mxu1 %v8044_v33  ;;  %5189 = vmatprep.mubr.bf16.mxu1 %v8870_v23  ;;  %v8100_v23 = vld [vmem:[#allocation15 + $0x54] ss:$8 sps:$4 sm:$0xff]  }
 0x324   : > { %5159 = vmatprep.subr.bf16.mxu1 %v8049_v35  ;;  %5642 = vmatprep.subr.bf16.mxu0 %v8100_v23  ;;  %v8136_v33 = vld [vmem:[#allocation15 + $0x94] ss:$8 sps:$4 sm:$0xff]   ;;  %v8134_v35 = vld [vmem:[#allocation15 + $0x90] ss:$8 sps:$4 sm:$0xff]   ;;  %v8157_v23 = vld [vmem:[#allocation15 + $0x124] ss:$8 sps:$4 sm:$0xff]  }
 0x325   : > { %5643 = vmatpush1.bf16.msra.mxu0 %v8098_v55  ;;  %v8160_v55 = vld [vmem:[#allocation15 + $0x114] ss:$8 sps:$4 sm:$0xff]  }
 0x326   : > { %5644 = vmatprep.subr.bf16.mxu0 %v8103_v41  ;;  %v8163_v41 = vld [vmem:[#allocation15 + $0x104] ss:$8 sps:$4 sm:$0xff]  }
 0x327   : > { %5160 = vmatpush1.bf16.msra.mxu1 %v8047_v36  ;;  %v8137_v36 = vld [vmem:[#allocation15 + $0x80] ss:$8 sps:$4 sm:$0xff]  }
 0x328   : > { %5161 = vmatprep.subr.bf16.mxu1 %v8052_v39  ;;  %v8139_v39 = vld [vmem:[#allocation15 + $0x84] ss:$8 sps:$4 sm:$0xff]  }
 0x329   : > { %5645 = vmatpush1.bf16.msra.mxu0 %v8101_v59  ;;  %v8166_v59 = vld [vmem:[#allocation15 + $0x1f4] ss:$8 sps:$4 sm:$0xff]  }
 0x32a   : > { %5646 = vmatprep.subr.bf16.mxu0 %v8106_v61  ;;  %v8169_v61 = vld [vmem:[#allocation15 + $0x1e4] ss:$8 sps:$4 sm:$0xff]  }
 0x32b   : > { %5162 = vmatpush1.bf16.msra.mxu1 %v8050_v42  ;;  %v8142_v42 = vld [vmem:[#allocation15 + $0x174] ss:$8 sps:$4 sm:$0xff]  }
 0x32c   : > { %5163 = vmatprep.subr.bf16.mxu1 %v8055_v43  ;;  %v8140_v43 = vld [vmem:[#allocation15 + $0x170] ss:$8 sps:$4 sm:$0xff]  }
 0x32d   : > { %5647 = vmatpush1.bf16.msra.mxu0 %v8104_v47  ;;  %v8172_v47 = vld [vmem:[#allocation15 + $0x1d4] ss:$8 sps:$4 sm:$0xff]  }
 0x32e   : > { %5648 = vmatprep.subr.bf16.mxu0 %v8109_v1  ;;  %v8175_v1 = vld [vmem:[#allocation15 + $0x1c4] ss:$8 sps:$4 sm:$0xff]  }
 0x32f   : > { %5164 = vmatpush1.bf16.msra.mxu1 %v8053_v44  ;;  %v8145_v44 = vld [vmem:[#allocation15 + $0x164] ss:$8 sps:$4 sm:$0xff]  }
 0x330   : > { %5165 = vmatprep.subr.bf16.mxu1 %v8058_v48  ;;  %v8151_v48 = vld [vmem:[#allocation15 + $0x144] ss:$8 sps:$4 sm:$0xff]  }
 0x331   : > { %5649 = vmatpush1.bf16.msra.mxu0 %v8107_v3  ;;  %v8178_v3 = vld [vmem:[#allocation15 + $0x1b4] ss:$8 sps:$4 sm:$0xff]  }
 0x332   : > { %5650 = vmatprep.subr.bf16.mxu0 %v8112_v5  ;;  %v8181_v5 = vld [vmem:[#allocation15 + $0x1a4] ss:$8 sps:$4 sm:$0xff]  }
 0x333   : > { %5166 = vmatpush1.bf16.msra.mxu1 %v8056_v52  ;;  %v8152_v52 = vld [vmem:[#allocation15 + $0x130] ss:$8 sps:$4 sm:$0xff]  }
 0x334   : > { %5167 = vmatprep.subr.bf16.mxu1 %v8061_v54  ;;  %v8155_v54 = vld [vmem:[#allocation15 + $0x120] ss:$8 sps:$4 sm:$0xff]  }
 0x335   : > { %5651 = vmatpush1.bf16.msra.mxu0 %v8110_v7  ;;  %v8184_v7 = vld [vmem:[#allocation15 + $0x194] ss:$8 sps:$4 sm:$0xff]  }
 0x336   : > { %5652 = vmatprep.subr.bf16.mxu0 %v8115_v20  ;;  %v8185_v20 = vld [vmem:[#allocation15 + $0x180] ss:$8 sps:$4 sm:$0xff]  }
 0x337   : > { %5168 = vmatpush1.bf16.msra.mxu1 %v8059_v57  ;;  %v8158_v57 = vld [vmem:[#allocation15 + $0x110] ss:$8 sps:$4 sm:$0xff]  }
 0x338   : > { %5169 = vmatprep.subr.bf16.mxu1 %v8064_v58  ;;  %v8161_v58 = vld [vmem:[#allocation15 + $0x100] ss:$8 sps:$4 sm:$0xff]  }
 0x339   : > { %5653 = vmatpush1.bf16.msra.mxu0 %v8113_v8  ;;  %v4250_v8 = vpop.f32.mrf.mxu0 }
 0x33a   : > { %5654 = vmatprep.subr.bf16.mxu0 %v8118_v16 }
 0x33b   : > { %5170 = vmatpush1.bf16.msra.mxu1 %v8062_v60  ;;  %v8164_v60 = vld [vmem:[#allocation15 + $0x1f0] ss:$8 sps:$4 sm:$0xff]  }
 0x33c   : > { %5171 = vmatprep.subr.bf16.mxu1 %v8067_v63  ;;  %v8167_v63 = vld [vmem:[#allocation15 + $0x1e0] ss:$8 sps:$4 sm:$0xff]  }
 0x33d   : > { %5655 = vmatpush2.bf16.msra.mxu0 %v8116_v10 }
 0x33e   : > { %5656 = vmatprep.subr.bf16.mxu0 %v8121_v12 }
 0x33f   : > { %5172 = vmatpush1.bf16.msra.mxu1 %v8065_v0  ;;  %v8170_v0 = vld [vmem:[#allocation15 + $0x1d0] ss:$8 sps:$4 sm:$0xff]  }
 0x340   : > { %5173 = vmatprep.subr.bf16.mxu1 %v8070_v2  ;;  %v8173_v2 = vld [vmem:[#allocation15 + $0x1c0] ss:$8 sps:$4 sm:$0xff]  }
 0x341   : > { %5657 = vmatpush2.bf16.msra.mxu0 %v8119_v14 }
 0x342   : > { %5658 = vmatprep.subr.bf16.mxu0 %v8124_v32 }
 0x343   : > { %5174 = vmatpush2.bf16.msra.mxu1 %v8068_v4  ;;  %v8176_v4 = vld [vmem:[#allocation15 + $0x1b0] ss:$8 sps:$4 sm:$0xff]  }
 0x344   : > { %5175 = vmatprep.subr.bf16.mxu1 %v8073_v6  ;;  %v8179_v6 = vld [vmem:[#allocation15 + $0x1a0] ss:$8 sps:$4 sm:$0xff]  }
 0x345   : > { %5659 = vmatpush2.bf16.msra.mxu0 %v8122_v18 }
 0x346   : > { %5660 = vmatprep.subr.bf16.mxu0 %v8127_v24 }
 0x347   : > { %5176 = vmatpush2.bf16.msra.mxu1 %v8071_v19  ;;  %v8182_v19 = vld [vmem:[#allocation15 + $0x190] ss:$8 sps:$4 sm:$0xff]  }
 0x348   : > { %5177 = vmatprep.subr.bf16.mxu1 %v8076_v22  ;;  %v8187_v22 = vld [vmem:[#allocation15 + $0x184] ss:$8 sps:$4 sm:$0xff]  }
 0x349   : > { %5661 = vmatpush2.bf16.msra.mxu0 %v8125_v26 }
 0x34a   : > { %5662 = vmatprep.subr.bf16.mxu0 %v8130_v30 }
 0x34b   : > { %5178 = vmatpush2.bf16.msra.mxu1 %v8074_v62  ;;  %v4252_v62 = vpop.f32.mrf.mxu0 }
 0x34c   : > { %5179 = vmatprep.subr.bf16.mxu1 %v8079_v9 }
 0x34d   : > { %5663 = vmatpush2.bf16.msra.mxu0 %v8128_v37  ;;  %v4254_v16 = vpop.f32.mrf.mxu0 }
 0x34e   : > { %5664 = vmatprep.subr.bf16.mxu0 %v8133_v38 }
 0x34f   : > { %5180 = vmatpush2.bf16.msra.mxu1 %v8077_v11  ;;  %v4256_v10 = vpop.f32.mrf.mxu0 }
 0x350   : > { %5181 = vmatprep.subr.bf16.mxu1 %v8082_v13 }
 0x351   : > { %5665 = vmatpush2.bf16.msra.mxu0 %v8131_v31  ;;  %v4336_v12 = vpop.f32.mrf.mxu0 }
 0x352   : > { %5666 = vmatprep.subr.bf16.mxu0 %v8136_v33  ;;  %v5200_v33 = vld [vmem:[%s9065_s8] sm:$0xf] }
 0x353   : > { %5182 = vmatpush2.bf16.msra.mxu1 %v8080_v15  ;;  %v4338_v14 = vpop.f32.mrf.mxu0 }
 0x354   : > { %5183 = vmatprep.subr.bf16.mxu1 %v8085_v34 }
 0x355   : > { %5667 = vmatpush2.bf16.msra.mxu0 %v8134_v35  ;;  %v4340_v32 = vpop.f32.mrf.mxu0 }
 0x356   : > { %5668 = vmatprep.subr.bf16.mxu0 %v8139_v39 }
 0x357   : > { %5184 = vmatpush2.bf16.msra.mxu1 %v8083_v21  ;;  %v4342_v18 = vpop.f32.mrf.mxu0 }
 0x358   : > { %5185 = vmatprep.subr.bf16.mxu1 %v8088_v25 }
 0x359   : > { %5669 = vmatpush2.bf16.msra.mxu0 %v8137_v36 }
 0x35b   : > { %5186 = vmatpush2.bf16.msra.mxu1 %v8086_v27 }
 0x35c   : > { %5187 = vmatprep.subr.bf16.mxu1 %v8091_v28 }
 0x35f   : > { %5188 = vmatpush2.bf16.msra.mxu1 %v8089_v29 }
 0x360   : > { %5681 = vmatprep.subr.bf16.mxu1 %v8142_v42 }
 0x362   : > { %5190 = vmatmul.mubr.bf16.vlgmr.msra.gmra.mxu1 %v8866_v17  ;;  %v8143_v17 = vld [vmem:[#allocation15 + $0x160] ss:$8 sps:$4 sm:$0xff]   ;;  %v4293_v9 = vpop.f32.mrf.mxu1  ;;  %v5062_v24 = vpop.f32.mrf.mxu0 }
 0x363   : > { %5682 = vmatpush1.bf16.msra.mxu1 %v8140_v43  ;;  %v4294_v28 = vadd.f32 %v4293_v9, %v4250_v8  ;;  %v5209_v43 = vrot.slane %v5200_v33, %v8855_v40  ;;  %v5213_v8 = vrot.slane %v5200_v33, %v8845_v49 }
 0x364   : > { %5683 = vmatprep.subr.bf16.mxu1 %v8145_v44  ;;  %v4295_v11 = vpop.f32.mrf.mxu1  ;;  %v5064_v26 = vpop.f32.mrf.mxu0 }
 0x365   : > { %v4296_v27 = vadd.f32 %v4295_v11, %v4252_v62  ;;  %v5063_v36 = vadd.f32 %v5062_v24, %v4294_v28 }
 0x366   : > { %v4297_v13 = vpop.f32.mrf.mxu1  ;;  %v5066_v37 = vpop.f32.mrf.mxu0 }
 0x367   : > { %5684 = vmatpush1.bf16.msra.mxu1 %v8143_v17  ;;  %v4298_v30 = vadd.f32 %v4297_v13, %v4254_v16  ;;  %v5065_v35 = vadd.f32 %v5064_v26, %v4296_v27 }
 0x368   : > { %5685 = vmatprep.subr.bf16.mxu1 %v8148_v45  ;;  %v4299_v15 = vpop.f32.mrf.mxu1  ;;  %v5068_v17 = vpop.f32.mrf.mxu0 }
 0x369   : > { %v4300_v31 = vadd.f32 %v4299_v15, %v4256_v10  ;;  %v5067_v44 = vadd.f32 %v5066_v37, %v4298_v30  ;;  %v5217_v10 = vrot.slane %v5200_v33, %v8850_v53  ;;  %v8188_v53 = vld [vmem:[%s9068_s11 + $0x78] sm:$0xff]   ;;  %v8190_v37 = vld [vmem:[%s9068_s11 + $0x70] sm:$0xff]  }
 0x36a   : > { %v8189_v30 = vld [vmem:[%s9068_s11 + $0x38] sm:$0xff]   ;;  %7040 = vmatprep.subr.bf16.mxu0 %v8188_v53  ;;  %v8214_v53 = vld [vmem:[%s9119_s0 + $0x8] sm:$0xff]  }
 0x36b   : > { %5686 = vmatpush1.bf16.msra.mxu1 %v8146_v46  ;;  %v5205_v46 = vrot.slane %v5200_v33, %v8852_v56  ;;  %v8193_v33 = vld [vmem:[%s9068_s11 + $0x28] sm:$0xff]  }
 0x36c   : > { %5687 = vmatprep.subr.bf16.mxu1 %v8151_v48 }
 0x36f   : > { %5688 = vmatpush1.bf16.msra.mxu1 %v8149_v50 }
 0x370   : > { %5689 = vmatprep.subr.bf16.mxu1 %v8154_v51  ;;  %v5069_v51 = vadd.f32 %v5068_v17, %v4300_v31  ;;  %v8192_v31 = vld [vmem:[%s9068_s11 + $0x68] sm:$0xff]  }
 0x371   : > { %v8200_v17 = vld [vmem:[%s9068_s11 + $0x48] sm:$0xff]  }
 0x373   : > { %5690 = vmatpush1.bf16.msra.mxu1 %v8152_v52 }
 0x374   : > { %5691 = vmatprep.subr.bf16.mxu1 %v8157_v23 }
 0x377   : > { %5692 = vmatpush1.bf16.msra.mxu1 %v8155_v54 }
 0x378   : > { %5693 = vmatprep.subr.bf16.mxu1 %v8160_v55 }
 0x37b   : > { %5694 = vmatpush1.bf16.msra.mxu1 %v8158_v57 }
 0x37c   : > { %5695 = vmatprep.subr.bf16.mxu1 %v8163_v41 }
 0x37f   : > { %5696 = vmatpush1.bf16.msra.mxu1 %v8161_v58 }
 0x380   : > { %5697 = vmatprep.subr.bf16.mxu1 %v8166_v59 }
 0x383   : > { %5698 = vmatpush2.bf16.msra.mxu1 %v8164_v60 }
 0x384   : > { %5699 = vmatprep.subr.bf16.mxu1 %v8169_v61 }
 0x387   : > { %5700 = vmatpush2.bf16.msra.mxu1 %v8167_v63 }
 0x388   : > { %5701 = vmatprep.subr.bf16.mxu1 %v8172_v47 }
 0x38b   : > { %5702 = vmatpush2.bf16.msra.mxu1 %v8170_v0 }
 0x38c   : > { %5703 = vmatprep.subr.bf16.mxu1 %v8175_v1 }
 0x38f   : > { %5704 = vmatpush2.bf16.msra.mxu1 %v8173_v2 }
 0x390   : > { %5705 = vmatprep.subr.bf16.mxu1 %v8178_v3 }
 0x393   : > { %5706 = vmatpush2.bf16.msra.mxu1 %v8176_v4 }
 0x394   : > { %5707 = vmatprep.subr.bf16.mxu1 %v8181_v5 }
 0x397   : > { %5708 = vmatpush2.bf16.msra.mxu1 %v8179_v6 }
 0x398   : > { %5709 = vmatprep.subr.bf16.mxu1 %v8184_v7 }
 0x39b   : > { %5710 = vmatpush2.bf16.msra.mxu1 %v8182_v19 }
 0x39c   : > { %5711 = vmatprep.subr.bf16.mxu1 %v8187_v22 }
 0x39f   : > { %5712 = vmatpush2.bf16.msra.mxu1 %v8185_v20 }
 0x3a2   : > { %v4379_v34 = vpop.f32.mrf.mxu1  ;;  %v5148_v0 = vpop.f32.mrf.mxu0 }
 0x3a3   : > { %v4380_v1 = vadd.f32 %v4379_v34, %v4336_v12 }
 0x3a4   : > { %v4381_v21 = vpop.f32.mrf.mxu1  ;;  %v5150_v2 = vpop.f32.mrf.mxu0 }
 0x3a5   : > { %v4382_v3 = vadd.f32 %v4381_v21, %v4338_v14  ;;  %v5149_v4 = vadd.f32 %v5148_v0, %v4380_v1 }
 0x3a6   : > { %v4383_v25 = vpop.f32.mrf.mxu1  ;;  %v5152_v6 = vpop.f32.mrf.mxu0 }
 0x3a7   : > { %v4384_v5 = vadd.f32 %v4383_v25, %v4340_v32  ;;  %v5151_v19 = vadd.f32 %v5150_v2, %v4382_v3 }
 0x3a8   : > { %v4385_v29 = vpop.f32.mrf.mxu1  ;;  %v5154_v11 = vpop.f32.mrf.mxu0 }
 0x3a9   : > { %v4386_v20 = vadd.f32 %v4385_v29, %v4342_v18  ;;  %v5153_v16 = vadd.f32 %v5152_v6, %v4384_v5 }
 0x3ab   : > { %v5155_v15 = vadd.f32 %v5154_v11, %v4386_v20  ;;  %v8210_v11 = vld [vmem:[%s9070_s13 + $0x8] sm:$0xff]  }
 0x3e2   : > { %v5105_v38 = vpop.f32.mrf.mxu1 }
 0x3e3   : > { %v5106_v45 = vadd.f32 %v5105_v38, %v5063_v36  ;;  %v8191_v38 = vld [vmem:[%s9068_s11 + $0x30] sm:$0xff]   ;;  %v8195_v36 = vld [vmem:[%s9068_s11 + $0x20] sm:$0xff]  }
 0x3e4   : > { %v5107_v39 = vpop.f32.mrf.mxu1 }
 0x3e5   : > { %v5108_v42 = vadd.f32 %v5107_v39, %v5065_v35  ;;  %v5222_v57 = vadd.f32 %v5205_v46, %v5106_v45  ;;  %v8194_v35 = vld [vmem:[%s9068_s11 + $0x60] sm:$0xff]   ;;  %v8196_v39 = vld [vmem:[%s9068_s11 + $0x58] sm:$0xff]   ;;  %v8201_v45 = vld [vmem:[%s9068_s11 + $0x8] sm:$0xff]  }
 0x3e6   : > { %v5109_v48 = vpop.f32.mrf.mxu1 }
 0x3e7   : > { %v5110_v50 = vadd.f32 %v5109_v48, %v5067_v44  ;;  %v5223_v23 = vadd.f32 %v5209_v43, %v5108_v42  ;;  %v5230_v61 = vmax.f32 %v5222_v57, 0.0  ;;  %v8197_v42 = vld [vmem:[%s9068_s11 + $0x18] sm:$0xff]   ;;  %v8199_v44 = vld [vmem:[%s9068_s11 + $0x10] sm:$0xff]   ;;  %v8203_v48 = vld [vmem:[%s9068_s11] sm:$0xff]  }
 0x3e8   : > { %v5111_v52 = vpop.f32.mrf.mxu1 }
 0x3e9   : > { %v5226_v54 = vadd.f32 %v5205_v46, %v5110_v50  ;;  %v5112_v55 = vadd.f32 %v5111_v52, %v5069_v51  ;;  %v5231_v59 = vmax.f32 %v5223_v23, 0.0  ;;  %v8202_v46 = vld [vmem:[%s9068_s11 + $0x40] sm:$0xff]   ;;  %v8204_v50 = vld [vmem:[%s9070_s13 + $0x38] sm:$0xff]   ;;  %v8499_v51 = vmov 0.0   ;;  %v8205_v52 = vld [vmem:[%s9070_s13 + $0x30] sm:$0xff]  }
 0x3ea   : > { %7076 = vmatprep.subr.bf16.mxu1 %v8499_v51  ;;  %v8206_v23 = vld [vmem:[%s9070_s13 + $0x28] sm:$0xff]  }
 0x3eb   : > { %v5227_v41 = vadd.f32 %v5209_v43, %v5112_v55  ;;  %v5234_v58 = vmax.f32 %v5226_v54, 0.0  ;;  %v8198_v43 = vld [vmem:[%s9068_s11 + $0x50] sm:$0xff]   ;;  %v8207_v54 = vld [vmem:[%s9070_s13 + $0x20] sm:$0xff]  }
 0x3ed   : > { %v5235_v60 = vmax.f32 %v5227_v41, 0.0  ;;  %v5238_v47 = vpack.c.bf16 %v5234_v58, %v5230_v61  ;;  %v5306_v41 = vld [vmem:[%s9118_s27] sm:$0x3]  ;;  %s9121_s27 = sld [smem:[#allocation34_spill]] }
 0x3ef   : > { %v5239_v63 = vpack.c.bf16 %v5235_v60, %v5231_v59  ;;  %v5315_v59 = vrot.slane %v5306_v41, %v8855_v40  ;;  %v5311_v60 = vrot.slane %v5306_v41, %v8852_v56  ;;  %v8208_v56 = vld [vmem:[%s9070_s13 + $0x18] sm:$0xff]  }
 0x3f1   : > { %5670 = vmatprep.mubr.bf16.mxu0 %v5239_v63 }
 0x3f2   : > { %5671 = vmatmul.mubr.bf16.vlgmr.msra.gmra.mxu0 %v5238_v47 }
 0x3f3   : > { %7041 = vmatpush3.bf16.msra.mxu0 %v8189_v30  ;;  %v8215_v30 = vld [vmem:[%s9119_s0] sm:$0xff]  }
 0x3f4   : > { %7042 = vmatprep.subr.bf16.mxu0 %v8190_v37  ;;  %v7013_v37 = vld [vmem:[%s9121_s27] ss:$0 sm:$0xff] }
 0x3f7   : > { %7043 = vmatpush3.bf16.msra.mxu0 %v8191_v38 }
 0x3f8   : > { %7044 = vmatprep.subr.bf16.mxu0 %v8192_v31 }
 0x3fb   : > { %7045 = vmatpush3.bf16.msra.mxu0 %v8193_v33 }
 0x3fc   : > { %7046 = vmatprep.subr.bf16.mxu0 %v8194_v35 }
 0x3ff   : > { %7047 = vmatpush3.bf16.msra.mxu0 %v8195_v36 }
 0x400   : > { %7048 = vmatprep.subr.bf16.mxu0 %v8196_v39 }
 0x403   : > { %7049 = vmatpush3.bf16.msra.mxu0 %v8197_v42 }
 0x404   : > { %7050 = vmatprep.subr.bf16.mxu0 %v8198_v43 }
 0x407   : > { %7051 = vmatpush3.bf16.msra.mxu0 %v8199_v44 }
 0x408   : > { %7052 = vmatprep.subr.bf16.mxu0 %v8200_v17  ;;  %v7022_v17 = vld [vmem:[%s9123_s12] ss:$0 sm:$0xff] }
 0x40b   : > { %7053 = vmatpush3.bf16.msra.mxu0 %v8201_v45 }
 0x40c   : > { %7054 = vmatprep.subr.bf16.mxu0 %v8202_v46 }
 0x40f   : > { %7055 = vmatpush3.bf16.msra.mxu0 %v8203_v48 }
 0x410   : > { %7096 = vmatprep.subr.bf16.mxu0 %v8499_v51 }
 0x422   : > { %v5191_v7 = vpop.f32.mrf.mxu1 }
 0x423   : > { %v5192_v22 = vadd.f32 %v5191_v7, %v5149_v4 }
 0x424   : > { %v5193_v62 = vpop.f32.mrf.mxu1 }
 0x425   : > { %v5194_v9 = vadd.f32 %v5193_v62, %v5151_v19  ;;  %v5224_v12 = vadd.f32 %v5213_v8, %v5192_v22 }
 0x426   : > { %v5195_v13 = vpop.f32.mrf.mxu1 }
 0x427   : > { %v5196_v34 = vadd.f32 %v5195_v13, %v5153_v16  ;;  %v5225_v21 = vadd.f32 %v5217_v10, %v5194_v9  ;;  %v5232_v25 = vmax.f32 %v5224_v12, 0.0  ;;  %v8211_v13 = vld [vmem:[%s9070_s13] sm:$0xff]  }
 0x428   : > { %v5197_v14 = vpop.f32.mrf.mxu1 }
 0x429   : > { %v5228_v32 = vadd.f32 %v5213_v8, %v5196_v34  ;;  %v5198_v24 = vadd.f32 %v5197_v14, %v5155_v15  ;;  %v5233_v27 = vmax.f32 %v5225_v21, 0.0  ;;  %v8212_v15 = vld [vmem:[%s9119_s0 + $0x18] sm:$0xff]   ;;  %v6996_v21 = vld [vmem:[%s9120_s15] ss:$0 sm:$0xff]  ;;  %s9125_s15 = sld [smem:[#allocation37_spill]] }
 0x42b   : > { %v5236_v26 = vmax.f32 %v5228_v32, 0.0  ;;  %v5229_v18 = vadd.f32 %v5217_v10, %v5198_v24  ;;  %v8209_v10 = vld [vmem:[%s9070_s13 + $0x10] sm:$0xff]  }
 0x42d   : > { %v5240_v28 = vpack.c.bf16 %v5236_v26, %v5232_v25  ;;  %v5237_v49 = vmax.f32 %v5229_v18, 0.0 }
 0x42f   : > { %v5241_v29 = vpack.c.bf16 %v5237_v49, %v5233_v27 }
 0x431   : > { %5713 = vmatprep.mubr.bf16.mxu1 %v5241_v29  ;;  %v8213_v29 = vld [vmem:[%s9119_s0 + $0x10] sm:$0xff]  }
 0x432   : > { %5714 = vmatmul.mubr.bf16.vlgmr.msra.gmra.mxu1 %v5240_v28 }
 0x433   : > { %7077 = vmatpush3.bf16.msra.mxu1 %v8204_v50  ;;  %7092 = vmatprep.mubr.msk.bf16.mxu1 %vm8500_vm0, %v8499_v51 }
 0x434   : > { %7078 = vmatprep.subr.bf16.mxu1 %v8499_v51 }
 0x437   : > { %7079 = vmatpush3.bf16.msra.mxu1 %v8205_v52 }
 0x438   : > { %7080 = vmatprep.subr.bf16.mxu1 %v8499_v51 }
 0x43b   : > { %7081 = vmatpush3.bf16.msra.mxu1 %v8206_v23 }
 0x43c   : > { %7082 = vmatprep.subr.bf16.mxu1 %v8499_v51 }
 0x43f   : > { %7083 = vmatpush3.bf16.msra.mxu1 %v8207_v54 }
 0x440   : > { %7084 = vmatprep.subr.bf16.mxu1 %v8499_v51 }
 0x443   : > { %7085 = vmatpush3.bf16.msra.mxu1 %v8208_v56 }
 0x444   : > { %7086 = vmatprep.subr.bf16.mxu1 %v8499_v51 }
 0x447   : > { %7087 = vmatpush3.bf16.msra.mxu1 %v8209_v10 }
 0x448   : > { %7088 = vmatprep.subr.bf16.mxu1 %v8499_v51 }
 0x44b   : > { %7089 = vmatpush3.bf16.msra.mxu1 %v8210_v11 }
 0x44c   : > { %7090 = vmatprep.subr.bf16.mxu1 %v8499_v51 }
 0x44f   : > { %7091 = vmatpush3.bf16.msra.mxu1 %v8211_v13 }
 0x4b2   : > { %v5672_v55 = vpop.f32.mrf.mxu0 }
 0x4b3   : > { %v5673_v2 = vadd.f32 %v5672_v55, %v5311_v60 }
 0x4b4   : > { %v5674_v57 = vpop.f32.mrf.mxu0 }
 0x4b5   : > { %v5675_v0 = vadd.f32 %v5674_v57, %v5315_v59 }
 0x4b6   : > { %v5676_v58 = vpop.f32.mrf.mxu0 }
 0x4b7   : > { %v5677_v1 = vadd.f32 %v5676_v58, %v5311_v60  ;;  %v7030_v60 = vld [vmem:[%s9125_s15] ss:$0 sm:$0xff] }
 0x4b8   : > { %v5678_v63 = vpop.f32.mrf.mxu0 }
 0x4b9   : > { %v5679_v4 = vadd.f32 %v5678_v63, %v5315_v59 }
 0x4f2   : > { %v5715_v61 = vpop.f32.mrf.mxu1 }
 0x4f3   : > { %v5716_v7 = vadd.f32 %v5715_v61, %v5673_v2 }
 0x4f4   : > { %v5717_v47 = vpop.f32.mrf.mxu1 }
 0x4f5   : > { %v5718_v5 = vadd.f32 %v5717_v47, %v5675_v0  ;;  %v5724_v16 = vmax.f32 %v5716_v7, 0.0 }
 0x4f6   : > { %v5719_v3 = vpop.f32.mrf.mxu1 }
 0x4f7   : > { %v5720_v6 = vadd.f32 %v5719_v3, %v5677_v1  ;;  %v5725_v8 = vmax.f32 %v5718_v5, 0.0  ;;  %v7031_v3 = vld [vmem:[#allocation4] ss:$0 sm:$0xff] }
 0x4f8   : > { %v5721_v19 = vpop.f32.mrf.mxu1 }
 0x4f9   : > { %v5722_v20 = vadd.f32 %v5721_v19, %v5679_v4  ;;  %v5726_v22 = vmax.f32 %v5720_v6, 0.0 }
 0x4fb   : > { %v5727_v62 = vmax.f32 %v5722_v20, 0.0  ;;  %v5728_v9 = vpack.c.bf16 %v5726_v22, %v5724_v16 }
 0x4fd   : > { %v5729_v40 = vpack.c.bf16 %v5727_v62, %v5725_v8 }
 0x4ff   : > { %5897 = vmatprep.mubr.bf16.mxu0 %v5729_v40 }
 0x500   : > { %5898 = vmatmul.mubr.bf16.vlgmr.msra.gmra.mxu0 %v5728_v9 }
 0x501   : > { %7104 = vmatprep.mubr.msk.bf16.mxu0 %vm8500_vm0, %v8499_v51  ;;  %7097 = vmatpush3.bf16.msra.mxu0 %v8212_v15 }
 0x502   : > { %7098 = vmatprep.subr.bf16.mxu0 %v8499_v51 }
 0x505   : > { %7099 = vmatpush3.bf16.msra.mxu0 %v8213_v29 }
 0x506   : > { %7100 = vmatprep.subr.bf16.mxu0 %v8499_v51 }
 0x509   : > { %7101 = vmatpush3.bf16.msra.mxu0 %v8214_v53 }
 0x50a   : > { %7102 = vmatprep.subr.bf16.mxu0 %v8499_v51 }
 0x50d   : > { %7103 = vmatpush3.bf16.msra.mxu0 %v8215_v30 }
 0x5c0   : > { %v7056_v12 = vpop.f32.mrf.mxu0 }
 0x5c2   : > { %v7057_v34 = vpop.f32.mrf.mxu0 }
 0x5c3   : > { %v7058_v14 = vadd.f32 %v7057_v34, %v7056_v12 }
 0x5c4   : > { %v7059_v32 = vpop.f32.mrf.mxu0 }
 0x5c5   : > { %v5900_v25 = vadd.f32 %v7058_v14, %v6996_v21 }
 0x5c6   : > { %v7060_v24 = vpop.f32.mrf.mxu0 }
 0x5c7   : > { %v7061_v26 = vadd.f32 %v7060_v24, %v7059_v32  ;;  %v5906_v27 = vmax.f32 %v5900_v25, 0.0 }
 0x5c9   : > { %v5903_v18 = vadd.f32 %v7061_v26, %v6996_v21 }
 0x5cb   : > { %v5907_v28 = vmax.f32 %v5903_v18, 0.0 }
 0x5cd   : > { %v5908_v49 = vpack.c.bf16 %v5907_v28, %v5906_v27 }
 0x5cf   : > { %7093 = vmatmul.mubr.bf16.vlgmr.msra.gmra.mxu1 %v5908_v49 }
 0x68f   : > { %v6014_v38 = vpop.f32.mrf.mxu1 }
 0x690   : > { %v6015_v33 = vadd.f32 %v7013_v37, %v6014_v38 }
 0x691   : > { %v7094_v31 = vpop.f32.mrf.mxu1 }
 0x692   : > { %v6021_v42 = vmax.f32 %v6015_v33, 0.0 }
 0x693   : > { %v6017_v35 = vpop.f32.mrf.mxu1 }
 0x694   : > { %v6018_v36 = vadd.f32 %v7013_v37, %v6017_v35 }
 0x695   : > { %v7095_v39 = vpop.f32.mrf.mxu1 }
 0x696   : > { %v6022_v43 = vmax.f32 %v6018_v36, 0.0 }
 0x698   : > { %v6023_v44 = vpack.c.bf16 %v6022_v43, %v6021_v42 }
 0x69a   : > { %7105 = vmatmul.mubr.msk.bf16.vlgmr.msra.gmra.mxu0 %vm6063_vm1, %v6023_v44 }
 0x75a   : > { %v6101_v45 = vpop.f32.mrf.mxu0 }
 0x75b   : > { %v6102_v46 = vadd.f32 %v7022_v17, %v6101_v45 }
 0x75c   : > { %v7106_v48 = vpop.f32.mrf.mxu0 }
 0x75d   : > { %v7028_v50 = vmul.f32 -1.442695, %v6102_v46 }
 0x75e   : > { %v6104_v52 = vpop.f32.mrf.mxu0 }
 0x75f   : > { %8216 = vpow2.f32 %v7028_v50  ;;  %v6105_v23 = vadd.f32 %v7022_v17, %v6104_v52 }
 0x760   : > { %v7107_v54 = vpop.f32.mrf.mxu0 }
 0x761   : > { %v7029_v55 = vmul.f32 -1.442695, %v6105_v23 }
 0x763   : > { %8218 = vpow2.f32 %v7029_v55 }
 0x76c   : > { %v8217_v57 = vpop.eup %8216 }
 0x76d   : > { %v6114_v41 = vadd.f32 1.0, %v8217_v57 }
 0x76f   : > { %8220 = vrcp.f32 %v6114_v41 }
 0x770   : > { %v8219_v58 = vpop.eup %8218 }
 0x771   : > { %v6115_v59 = vadd.f32 1.0, %v8219_v58 }
 0x773   : > { %8222 = vrcp.f32 %v6115_v59 }
 0x77c   : > { %v8221_v61 = vpop.eup %8220 }
 0x77d   : > { %v6127_v63 = vmul.f32 %v8221_v61, %v7030_v60  ;;  %6157 = vst.msk [vmem:[%s9026_s9] sm:$0xff] %vm6129_vm2, %v8221_v61 }
 0x77f   : > { %v6130_v47 = vsel %vm6129_vm2, %v6127_v63, 0.0 }
 0x780   : > { %v8223_v0 = vpop.eup %8222  ;;  %6131 = vadd.xlane.f32.xlu0 %v6130_v47 }
 0x781   : > { %6158 = vst.msk [vmem:[%s9026_s9 + $0x8] sm:$0xff] %vm6129_vm2, %v8223_v0  ;;  %v6128_v1 = vmul.f32 %v8223_v0, %v7030_v60 }
 0x783   : > { %v6133_v2 = vsel %vm6129_vm2, %v6128_v1, 0.0 }
 0x784   : > { %6134 = vadd.xlane.f32.xlu0 %v6133_v2 }
 0x809   : > { %v6132_v4 = vpop.xlane.xlu0 %6131 }
 0x80a   : > { %v6143_v5 = vadd.f32 %v7031_v3, %v6132_v4 }
 0x80c   : > { %v7032_v6 = vmul.f32 -1.442695, %v6143_v5 }
 0x80d   : > { %v6135_v7 = vpop.xlane.xlu0 %6134 }
 0x80e   : > { %8224 = vpow2.f32 %v7032_v6  ;;  %v6144_v19 = vadd.f32 %v7031_v3, %v6135_v7 }
 0x810   : > { %v7033_v20 = vmul.f32 -1.442695, %v6144_v19 }
 0x812   : > { %8226 = vpow2.f32 %v7033_v20 }
 0x81b   : > { %v8225_v22 = vpop.eup %8224 }
 0x81c   : > { %v6151_v8 = vadd.f32 1.0, %v8225_v22 }
 0x81e   : > { %8228 = vrcp.f32 %v6151_v8 }
 0x81f   : > { %v8227_v62 = vpop.eup %8226 }
 0x820   : > { %v6152_v16 = vadd.f32 1.0, %v8227_v62 }
 0x822   : > { %8230 = vrcp.f32 %v6152_v16 }
 0x82b   : > { %v8229_v40 = vpop.eup %8228 }
 0x82c   : > { %6161 = vrot.lane.b32.xlu1 %v8229_v40, %s8501_s30 }
 0x82f   : > { %v8231_v9 = vpop.eup %8230 }
 0x830   : > { %6163 = vrot.lane.b32.xlu1 %v8231_v9, %s8501_s30 }
 0x89e   : > { %v6162_v56 = vpop.permute.xlu1 %6161 }
 0x89f   : > { %6168 = vst.msk [vmem:[%s9026_s9] sm:$0xff] %vm6167_vm3, %v6162_v56 }
 0x8a0   : > { %6171 = vst.msk [vmem:[%s9026_s9] sm:$0xff] %vm6170_vm4, %v8499_v51 }
 0x8a2   : > { %v6164_v10 = vpop.permute.xlu1 %6163 }
 0x8a3   : > { %6169 = vst.msk [vmem:[%s9026_s9 + $0x8] sm:$0xff] %vm6167_vm3, %v6164_v10 }
 0x8a4   : > { %6172 = vst.msk [vmem:[%s9026_s9 + $0x8] sm:$0xff] %vm6170_vm4, %v8499_v51 }
 0x8a5 PF: > { %s39_s23 = sadd.s32 1, %s8484_s23   ;;  %s9126_s10 = sld [smem:[#allocation21_spill]] }
 0x8a6   : > { %p36_p3 = scmp.ge.s32.totalorder %s39_s23, 4   ;;  %s9127_s1 = sld [smem:[#allocation24_spill]] }
 0x8a7   : > { %s9128_s16 = sld [smem:[#allocation23_spill]]  ;;  %s9129_s20 = smov %s8468_s21 }
 0x8a8   : > { %s9131_s22 = smov %s8480_s2 }
 0x8a9   :  { %38 = sbr.rel (!%p36_p3) target bundleno = 23 (0x17), region = 179 }
 0x8ab   : > { %s9130_s21 = smov %s9126_s10 }
 0x8ad   : > { %s9132_s2 = smov %s9128_s16 }
 0x8ae   :  { %6195 = vsyncpa [#allocation6], 1 }
 0x8af   :  { %6197 = vsyncpa [#allocation6 + $0x1], 1 }
 0x8b0   :  { %6198 = vsyncpa [#allocation8], 1 }
 0x8b1   :  { %6200 = vsyncpa [#allocation8 + $0x1], 1 }
 0x8b2   :  { %6201 = vsyncpa [#allocation11], 1 }
 0x8b3   :  { %6202 = vsyncpa [#allocation14], 1 }

// kernel: tpu_custom_call.1
= control target key start
LH: loop header
LB: loop body
LE: loop exit
PB: predicated region body
PF: predicated region fallthrough
CT: control target
= control target key end

     0   :  { %s9057_s0 = inlined_call_operand.hbm [shape: f32[32,256], index: 0, kind: input, shape index: {}]   ;;  %s9058_s1 = inlined_call_operand.hbm [shape: f32[32,1024], index: 1, kind: input, shape index: {}]   ;;  %s9059_s2 = inlined_call_operand.hbm [shape: bf16[256,512], index: 2, kind: input, shape index: {}]   ;;  %s9060_s3 = inlined_call_operand.hbm [shape: bf16[1024,512], index: 3, kind: input, shape index: {}]   ;;  %s9061_s4 = inlined_call_operand.vmem [shape: f32[1,512], index: 4, kind: input, shape index: {}]   ;;  %s9062_s5 = inlined_call_operand.vmem [shape: f32[1,512], index: 5, kind: input, shape index: {}]   ;;  %s9063_s6 = inlined_call_operand.hbm [shape: bf16[512,512], index: 6, kind: input, shape index: {}]   ;;  %s9064_s7 = inlined_call_operand.hbm [shape: bf16[512,512], index: 7, kind: input, shape index: {}]   ;;  %s9065_s8 = inlined_call_operand.vmem [shape: f32[1,512], index: 8, kind: input, shape index: {}]   ;;  %s9066_s9 = inlined_call_operand.hbm [shape: bf16[512,256], index: 9, kind: input, shape index: {}]   ;;  %s9067_s10 = inlined_call_operand.vmem [shape: f32[1,256], index: 10, kind: input, shape index: {}]   ;;  %s9068_s11 = inlined_call_operand.vmem [shape: bf16[256,128], index: 11, kind: input, shape index: {}]   ;;  %s9069_s12 = inlined_call_operand.vmem [shape: f32[1,128], index: 12, kind: input, shape index: {}]   ;;  %s9070_s13 = inlined_call_operand.vmem [shape: bf16[128,64], index: 13, kind: input, shape index: {}]   ;;  %s9071_s14 = inlined_call_operand.vmem [shape: f32[1,64], index: 14, kind: input, shape index: {}]   ;;  %s9072_s15 = inlined_call_operand.vmem [shape: bf16[64,5], index: 15, kind: input, shape index: {}]   ;;  %s9073_s16 = inlined_call_operand.vmem [shape: f32[1,5], index: 16, kind: input, shape index: {}]   ;;  %s9074_s17 = inlined_call_operand.vmem [shape: f32[1,5], index: 17, kind: input, shape index: {}]   ;;  %s9075_s18 = inlined_call_operand.<no memory space> [shape: f32[1,1], index: 18, kind: input, shape index: {}]   ;;  %s9076_s19 = inlined_call_operand.vmem [shape: f32[32,8], index: 19, kind: output, shape index: {}]  }
   0x1   :  { %9083 = sst [smem:[#allocation25_spill]] %s9057_s0  ;;  %v24_v0 = vstv %s9075_s18 }
   0x2   :  { %9084 = sst [smem:[#allocation26_spill]] %s9058_s1  ;;  %25 = vst [vmem:[#allocation4] sm:$0x1] %v24_v0 }
   0x3   :  { %9085 = sst [smem:[#allocation27_spill]] %s9059_s2 }
   0x4   :  { %9086 = sst [smem:[#allocation28_spill]] %s9060_s3 }
   0x5   :  { %9087 = sst [smem:[#allocation29_spill]] %s9063_s6 }
   0x6   :  { %9088 = sst [smem:[#allocation30_spill]] %s9064_s7 }
   0x7   :  { %9089 = sst [smem:[#allocation31_spill]] %s9066_s9 }
   0x8   :  { %9090 = sst [smem:[#allocation32_spill]] %s9067_s10 }
   0x9   :  { %9091 = sst [smem:[#allocation33_spill]] %s9069_s12 }
   0xa   :  { %9092 = sst [smem:[#allocation34_spill]] %s9071_s14 }
   0xb   :  { %9093 = sst [smem:[#allocation35_spill]] %s9072_s15 }
   0xc   :  { %9094 = sst [smem:[#allocation36_spill]] %s9073_s16 }
   0xd   :  { %9095 = sst [smem:[#allocation37_spill]] %s9074_s17 }
   0xe   :  { %9096 = sst [smem:[#allocation38_spill]] %s9076_s19 }
   0xf   :  { %26 = vsyncpa [#allocation6], 0 }
  0x10   :  { %28 = vsyncpa [#allocation6 + $0x1], 0 }
  0x11   :  { %29 = vsyncpa [#allocation8], 0 }
  0x12   :  { %31 = vsyncpa [#allocation8 + $0x1], 0 }
  0x13   :  { %32 = vsyncpa [#allocation11], 0 }
  0x14   :  { %33 = vsyncpa [#allocation14], 0  ;;  %s8605_s20 = smov 0   ;;  %s8607_s21 = smov 0  }
  0x15   :  { %s8609_s1 = smov 0   ;;  %s8611_s22 = smov 0  }
  0x16   :  { %s8613_s2 = smov 0   ;;  %s8615_s23 = smov 0  }
  0x17 LB: > { %9097 = sst [smem:[#allocation21_spill]] %s8472_s1  ;;  %s9077_s18 = sadd.s32 4294967295, %s8484_s23   ;;  %s8484_s23 = sphi %s8615_s23, %s39_s23   ;;  %s8480_s2 = sphi %s8613_s2, %s9132_s2   ;;  %s8476_s22 = sphi %s8611_s22, %s9131_s22   ;;  %s8472_s1 = sphi %s8609_s1, %s9127_s1   ;;  %s8468_s21 = sphi %s8607_s21, %s9130_s21   ;;  %s8464_s20 = sphi %s8605_s20, %s9129_s20  }
  0x18   : > { %9098 = sst [smem:[#allocation22_spill]] %s8476_s22  ;;  %p6331_p0 = scmp.ge.s32.totalorder %s8484_s23, 1 }
  0x19   : > { %p8639_p1 = scmp.eq.s32.totalorder %s9077_s18, 0  ;;  %p505_p2 = scmp.lt.s32.totalorder %s8484_s23, 3 }
  0x1a   : > { %s8486_s3 = smov [#allocation9]   ;;  %s8487_s28 = smov [#allocation10]  }
  0x1b   : > { %p8644_p3 = pnand %p6331_p0, %p505_p2  ;;  %s521_s26 = sshll.u32 %s8486_s3, 4  ;;  %s522_s26 = int_to_ptr.vmem [resolvable:$true] %s521_s26 }
  0x1c   : > { %s538_s29 = sshll.u32 %s8487_s28, 4  ;;  %s8488_s0 = smov [#allocation13]   ;;  %s539_s29 = int_to_ptr.vmem [resolvable:$true] %s538_s29 }
  0x1d   : > { %p7132_p4 = pneg %p8644_p3  ;;  %s570_s30 = sshll.u32 %s8488_s0, 4  ;;  %s571_s30 = int_to_ptr.vmem [resolvable:$true] %s570_s30 }
  0x1e   : > { %s8243_s3 = scalar_lea.vmem %s522_s26, 8192  ;;  %p8251_p10 = scmp.lt.s32.totalorder %s522_s26, %s522_s26 }
  0x1f   : > { %p8652_p5 = pnand %p7132_p4, %p8639_p1  ;;  %p8244_p7 = scmp.ne.s32.totalorder %s522_s26, %s8243_s3 }
  0x20   : > { %p8252_p11 = scmp.lt.s32.totalorder %s8243_s3, %s8243_s3 }
  0x21   : > { %p8658_p6 = pneg %p8652_p5 }
  0x22   : > { %p8253_p12 = por %p8252_p11, %p8251_p10 }
  0x23   : > { %p8246_p8 = pnand %p8244_p7, %p8658_p6 }
  0x25   : > { %p8247_p9 = pneg %p8246_p8 }
  0x27   : > { %p8254_p13 = pnand %p8253_p12, %p8247_p9 }
  0x29   : > { %8257 = shalt.err (!%p8254_p13)
}
  0x2a   : > { %s9078_s28 = smov 256   ;;  %s9079_s0 = smov 16  }
  0x2b   : > { %s9103_s16 = sld [smem:[#allocation27_spill]]  ;;  %s8269_s22 = scalar_lea.vmem %s539_s29, 32768 }
  0x2c   : > { %p8270_p0 = scmp.ne.s32.totalorder %s539_s29, %s8269_s22  ;;  %p8277_p7 = scmp.lt.s32.totalorder %s539_s29, %s539_s29 }
  0x2d   : > { %p8278_p8 = scmp.lt.s32.totalorder %s8269_s22, %s8269_s22 }
  0x2e   : > { %p8272_p2 = pnand %p8270_p0, %p8658_p6 }
  0x2f   : > { %p8279_p9 = por %p8278_p8, %p8277_p7 }
  0x30   : > { %p8273_p4 = pneg %p8272_p2 }
  0x31   : > { %7135 = dma.hbm_to_vmem [thread:$0]  (!%p8652_p5), %s9103_s16, 8192, %s522_s26, [#allocation8], %s9078_s28, %s9078_s28, %s9079_s0  }
  0x32   : > { %p8280_p10 = pnand %p8279_p9, %p8273_p4 }
  0x34   : > { %8283 = shalt.err (!%p8280_p10)
}
  0x35   : > { %s9104_s12 = sld [smem:[#allocation28_spill]]  ;;  %s8295_s16 = scalar_lea.vmem %s571_s30, 16384 }
  0x36   : > { %p8296_p11 = scmp.ne.s32.totalorder %s571_s30, %s8295_s16  ;;  %p8303_p0 = scmp.lt.s32.totalorder %s571_s30, %s571_s30 }
  0x37   : > { %p8304_p2 = scmp.lt.s32.totalorder %s8295_s16, %s8295_s16 }
  0x38   : > { %p8298_p12 = pnand %p8296_p11, %p8658_p6 }
  0x39   : > { %p8305_p4 = por %p8304_p2, %p8303_p0 }
  0x3a   : > { %p8299_p13 = pneg %p8298_p12 }
  0x3b   : > { %7138 = dma.hbm_to_vmem [thread:$0]  (!%p8652_p5), %s9104_s12, 32768, %s539_s29, [#allocation11], %s9078_s28, %s9078_s28, %s9079_s0  }
  0x3c   : > { %p8306_p7 = pnand %p8305_p4, %p8299_p13 }
  0x3e   : > { %8309 = shalt.err (!%p8306_p7)
}
  0x3f   : > { %s9105_s7 = sld [smem:[#allocation30_spill]]  ;;  %s8491_s12 = smov [#allocation12]  }
  0x40   : > { %s557_s19 = sshll.u32 %s8491_s12, 4  ;;  %s8492_s22 = smov [#allocation15]   ;;  %s558_s19 = int_to_ptr.vmem [resolvable:$true] %s557_s19 }
  0x41   : > { %s586_s26 = sshll.u32 %s8492_s22, 4  ;;  %s8321_s29 = scalar_lea.vmem %s558_s19, 16384  ;;  %s587_s26 = int_to_ptr.vmem [resolvable:$true] %s586_s26 }
  0x42   : > { %p8322_p8 = scmp.ne.s32.totalorder %s558_s19, %s8321_s29  ;;  %p8329_p11 = scmp.lt.s32.totalorder %s558_s19, %s558_s19 }
  0x43   : > { %p8330_p12 = scmp.lt.s32.totalorder %s8321_s29, %s8321_s29 }
  0x44   : > { %p8324_p9 = pnand %p8322_p8, %p8658_p6 }
  0x45   : > { %7144 = dma.hbm_to_vmem [thread:$0]  (!%p8652_p5), %s9105_s7, 16384, %s571_s30, [#allocation14], %s9078_s28, %s9078_s28, %s9079_s0  }
  0x46   : > { %p8325_p10 = pneg %p8324_p9  ;;  %p8331_p13 = por %p8330_p12, %p8329_p11 }
  0x48   : > { %p8332_p0 = pnand %p8331_p13, %p8325_p10 }
  0x4a   : > { %8335 = shalt.err (!%p8332_p0)
}
  0x4b   : > { %s9106_s6 = sld [smem:[#allocation29_spill]]  ;;  %s8347_s16 = scalar_lea.vmem %s587_s26, 8192 }
  0x4c   : > { %p8348_p2 = scmp.ne.s32.totalorder %s587_s26, %s8347_s16  ;;  %p8355_p8 = scmp.lt.s32.totalorder %s587_s26, %s587_s26 }
  0x4d   : > { %p8356_p9 = scmp.lt.s32.totalorder %s8347_s16, %s8347_s16 }
  0x4e   : > { %p8350_p4 = pnand %p8348_p2, %p8658_p6 }
  0x4f   : > { %p8357_p10 = por %p8356_p9, %p8355_p8 }
  0x50   : > { %p8351_p7 = pneg %p8350_p4 }
  0x51   : > { %7141 = dma.hbm_to_vmem [thread:$0]  (!%p8652_p5), %s9106_s6, 16384, %s558_s19, [#allocation11], %s9078_s28, %s9078_s28, %s9079_s0  }
  0x52   : > { %p8358_p11 = pnand %p8357_p10, %p8351_p7 }
  0x54   : > { %8361 = shalt.err (!%p8358_p11)
}
  0x55   : > { %s8493_s17 = smov 128   ;;  %s8494_s18 = smov 8  }
  0x56   : > { %s9107_s9 = sld [smem:[#allocation31_spill]]  ;;  %s51_s19 = sadd.s32 1, %s8480_s2 }
  0x57   : > { %p53_p6 = scmp.ge.s32.totalorder %s51_s19, 2  ;;  %s60_s22 = sadd.s32 1, %s8472_s1 }
  0x58   : > { %p67_p12 = scmp.ne.s32.totalorder %s8472_s1, %s8468_s21  ;;  %p68_p13 = scmp.eq.s32.totalorder %s8484_s23, 0 }
  0x59   : > { %s9134_s19 = smov (%p53_p6, %s51_s19), 0  ;;  %p73_p2 = scmp.ne.s32.totalorder %s8468_s21, %s8464_s20 }
  0x5a   : > { %9108 = sst [smem:[#allocation23_spill]] %s9134_s19  ;;  %p8716_p0 = por %p68_p13, %p67_p12 }
  0x5b   : > { %s55_s27 = ssub.s32 %s8480_s2, %s9134_s19  ;;  %p7160_p4 = scmp.lt.s32.totalorder %s8484_s23, 2 }
  0x5c   : > { %7147 = dma.hbm_to_vmem [thread:$0]  (!%p8652_p5), %s9107_s9, 8192, %s587_s26, [#allocation14], %s8493_s17, %s8493_s17, %s8494_s18  }
  0x5d   : > { %p58_p7 = scmp.eq.s32.totalorder %s55_s27, 0  ;;  %p8727_p5 = por %p8639_p1, %p73_p2 }
  0x5e   : > { %s8732_s30 = sand.u32 1, %s8472_s1   ;;  %s7037_s3 = sshll.u32 %s8480_s2, 9 }
  0x5f   : > { %s8736_s16 = scalar_select %p58_p7, %s8472_s1, %s60_s22  }
  0x60   : > { %s6338_s17 = sshll.u32 %s8732_s30, 5  ;;  %s9112_s12 = sld [smem:[#allocation25_spill]] }
  0x61   : > { %9111 = sst [smem:[#allocation24_spill]] %s8736_s16  ;;  %s631_s28 = scalar_lea.vmem [#allocation5], %s6338_s17 }
  0x62   : > { %s641_s0 = sshll.u32 %s631_s28, 4  ;;  %p8744_p8 = pnand %p7160_p4, %p8716_p0  ;;  %s642_s0 = int_to_ptr.vmem [resolvable:$true] %s641_s0 }
  0x63   : > { %s651_s6 = sand.u32 1, %s8484_s23   ;;  %s628_s7 = scalar_lea.sflag [#allocation6], %s8732_s30 }
  0x64   : > { %p8364_p9 = pneg %p8744_p8  ;;  %s8375_s22 = scalar_lea.vmem %s642_s0, 512 }
  0x65   : > { %p8376_p10 = scmp.ne.s32.totalorder %s642_s0, %s8375_s22 }
  0x66   : > { %s640_s20 = scalar_lea.hbm %s9112_s12, %s7037_s3  ;;  %s8495_s3 = smov [#allocation5]  }
  0x67   : > { %p8378_p11 = pnand %p8376_p10, %p8364_p9  ;;  %s8380_s28 = sshll.u32 %s8495_s3, 4  ;;  %s8381_s28 = int_to_ptr.vmem [resolvable:$false] %s8380_s28 }
  0x68   : > { %s8382_s29 = scalar_lea.vmem %s8381_s28, 1024  ;;  %p8383_p12 = scmp.lt.s32.totalorder %s642_s0, %s8381_s28 }
  0x69   : > { %p8379_p6 = pneg %p8378_p11  ;;  %p8384_p13 = scmp.lt.s32.totalorder %s8382_s29, %s8375_s22 }
  0x6b   : > { %p8385_p0 = por %p8384_p13, %p8383_p12 }
  0x6d   : > { %p8386_p2 = pnand %p8385_p0, %p8379_p6 }
  0x6f   : > { %8389 = shalt.err (!%p8386_p2)
}
  0x70   : > { %s9114_s17 = smov 16   ;;  %s9115_s18 = smov 256  }
  0x71   : > { %7151 = dma.hbm_to_vmem [thread:$0]  (!%p8744_p8), %s640_s20, 512, %s642_s0, %s628_s7, %s9115_s18, %s9115_s18, %s9114_s17  }
  0x72   : > { %s6342_s14 = sshll.u32 %s8732_s30, 7  ;;  %s7039_s12 = sshll.u32 %s8480_s2, 11 }
  0x73   : > { %s9116_s19 = sld [smem:[#allocation26_spill]]  ;;  %s655_s28 = scalar_lea.vmem [#allocation7], %s6342_s14 }
  0x74   : > { %s665_s22 = sshll.u32 %s655_s28, 4  ;;  %s652_s29 = scalar_lea.sflag [#allocation8], %s651_s6  ;;  %s666_s22 = int_to_ptr.vmem [resolvable:$true] %s665_s22 }
  0x75   : > { %s8403_s1 = scalar_lea.vmem %s666_s22, 2048  ;;  %s8496_s15 = smov [#allocation7]  }
  0x76   : > { %p8404_p4 = scmp.ne.s32.totalorder %s666_s22, %s8403_s1  ;;  %s8408_s10 = sshll.u32 %s8496_s15, 4  ;;  %s8409_s10 = int_to_ptr.vmem [resolvable:$false] %s8408_s10 }
  0x77   : > { %s8410_s7 = scalar_lea.vmem %s8409_s10, 4096  ;;  %p8411_p11 = scmp.lt.s32.totalorder %s666_s22, %s8409_s10 }
  0x78   : > { %p8406_p7 = pnand %p8404_p4, %p8364_p9  ;;  %p8412_p6 = scmp.lt.s32.totalorder %s8410_s7, %s8403_s1 }
  0x79   : > { %s664_s16 = scalar_lea.hbm %s9116_s19, %s7039_s12 }
  0x7a   : > { %p8407_p10 = pneg %p8406_p7  ;;  %p8413_p12 = por %p8412_p6, %p8411_p11 }
  0x7c   : > { %p8414_p13 = pnand %p8413_p12, %p8407_p10 }
  0x7e   : > { %8417 = shalt.err (!%p8414_p13)
}
  0x7f   : > { %s8497_s9 = smov 1024   ;;  %s8498_s0 = smov 64  }
  0x80   : > { %7154 = dma.hbm_to_vmem [thread:$0]  (!%p8744_p8), %s664_s16, 2048, %s666_s22, %s652_s29, %s8497_s9, %s8497_s9, %s8498_s0  }
  0x81   : > { %677 = sbr.rel (%p8644_p3) target bundleno = 2213 (0x8a5), region = 96  ;;  %s679_s6 = sand.u32 (!%p8644_p3), 1, %s8468_s21  }
  0x82   : > { %s6347_s19 = sshll.u32 (!%p8644_p3), %s679_s6, 5  ;;  %s680_s15 = scalar_lea.sflag (!%p8644_p3), [#allocation6], %s679_s6 }
  0x83   : > { %s8773_s30 = scalar_lea.vmem (!%p8644_p3), [#allocation5], %s6347_s19 }
  0x86   : > { %8443 = dma.done.wait (%p8727_p5), %s680_s15, 512  }
  0x87   : > { %8445 = vsyncadd (%p8727_p5), %s680_s15, 4294966784  ;;  %s9117_s10 = sadd.s32 4294967295, %s8484_s23   ;;  %s6348_s16 = sshll.u32 %s679_s6, 7 }
  0x88   : > { %s688_s1 = sand.u32 1, %s9117_s10   ;;  %s8781_s25 = scalar_lea.vmem [#allocation7], %s6348_s16 }
  0x89   : > { %s689_s20 = scalar_lea.sflag [#allocation8], %s688_s1 }
  0x8a   : > { %8447 = dma.done.wait (%p8727_p5), %s689_s20, 2048  }
  0x8b   : > { %8449 = vsyncadd (%p8727_p5), %s689_s20, 4294965248 }
  0x8c   : > { %8451 = dma.done.wait (%p8639_p1), [#allocation8], 8192  }
  0x8d   : > { %8453 = vsyncadd (%p8639_p1), [#allocation8], 4294959104 }
  0x8e   : > { %8455 = dma.done.wait (%p8639_p1), [#allocation11], 49152  }
  0x8f   : > { %8457 = vsyncadd (%p8639_p1), [#allocation11], 4294918144 }
  0x90   : > { %8459 = dma.done.wait (%p8639_p1), [#allocation14], 24576  }
  0x91   : > { %8461 = vsyncadd (%p8639_p1), [#allocation14], 4294942720  ;;  %v7228_v1 = vld [vmem:[#allocation9 + $0xe4] ss:$16 sps:$4 sm:$0xff]   ;;  %v7230_v2 = vld [vmem:[#allocation9 + $0xec] ss:$16 sps:$4 sm:$0xff]  }
  0x92   : > { %1203 = vmatprep.subr.bf16.mxu0 %v7228_v1  ;;  %v7232_v3 = vld [vmem:[#allocation9 + $0xe0] ss:$16 sps:$4 sm:$0xff]   ;;  %v7233_v4 = vld [vmem:[#allocation9 + $0xe8] ss:$16 sps:$4 sm:$0xff]   ;;  %1246 = vmatprep.subr.bf16.mxu1 %v7230_v2  ;;  %v7234_v5 = vld [vmem:[#allocation9 + $0xc4] ss:$16 sps:$4 sm:$0xff]  }
  0x93   : > { %1204 = vmatpush1.bf16.msra.mxu0 %v7232_v3  ;;  %1247 = vmatpush1.bf16.msra.mxu1 %v7233_v4  ;;  %v7236_v6 = vld [vmem:[#allocation9 + $0xcc] ss:$16 sps:$4 sm:$0xff]   ;;  %v7238_v7 = vld [vmem:[#allocation9 + $0xc0] ss:$16 sps:$4 sm:$0xff]   ;;  %v7239_v8 = vld [vmem:[#allocation9 + $0xc8] ss:$16 sps:$4 sm:$0xff]  }
  0x94   : > { %1205 = vmatprep.subr.bf16.mxu0 %v7234_v5  ;;  %1248 = vmatprep.subr.bf16.mxu1 %v7236_v6  ;;  %v7240_v9 = vld [vmem:[#allocation9 + $0xa4] ss:$16 sps:$4 sm:$0xff]   ;;  %v7242_v10 = vld [vmem:[#allocation9 + $0xac] ss:$16 sps:$4 sm:$0xff]   ;;  %v7244_v11 = vld [vmem:[#allocation9 + $0xa0] ss:$16 sps:$4 sm:$0xff]  }
  0x95   : > { %v7245_v12 = vld [vmem:[#allocation9 + $0xa8] ss:$16 sps:$4 sm:$0xff]   ;;  %v7246_v13 = vld [vmem:[#allocation9 + $0x84] ss:$16 sps:$4 sm:$0xff]   ;;  %v7248_v14 = vld [vmem:[#allocation9 + $0x8c] ss:$16 sps:$4 sm:$0xff]  }
  0x96   : > { %v7250_v15 = vld [vmem:[#allocation9 + $0x80] ss:$16 sps:$4 sm:$0xff]   ;;  %v7251_v16 = vld [vmem:[#allocation9 + $0x88] ss:$16 sps:$4 sm:$0xff]   ;;  %v7252_v17 = vld [vmem:[#allocation9 + $0x64] ss:$16 sps:$4 sm:$0xff]  }
  0x97   : > { %1206 = vmatpush1.bf16.msra.mxu0 %v7238_v7  ;;  %1249 = vmatpush1.bf16.msra.mxu1 %v7239_v8  ;;  %v7254_v18 = vld [vmem:[#allocation9 + $0x6c] ss:$16 sps:$4 sm:$0xff]   ;;  %v7256_v19 = vld [vmem:[#allocation9 + $0x60] ss:$16 sps:$4 sm:$0xff]   ;;  %v7257_v20 = vld [vmem:[#allocation9 + $0x68] ss:$16 sps:$4 sm:$0xff]  }
  0x98   : > { %1207 = vmatprep.subr.bf16.mxu0 %v7240_v9  ;;  %1250 = vmatprep.subr.bf16.mxu1 %v7242_v10  ;;  %v7258_v21 = vld [vmem:[#allocation9 + $0x44] ss:$16 sps:$4 sm:$0xff]   ;;  %v7260_v22 = vld [vmem:[#allocation9 + $0x4c] ss:$16 sps:$4 sm:$0xff]   ;;  %v7262_v23 = vld [vmem:[#allocation9 + $0x40] ss:$16 sps:$4 sm:$0xff]  }
  0x99   : > { %v7263_v24 = vld [vmem:[#allocation9 + $0x48] ss:$16 sps:$4 sm:$0xff]   ;;  %v7264_v25 = vld [vmem:[#allocation9 + $0x24] ss:$16 sps:$4 sm:$0xff]   ;;  %v7266_v26 = vld [vmem:[#allocation9 + $0x2c] ss:$16 sps:$4 sm:$0xff]  }
  0x9a   : > { %v7268_v27 = vld [vmem:[#allocation9 + $0x20] ss:$16 sps:$4 sm:$0xff]   ;;  %v7269_v28 = vld [vmem:[#allocation9 + $0x28] ss:$16 sps:$4 sm:$0xff]   ;;  %v7270_v29 = vld [vmem:[#allocation9 + $0x4] ss:$16 sps:$4 sm:$0xff]  }
  0x9b   : > { %1208 = vmatpush1.bf16.msra.mxu0 %v7244_v11  ;;  %1251 = vmatpush1.bf16.msra.mxu1 %v7245_v12  ;;  %v7272_v30 = vld [vmem:[#allocation9 + $0xc] ss:$16 sps:$4 sm:$0xff]   ;;  %v7274_v31 = vld [vmem:[#allocation9] ss:$16 sps:$4 sm:$0xff]   ;;  %v7275_v32 = vld [vmem:[#allocation9 + $0x8] ss:$16 sps:$4 sm:$0xff]  }
  0x9c   : > { %1209 = vmatprep.subr.bf16.mxu0 %v7246_v13  ;;  %1252 = vmatprep.subr.bf16.mxu1 %v7248_v14  ;;  %v7276_v33 = vld [vmem:[#allocation9 + $0x1e4] ss:$16 sps:$4 sm:$0xff]   ;;  %v7278_v34 = vld [vmem:[#allocation9 + $0x1ec] ss:$16 sps:$4 sm:$0xff]   ;;  %v7280_v35 = vld [vmem:[#allocation9 + $0x1e0] ss:$16 sps:$4 sm:$0xff]  }
  0x9d   : > { %v7281_v36 = vld [vmem:[#allocation9 + $0x1e8] ss:$16 sps:$4 sm:$0xff]   ;;  %v7282_v37 = vld [vmem:[#allocation9 + $0x1c4] ss:$16 sps:$4 sm:$0xff]   ;;  %v7284_v38 = vld [vmem:[#allocation9 + $0x1cc] ss:$16 sps:$4 sm:$0xff]  }
  0x9e   : > { %v7286_v39 = vld [vmem:[#allocation9 + $0x1c0] ss:$16 sps:$4 sm:$0xff]   ;;  %v7287_v40 = vld [vmem:[#allocation9 + $0x1c8] ss:$16 sps:$4 sm:$0xff]   ;;  %v7288_v41 = vld [vmem:[#allocation9 + $0x1a4] ss:$16 sps:$4 sm:$0xff]  }
  0x9f   : > { %1210 = vmatpush1.bf16.msra.mxu0 %v7250_v15  ;;  %1253 = vmatpush1.bf16.msra.mxu1 %v7251_v16  ;;  %v7290_v42 = vld [vmem:[#allocation9 + $0x1ac] ss:$16 sps:$4 sm:$0xff]   ;;  %v7292_v43 = vld [vmem:[#allocation9 + $0x1a0] ss:$16 sps:$4 sm:$0xff]   ;;  %v7293_v44 = vld [vmem:[#allocation9 + $0x1a8] ss:$16 sps:$4 sm:$0xff]  }
  0xa0   : > { %1211 = vmatprep.subr.bf16.mxu0 %v7252_v17  ;;  %1254 = vmatprep.subr.bf16.mxu1 %v7254_v18  ;;  %v7294_v45 = vld [vmem:[#allocation9 + $0x184] ss:$16 sps:$4 sm:$0xff]   ;;  %v7296_v46 = vld [vmem:[#allocation9 + $0x18c] ss:$16 sps:$4 sm:$0xff]   ;;  %v7298_v48 = vld [vmem:[#allocation9 + $0x180] ss:$16 sps:$4 sm:$0xff]  }
  0xa1   : > { %v814_v47 = vld [vmem:[%s8773_s30 + $0x8] sm:$0xff]  ;;  %v816_v50 = vld [vmem:[%s8773_s30 + $0x18] sm:$0xff]  ;;  %v7300_v51 = vld [vmem:[#allocation9 + $0x164] ss:$16 sps:$4 sm:$0xff]   ;;  %s9118_s27 = sld [smem:[#allocation32_spill]]  ;;  %vm8500_vm0 = vmmov 0  }
  0xa2   : > { %v7299_v49 = vld [vmem:[#allocation9 + $0x188] ss:$16 sps:$4 sm:$0xff]   ;;  %v818_v52 = vpack.c.bf16 %v816_v50, %v814_v47  ;;  %v7302_v53 = vld [vmem:[#allocation9 + $0x16c] ss:$16 sps:$4 sm:$0xff]   ;;  %v7304_v54 = vld [vmem:[#allocation9 + $0x160] ss:$16 sps:$4 sm:$0xff]  }
  0xa3   : > { %1212 = vmatpush1.bf16.msra.mxu0 %v7256_v19  ;;  %1255 = vmatpush1.bf16.msra.mxu1 %v7257_v20  ;;  %v7305_v55 = vld [vmem:[#allocation9 + $0x168] ss:$16 sps:$4 sm:$0xff]   ;;  %v7306_v56 = vld [vmem:[#allocation9 + $0x144] ss:$16 sps:$4 sm:$0xff]   ;;  %v7308_v57 = vld [vmem:[#allocation9 + $0x14c] ss:$16 sps:$4 sm:$0xff]  }
  0xa4   : > { %1213 = vmatprep.subr.bf16.mxu0 %v7258_v21  ;;  %1256 = vmatprep.subr.bf16.mxu1 %v7260_v22  ;;  %v7310_v58 = vld [vmem:[#allocation9 + $0x140] ss:$16 sps:$4 sm:$0xff]   ;;  %v7311_v59 = vld [vmem:[#allocation9 + $0x148] ss:$16 sps:$4 sm:$0xff]   ;;  %v7312_v60 = vld [vmem:[#allocation9 + $0x124] ss:$16 sps:$4 sm:$0xff]  }
  0xa5   : > { %1235 = vmatprep.mubr.bf16.mxu0 %v818_v52  ;;  %1278 = vmatprep.mubr.bf16.mxu1 %v818_v52  ;;  %v7314_v61 = vld [vmem:[#allocation9 + $0x12c] ss:$16 sps:$4 sm:$0xff]   ;;  %v7316_v62 = vld [vmem:[#allocation9 + $0x120] ss:$16 sps:$4 sm:$0xff]   ;;  %v7317_v63 = vld [vmem:[#allocation9 + $0x128] ss:$16 sps:$4 sm:$0xff]  }
  0xa6   : > { %v7318_v0 = vld [vmem:[#allocation9 + $0x104] ss:$16 sps:$4 sm:$0xff]   ;;  %v7320_v1 = vld [vmem:[#allocation9 + $0x10c] ss:$16 sps:$4 sm:$0xff]   ;;  %v7322_v2 = vld [vmem:[#allocation9 + $0x100] ss:$16 sps:$4 sm:$0xff]  }
  0xa7   : > { %1214 = vmatpush1.bf16.msra.mxu0 %v7262_v23  ;;  %1257 = vmatpush1.bf16.msra.mxu1 %v7263_v24  ;;  %v7323_v3 = vld [vmem:[#allocation9 + $0x108] ss:$16 sps:$4 sm:$0xff]   ;;  %v813_v4 = vld [vmem:[%s8773_s30] sm:$0xff]  ;;  %v815_v5 = vld [vmem:[%s8773_s30 + $0x10] sm:$0xff]  ;;  %s9119_s0 = sld [smem:[#allocation35_spill]]  ;;  %vm6063_vm1 = vcmask 523264  }
  0xa8   : > { %1215 = vmatprep.subr.bf16.mxu0 %v7264_v25  ;;  %1258 = vmatprep.subr.bf16.mxu1 %v7266_v26  ;;  %v7326_v6 = vld [vmem:[#allocation10 + $0xe4] ss:$16 sps:$4 sm:$0xff]   ;;  %v817_v8 = vpack.c.bf16 %v815_v5, %v813_v4  ;;  %v7324_v9 = vld [vmem:[#allocation10 + $0xe0] ss:$16 sps:$4 sm:$0xff]   ;;  %s9120_s15 = sld [smem:[#allocation33_spill]]  ;;  %vm6129_vm2 = vcmask 39936  }
  0xa9   : > { %v7329_v7 = vld [vmem:[#allocation10 + $0x2e4] ss:$16 sps:$4 sm:$0xff]   ;;  %v7327_v10 = vld [vmem:[#allocation10 + $0x2e0] ss:$16 sps:$4 sm:$0xff]   ;;  %s9122_s17 = sld [smem:[#allocation22_spill]]  ;;  %s8501_s30 = smov 5  }
  0xaa   : > { %v7332_v11 = vld [vmem:[#allocation10 + $0xc4] ss:$16 sps:$4 sm:$0xff]   ;;  %v7330_v13 = vld [vmem:[#allocation10 + $0xc0] ss:$16 sps:$4 sm:$0xff]   ;;  %s9123_s12 = sld [smem:[#allocation36_spill]]  ;;  %vm6167_vm3 = vcmask 48168  }
  0xab   : > { %1216 = vmatpush1.bf16.msra.mxu0 %v7268_v27  ;;  %1259 = vmatpush1.bf16.msra.mxu1 %v7269_v28  ;;  %v7335_v12 = vld [vmem:[#allocation10 + $0x2c4] ss:$16 sps:$4 sm:$0xff]   ;;  %v7333_v14 = vld [vmem:[#allocation10 + $0x2c0] ss:$16 sps:$4 sm:$0xff]   ;;  %s9124_s7 = sld [smem:[#allocation38_spill]]  ;;  %vm6170_vm4 = vcmask 64560  }
  0xac   : > { %1217 = vmatprep.subr.bf16.mxu0 %v7270_v29  ;;  %1260 = vmatprep.subr.bf16.mxu1 %v7272_v30  ;;  %v7338_v15 = vld [vmem:[#allocation10 + $0xa4] ss:$16 sps:$4 sm:$0xff]   ;;  %v7336_v17 = vld [vmem:[#allocation10 + $0xa0] ss:$16 sps:$4 sm:$0xff]  }
  0xad   : > { %v7341_v16 = vld [vmem:[#allocation10 + $0x2a4] ss:$16 sps:$4 sm:$0xff]   ;;  %v7339_v18 = vld [vmem:[#allocation10 + $0x2a0] ss:$16 sps:$4 sm:$0xff]  }
  0xae   : > { %v7344_v19 = vld [vmem:[#allocation10 + $0x84] ss:$16 sps:$4 sm:$0xff]   ;;  %v7342_v21 = vld [vmem:[#allocation10 + $0x80] ss:$16 sps:$4 sm:$0xff]  }
  0xaf   : > { %1218 = vmatpush1.bf16.msra.mxu0 %v7274_v31  ;;  %1261 = vmatpush1.bf16.msra.mxu1 %v7275_v32  ;;  %v7347_v20 = vld [vmem:[#allocation10 + $0x284] ss:$16 sps:$4 sm:$0xff]   ;;  %v7345_v22 = vld [vmem:[#allocation10 + $0x280] ss:$16 sps:$4 sm:$0xff]   ;;  %s6354_s3 = sshll.u32 %s9122_s17, 1 }
  0xb0   : > { %1219 = vmatprep.subr.bf16.mxu0 %v7276_v33  ;;  %1262 = vmatprep.subr.bf16.mxu1 %v7278_v34  ;;  %v7350_v23 = vld [vmem:[#allocation10 + $0x64] ss:$16 sps:$4 sm:$0xff]   ;;  %v7348_v25 = vld [vmem:[#allocation10 + $0x60] ss:$16 sps:$4 sm:$0xff]   ;;  %v1314_v33 = vld [vmem:[%s8781_s25 + $0x8] sm:$0xff]  ;;  %p779_p1 = scmp.lt.s32.totalorder %s6354_s3, 3 }
  0xb1   : > { %v7353_v24 = vld [vmem:[#allocation10 + $0x264] ss:$16 sps:$4 sm:$0xff]   ;;  %v7351_v26 = vld [vmem:[#allocation10 + $0x260] ss:$16 sps:$4 sm:$0xff]   ;;  %v1322_v34 = vld [vmem:[%s8781_s25 + $0x48] sm:$0xff] }
  0xb2   : > { %v7356_v27 = vld [vmem:[#allocation10 + $0x44] ss:$16 sps:$4 sm:$0xff]   ;;  %v7354_v29 = vld [vmem:[#allocation10 + $0x40] ss:$16 sps:$4 sm:$0xff]   ;;  %s9136_s3 = smov (!%p779_p1, %s6354_s3), 3 }
  0xb3   : > { %1220 = vmatpush2.bf16.msra.mxu0 %v7280_v35  ;;  %1263 = vmatpush2.bf16.msra.mxu1 %v7281_v36  ;;  %v7359_v28 = vld [vmem:[#allocation10 + $0x244] ss:$16 sps:$4 sm:$0xff]   ;;  %v7357_v30 = vld [vmem:[#allocation10 + $0x240] ss:$16 sps:$4 sm:$0xff]   ;;  %v1316_v35 = vld [vmem:[%s8781_s25 + $0x18] sm:$0xff]  ;;  %s6355_s28 = sshll.u32 %s9136_s3, 3 }
  0xb4   : > { %1221 = vmatprep.subr.bf16.mxu0 %v7282_v37  ;;  %1264 = vmatprep.subr.bf16.mxu1 %v7284_v38  ;;  %v7362_v31 = vld [vmem:[#allocation10 + $0x24] ss:$16 sps:$4 sm:$0xff]   ;;  %v1324_v36 = vld [vmem:[%s8781_s25 + $0x58] sm:$0xff]  ;;  %v7360_v37 = vld [vmem:[#allocation10 + $0x20] ss:$16 sps:$4 sm:$0xff]   ;;  %s9026_s9 = scalar_lea.vmem %s9124_s7, %s6355_s28 }
  0xb5   : > { %v7365_v32 = vld [vmem:[#allocation10 + $0x224] ss:$16 sps:$4 sm:$0xff]   ;;  %v7363_v38 = vld [vmem:[#allocation10 + $0x220] ss:$16 sps:$4 sm:$0xff]  }
  0xb6   : > { %v7372_v47 = vld [vmem:[#allocation10 + $0x1e0] ss:$16 sps:$4 sm:$0xff]   ;;  %v7383_v50 = vld [vmem:[#allocation10 + $0x3c4] ss:$16 sps:$4 sm:$0xff]  }
  0xb7   : > { %1222 = vmatpush2.bf16.msra.mxu0 %v7286_v39  ;;  %1265 = vmatpush2.bf16.msra.mxu1 %v7287_v40  ;;  %v7368_v39 = vld [vmem:[#allocation10 + $0x4] ss:$16 sps:$4 sm:$0xff]   ;;  %v8807_v40 = vpack.c.bf16 %v1322_v34, %v1314_v33  ;;  %v7381_v52 = vld [vmem:[#allocation10 + $0x3c0] ss:$16 sps:$4 sm:$0xff]   ;;  %v1328_v33 = vld [vmem:[%s8781_s25 + $0x78] sm:$0xff] }
  0xb8   : > { %1223 = vmatprep.subr.bf16.mxu0 %v7288_v41  ;;  %1266 = vmatprep.subr.bf16.mxu1 %v7290_v42  ;;  %v8809_v41 = vpack.c.bf16 %v1324_v36, %v1316_v35  ;;  %v7371_v42 = vld [vmem:[#allocation10 + $0x204] ss:$16 sps:$4 sm:$0xff]   ;;  %v7405_v4 = vld [vmem:[#allocation10 + $0x340] ss:$16 sps:$4 sm:$0xff]  }
  0xb9   : > { %v7410_v5 = vld [vmem:[#allocation10 + $0x124] ss:$16 sps:$4 sm:$0xff]   ;;  %v7432_v35 = vld [vmem:[#allocation10 + $0x4a0] ss:$16 sps:$4 sm:$0xff]  }
  0xba   : > { %v7435_v36 = vld [vmem:[#allocation10 + $0x6a0] ss:$16 sps:$4 sm:$0xff]  }
  0xbb   : > { %1224 = vmatpush2.bf16.msra.mxu0 %v7292_v43  ;;  %1267 = vmatpush2.bf16.msra.mxu1 %v7293_v44  ;;  %v7366_v43 = vld [vmem:[#allocation10] ss:$16 sps:$4 sm:$0xff]  }
  0xbc   : > { %1225 = vmatprep.subr.bf16.mxu0 %v7294_v45  ;;  %1268 = vmatprep.subr.bf16.mxu1 %v7296_v46  ;;  %v7369_v44 = vld [vmem:[#allocation10 + $0x200] ss:$16 sps:$4 sm:$0xff]   ;;  %v7374_v45 = vld [vmem:[#allocation10 + $0x1e4] ss:$16 sps:$4 sm:$0xff]  }
  0xbd   : > { %v7377_v46 = vld [vmem:[#allocation10 + $0x3e4] ss:$16 sps:$4 sm:$0xff]  }
  0xbf   : > { %1226 = vmatpush2.bf16.msra.mxu0 %v7298_v48  ;;  %1269 = vmatpush2.bf16.msra.mxu1 %v7299_v49  ;;  %v7375_v48 = vld [vmem:[#allocation10 + $0x3e0] ss:$16 sps:$4 sm:$0xff]   ;;  %v7380_v49 = vld [vmem:[#allocation10 + $0x1c4] ss:$16 sps:$4 sm:$0xff]  }
  0xc0   : > { %1227 = vmatprep.subr.bf16.mxu0 %v7300_v51  ;;  %1270 = vmatprep.subr.bf16.mxu1 %v7302_v53  ;;  %v7378_v51 = vld [vmem:[#allocation10 + $0x1c0] ss:$16 sps:$4 sm:$0xff]   ;;  %v7386_v53 = vld [vmem:[#allocation10 + $0x1a4] ss:$16 sps:$4 sm:$0xff]  }
  0xc3   : > { %1228 = vmatpush2.bf16.msra.mxu0 %v7304_v54  ;;  %1271 = vmatpush2.bf16.msra.mxu1 %v7305_v55  ;;  %v7389_v54 = vld [vmem:[#allocation10 + $0x3a4] ss:$16 sps:$4 sm:$0xff]   ;;  %v7384_v55 = vld [vmem:[#allocation10 + $0x1a0] ss:$16 sps:$4 sm:$0xff]  }
  0xc4   : > { %1229 = vmatprep.subr.bf16.mxu0 %v7306_v56  ;;  %1272 = vmatprep.subr.bf16.mxu1 %v7308_v57  ;;  %v7387_v56 = vld [vmem:[#allocation10 + $0x3a0] ss:$16 sps:$4 sm:$0xff]   ;;  %v7392_v57 = vld [vmem:[#allocation10 + $0x184] ss:$16 sps:$4 sm:$0xff]  }
  0xc7   : > { %1230 = vmatpush2.bf16.msra.mxu0 %v7310_v58  ;;  %1273 = vmatpush2.bf16.msra.mxu1 %v7311_v59  ;;  %v7395_v58 = vld [vmem:[#allocation10 + $0x384] ss:$16 sps:$4 sm:$0xff]   ;;  %v7390_v59 = vld [vmem:[#allocation10 + $0x180] ss:$16 sps:$4 sm:$0xff]  }
  0xc8   : > { %1231 = vmatprep.subr.bf16.mxu0 %v7312_v60  ;;  %1274 = vmatprep.subr.bf16.mxu1 %v7314_v61  ;;  %v7393_v60 = vld [vmem:[#allocation10 + $0x380] ss:$16 sps:$4 sm:$0xff]   ;;  %v7398_v61 = vld [vmem:[#allocation10 + $0x164] ss:$16 sps:$4 sm:$0xff]  }
  0xcb   : > { %1232 = vmatpush2.bf16.msra.mxu0 %v7316_v62  ;;  %1275 = vmatpush2.bf16.msra.mxu1 %v7317_v63  ;;  %v7401_v62 = vld [vmem:[#allocation10 + $0x364] ss:$16 sps:$4 sm:$0xff]   ;;  %v7396_v63 = vld [vmem:[#allocation10 + $0x160] ss:$16 sps:$4 sm:$0xff]  }
  0xcc   : > { %1233 = vmatprep.subr.bf16.mxu0 %v7318_v0  ;;  %1276 = vmatprep.subr.bf16.mxu1 %v7320_v1  ;;  %v7399_v0 = vld [vmem:[#allocation10 + $0x360] ss:$16 sps:$4 sm:$0xff]   ;;  %v7404_v1 = vld [vmem:[#allocation10 + $0x144] ss:$16 sps:$4 sm:$0xff]  }
  0xcf   : > { %1234 = vmatpush2.bf16.msra.mxu0 %v7322_v2  ;;  %1277 = vmatpush2.bf16.msra.mxu1 %v7323_v3  ;;  %v7407_v2 = vld [vmem:[#allocation10 + $0x344] ss:$16 sps:$4 sm:$0xff]   ;;  %v7402_v3 = vld [vmem:[#allocation10 + $0x140] ss:$16 sps:$4 sm:$0xff]  }
  0xd0   : > { %2873 = vmatprep.subr.bf16.mxu0 %v7326_v6  ;;  %2916 = vmatprep.subr.bf16.mxu1 %v7329_v7  ;;  %v7413_v6 = vld [vmem:[#allocation10 + $0x324] ss:$16 sps:$4 sm:$0xff]   ;;  %v7408_v7 = vld [vmem:[#allocation10 + $0x120] ss:$16 sps:$4 sm:$0xff]  }
  0xd2   : > { %1236 = vmatmul.mubr.bf16.vlgmr.msra.gmra.mxu0 %v817_v8  ;;  %1279 = vmatmul.mubr.bf16.vlgmr.msra.gmra.mxu1 %v817_v8  ;;  %v7411_v8 = vld [vmem:[#allocation10 + $0x320] ss:$16 sps:$4 sm:$0xff]  }
  0xd3   : > { %2874 = vmatpush1.bf16.msra.mxu0 %v7324_v9  ;;  %2917 = vmatpush1.bf16.msra.mxu1 %v7327_v10  ;;  %v7416_v9 = vld [vmem:[#allocation10 + $0x104] ss:$16 sps:$4 sm:$0xff]  }
  0xd4   : > { %2875 = vmatprep.subr.bf16.mxu0 %v7332_v11  ;;  %2918 = vmatprep.subr.bf16.mxu1 %v7335_v12  ;;  %v7419_v10 = vld [vmem:[#allocation10 + $0x304] ss:$16 sps:$4 sm:$0xff]   ;;  %v7414_v11 = vld [vmem:[#allocation10 + $0x100] ss:$16 sps:$4 sm:$0xff]  }
  0xd5   : > { %2905 = vmatprep.mubr.bf16.mxu0 %v8807_v40  ;;  %2948 = vmatprep.mubr.bf16.mxu1 %v8809_v41  ;;  %v7417_v12 = vld [vmem:[#allocation10 + $0x300] ss:$16 sps:$4 sm:$0xff]  }
  0xd7   : > { %2876 = vmatpush1.bf16.msra.mxu0 %v7330_v13  ;;  %2919 = vmatpush1.bf16.msra.mxu1 %v7333_v14  ;;  %v1313_v13 = vld [vmem:[%s8781_s25] sm:$0xff] }
  0xd8   : > { %2877 = vmatprep.subr.bf16.mxu0 %v7338_v15  ;;  %2920 = vmatprep.subr.bf16.mxu1 %v7341_v16  ;;  %v1321_v14 = vld [vmem:[%s8781_s25 + $0x40] sm:$0xff]  ;;  %v1315_v15 = vld [vmem:[%s8781_s25 + $0x10] sm:$0xff] }
  0xd9   : > { %v1323_v16 = vld [vmem:[%s8781_s25 + $0x50] sm:$0xff] }
  0xdb   : > { %2878 = vmatpush1.bf16.msra.mxu0 %v7336_v17  ;;  %2921 = vmatpush1.bf16.msra.mxu1 %v7339_v18  ;;  %v7422_v17 = vld [vmem:[#allocation10 + $0x4e4] ss:$16 sps:$4 sm:$0xff]  }
  0xdc   : > { %2879 = vmatprep.subr.bf16.mxu0 %v7344_v19  ;;  %2922 = vmatprep.subr.bf16.mxu1 %v7347_v20  ;;  %v7425_v18 = vld [vmem:[#allocation10 + $0x6e4] ss:$16 sps:$4 sm:$0xff]   ;;  %v8817_v19 = vpack.c.bf16 %v1321_v14, %v1313_v13  ;;  %v8819_v20 = vpack.c.bf16 %v1323_v16, %v1315_v15  ;;  %v7492_v13 = vld [vmem:[#allocation10 + $0x560] ss:$16 sps:$4 sm:$0xff]  }
  0xdd   : > { %v7495_v14 = vld [vmem:[#allocation10 + $0x760] ss:$16 sps:$4 sm:$0xff]   ;;  %v7500_v15 = vld [vmem:[#allocation10 + $0x544] ss:$16 sps:$4 sm:$0xff]  }
  0xde   : > { %v7503_v16 = vld [vmem:[#allocation10 + $0x744] ss:$16 sps:$4 sm:$0xff]  }
  0xdf   : > { %2880 = vmatpush1.bf16.msra.mxu0 %v7342_v21  ;;  %2923 = vmatpush1.bf16.msra.mxu1 %v7345_v22  ;;  %v7420_v21 = vld [vmem:[#allocation10 + $0x4e0] ss:$16 sps:$4 sm:$0xff]  }
  0xe0   : > { %2881 = vmatprep.subr.bf16.mxu0 %v7350_v23  ;;  %2924 = vmatprep.subr.bf16.mxu1 %v7353_v24  ;;  %v7423_v22 = vld [vmem:[#allocation10 + $0x6e0] ss:$16 sps:$4 sm:$0xff]   ;;  %v7428_v23 = vld [vmem:[#allocation10 + $0x4c4] ss:$16 sps:$4 sm:$0xff]  }
  0xe1   : > { %v7431_v24 = vld [vmem:[#allocation10 + $0x6c4] ss:$16 sps:$4 sm:$0xff]  }
  0xe3   : > { %2882 = vmatpush1.bf16.msra.mxu0 %v7348_v25  ;;  %2925 = vmatpush1.bf16.msra.mxu1 %v7351_v26  ;;  %v7426_v25 = vld [vmem:[#allocation10 + $0x4c0] ss:$16 sps:$4 sm:$0xff]  }
  0xe4   : > { %2883 = vmatprep.subr.bf16.mxu0 %v7356_v27  ;;  %2926 = vmatprep.subr.bf16.mxu1 %v7359_v28  ;;  %v7429_v26 = vld [vmem:[#allocation10 + $0x6c0] ss:$16 sps:$4 sm:$0xff]   ;;  %v1318_v27 = vld [vmem:[%s8781_s25 + $0x28] sm:$0xff] }
  0xe5   : > { %v1326_v28 = vld [vmem:[%s8781_s25 + $0x68] sm:$0xff] }
  0xe7   : > { %2884 = vmatpush1.bf16.msra.mxu0 %v7354_v29  ;;  %2927 = vmatpush1.bf16.msra.mxu1 %v7357_v30  ;;  %v1320_v29 = vld [vmem:[%s8781_s25 + $0x38] sm:$0xff]  ;;  %v7434_v30 = vld [vmem:[#allocation10 + $0x4a4] ss:$16 sps:$4 sm:$0xff]  }
  0xe8   : > { %2885 = vmatprep.subr.bf16.mxu0 %v7362_v31  ;;  %2928 = vmatprep.subr.bf16.mxu1 %v7365_v32  ;;  %v7437_v31 = vld [vmem:[#allocation10 + $0x6a4] ss:$16 sps:$4 sm:$0xff]   ;;  %v8826_v32 = vpack.c.bf16 %v1326_v28, %v1318_v27  ;;  %v8829_v34 = vpack.c.bf16 %v1328_v33, %v1320_v29  ;;  %v7510_v27 = vld [vmem:[#allocation10 + $0x500] ss:$16 sps:$4 sm:$0xff]  }
  0xe9   : > { %v7513_v28 = vld [vmem:[#allocation10 + $0x700] ss:$16 sps:$4 sm:$0xff]  }
  0xea   : > { %v1317_v29 = vld [vmem:[%s8781_s25 + $0x20] sm:$0xff]  ;;  %v1327_v33 = vld [vmem:[%s8781_s25 + $0x70] sm:$0xff] }
  0xeb   : > { %2886 = vmatpush1.bf16.msra.mxu0 %v7360_v37  ;;  %2929 = vmatpush1.bf16.msra.mxu1 %v7363_v38  ;;  %v7440_v37 = vld [vmem:[#allocation10 + $0x484] ss:$16 sps:$4 sm:$0xff]  }
  0xec   : > { %2887 = vmatprep.subr.bf16.mxu0 %v7368_v39  ;;  %2930 = vmatprep.subr.bf16.mxu1 %v7371_v42  ;;  %v7443_v38 = vld [vmem:[#allocation10 + $0x684] ss:$16 sps:$4 sm:$0xff]   ;;  %v7438_v39 = vld [vmem:[#allocation10 + $0x480] ss:$16 sps:$4 sm:$0xff]  }
  0xed   : > { %v7441_v42 = vld [vmem:[#allocation10 + $0x680] ss:$16 sps:$4 sm:$0xff]  }
  0xef   : > { %2888 = vmatpush1.bf16.msra.mxu0 %v7366_v43  ;;  %2931 = vmatpush1.bf16.msra.mxu1 %v7369_v44  ;;  %v7446_v43 = vld [vmem:[#allocation10 + $0x464] ss:$16 sps:$4 sm:$0xff]  }
  0xf0   : > { %2889 = vmatprep.subr.bf16.mxu0 %v7374_v45  ;;  %2932 = vmatprep.subr.bf16.mxu1 %v7377_v46  ;;  %v7449_v44 = vld [vmem:[#allocation10 + $0x664] ss:$16 sps:$4 sm:$0xff]   ;;  %v7444_v45 = vld [vmem:[#allocation10 + $0x460] ss:$16 sps:$4 sm:$0xff]  }
  0xf1   : > { %v7447_v46 = vld [vmem:[#allocation10 + $0x660] ss:$16 sps:$4 sm:$0xff]  }
  0xf3   : > { %2890 = vmatpush2.bf16.msra.mxu0 %v7372_v47  ;;  %2933 = vmatpush2.bf16.msra.mxu1 %v7375_v48  ;;  %v7452_v47 = vld [vmem:[#allocation10 + $0x444] ss:$16 sps:$4 sm:$0xff]  }
  0xf4   : > { %2891 = vmatprep.subr.bf16.mxu0 %v7380_v49  ;;  %2934 = vmatprep.subr.bf16.mxu1 %v7383_v50  ;;  %v7455_v48 = vld [vmem:[#allocation10 + $0x644] ss:$16 sps:$4 sm:$0xff]   ;;  %v7450_v49 = vld [vmem:[#allocation10 + $0x440] ss:$16 sps:$4 sm:$0xff]  }
  0xf5   : > { %v7453_v50 = vld [vmem:[#allocation10 + $0x640] ss:$16 sps:$4 sm:$0xff]  }
  0xf7   : > { %2892 = vmatpush2.bf16.msra.mxu0 %v7378_v51  ;;  %2935 = vmatpush2.bf16.msra.mxu1 %v7381_v52  ;;  %v7458_v51 = vld [vmem:[#allocation10 + $0x424] ss:$16 sps:$4 sm:$0xff]  }
  0xf8   : > { %2893 = vmatprep.subr.bf16.mxu0 %v7386_v53  ;;  %2936 = vmatprep.subr.bf16.mxu1 %v7389_v54  ;;  %v7461_v52 = vld [vmem:[#allocation10 + $0x624] ss:$16 sps:$4 sm:$0xff]   ;;  %v7456_v53 = vld [vmem:[#allocation10 + $0x420] ss:$16 sps:$4 sm:$0xff]  }
  0xf9   : > { %v7459_v54 = vld [vmem:[#allocation10 + $0x620] ss:$16 sps:$4 sm:$0xff]  }
  0xfb   : > { %2894 = vmatpush2.bf16.msra.mxu0 %v7384_v55  ;;  %2937 = vmatpush2.bf16.msra.mxu1 %v7387_v56  ;;  %v7464_v55 = vld [vmem:[#allocation10 + $0x404] ss:$16 sps:$4 sm:$0xff]  }
  0xfc   : > { %2895 = vmatprep.subr.bf16.mxu0 %v7392_v57  ;;  %2938 = vmatprep.subr.bf16.mxu1 %v7395_v58  ;;  %v7467_v56 = vld [vmem:[#allocation10 + $0x604] ss:$16 sps:$4 sm:$0xff]   ;;  %v7462_v57 = vld [vmem:[#allocation10 + $0x400] ss:$16 sps:$4 sm:$0xff]  }
  0xfd   : > { %v7465_v58 = vld [vmem:[#allocation10 + $0x600] ss:$16 sps:$4 sm:$0xff]  }
  0xff   : > { %2896 = vmatpush2.bf16.msra.mxu0 %v7390_v59  ;;  %2939 = vmatpush2.bf16.msra.mxu1 %v7393_v60  ;;  %v7470_v59 = vld [vmem:[#allocation10 + $0x5e4] ss:$16 sps:$4 sm:$0xff]  }
 0x100   : > { %2897 = vmatprep.subr.bf16.mxu0 %v7398_v61  ;;  %2940 = vmatprep.subr.bf16.mxu1 %v7401_v62  ;;  %v7473_v60 = vld [vmem:[#allocation10 + $0x7e4] ss:$16 sps:$4 sm:$0xff]   ;;  %v7468_v61 = vld [vmem:[#allocation10 + $0x5e0] ss:$16 sps:$4 sm:$0xff]  }
 0x101   : > { %v7471_v62 = vld [vmem:[#allocation10 + $0x7e0] ss:$16 sps:$4 sm:$0xff]  }
 0x103   : > { %2898 = vmatpush2.bf16.msra.mxu0 %v7396_v63  ;;  %2941 = vmatpush2.bf16.msra.mxu1 %v7399_v0  ;;  %v7476_v63 = vld [vmem:[#allocation10 + $0x5c4] ss:$16 sps:$4 sm:$0xff]  }
 0x104   : > { %2899 = vmatprep.subr.bf16.mxu0 %v7404_v1  ;;  %2942 = vmatprep.subr.bf16.mxu1 %v7407_v2  ;;  %v7479_v0 = vld [vmem:[#allocation10 + $0x7c4] ss:$16 sps:$4 sm:$0xff]   ;;  %v7474_v1 = vld [vmem:[#allocation10 + $0x5c0] ss:$16 sps:$4 sm:$0xff]  }
 0x105   : > { %v7477_v2 = vld [vmem:[#allocation10 + $0x7c0] ss:$16 sps:$4 sm:$0xff]  }
 0x107   : > { %2900 = vmatpush2.bf16.msra.mxu0 %v7402_v3  ;;  %2943 = vmatpush2.bf16.msra.mxu1 %v7405_v4  ;;  %v7482_v3 = vld [vmem:[#allocation10 + $0x5a4] ss:$16 sps:$4 sm:$0xff]  }
 0x108   : > { %2901 = vmatprep.subr.bf16.mxu0 %v7410_v5  ;;  %2944 = vmatprep.subr.bf16.mxu1 %v7413_v6  ;;  %v7485_v4 = vld [vmem:[#allocation10 + $0x7a4] ss:$16 sps:$4 sm:$0xff]   ;;  %v7480_v5 = vld [vmem:[#allocation10 + $0x5a0] ss:$16 sps:$4 sm:$0xff]  }
 0x109   : > { %v7483_v6 = vld [vmem:[#allocation10 + $0x7a0] ss:$16 sps:$4 sm:$0xff]  }
 0x10b   : > { %2902 = vmatpush2.bf16.msra.mxu0 %v7408_v7  ;;  %2945 = vmatpush2.bf16.msra.mxu1 %v7411_v8  ;;  %v7488_v7 = vld [vmem:[#allocation10 + $0x584] ss:$16 sps:$4 sm:$0xff]  }
 0x10c   : > { %2903 = vmatprep.subr.bf16.mxu0 %v7416_v9  ;;  %2946 = vmatprep.subr.bf16.mxu1 %v7419_v10  ;;  %v7491_v8 = vld [vmem:[#allocation10 + $0x784] ss:$16 sps:$4 sm:$0xff]   ;;  %v7486_v9 = vld [vmem:[#allocation10 + $0x580] ss:$16 sps:$4 sm:$0xff]  }
 0x10d   : > { %v7489_v10 = vld [vmem:[#allocation10 + $0x780] ss:$16 sps:$4 sm:$0xff]  }
 0x10f   : > { %2904 = vmatpush2.bf16.msra.mxu0 %v7414_v11  ;;  %2947 = vmatpush2.bf16.msra.mxu1 %v7417_v12  ;;  %v7494_v11 = vld [vmem:[#allocation10 + $0x564] ss:$16 sps:$4 sm:$0xff]  }
 0x110   : > { %2959 = vmatprep.subr.bf16.mxu0 %v7422_v17  ;;  %3002 = vmatprep.subr.bf16.mxu1 %v7425_v18  ;;  %v7497_v12 = vld [vmem:[#allocation10 + $0x764] ss:$16 sps:$4 sm:$0xff]   ;;  %v7498_v17 = vld [vmem:[#allocation10 + $0x540] ss:$16 sps:$4 sm:$0xff]  }
 0x111   : > { %v7501_v18 = vld [vmem:[#allocation10 + $0x740] ss:$16 sps:$4 sm:$0xff]  }
 0x112   : > { %2906 = vmatmul.mubr.bf16.vlgmr.msra.gmra.mxu0 %v8817_v19  ;;  %2949 = vmatmul.mubr.bf16.vlgmr.msra.gmra.mxu1 %v8819_v20 }
 0x113   : > { %2960 = vmatpush1.bf16.msra.mxu0 %v7420_v21  ;;  %3003 = vmatpush1.bf16.msra.mxu1 %v7423_v22  ;;  %v7506_v21 = vld [vmem:[#allocation10 + $0x524] ss:$16 sps:$4 sm:$0xff]  }
 0x114   : > { %2961 = vmatprep.subr.bf16.mxu0 %v7428_v23  ;;  %3004 = vmatprep.subr.bf16.mxu1 %v7431_v24  ;;  %v7509_v22 = vld [vmem:[#allocation10 + $0x724] ss:$16 sps:$4 sm:$0xff]   ;;  %v7504_v23 = vld [vmem:[#allocation10 + $0x520] ss:$16 sps:$4 sm:$0xff]  }
 0x115   : > { %2991 = vmatprep.mubr.bf16.mxu0 %v8826_v32  ;;  %3034 = vmatprep.mubr.bf16.mxu1 %v8829_v34  ;;  %v7507_v24 = vld [vmem:[#allocation10 + $0x720] ss:$16 sps:$4 sm:$0xff]  }
 0x117   : > { %2962 = vmatpush1.bf16.msra.mxu0 %v7426_v25  ;;  %3005 = vmatpush1.bf16.msra.mxu1 %v7429_v26  ;;  %v7512_v25 = vld [vmem:[#allocation10 + $0x504] ss:$16 sps:$4 sm:$0xff]  }
 0x118   : > { %2963 = vmatprep.subr.bf16.mxu0 %v7434_v30  ;;  %3006 = vmatprep.subr.bf16.mxu1 %v7437_v31  ;;  %v7515_v26 = vld [vmem:[#allocation10 + $0x704] ss:$16 sps:$4 sm:$0xff]  }
 0x119   : > { %v1325_v30 = vld [vmem:[%s8781_s25 + $0x60] sm:$0xff]  ;;  %v1319_v31 = vld [vmem:[%s8781_s25 + $0x30] sm:$0xff] }
 0x11b   : > { %2964 = vmatpush1.bf16.msra.mxu0 %v7432_v35  ;;  %3007 = vmatpush1.bf16.msra.mxu1 %v7435_v36  ;;  %v7518_v35 = vld [vmem:[#allocation10 + $0xec] ss:$16 sps:$4 sm:$0xff]  }
 0x11c   : > { %2965 = vmatprep.subr.bf16.mxu0 %v7440_v37  ;;  %3008 = vmatprep.subr.bf16.mxu1 %v7443_v38  ;;  %v7521_v36 = vld [vmem:[#allocation10 + $0x2ec] ss:$16 sps:$4 sm:$0xff]   ;;  %v8837_v37 = vpack.c.bf16 %v1325_v30, %v1317_v29  ;;  %v8839_v38 = vpack.c.bf16 %v1327_v33, %v1319_v31  ;;  %v7594_v29 = vld [vmem:[#allocation10 + $0x148] ss:$16 sps:$4 sm:$0xff]  }
 0x11d   : > { %v7597_v30 = vld [vmem:[#allocation10 + $0x348] ss:$16 sps:$4 sm:$0xff]   ;;  %v7602_v31 = vld [vmem:[#allocation10 + $0x12c] ss:$16 sps:$4 sm:$0xff]  }
 0x11e   : > { %v7605_v33 = vld [vmem:[#allocation10 + $0x32c] ss:$16 sps:$4 sm:$0xff]  }
 0x11f   : > { %2966 = vmatpush1.bf16.msra.mxu0 %v7438_v39  ;;  %3009 = vmatpush1.bf16.msra.mxu1 %v7441_v42  ;;  %v7516_v39 = vld [vmem:[#allocation10 + $0xe8] ss:$16 sps:$4 sm:$0xff]  }
 0x120   : > { %2967 = vmatprep.subr.bf16.mxu0 %v7446_v43  ;;  %3010 = vmatprep.subr.bf16.mxu1 %v7449_v44  ;;  %v7519_v42 = vld [vmem:[#allocation10 + $0x2e8] ss:$16 sps:$4 sm:$0xff]   ;;  %v7524_v43 = vld [vmem:[#allocation10 + $0xcc] ss:$16 sps:$4 sm:$0xff]  }
 0x121   : > { %v7527_v44 = vld [vmem:[#allocation10 + $0x2cc] ss:$16 sps:$4 sm:$0xff]  }
 0x123   : > { %2968 = vmatpush1.bf16.msra.mxu0 %v7444_v45  ;;  %3011 = vmatpush1.bf16.msra.mxu1 %v7447_v46  ;;  %v7522_v45 = vld [vmem:[#allocation10 + $0xc8] ss:$16 sps:$4 sm:$0xff]  }
 0x124   : > { %2969 = vmatprep.subr.bf16.mxu0 %v7452_v47  ;;  %3012 = vmatprep.subr.bf16.mxu1 %v7455_v48  ;;  %v7525_v46 = vld [vmem:[#allocation10 + $0x2c8] ss:$16 sps:$4 sm:$0xff]   ;;  %v7530_v47 = vld [vmem:[#allocation10 + $0xac] ss:$16 sps:$4 sm:$0xff]  }
 0x125   : > { %v7533_v48 = vld [vmem:[#allocation10 + $0x2ac] ss:$16 sps:$4 sm:$0xff]  }
 0x127   : > { %2970 = vmatpush1.bf16.msra.mxu0 %v7450_v49  ;;  %3013 = vmatpush1.bf16.msra.mxu1 %v7453_v50  ;;  %v7528_v49 = vld [vmem:[#allocation10 + $0xa8] ss:$16 sps:$4 sm:$0xff]  }
 0x128   : > { %2971 = vmatprep.subr.bf16.mxu0 %v7458_v51  ;;  %3014 = vmatprep.subr.bf16.mxu1 %v7461_v52  ;;  %v7531_v50 = vld [vmem:[#allocation10 + $0x2a8] ss:$16 sps:$4 sm:$0xff]   ;;  %v7536_v51 = vld [vmem:[#allocation10 + $0x8c] ss:$16 sps:$4 sm:$0xff]  }
 0x129   : > { %v7539_v52 = vld [vmem:[#allocation10 + $0x28c] ss:$16 sps:$4 sm:$0xff]  }
 0x12b   : > { %2972 = vmatpush1.bf16.msra.mxu0 %v7456_v53  ;;  %3015 = vmatpush1.bf16.msra.mxu1 %v7459_v54  ;;  %v7534_v53 = vld [vmem:[#allocation10 + $0x88] ss:$16 sps:$4 sm:$0xff]  }
 0x12c   : > { %2973 = vmatprep.subr.bf16.mxu0 %v7464_v55  ;;  %3016 = vmatprep.subr.bf16.mxu1 %v7467_v56  ;;  %v7537_v54 = vld [vmem:[#allocation10 + $0x288] ss:$16 sps:$4 sm:$0xff]   ;;  %v7542_v55 = vld [vmem:[#allocation10 + $0x6c] ss:$16 sps:$4 sm:$0xff]  }
 0x12d   : > { %v7545_v56 = vld [vmem:[#allocation10 + $0x26c] ss:$16 sps:$4 sm:$0xff]  }
 0x12f   : > { %2974 = vmatpush1.bf16.msra.mxu0 %v7462_v57  ;;  %3017 = vmatpush1.bf16.msra.mxu1 %v7465_v58  ;;  %v7540_v57 = vld [vmem:[#allocation10 + $0x68] ss:$16 sps:$4 sm:$0xff]   ;;  %v7551_v58 = vld [vmem:[#allocation10 + $0x24c] ss:$16 sps:$4 sm:$0xff]  }
 0x130   : > { %2975 = vmatprep.subr.bf16.mxu0 %v7470_v59  ;;  %3018 = vmatprep.subr.bf16.mxu1 %v7473_v60  ;;  %v7546_v59 = vld [vmem:[#allocation10 + $0x48] ss:$16 sps:$4 sm:$0xff]  }
 0x131   : > { %v7549_v60 = vld [vmem:[#allocation10 + $0x248] ss:$16 sps:$4 sm:$0xff]  }
 0x133   : > { %2976 = vmatpush2.bf16.msra.mxu0 %v7468_v61  ;;  %3019 = vmatpush2.bf16.msra.mxu1 %v7471_v62  ;;  %v7554_v61 = vld [vmem:[#allocation10 + $0x2c] ss:$16 sps:$4 sm:$0xff]  }
 0x134   : > { %2977 = vmatprep.subr.bf16.mxu0 %v7476_v63  ;;  %3020 = vmatprep.subr.bf16.mxu1 %v7479_v0  ;;  %v7557_v62 = vld [vmem:[#allocation10 + $0x22c] ss:$16 sps:$4 sm:$0xff]   ;;  %v7552_v63 = vld [vmem:[#allocation10 + $0x28] ss:$16 sps:$4 sm:$0xff]  }
 0x135   : > { %v7555_v0 = vld [vmem:[#allocation10 + $0x228] ss:$16 sps:$4 sm:$0xff]  }
 0x137   : > { %2978 = vmatpush2.bf16.msra.mxu0 %v7474_v1  ;;  %3021 = vmatpush2.bf16.msra.mxu1 %v7477_v2  ;;  %v7560_v1 = vld [vmem:[#allocation10 + $0xc] ss:$16 sps:$4 sm:$0xff]  }
 0x138   : > { %2979 = vmatprep.subr.bf16.mxu0 %v7482_v3  ;;  %3022 = vmatprep.subr.bf16.mxu1 %v7485_v4  ;;  %v7563_v2 = vld [vmem:[#allocation10 + $0x20c] ss:$16 sps:$4 sm:$0xff]   ;;  %v7558_v3 = vld [vmem:[#allocation10 + $0x8] ss:$16 sps:$4 sm:$0xff]  }
 0x139   : > { %v7561_v4 = vld [vmem:[#allocation10 + $0x208] ss:$16 sps:$4 sm:$0xff]  }
 0x13b   : > { %2980 = vmatpush2.bf16.msra.mxu0 %v7480_v5  ;;  %3023 = vmatpush2.bf16.msra.mxu1 %v7483_v6  ;;  %v7566_v5 = vld [vmem:[#allocation10 + $0x1ec] ss:$16 sps:$4 sm:$0xff]  }
 0x13c   : > { %2981 = vmatprep.subr.bf16.mxu0 %v7488_v7  ;;  %3024 = vmatprep.subr.bf16.mxu1 %v7491_v8  ;;  %v7569_v6 = vld [vmem:[#allocation10 + $0x3ec] ss:$16 sps:$4 sm:$0xff]   ;;  %v7564_v7 = vld [vmem:[#allocation10 + $0x1e8] ss:$16 sps:$4 sm:$0xff]  }
 0x13d   : > { %v7567_v8 = vld [vmem:[#allocation10 + $0x3e8] ss:$16 sps:$4 sm:$0xff]  }
 0x13f   : > { %2982 = vmatpush2.bf16.msra.mxu0 %v7486_v9  ;;  %3025 = vmatpush2.bf16.msra.mxu1 %v7489_v10  ;;  %v7572_v9 = vld [vmem:[#allocation10 + $0x1cc] ss:$16 sps:$4 sm:$0xff]  }
 0x140   : > { %2983 = vmatprep.subr.bf16.mxu0 %v7494_v11  ;;  %3026 = vmatprep.subr.bf16.mxu1 %v7497_v12  ;;  %v7575_v10 = vld [vmem:[#allocation10 + $0x3cc] ss:$16 sps:$4 sm:$0xff]   ;;  %v7570_v11 = vld [vmem:[#allocation10 + $0x1c8] ss:$16 sps:$4 sm:$0xff]  }
 0x141   : > { %v7573_v12 = vld [vmem:[#allocation10 + $0x3c8] ss:$16 sps:$4 sm:$0xff]  }
 0x143   : > { %2984 = vmatpush2.bf16.msra.mxu0 %v7492_v13  ;;  %3027 = vmatpush2.bf16.msra.mxu1 %v7495_v14  ;;  %v7578_v13 = vld [vmem:[#allocation10 + $0x1ac] ss:$16 sps:$4 sm:$0xff]  }
 0x144   : > { %2985 = vmatprep.subr.bf16.mxu0 %v7500_v15  ;;  %3028 = vmatprep.subr.bf16.mxu1 %v7503_v16  ;;  %v7581_v14 = vld [vmem:[#allocation10 + $0x3ac] ss:$16 sps:$4 sm:$0xff]   ;;  %v7576_v15 = vld [vmem:[#allocation10 + $0x1a8] ss:$16 sps:$4 sm:$0xff]  }
 0x145   : > { %v7579_v16 = vld [vmem:[#allocation10 + $0x3a8] ss:$16 sps:$4 sm:$0xff]  }
 0x147   : > { %2986 = vmatpush2.bf16.msra.mxu0 %v7498_v17  ;;  %3029 = vmatpush2.bf16.msra.mxu1 %v7501_v18  ;;  %v7584_v17 = vld [vmem:[#allocation10 + $0x18c] ss:$16 sps:$4 sm:$0xff]  }
 0x148   : > { %2987 = vmatprep.subr.bf16.mxu0 %v7506_v21  ;;  %3030 = vmatprep.subr.bf16.mxu1 %v7509_v22  ;;  %v7587_v18 = vld [vmem:[#allocation10 + $0x38c] ss:$16 sps:$4 sm:$0xff]   ;;  %v7582_v21 = vld [vmem:[#allocation10 + $0x188] ss:$16 sps:$4 sm:$0xff]  }
 0x149   : > { %v7585_v22 = vld [vmem:[#allocation10 + $0x388] ss:$16 sps:$4 sm:$0xff]  }
 0x14b   : > { %2988 = vmatpush2.bf16.msra.mxu0 %v7504_v23  ;;  %3031 = vmatpush2.bf16.msra.mxu1 %v7507_v24  ;;  %v7590_v23 = vld [vmem:[#allocation10 + $0x16c] ss:$16 sps:$4 sm:$0xff]  }
 0x14c   : > { %2989 = vmatprep.subr.bf16.mxu0 %v7512_v25  ;;  %3032 = vmatprep.subr.bf16.mxu1 %v7515_v26  ;;  %v7593_v24 = vld [vmem:[#allocation10 + $0x36c] ss:$16 sps:$4 sm:$0xff]   ;;  %v7588_v25 = vld [vmem:[#allocation10 + $0x168] ss:$16 sps:$4 sm:$0xff]  }
 0x14d   : > { %v7591_v26 = vld [vmem:[#allocation10 + $0x368] ss:$16 sps:$4 sm:$0xff]  }
 0x14f   : > { %2990 = vmatpush2.bf16.msra.mxu0 %v7510_v27  ;;  %3033 = vmatpush2.bf16.msra.mxu1 %v7513_v28  ;;  %v7596_v27 = vld [vmem:[#allocation10 + $0x14c] ss:$16 sps:$4 sm:$0xff]  }
 0x150   : > { %3045 = vmatprep.subr.bf16.mxu0 %v7518_v35  ;;  %3088 = vmatprep.subr.bf16.mxu1 %v7521_v36  ;;  %v7599_v28 = vld [vmem:[#allocation10 + $0x34c] ss:$16 sps:$4 sm:$0xff]   ;;  %v7600_v35 = vld [vmem:[#allocation10 + $0x128] ss:$16 sps:$4 sm:$0xff]  }
 0x151   : > { %v7603_v36 = vld [vmem:[#allocation10 + $0x328] ss:$16 sps:$4 sm:$0xff]  }
 0x152   : > { %2992 = vmatmul.mubr.bf16.vlgmr.msra.gmra.mxu0 %v8837_v37  ;;  %3035 = vmatmul.mubr.bf16.vlgmr.msra.gmra.mxu1 %v8839_v38 }
 0x153   : > { %3046 = vmatpush1.bf16.msra.mxu0 %v7516_v39  ;;  %3089 = vmatpush1.bf16.msra.mxu1 %v7519_v42  ;;  %v3246_v39 = vlaneseq  ;;  %v7608_v42 = vld [vmem:[#allocation10 + $0x10c] ss:$16 sps:$4 sm:$0xff]  }
 0x154   : > { %3047 = vmatprep.subr.bf16.mxu0 %v7524_v43  ;;  %3090 = vmatprep.subr.bf16.mxu1 %v7527_v44  ;;  %v7611_v43 = vld [vmem:[#allocation10 + $0x30c] ss:$16 sps:$4 sm:$0xff]   ;;  %v7606_v44 = vld [vmem:[#allocation10 + $0x108] ss:$16 sps:$4 sm:$0xff]  }
 0x155   : > { %3077 = vmatprep.mubr.bf16.mxu0 %v8807_v40  ;;  %3120 = vmatprep.mubr.bf16.mxu1 %v8809_v41  ;;  %v7543_v40 = vld [vmem:[#allocation10 + $0x268] ss:$16 sps:$4 sm:$0xff]   ;;  %v7548_v41 = vld [vmem:[#allocation10 + $0x4c] ss:$16 sps:$4 sm:$0xff]  }
 0x157   : > { %3048 = vmatpush1.bf16.msra.mxu0 %v7522_v45  ;;  %3091 = vmatpush1.bf16.msra.mxu1 %v7525_v46  ;;  %v7609_v45 = vld [vmem:[#allocation10 + $0x308] ss:$16 sps:$4 sm:$0xff]   ;;  %v3247_v46 = vshrl.u32 %v3246_v39, 7 }
 0x158   : > { %3049 = vmatprep.subr.bf16.mxu0 %v7530_v47  ;;  %3092 = vmatprep.subr.bf16.mxu1 %v7533_v48  ;;  %v7614_v47 = vld [vmem:[#allocation10 + $0x4ec] ss:$16 sps:$4 sm:$0xff]   ;;  %v7651_v39 = vld [vmem:[#allocation10 + $0x628] ss:$16 sps:$4 sm:$0xff]  }
 0x159   : > { %v7617_v48 = vld [vmem:[#allocation10 + $0x6ec] ss:$16 sps:$4 sm:$0xff]  }
 0x15b   : > { %3050 = vmatpush1.bf16.msra.mxu0 %v7528_v49  ;;  %3093 = vmatpush1.bf16.msra.mxu1 %v7531_v50  ;;  %v8845_v49 = vsub.s32 2, %v3247_v46  ;;  %v3244_v50 = vld [vmem:[%s9061_s4] sm:$0xf] }
 0x15c   : > { %3051 = vmatprep.subr.bf16.mxu0 %v7536_v51  ;;  %3094 = vmatprep.subr.bf16.mxu1 %v7539_v52  ;;  %v7612_v51 = vld [vmem:[#allocation10 + $0x4e8] ss:$16 sps:$4 sm:$0xff]  }
 0x15d   : > { %v7615_v52 = vld [vmem:[#allocation10 + $0x6e8] ss:$16 sps:$4 sm:$0xff]  }
 0x15f   : > { %3052 = vmatpush1.bf16.msra.mxu0 %v7534_v53  ;;  %3095 = vmatpush1.bf16.msra.mxu1 %v7537_v54  ;;  %v8850_v53 = vsub.s32 3, %v3247_v46  ;;  %v7620_v54 = vld [vmem:[#allocation10 + $0x4cc] ss:$16 sps:$4 sm:$0xff]  }
 0x160   : > { %3053 = vmatprep.subr.bf16.mxu0 %v7542_v55  ;;  %3096 = vmatprep.subr.bf16.mxu1 %v7545_v56  ;;  %v7623_v55 = vld [vmem:[#allocation10 + $0x6cc] ss:$16 sps:$4 sm:$0xff]   ;;  %v8852_v56 = vsub.s32 0, %v3247_v46 }
 0x163   : > { %3054 = vmatpush1.bf16.msra.mxu0 %v7540_v57  ;;  %3097 = vmatpush1.bf16.msra.mxu1 %v7543_v40  ;;  %v3257_v57 = vrot.slane %v3244_v50, %v8845_v49  ;;  %v8855_v40 = vsub.s32 1, %v3247_v46  ;;  %v7662_v46 = vld [vmem:[#allocation10 + $0x5ec] ss:$16 sps:$4 sm:$0xff]  }
 0x164   : > { %3055 = vmatprep.subr.bf16.mxu0 %v7548_v41  ;;  %3098 = vmatprep.subr.bf16.mxu1 %v7551_v58  ;;  %v3261_v41 = vrot.slane %v3244_v50, %v8850_v53  ;;  %v7618_v58 = vld [vmem:[#allocation10 + $0x4c8] ss:$16 sps:$4 sm:$0xff]  }
 0x167   : > { %3056 = vmatpush1.bf16.msra.mxu0 %v7546_v59  ;;  %3099 = vmatpush1.bf16.msra.mxu1 %v7549_v60 }
 0x168   : > { %3057 = vmatprep.subr.bf16.mxu0 %v7554_v61  ;;  %3100 = vmatprep.subr.bf16.mxu1 %v7557_v62  ;;  %v3249_v61 = vrot.slane %v3244_v50, %v8852_v56 }
 0x16b   : > { %3058 = vmatpush1.bf16.msra.mxu0 %v7552_v63  ;;  %3101 = vmatpush1.bf16.msra.mxu1 %v7555_v0  ;;  %v7621_v63 = vld [vmem:[#allocation10 + $0x6c8] ss:$16 sps:$4 sm:$0xff]  }
 0x16c   : > { %3059 = vmatprep.subr.bf16.mxu0 %v7560_v1  ;;  %3102 = vmatprep.subr.bf16.mxu1 %v7563_v2  ;;  %v3253_v1 = vrot.slane %v3244_v50, %v8855_v40  ;;  %v7663_v50 = vld [vmem:[#allocation10 + $0x7e8] ss:$16 sps:$4 sm:$0xff]  }
 0x16f   : > { %3060 = vmatpush1.bf16.msra.mxu0 %v7558_v3  ;;  %3103 = vmatpush1.bf16.msra.mxu1 %v7561_v4  ;;  %v7626_v3 = vld [vmem:[#allocation10 + $0x4ac] ss:$16 sps:$4 sm:$0xff]  }
 0x170   : > { %3061 = vmatprep.subr.bf16.mxu0 %v7566_v5  ;;  %3104 = vmatprep.subr.bf16.mxu1 %v7569_v6  ;;  %v7629_v4 = vld [vmem:[#allocation10 + $0x6ac] ss:$16 sps:$4 sm:$0xff]   ;;  %v7624_v6 = vld [vmem:[#allocation10 + $0x4a8] ss:$16 sps:$4 sm:$0xff]  }
 0x173   : > { %3062 = vmatpush2.bf16.msra.mxu0 %v7564_v7  ;;  %3105 = vmatpush2.bf16.msra.mxu1 %v7567_v8  ;;  %v7627_v7 = vld [vmem:[#allocation10 + $0x6a8] ss:$16 sps:$4 sm:$0xff]  }
 0x174   : > { %3063 = vmatprep.subr.bf16.mxu0 %v7572_v9  ;;  %3106 = vmatprep.subr.bf16.mxu1 %v7575_v10 }
 0x177   : > { %3064 = vmatpush2.bf16.msra.mxu0 %v7570_v11  ;;  %3107 = vmatpush2.bf16.msra.mxu1 %v7573_v12  ;;  %v7632_v11 = vld [vmem:[#allocation10 + $0x48c] ss:$16 sps:$4 sm:$0xff]  }
 0x178   : > { %3065 = vmatprep.subr.bf16.mxu0 %v7578_v13  ;;  %3108 = vmatprep.subr.bf16.mxu1 %v7581_v14 }
 0x17b   : > { %3066 = vmatpush2.bf16.msra.mxu0 %v7576_v15  ;;  %3109 = vmatpush2.bf16.msra.mxu1 %v7579_v16  ;;  %v7635_v15 = vld [vmem:[#allocation10 + $0x68c] ss:$16 sps:$4 sm:$0xff]  }
 0x17c   : > { %3067 = vmatprep.subr.bf16.mxu0 %v7584_v17  ;;  %3110 = vmatprep.subr.bf16.mxu1 %v7587_v18  ;;  %v7630_v18 = vld [vmem:[#allocation10 + $0x488] ss:$16 sps:$4 sm:$0xff]  }
 0x17f   : > { %3068 = vmatpush2.bf16.msra.mxu0 %v7582_v21  ;;  %3111 = vmatpush2.bf16.msra.mxu1 %v7585_v22  ;;  %v7633_v21 = vld [vmem:[#allocation10 + $0x688] ss:$16 sps:$4 sm:$0xff]  }
 0x180   : > { %3069 = vmatprep.subr.bf16.mxu0 %v7590_v23  ;;  %3112 = vmatprep.subr.bf16.mxu1 %v7593_v24  ;;  %v7638_v24 = vld [vmem:[#allocation10 + $0x46c] ss:$16 sps:$4 sm:$0xff]  }
 0x183   : > { %3070 = vmatpush2.bf16.msra.mxu0 %v7588_v25  ;;  %3113 = vmatpush2.bf16.msra.mxu1 %v7591_v26  ;;  %v7641_v25 = vld [vmem:[#allocation10 + $0x66c] ss:$16 sps:$4 sm:$0xff]   ;;  %v7636_v26 = vld [vmem:[#allocation10 + $0x468] ss:$16 sps:$4 sm:$0xff]  }
 0x184   : > { %3071 = vmatprep.subr.bf16.mxu0 %v7596_v27  ;;  %3114 = vmatprep.subr.bf16.mxu1 %v7599_v28  ;;  %v7639_v27 = vld [vmem:[#allocation10 + $0x668] ss:$16 sps:$4 sm:$0xff]   ;;  %v7644_v28 = vld [vmem:[#allocation10 + $0x44c] ss:$16 sps:$4 sm:$0xff]  }
 0x187   : > { %3072 = vmatpush2.bf16.msra.mxu0 %v7594_v29  ;;  %3115 = vmatpush2.bf16.msra.mxu1 %v7597_v30  ;;  %v7647_v29 = vld [vmem:[#allocation10 + $0x64c] ss:$16 sps:$4 sm:$0xff]   ;;  %v7642_v30 = vld [vmem:[#allocation10 + $0x448] ss:$16 sps:$4 sm:$0xff]  }
 0x188   : > { %3073 = vmatprep.subr.bf16.mxu0 %v7602_v31  ;;  %3116 = vmatprep.subr.bf16.mxu1 %v7605_v33  ;;  %v7645_v31 = vld [vmem:[#allocation10 + $0x648] ss:$16 sps:$4 sm:$0xff]   ;;  %v7650_v33 = vld [vmem:[#allocation10 + $0x42c] ss:$16 sps:$4 sm:$0xff]  }
 0x18b   : > { %3074 = vmatpush2.bf16.msra.mxu0 %v7600_v35  ;;  %3117 = vmatpush2.bf16.msra.mxu1 %v7603_v36  ;;  %v7653_v35 = vld [vmem:[#allocation10 + $0x62c] ss:$16 sps:$4 sm:$0xff]   ;;  %v7648_v36 = vld [vmem:[#allocation10 + $0x428] ss:$16 sps:$4 sm:$0xff]  }
 0x18c   : > { %3075 = vmatprep.subr.bf16.mxu0 %v7608_v42  ;;  %3118 = vmatprep.subr.bf16.mxu1 %v7611_v43  ;;  %v7656_v42 = vld [vmem:[#allocation10 + $0x40c] ss:$16 sps:$4 sm:$0xff]  }
 0x18d   : > { %v7659_v43 = vld [vmem:[#allocation10 + $0x60c] ss:$16 sps:$4 sm:$0xff]  }
 0x18f   : > { %3076 = vmatpush2.bf16.msra.mxu0 %v7606_v44  ;;  %3119 = vmatpush2.bf16.msra.mxu1 %v7609_v45  ;;  %v7654_v44 = vld [vmem:[#allocation10 + $0x408] ss:$16 sps:$4 sm:$0xff]  }
 0x190   : > { %3131 = vmatprep.subr.bf16.mxu0 %v7614_v47  ;;  %3174 = vmatprep.subr.bf16.mxu1 %v7617_v48  ;;  %v7657_v45 = vld [vmem:[#allocation10 + $0x608] ss:$16 sps:$4 sm:$0xff]   ;;  %v7665_v47 = vld [vmem:[#allocation10 + $0x7ec] ss:$16 sps:$4 sm:$0xff]  }
 0x191   : > { %v7660_v48 = vld [vmem:[#allocation10 + $0x5e8] ss:$16 sps:$4 sm:$0xff]  }
 0x192   : > { %v1237_v59 = vpop.f32.mrf.mxu0  ;;  %v1280_v60 = vpop.f32.mrf.mxu1  ;;  %3078 = vmatmul.mubr.bf16.vlgmr.msra.gmra.mxu0 %v8817_v19  ;;  %3121 = vmatmul.mubr.bf16.vlgmr.msra.gmra.mxu1 %v8819_v20 }
 0x193   : > { %v3268_v62 = vadd.f32 %v3257_v57, %v1280_v60  ;;  %3132 = vmatpush1.bf16.msra.mxu0 %v7612_v51  ;;  %3175 = vmatpush1.bf16.msra.mxu1 %v7615_v52  ;;  %v3266_v8 = vadd.f32 %v3249_v61, %v1237_v59  ;;  %v7668_v51 = vld [vmem:[#allocation10 + $0x5cc] ss:$16 sps:$4 sm:$0xff]   ;;  %v7675_v59 = vld [vmem:[#allocation10 + $0x7a8] ss:$16 sps:$4 sm:$0xff]  }
 0x194   : > { %v1239_v0 = vpop.f32.mrf.mxu0  ;;  %v1282_v2 = vpop.f32.mrf.mxu1  ;;  %3133 = vmatprep.subr.bf16.mxu0 %v7620_v54  ;;  %3176 = vmatprep.subr.bf16.mxu1 %v7623_v55  ;;  %v7671_v52 = vld [vmem:[#allocation10 + $0x7cc] ss:$16 sps:$4 sm:$0xff]   ;;  %v7666_v54 = vld [vmem:[#allocation10 + $0x5c8] ss:$16 sps:$4 sm:$0xff]  }
 0x195   : > { %v3269_v5 = vadd.f32 %v3261_v41, %v1282_v2  ;;  %3163 = vmatprep.mubr.bf16.mxu0 %v8826_v32  ;;  %3206 = vmatprep.mubr.bf16.mxu1 %v8829_v34  ;;  %v3267_v12 = vadd.f32 %v3253_v1, %v1239_v0  ;;  %v7669_v55 = vld [vmem:[#allocation10 + $0x7c8] ss:$16 sps:$4 sm:$0xff]   ;;  %v7680_v60 = vld [vmem:[#allocation10 + $0x58c] ss:$16 sps:$4 sm:$0xff]  }
 0x196   : > { %v1241_v19 = vpop.f32.mrf.mxu0  ;;  %v1284_v20 = vpop.f32.mrf.mxu1  ;;  %v7686_v0 = vld [vmem:[#allocation10 + $0x56c] ss:$16 sps:$4 sm:$0xff]   ;;  %v7684_v2 = vld [vmem:[#allocation10 + $0x568] ss:$16 sps:$4 sm:$0xff]  }
 0x197   : > { %v3270_v9 = vadd.f32 %v3249_v61, %v1241_v19  ;;  %v3272_v10 = vadd.f32 %v3257_v57, %v1284_v20  ;;  %3134 = vmatpush1.bf16.msra.mxu0 %v7618_v58  ;;  %3177 = vmatpush1.bf16.msra.mxu1 %v7621_v63  ;;  %v7674_v57 = vld [vmem:[#allocation10 + $0x5ac] ss:$16 sps:$4 sm:$0xff]   ;;  %v7672_v58 = vld [vmem:[#allocation10 + $0x5a8] ss:$16 sps:$4 sm:$0xff]  }
 0x198   : > { %v1243_v13 = vpop.f32.mrf.mxu0  ;;  %v1286_v14 = vpop.f32.mrf.mxu1  ;;  %3135 = vmatprep.subr.bf16.mxu0 %v7626_v3  ;;  %3178 = vmatprep.subr.bf16.mxu1 %v7629_v4  ;;  %v7683_v61 = vld [vmem:[#allocation10 + $0x78c] ss:$16 sps:$4 sm:$0xff]   ;;  %v7681_v63 = vld [vmem:[#allocation10 + $0x788] ss:$16 sps:$4 sm:$0xff]  }
 0x199   : > { %v8864_v16 = vpack.c.bf16 %v3270_v9, %v3266_v8  ;;  %v8866_v17 = vpack.c.bf16 %v3272_v10, %v3268_v62  ;;  %v3271_v32 = vadd.f32 %v3253_v1, %v1243_v13  ;;  %v3273_v34 = vadd.f32 %v3261_v41, %v1286_v14  ;;  %v7677_v41 = vld [vmem:[#allocation10 + $0x7ac] ss:$16 sps:$4 sm:$0xff]   ;;  %v7678_v62 = vld [vmem:[#allocation10 + $0x588] ss:$16 sps:$4 sm:$0xff]   ;;  %v7710_v14 = vld [vmem:[#allocation13 + $0xe4] ss:$16 sps:$4 sm:$0xff]  }
 0x19a   : > { %v7689_v1 = vld [vmem:[#allocation10 + $0x76c] ss:$16 sps:$4 sm:$0xff]   ;;  %v7687_v3 = vld [vmem:[#allocation10 + $0x768] ss:$16 sps:$4 sm:$0xff]  }
 0x19b   : > { %v8868_v22 = vpack.c.bf16 %v3271_v32, %v3267_v12  ;;  %v8870_v23 = vpack.c.bf16 %v3273_v34, %v3269_v5  ;;  %3136 = vmatpush1.bf16.msra.mxu0 %v7624_v6  ;;  %3179 = vmatpush1.bf16.msra.mxu1 %v7627_v7  ;;  %v7692_v4 = vld [vmem:[#allocation10 + $0x54c] ss:$16 sps:$4 sm:$0xff]   ;;  %v7690_v6 = vld [vmem:[#allocation10 + $0x548] ss:$16 sps:$4 sm:$0xff]   ;;  %v7713_v32 = vld [vmem:[#allocation13 + $0xc4] ss:$16 sps:$4 sm:$0xff]  }
 0x19c   : > { %3137 = vmatprep.subr.bf16.mxu0 %v7632_v11  ;;  %3180 = vmatprep.subr.bf16.mxu1 %v7635_v15  ;;  %v7695_v5 = vld [vmem:[#allocation10 + $0x74c] ss:$16 sps:$4 sm:$0xff]   ;;  %v7693_v7 = vld [vmem:[#allocation10 + $0x748] ss:$16 sps:$4 sm:$0xff]   ;;  %v7708_v15 = vld [vmem:[#allocation13 + $0xe0] ss:$16 sps:$4 sm:$0xff]  }
 0x19d   : > { %v7698_v19 = vld [vmem:[#allocation10 + $0x52c] ss:$16 sps:$4 sm:$0xff]   ;;  %v7696_v8 = vld [vmem:[#allocation10 + $0x528] ss:$16 sps:$4 sm:$0xff]   ;;  %v7711_v34 = vld [vmem:[#allocation13 + $0xc0] ss:$16 sps:$4 sm:$0xff]  }
 0x19e   : > { %v7701_v20 = vld [vmem:[#allocation10 + $0x72c] ss:$16 sps:$4 sm:$0xff]   ;;  %v7699_v9 = vld [vmem:[#allocation10 + $0x728] ss:$16 sps:$4 sm:$0xff]  }
 0x19f   : > { %3138 = vmatpush1.bf16.msra.mxu0 %v7630_v18  ;;  %3181 = vmatpush1.bf16.msra.mxu1 %v7633_v21  ;;  %v7704_v10 = vld [vmem:[#allocation10 + $0x50c] ss:$16 sps:$4 sm:$0xff]   ;;  %v7702_v12 = vld [vmem:[#allocation10 + $0x508] ss:$16 sps:$4 sm:$0xff]   ;;  %v7716_v18 = vld [vmem:[#allocation13 + $0xa4] ss:$16 sps:$4 sm:$0xff]  }
 0x1a0   : > { %3139 = vmatprep.subr.bf16.mxu0 %v7638_v24  ;;  %3182 = vmatprep.subr.bf16.mxu1 %v7641_v25  ;;  %v7707_v11 = vld [vmem:[#allocation10 + $0x70c] ss:$16 sps:$4 sm:$0xff]   ;;  %v7705_v13 = vld [vmem:[#allocation10 + $0x708] ss:$16 sps:$4 sm:$0xff]   ;;  %v7714_v21 = vld [vmem:[#allocation13 + $0xa0] ss:$16 sps:$4 sm:$0xff]  }
 0x1a1   : > { %v7719_v24 = vld [vmem:[#allocation13 + $0x84] ss:$16 sps:$4 sm:$0xff]   ;;  %v7717_v25 = vld [vmem:[#allocation13 + $0x80] ss:$16 sps:$4 sm:$0xff]  }
 0x1a3   : > { %3140 = vmatpush1.bf16.msra.mxu0 %v7636_v26  ;;  %3183 = vmatpush1.bf16.msra.mxu1 %v7639_v27  ;;  %v7722_v26 = vld [vmem:[#allocation13 + $0x64] ss:$16 sps:$4 sm:$0xff]   ;;  %v7720_v27 = vld [vmem:[#allocation13 + $0x60] ss:$16 sps:$4 sm:$0xff]  }
 0x1a4   : > { %3141 = vmatprep.subr.bf16.mxu0 %v7644_v28  ;;  %3184 = vmatprep.subr.bf16.mxu1 %v7647_v29  ;;  %v7804_v28 = vld [vmem:[#allocation13 + $0x2e0] ss:$16 sps:$4 sm:$0xff]   ;;  %v7806_v29 = vld [vmem:[#allocation13 + $0x2e4] ss:$16 sps:$4 sm:$0xff]  }
 0x1a7   : > { %3142 = vmatpush1.bf16.msra.mxu0 %v7642_v30  ;;  %3185 = vmatpush1.bf16.msra.mxu1 %v7645_v31  ;;  %v7725_v30 = vld [vmem:[#allocation13 + $0x44] ss:$16 sps:$4 sm:$0xff]  }
 0x1a8   : > { %3143 = vmatprep.subr.bf16.mxu0 %v7650_v33  ;;  %3186 = vmatprep.subr.bf16.mxu1 %v7653_v35  ;;  %v7812_v31 = vld [vmem:[#allocation13 + $0x2c4] ss:$16 sps:$4 sm:$0xff]   ;;  %v7726_v35 = vld [vmem:[#allocation13 + $0x20] ss:$16 sps:$4 sm:$0xff]  }
 0x1a9   : > { %v7728_v33 = vld [vmem:[#allocation13 + $0x24] ss:$16 sps:$4 sm:$0xff]  }
 0x1ab   : > { %3144 = vmatpush1.bf16.msra.mxu0 %v7648_v36  ;;  %3187 = vmatpush1.bf16.msra.mxu1 %v7651_v39  ;;  %v7816_v36 = vld [vmem:[#allocation13 + $0x2a0] ss:$16 sps:$4 sm:$0xff]   ;;  %v7818_v39 = vld [vmem:[#allocation13 + $0x2a4] ss:$16 sps:$4 sm:$0xff]  }
 0x1ac   : > { %3145 = vmatprep.subr.bf16.mxu0 %v7656_v42  ;;  %3188 = vmatprep.subr.bf16.mxu1 %v7659_v43  ;;  %v7731_v42 = vld [vmem:[#allocation13 + $0x4] ss:$16 sps:$4 sm:$0xff]   ;;  %v7729_v43 = vld [vmem:[#allocation13] ss:$16 sps:$4 sm:$0xff]  }
 0x1af   : > { %3146 = vmatpush1.bf16.msra.mxu0 %v7654_v44  ;;  %3189 = vmatpush1.bf16.msra.mxu1 %v7657_v45  ;;  %v7822_v44 = vld [vmem:[#allocation13 + $0x280] ss:$16 sps:$4 sm:$0xff]   ;;  %v7824_v45 = vld [vmem:[#allocation13 + $0x284] ss:$16 sps:$4 sm:$0xff]  }
 0x1b0   : > { %3147 = vmatprep.subr.bf16.mxu0 %v7662_v46  ;;  %3190 = vmatprep.subr.bf16.mxu1 %v7665_v47  ;;  %v7734_v46 = vld [vmem:[#allocation13 + $0x1e4] ss:$16 sps:$4 sm:$0xff]   ;;  %v7732_v47 = vld [vmem:[#allocation13 + $0x1e0] ss:$16 sps:$4 sm:$0xff]  }
 0x1b3   : > { %3148 = vmatpush2.bf16.msra.mxu0 %v7660_v48  ;;  %3191 = vmatpush2.bf16.msra.mxu1 %v7663_v50  ;;  %v7828_v48 = vld [vmem:[#allocation13 + $0x260] ss:$16 sps:$4 sm:$0xff]   ;;  %v7830_v50 = vld [vmem:[#allocation13 + $0x264] ss:$16 sps:$4 sm:$0xff]  }
 0x1b4   : > { %3149 = vmatprep.subr.bf16.mxu0 %v7668_v51  ;;  %3192 = vmatprep.subr.bf16.mxu1 %v7671_v52  ;;  %v7737_v51 = vld [vmem:[#allocation13 + $0x1c4] ss:$16 sps:$4 sm:$0xff]   ;;  %v7735_v52 = vld [vmem:[#allocation13 + $0x1c0] ss:$16 sps:$4 sm:$0xff]  }
 0x1b7   : > { %3150 = vmatpush2.bf16.msra.mxu0 %v7666_v54  ;;  %3193 = vmatpush2.bf16.msra.mxu1 %v7669_v55  ;;  %v7834_v54 = vld [vmem:[#allocation13 + $0x240] ss:$16 sps:$4 sm:$0xff]   ;;  %v7836_v55 = vld [vmem:[#allocation13 + $0x244] ss:$16 sps:$4 sm:$0xff]  }
 0x1b8   : > { %3151 = vmatprep.subr.bf16.mxu0 %v7674_v57  ;;  %3194 = vmatprep.subr.bf16.mxu1 %v7677_v41  ;;  %v7740_v57 = vld [vmem:[#allocation13 + $0x1a4] ss:$16 sps:$4 sm:$0xff]   ;;  %v7738_v41 = vld [vmem:[#allocation13 + $0x1a0] ss:$16 sps:$4 sm:$0xff]  }
 0x1bb   : > { %3152 = vmatpush2.bf16.msra.mxu0 %v7672_v58  ;;  %3195 = vmatpush2.bf16.msra.mxu1 %v7675_v59  ;;  %v7840_v58 = vld [vmem:[#allocation13 + $0x220] ss:$16 sps:$4 sm:$0xff]   ;;  %v7842_v59 = vld [vmem:[#allocation13 + $0x224] ss:$16 sps:$4 sm:$0xff]  }
 0x1bc   : > { %3153 = vmatprep.subr.bf16.mxu0 %v7680_v60  ;;  %3196 = vmatprep.subr.bf16.mxu1 %v7683_v61  ;;  %v7743_v60 = vld [vmem:[#allocation13 + $0x184] ss:$16 sps:$4 sm:$0xff]   ;;  %v7741_v61 = vld [vmem:[#allocation13 + $0x180] ss:$16 sps:$4 sm:$0xff]  }
 0x1bf   : > { %3154 = vmatpush2.bf16.msra.mxu0 %v7678_v62  ;;  %3197 = vmatpush2.bf16.msra.mxu1 %v7681_v63  ;;  %v7846_v62 = vld [vmem:[#allocation13 + $0x200] ss:$16 sps:$4 sm:$0xff]   ;;  %v7848_v63 = vld [vmem:[#allocation13 + $0x204] ss:$16 sps:$4 sm:$0xff]  }
 0x1c0   : > { %3155 = vmatprep.subr.bf16.mxu0 %v7686_v0  ;;  %3198 = vmatprep.subr.bf16.mxu1 %v7689_v1  ;;  %v7746_v0 = vld [vmem:[#allocation13 + $0x164] ss:$16 sps:$4 sm:$0xff]   ;;  %v7744_v1 = vld [vmem:[#allocation13 + $0x160] ss:$16 sps:$4 sm:$0xff]  }
 0x1c3   : > { %3156 = vmatpush2.bf16.msra.mxu0 %v7684_v2  ;;  %3199 = vmatpush2.bf16.msra.mxu1 %v7687_v3  ;;  %v7852_v2 = vld [vmem:[#allocation13 + $0x3e0] ss:$16 sps:$4 sm:$0xff]   ;;  %v7854_v3 = vld [vmem:[#allocation13 + $0x3e4] ss:$16 sps:$4 sm:$0xff]  }
 0x1c4   : > { %3157 = vmatprep.subr.bf16.mxu0 %v7692_v4  ;;  %3200 = vmatprep.subr.bf16.mxu1 %v7695_v5  ;;  %v7749_v4 = vld [vmem:[#allocation13 + $0x144] ss:$16 sps:$4 sm:$0xff]   ;;  %v7747_v5 = vld [vmem:[#allocation13 + $0x140] ss:$16 sps:$4 sm:$0xff]  }
 0x1c7   : > { %3158 = vmatpush2.bf16.msra.mxu0 %v7690_v6  ;;  %3201 = vmatpush2.bf16.msra.mxu1 %v7693_v7  ;;  %v7858_v6 = vld [vmem:[#allocation13 + $0x3c0] ss:$16 sps:$4 sm:$0xff]   ;;  %v7860_v7 = vld [vmem:[#allocation13 + $0x3c4] ss:$16 sps:$4 sm:$0xff]  }
 0x1c8   : > { %3159 = vmatprep.subr.bf16.mxu0 %v7698_v19  ;;  %3202 = vmatprep.subr.bf16.mxu1 %v7701_v20 }
 0x1cb   : > { %3160 = vmatpush2.bf16.msra.mxu0 %v7696_v8  ;;  %3203 = vmatpush2.bf16.msra.mxu1 %v7699_v9  ;;  %v7752_v8 = vld [vmem:[#allocation13 + $0x124] ss:$16 sps:$4 sm:$0xff]   ;;  %v7750_v9 = vld [vmem:[#allocation13 + $0x120] ss:$16 sps:$4 sm:$0xff]  }
 0x1cc   : > { %3161 = vmatprep.subr.bf16.mxu0 %v7704_v10  ;;  %3204 = vmatprep.subr.bf16.mxu1 %v7707_v11  ;;  %v7864_v10 = vld [vmem:[#allocation13 + $0x3a0] ss:$16 sps:$4 sm:$0xff]   ;;  %v7866_v11 = vld [vmem:[#allocation13 + $0x3a4] ss:$16 sps:$4 sm:$0xff]  }
 0x1cf   : > { %3162 = vmatpush2.bf16.msra.mxu0 %v7702_v12  ;;  %3205 = vmatpush2.bf16.msra.mxu1 %v7705_v13 }
 0x1d0   : > { %4216 = vmatprep.subr.bf16.mxu0 %v7710_v14  ;;  %4259 = vmatprep.subr.bf16.mxu1 %v7806_v29  ;;  %v7755_v14 = vld [vmem:[#allocation13 + $0x104] ss:$16 sps:$4 sm:$0xff]  }
 0x1d2   : > { %3164 = vmatmul.mubr.bf16.vlgmr.msra.gmra.mxu0 %v8837_v37  ;;  %3207 = vmatmul.mubr.bf16.vlgmr.msra.gmra.mxu1 %v8839_v38  ;;  %v7723_v37 = vld [vmem:[#allocation13 + $0x40] ss:$16 sps:$4 sm:$0xff]   ;;  %v2907_v19 = vpop.f32.mrf.mxu0  ;;  %v2950_v20 = vpop.f32.mrf.mxu1 }
 0x1d3   : > { %4217 = vmatpush1.bf16.msra.mxu0 %v7708_v15  ;;  %4260 = vmatpush1.bf16.msra.mxu1 %v7804_v28  ;;  %v7810_v38 = vld [vmem:[#allocation13 + $0x2c0] ss:$16 sps:$4 sm:$0xff]  }
 0x1d4   : > { %4218 = vmatprep.subr.bf16.mxu0 %v7713_v32  ;;  %4261 = vmatprep.subr.bf16.mxu1 %v7812_v31  ;;  %v2909_v12 = vpop.f32.mrf.mxu0  ;;  %v2952_v13 = vpop.f32.mrf.mxu1  ;;  %v7753_v15 = vld [vmem:[#allocation13 + $0x100] ss:$16 sps:$4 sm:$0xff]  }
 0x1d5   : > { %v7870_v32 = vld [vmem:[#allocation13 + $0x380] ss:$16 sps:$4 sm:$0xff]  }
 0x1d7   : > { %4219 = vmatpush1.bf16.msra.mxu0 %v7711_v34  ;;  %4262 = vmatpush1.bf16.msra.mxu1 %v7810_v38  ;;  %v7872_v34 = vld [vmem:[#allocation13 + $0x384] ss:$16 sps:$4 sm:$0xff]   ;;  %v2951_v38 = vadd.f32 %v2950_v20, %v2907_v19  ;;  %v7902_v19 = vld [vmem:[#allocation13 + $0x2ec] ss:$16 sps:$4 sm:$0xff]   ;;  %v7759_v20 = vld [vmem:[#allocation13 + $0xc8] ss:$16 sps:$4 sm:$0xff]  }
 0x1d8   : > { %4220 = vmatprep.subr.bf16.mxu0 %v7716_v18  ;;  %4263 = vmatprep.subr.bf16.mxu1 %v7818_v39  ;;  %v2911_v18 = vpop.f32.mrf.mxu0 }
 0x1db   : > { %4221 = vmatpush1.bf16.msra.mxu0 %v7714_v21  ;;  %4264 = vmatpush1.bf16.msra.mxu1 %v7816_v36  ;;  %v2954_v21 = vpop.f32.mrf.mxu1 }
 0x1dc   : > { %4222 = vmatprep.subr.bf16.mxu0 %v7719_v24  ;;  %4265 = vmatprep.subr.bf16.mxu1 %v7824_v45  ;;  %v7758_v24 = vld [vmem:[#allocation13 + $0xec] ss:$16 sps:$4 sm:$0xff]   ;;  %v2955_v36 = vadd.f32 %v2954_v21, %v2911_v18  ;;  %v7777_v21 = vld [vmem:[#allocation13 + $0x8] ss:$16 sps:$4 sm:$0xff]  }
 0x1dd   : > { %v2956_v28 = vpop.f32.mrf.mxu1  ;;  %v7779_v18 = vld [vmem:[#allocation13 + $0xc] ss:$16 sps:$4 sm:$0xff]  }
 0x1df   : > { %4223 = vmatpush1.bf16.msra.mxu0 %v7717_v25  ;;  %4266 = vmatpush1.bf16.msra.mxu1 %v7822_v44  ;;  %v7876_v25 = vld [vmem:[#allocation13 + $0x360] ss:$16 sps:$4 sm:$0xff]  }
 0x1e0   : > { %4224 = vmatprep.subr.bf16.mxu0 %v7722_v26  ;;  %4267 = vmatprep.subr.bf16.mxu1 %v7830_v50  ;;  %v7878_v26 = vld [vmem:[#allocation13 + $0x364] ss:$16 sps:$4 sm:$0xff]  }
 0x1e3   : > { %4225 = vmatpush1.bf16.msra.mxu0 %v7720_v27  ;;  %4268 = vmatpush1.bf16.msra.mxu1 %v7828_v48  ;;  %v2913_v27 = vpop.f32.mrf.mxu0 }
 0x1e4   : > { %4226 = vmatprep.subr.bf16.mxu0 %v7725_v30  ;;  %4269 = vmatprep.subr.bf16.mxu1 %v7836_v55 }
 0x1e7   : > { %4227 = vmatpush1.bf16.msra.mxu0 %v7723_v37  ;;  %4270 = vmatpush1.bf16.msra.mxu1 %v7834_v54  ;;  %v2953_v37 = vadd.f32 %v2952_v13, %v2909_v12  ;;  %v7770_v12 = vld [vmem:[#allocation13 + $0x6c] ss:$16 sps:$4 sm:$0xff]   ;;  %v7768_v13 = vld [vmem:[#allocation13 + $0x68] ss:$16 sps:$4 sm:$0xff]  }
 0x1e8   : > { %4228 = vmatprep.subr.bf16.mxu0 %v7728_v33  ;;  %4271 = vmatprep.subr.bf16.mxu1 %v7842_v59 }
 0x1eb   : > { %4229 = vmatpush1.bf16.msra.mxu0 %v7726_v35  ;;  %4272 = vmatpush1.bf16.msra.mxu1 %v7840_v58  ;;  %v7884_v35 = vld [vmem:[#allocation13 + $0x344] ss:$16 sps:$4 sm:$0xff]  }
 0x1ec   : > { %4230 = vmatprep.subr.bf16.mxu0 %v7731_v42  ;;  %4273 = vmatprep.subr.bf16.mxu1 %v7848_v63  ;;  %v7882_v42 = vld [vmem:[#allocation13 + $0x340] ss:$16 sps:$4 sm:$0xff]   ;;  %v7896_v63 = vld [vmem:[#allocation13 + $0x304] ss:$16 sps:$4 sm:$0xff]  }
 0x1ef   : > { %4231 = vmatpush1.bf16.msra.mxu0 %v7729_v43  ;;  %4274 = vmatpush1.bf16.msra.mxu1 %v7846_v62 }
 0x1f0   : > { %4232 = vmatprep.subr.bf16.mxu0 %v7734_v46  ;;  %4275 = vmatprep.subr.bf16.mxu1 %v7854_v3  ;;  %v2957_v46 = vadd.f32 %v2956_v28, %v2913_v27  ;;  %v7783_v27 = vld [vmem:[#allocation13 + $0x1c8] ss:$16 sps:$4 sm:$0xff]   ;;  %v7788_v28 = vld [vmem:[#allocation13 + $0x1ac] ss:$16 sps:$4 sm:$0xff]  }
 0x1f3   : > { %4233 = vmatpush2.bf16.msra.mxu0 %v7732_v47  ;;  %4276 = vmatpush2.bf16.msra.mxu1 %v7852_v2  ;;  %v8877_v47 = vld [vmem:[%s9062_s5] sm:$0xf] }
 0x1f4   : > { %4234 = vmatprep.subr.bf16.mxu0 %v7737_v51  ;;  %4277 = vmatprep.subr.bf16.mxu1 %v7860_v7  ;;  %v7890_v51 = vld [vmem:[#allocation13 + $0x324] ss:$16 sps:$4 sm:$0xff]   ;;  %v3291_v54 = vrot.slane %v8877_v47, %v8855_v40  ;;  %v3287_v59 = vrot.slane %v8877_v47, %v8852_v56  ;;  %v7894_v2 = vld [vmem:[#allocation13 + $0x300] ss:$16 sps:$4 sm:$0xff]   ;;  %v7761_v7 = vld [vmem:[#allocation13 + $0xcc] ss:$16 sps:$4 sm:$0xff]  }
 0x1f7   : > { %4235 = vmatpush2.bf16.msra.mxu0 %v7735_v52  ;;  %4278 = vmatpush2.bf16.msra.mxu1 %v7858_v6 }
 0x1f8   : > { %4236 = vmatprep.subr.bf16.mxu0 %v7740_v57  ;;  %4279 = vmatprep.subr.bf16.mxu1 %v7866_v11  ;;  %v7765_v11 = vld [vmem:[#allocation13 + $0x88] ss:$16 sps:$4 sm:$0xff]  }
 0x1fb   : > { %4237 = vmatpush2.bf16.msra.mxu0 %v7738_v41  ;;  %4280 = vmatpush2.bf16.msra.mxu1 %v7864_v10  ;;  %v7888_v41 = vld [vmem:[#allocation13 + $0x320] ss:$16 sps:$4 sm:$0xff]   ;;  %v7767_v10 = vld [vmem:[#allocation13 + $0x8c] ss:$16 sps:$4 sm:$0xff]  }
 0x1fc   : > { %4238 = vmatprep.subr.bf16.mxu0 %v7743_v60  ;;  %4281 = vmatprep.subr.bf16.mxu1 %v7872_v34  ;;  %v7774_v34 = vld [vmem:[#allocation13 + $0x28] ss:$16 sps:$4 sm:$0xff]  }
 0x1ff   : > { %4239 = vmatpush2.bf16.msra.mxu0 %v7741_v61  ;;  %4282 = vmatpush2.bf16.msra.mxu1 %v7870_v32  ;;  %v7776_v32 = vld [vmem:[#allocation13 + $0x2c] ss:$16 sps:$4 sm:$0xff]  }
 0x200   : > { %4240 = vmatprep.subr.bf16.mxu0 %v7746_v0  ;;  %4283 = vmatprep.subr.bf16.mxu1 %v7878_v26  ;;  %v7785_v26 = vld [vmem:[#allocation13 + $0x1cc] ss:$16 sps:$4 sm:$0xff]  }
 0x203   : > { %4241 = vmatpush2.bf16.msra.mxu0 %v7744_v1  ;;  %4284 = vmatpush2.bf16.msra.mxu1 %v7876_v25  ;;  %v7780_v25 = vld [vmem:[#allocation13 + $0x1e8] ss:$16 sps:$4 sm:$0xff]  }
 0x204   : > { %4242 = vmatprep.subr.bf16.mxu0 %v7749_v4  ;;  %4285 = vmatprep.subr.bf16.mxu1 %v7884_v35  ;;  %v7795_v35 = vld [vmem:[#allocation13 + $0x148] ss:$16 sps:$4 sm:$0xff]  }
 0x207   : > { %4243 = vmatpush2.bf16.msra.mxu0 %v7747_v5  ;;  %4286 = vmatpush2.bf16.msra.mxu1 %v7882_v42  ;;  %v7756_v5 = vld [vmem:[#allocation13 + $0xe8] ss:$16 sps:$4 sm:$0xff]   ;;  %v7803_v42 = vld [vmem:[#allocation13 + $0x10c] ss:$16 sps:$4 sm:$0xff]  }
 0x208   : > { %4244 = vmatprep.subr.bf16.mxu0 %v7752_v8  ;;  %4287 = vmatprep.subr.bf16.mxu1 %v7890_v51  ;;  %v7764_v8 = vld [vmem:[#allocation13 + $0xac] ss:$16 sps:$4 sm:$0xff]   ;;  %v7819_v51 = vld [vmem:[#allocation12 + $0xa0] ss:$16 sps:$4 sm:$0xff]  }
 0x20b   : > { %4245 = vmatpush2.bf16.msra.mxu0 %v7750_v9  ;;  %4288 = vmatpush2.bf16.msra.mxu1 %v7888_v41  ;;  %v7762_v9 = vld [vmem:[#allocation13 + $0xa8] ss:$16 sps:$4 sm:$0xff]   ;;  %v7839_v41 = vld [vmem:[#allocation12 + $0x44] ss:$16 sps:$4 sm:$0xff]  }
 0x20c   : > { %4246 = vmatprep.subr.bf16.mxu0 %v7755_v14  ;;  %4289 = vmatprep.subr.bf16.mxu1 %v7896_v63  ;;  %v7773_v14 = vld [vmem:[#allocation13 + $0x4c] ss:$16 sps:$4 sm:$0xff]   ;;  %v7857_v63 = vld [vmem:[#allocation12 + $0x1e4] ss:$16 sps:$4 sm:$0xff]  }
 0x20f   : > { %4247 = vmatpush2.bf16.msra.mxu0 %v7753_v15  ;;  %4290 = vmatpush2.bf16.msra.mxu1 %v7894_v2  ;;  %v7771_v15 = vld [vmem:[#allocation13 + $0x48] ss:$16 sps:$4 sm:$0xff]   ;;  %v7861_v2 = vld [vmem:[#allocation12 + $0x1c0] ss:$16 sps:$4 sm:$0xff]  }
 0x210   : > { %4302 = vmatprep.subr.bf16.mxu0 %v7758_v24  ;;  %4345 = vmatprep.subr.bf16.mxu1 %v7902_v19  ;;  %v7782_v24 = vld [vmem:[#allocation13 + $0x1ec] ss:$16 sps:$4 sm:$0xff]  }
 0x212   : > { %v2993_v29 = vpop.f32.mrf.mxu0  ;;  %v3036_v30 = vpop.f32.mrf.mxu1 }
 0x213   : > { %v2994_v43 = vadd.f32 %v2993_v29, %v2951_v38  ;;  %v7786_v29 = vld [vmem:[#allocation13 + $0x1a8] ss:$16 sps:$4 sm:$0xff]   ;;  %v7794_v38 = vld [vmem:[#allocation13 + $0x16c] ss:$16 sps:$4 sm:$0xff]  }
 0x214   : > { %v2995_v31 = vpop.f32.mrf.mxu0  ;;  %v3038_v33 = vpop.f32.mrf.mxu1 }
 0x215   : > { %v2996_v39 = vadd.f32 %v2995_v31, %v2953_v37  ;;  %v3037_v58 = vadd.f32 %v3036_v30, %v2994_v43  ;;  %v7791_v30 = vld [vmem:[#allocation13 + $0x18c] ss:$16 sps:$4 sm:$0xff]   ;;  %v7789_v37 = vld [vmem:[#allocation13 + $0x188] ss:$16 sps:$4 sm:$0xff]  }
 0x216   : > { %v2997_v44 = vpop.f32.mrf.mxu0  ;;  %v3040_v45 = vpop.f32.mrf.mxu1  ;;  %v7792_v31 = vld [vmem:[#allocation13 + $0x168] ss:$16 sps:$4 sm:$0xff]  }
 0x217   : > { %v2998_v48 = vadd.f32 %v2997_v44, %v2955_v36  ;;  %v3039_v52 = vadd.f32 %v3038_v33, %v2996_v39  ;;  %v3304_v3 = vadd.f32 %v3287_v59, %v3037_v58  ;;  %v7797_v33 = vld [vmem:[#allocation13 + $0x14c] ss:$16 sps:$4 sm:$0xff]   ;;  %v7798_v39 = vld [vmem:[#allocation13 + $0x128] ss:$16 sps:$4 sm:$0xff]   ;;  %v7809_v44 = vld [vmem:[#allocation12 + $0xe4] ss:$16 sps:$4 sm:$0xff]  }
 0x218   : > { %v2999_v50 = vpop.f32.mrf.mxu0  ;;  %v3042_v60 = vpop.f32.mrf.mxu1  ;;  %v7800_v36 = vld [vmem:[#allocation13 + $0x12c] ss:$16 sps:$4 sm:$0xff]   ;;  %v7801_v43 = vld [vmem:[#allocation13 + $0x108] ss:$16 sps:$4 sm:$0xff]   ;;  %v7837_v58 = vld [vmem:[#allocation12 + $0x40] ss:$16 sps:$4 sm:$0xff]  }
 0x219   : > { %v3041_v55 = vadd.f32 %v3040_v45, %v2998_v48  ;;  %v3000_v57 = vadd.f32 %v2999_v50, %v2957_v46  ;;  %v3305_v0 = vadd.f32 %v3291_v54, %v3039_v52  ;;  %v7807_v45 = vld [vmem:[#allocation12 + $0xe0] ss:$16 sps:$4 sm:$0xff]   ;;  %v7815_v46 = vld [vmem:[#allocation12 + $0xc4] ss:$16 sps:$4 sm:$0xff]  }
 0x21a   : > { %v7813_v48 = vld [vmem:[#allocation12 + $0xc0] ss:$16 sps:$4 sm:$0xff]   ;;  %v7821_v50 = vld [vmem:[#allocation12 + $0xa4] ss:$16 sps:$4 sm:$0xff]  }
 0x21b   : > { %v3043_v61 = vadd.f32 %v3042_v60, %v3000_v57  ;;  %v3308_v62 = vadd.f32 %v3287_v59, %v3041_v55  ;;  %v7827_v52 = vld [vmem:[#allocation12 + $0x84] ss:$16 sps:$4 sm:$0xff]   ;;  %v7831_v57 = vld [vmem:[#allocation12 + $0x60] ss:$16 sps:$4 sm:$0xff]  }
 0x21c   : > { %v7833_v55 = vld [vmem:[#allocation12 + $0x64] ss:$16 sps:$4 sm:$0xff]   ;;  %v7843_v60 = vld [vmem:[#allocation12 + $0x20] ss:$16 sps:$4 sm:$0xff]  }
 0x21d   : > { %v3309_v1 = vadd.f32 %v3291_v54, %v3043_v61  ;;  %v8883_v6 = vpack.c.bf16 %v3308_v62, %v3304_v3  ;;  %v7825_v54 = vld [vmem:[#allocation12 + $0x80] ss:$16 sps:$4 sm:$0xff]   ;;  %v7845_v59 = vld [vmem:[#allocation12 + $0x24] ss:$16 sps:$4 sm:$0xff]  }
 0x21e   : > { %v7851_v61 = vld [vmem:[#allocation12 + $0x4] ss:$16 sps:$4 sm:$0xff]   ;;  %v7849_v62 = vld [vmem:[#allocation12] ss:$16 sps:$4 sm:$0xff]  }
 0x21f   : > { %v3445_v4 = vpack.c.bf16 %v3309_v1, %v3305_v0  ;;  %v7855_v0 = vld [vmem:[#allocation12 + $0x1e0] ss:$16 sps:$4 sm:$0xff]   ;;  %v7863_v1 = vld [vmem:[#allocation12 + $0x1c4] ss:$16 sps:$4 sm:$0xff]  }
 0x221   : > { %4248 = vmatprep.mubr.bf16.mxu0 %v3445_v4 }
 0x222   : > { %4249 = vmatmul.mubr.bf16.vlgmr.msra.gmra.mxu0 %v8883_v6 }
 0x223   : > { %4303 = vmatpush1.bf16.msra.mxu0 %v7756_v5  ;;  %4334 = vmatprep.mubr.bf16.mxu0 %v3445_v4  ;;  %v7869_v5 = vld [vmem:[#allocation12 + $0x1a4] ss:$16 sps:$4 sm:$0xff]  }
 0x224   : > { %4304 = vmatprep.subr.bf16.mxu0 %v7761_v7 }
 0x227   : > { %4305 = vmatpush1.bf16.msra.mxu0 %v7759_v20  ;;  %v7875_v20 = vld [vmem:[#allocation12 + $0x184] ss:$16 sps:$4 sm:$0xff]  }
 0x228   : > { %4306 = vmatprep.subr.bf16.mxu0 %v7764_v8  ;;  %v7873_v8 = vld [vmem:[#allocation12 + $0x180] ss:$16 sps:$4 sm:$0xff]  }
 0x22b   : > { %4307 = vmatpush1.bf16.msra.mxu0 %v7762_v9 }
 0x22c   : > { %4308 = vmatprep.subr.bf16.mxu0 %v7767_v10 }
 0x22f   : > { %4309 = vmatpush1.bf16.msra.mxu0 %v7765_v11  ;;  %v7881_v11 = vld [vmem:[#allocation12 + $0x164] ss:$16 sps:$4 sm:$0xff]  }
 0x230   : > { %4310 = vmatprep.subr.bf16.mxu0 %v7770_v12  ;;  %v7879_v12 = vld [vmem:[#allocation12 + $0x160] ss:$16 sps:$4 sm:$0xff]  }
 0x233   : > { %4311 = vmatpush1.bf16.msra.mxu0 %v7768_v13 }
 0x234   : > { %4312 = vmatprep.subr.bf16.mxu0 %v7773_v14 }
 0x237   : > { %4313 = vmatpush1.bf16.msra.mxu0 %v7771_v15  ;;  %v7887_v15 = vld [vmem:[#allocation12 + $0x144] ss:$16 sps:$4 sm:$0xff]  }
 0x238   : > { %4314 = vmatprep.subr.bf16.mxu0 %v7776_v32 }
 0x23b   : > { %4315 = vmatpush1.bf16.msra.mxu0 %v7774_v34 }
 0x23c   : > { %4316 = vmatprep.subr.bf16.mxu0 %v7779_v18 }
 0x23f   : > { %4317 = vmatpush1.bf16.msra.mxu0 %v7777_v21  ;;  %v7885_v21 = vld [vmem:[#allocation12 + $0x140] ss:$16 sps:$4 sm:$0xff]  }
 0x240   : > { %4318 = vmatprep.subr.bf16.mxu0 %v7782_v24 }
 0x243   : > { %4319 = vmatpush2.bf16.msra.mxu0 %v7780_v25 }
 0x244   : > { %4320 = vmatprep.subr.bf16.mxu0 %v7785_v26 }
 0x247   : > { %4321 = vmatpush2.bf16.msra.mxu0 %v7783_v27  ;;  %v7893_v27 = vld [vmem:[#allocation12 + $0x124] ss:$16 sps:$4 sm:$0xff]  }
 0x248   : > { %4322 = vmatprep.subr.bf16.mxu0 %v7788_v28 }
 0x24b   : > { %4323 = vmatpush2.bf16.msra.mxu0 %v7786_v29 }
 0x24c   : > { %4324 = vmatprep.subr.bf16.mxu0 %v7791_v30 }
 0x24f   : > { %4325 = vmatpush2.bf16.msra.mxu0 %v7789_v37 }
 0x250   : > { %4326 = vmatprep.subr.bf16.mxu0 %v7794_v38 }
 0x252   : > { %v3079_v3 = vpop.f32.mrf.mxu0  ;;  %v3122_v4 = vpop.f32.mrf.mxu1 }
 0x253   : > { %4327 = vmatpush2.bf16.msra.mxu0 %v7792_v31  ;;  %v3123_v24 = vadd.f32 %v3122_v4, %v3079_v3  ;;  %v7917_v3 = vld [vmem:[#allocation12 + $0xac] ss:$16 sps:$4 sm:$0xff]   ;;  %v7912_v4 = vld [vmem:[#allocation13 + $0x2a8] ss:$16 sps:$4 sm:$0xff]  }
 0x254   : > { %4328 = vmatprep.subr.bf16.mxu0 %v7797_v33  ;;  %v3081_v7 = vpop.f32.mrf.mxu0  ;;  %v3124_v19 = vpop.f32.mrf.mxu1 }
 0x255   : > { %v3125_v18 = vadd.f32 %v3124_v19, %v3081_v7  ;;  %v7923_v7 = vld [vmem:[#allocation12 + $0x8c] ss:$16 sps:$4 sm:$0xff]   ;;  %v7918_v19 = vld [vmem:[#allocation13 + $0x288] ss:$16 sps:$4 sm:$0xff]  }
 0x256   : > { %v3083_v9 = vpop.f32.mrf.mxu0  ;;  %v3126_v10 = vpop.f32.mrf.mxu1 }
 0x257   : > { %4329 = vmatpush2.bf16.msra.mxu0 %v7795_v35  ;;  %v3127_v28 = vadd.f32 %v3126_v10, %v3083_v9  ;;  %v7891_v35 = vld [vmem:[#allocation12 + $0x120] ss:$16 sps:$4 sm:$0xff]   ;;  %v7924_v9 = vld [vmem:[#allocation13 + $0x268] ss:$16 sps:$4 sm:$0xff]  }
 0x258   : > { %4330 = vmatprep.subr.bf16.mxu0 %v7800_v36  ;;  %v3085_v13 = vpop.f32.mrf.mxu0  ;;  %v3128_v14 = vpop.f32.mrf.mxu1  ;;  %v7927_v10 = vld [vmem:[#allocation12 + $0x68] ss:$16 sps:$4 sm:$0xff]  }
 0x259   : > { %v3129_v31 = vadd.f32 %v3128_v14, %v3085_v13  ;;  %v7930_v13 = vld [vmem:[#allocation13 + $0x248] ss:$16 sps:$4 sm:$0xff]  }
 0x25a   : > { %v7933_v14 = vld [vmem:[#allocation12 + $0x48] ss:$16 sps:$4 sm:$0xff]  }
 0x25b   : > { %4331 = vmatpush2.bf16.msra.mxu0 %v7798_v39  ;;  %v7899_v39 = vld [vmem:[#allocation12 + $0x104] ss:$16 sps:$4 sm:$0xff]  }
 0x25c   : > { %4332 = vmatprep.subr.bf16.mxu0 %v7803_v42 }
 0x25f   : > { %4333 = vmatpush2.bf16.msra.mxu0 %v7801_v43  ;;  %v3299_v43 = vrot.slane %v8877_v47, %v8850_v53 }
 0x260   : > { %5028 = vmatprep.subr.bf16.mxu0 %v7809_v44 }
 0x262   : > { %4335 = vmatmul.mubr.bf16.vlgmr.msra.gmra.mxu0 %v8883_v6  ;;  %v7867_v6 = vld [vmem:[#allocation12 + $0x1a0] ss:$16 sps:$4 sm:$0xff]  }
 0x263   : > { %5029 = vmatpush1.bf16.msra.mxu0 %v7807_v45  ;;  %5060 = vmatprep.mubr.bf16.mxu0 %v8868_v22 }
 0x264   : > { %5030 = vmatprep.subr.bf16.mxu0 %v7815_v46 }
 0x267   : > { %5031 = vmatpush1.bf16.msra.mxu0 %v7813_v48  ;;  %v3295_v48 = vrot.slane %v8877_v47, %v8845_v49  ;;  %v7911_v47 = vld [vmem:[#allocation12 + $0xcc] ss:$16 sps:$4 sm:$0xff]  }
 0x268   : > { %5032 = vmatprep.subr.bf16.mxu0 %v7821_v50 }
 0x26b   : > { %5033 = vmatpush1.bf16.msra.mxu0 %v7819_v51 }
 0x26c   : > { %5034 = vmatprep.subr.bf16.mxu0 %v7827_v52  ;;  %v7897_v52 = vld [vmem:[#allocation12 + $0x100] ss:$16 sps:$4 sm:$0xff]  }
 0x26f   : > { %5035 = vmatpush1.bf16.msra.mxu0 %v7825_v54 }
 0x270   : > { %5036 = vmatprep.subr.bf16.mxu0 %v7833_v55  ;;  %v7905_v55 = vld [vmem:[#allocation12 + $0xec] ss:$16 sps:$4 sm:$0xff]  }
 0x273   : > { %5037 = vmatpush1.bf16.msra.mxu0 %v7831_v57 }
 0x274   : > { %5038 = vmatprep.subr.bf16.mxu0 %v7839_v41 }
 0x277   : > { %5039 = vmatpush1.bf16.msra.mxu0 %v7837_v58 }
 0x278   : > { %5040 = vmatprep.subr.bf16.mxu0 %v7845_v59 }
 0x27b   : > { %5041 = vmatpush1.bf16.msra.mxu0 %v7843_v60  ;;  %v7900_v60 = vld [vmem:[#allocation13 + $0x2e8] ss:$16 sps:$4 sm:$0xff]  }
 0x27c   : > { %5042 = vmatprep.subr.bf16.mxu0 %v7851_v61  ;;  %v7903_v61 = vld [vmem:[#allocation12 + $0xe8] ss:$16 sps:$4 sm:$0xff]  }
 0x27f   : > { %5043 = vmatpush1.bf16.msra.mxu0 %v7849_v62 }
 0x280   : > { %5044 = vmatprep.subr.bf16.mxu0 %v7857_v63  ;;  %v7908_v63 = vld [vmem:[#allocation13 + $0x2cc] ss:$16 sps:$4 sm:$0xff]  }
 0x283   : > { %5045 = vmatpush2.bf16.msra.mxu0 %v7855_v0  ;;  %v7906_v0 = vld [vmem:[#allocation13 + $0x2c8] ss:$16 sps:$4 sm:$0xff]  }
 0x284   : > { %5046 = vmatprep.subr.bf16.mxu0 %v7863_v1  ;;  %v7909_v1 = vld [vmem:[#allocation12 + $0xc8] ss:$16 sps:$4 sm:$0xff]  }
 0x287   : > { %5047 = vmatpush2.bf16.msra.mxu0 %v7861_v2  ;;  %v7914_v2 = vld [vmem:[#allocation13 + $0x2ac] ss:$16 sps:$4 sm:$0xff]  }
 0x288   : > { %5048 = vmatprep.subr.bf16.mxu0 %v7869_v5  ;;  %v7915_v5 = vld [vmem:[#allocation12 + $0xa8] ss:$16 sps:$4 sm:$0xff]  }
 0x28b   : > { %5049 = vmatpush2.bf16.msra.mxu0 %v7867_v6  ;;  %v7920_v6 = vld [vmem:[#allocation13 + $0x28c] ss:$16 sps:$4 sm:$0xff]  }
 0x28c   : > { %5050 = vmatprep.subr.bf16.mxu0 %v7875_v20  ;;  %v7921_v20 = vld [vmem:[#allocation12 + $0x88] ss:$16 sps:$4 sm:$0xff]  }
 0x28f   : > { %5051 = vmatpush2.bf16.msra.mxu0 %v7873_v8  ;;  %v7929_v8 = vld [vmem:[#allocation12 + $0x6c] ss:$16 sps:$4 sm:$0xff]  }
 0x290   : > { %5052 = vmatprep.subr.bf16.mxu0 %v7881_v11  ;;  %v7932_v11 = vld [vmem:[#allocation13 + $0x24c] ss:$16 sps:$4 sm:$0xff]  }
 0x292   : > { %v3165_v32 = vpop.f32.mrf.mxu0  ;;  %v3208_v34 = vpop.f32.mrf.mxu1 }
 0x293   : > { %5053 = vmatpush2.bf16.msra.mxu0 %v7879_v12  ;;  %v3166_v30 = vadd.f32 %v3165_v32, %v3123_v24  ;;  %v7935_v12 = vld [vmem:[#allocation12 + $0x4c] ss:$16 sps:$4 sm:$0xff]  }
 0x294   : > { %v3167_v25 = vpop.f32.mrf.mxu0  ;;  %v3210_v26 = vpop.f32.mrf.mxu1  ;;  %5054 = vmatprep.subr.bf16.mxu0 %v7887_v15  ;;  %v7938_v15 = vld [vmem:[#allocation13 + $0x22c] ss:$16 sps:$4 sm:$0xff]  }
 0x295   : > { %v3168_v29 = vadd.f32 %v3167_v25, %v3125_v18  ;;  %v3209_v46 = vadd.f32 %v3208_v34, %v3166_v30  ;;  %v7941_v32 = vld [vmem:[#allocation12 + $0x2c] ss:$16 sps:$4 sm:$0xff]   ;;  %v7936_v34 = vld [vmem:[#allocation13 + $0x228] ss:$16 sps:$4 sm:$0xff]  }
 0x296   : > { %v3169_v37 = vpop.f32.mrf.mxu0  ;;  %v3212_v38 = vpop.f32.mrf.mxu1  ;;  %v7939_v18 = vld [vmem:[#allocation12 + $0x28] ss:$16 sps:$4 sm:$0xff]   ;;  %v7947_v24 = vld [vmem:[#allocation12 + $0xc] ss:$16 sps:$4 sm:$0xff]  }
 0x297   : > { %v3170_v33 = vadd.f32 %v3169_v37, %v3127_v28  ;;  %5055 = vmatpush2.bf16.msra.mxu0 %v7885_v21  ;;  %v3211_v42 = vadd.f32 %v3210_v26, %v3168_v29  ;;  %v3306_v58 = vadd.f32 %v3295_v48, %v3209_v46  ;;  %v7944_v21 = vld [vmem:[#allocation13 + $0x20c] ss:$16 sps:$4 sm:$0xff]   ;;  %v7942_v25 = vld [vmem:[#allocation13 + $0x208] ss:$16 sps:$4 sm:$0xff]  }
 0x298   : > { %v3171_v36 = vpop.f32.mrf.mxu0  ;;  %5056 = vmatprep.subr.bf16.mxu0 %v7893_v27  ;;  %v3214_v50 = vpop.f32.mrf.mxu1  ;;  %v7945_v26 = vld [vmem:[#allocation12 + $0x8] ss:$16 sps:$4 sm:$0xff]   ;;  %v7950_v27 = vld [vmem:[#allocation13 + $0x3ec] ss:$16 sps:$4 sm:$0xff]  }
 0x299   : > { %v3213_v44 = vadd.f32 %v3212_v38, %v3170_v33  ;;  %v3172_v45 = vadd.f32 %v3171_v36, %v3129_v31  ;;  %v3307_v57 = vadd.f32 %v3299_v43, %v3211_v42  ;;  %v7953_v28 = vld [vmem:[#allocation12 + $0x1ec] ss:$16 sps:$4 sm:$0xff]   ;;  %v7948_v29 = vld [vmem:[#allocation13 + $0x3e8] ss:$16 sps:$4 sm:$0xff]  }
 0x29a   : > { %v7951_v30 = vld [vmem:[#allocation12 + $0x1e8] ss:$16 sps:$4 sm:$0xff]   ;;  %v7956_v37 = vld [vmem:[#allocation13 + $0x3cc] ss:$16 sps:$4 sm:$0xff]  }
 0x29b   : > { %v3215_v51 = vadd.f32 %v3214_v50, %v3172_v45  ;;  %5057 = vmatpush2.bf16.msra.mxu0 %v7891_v35  ;;  %v3310_v54 = vadd.f32 %v3295_v48, %v3213_v44  ;;  %v7959_v38 = vld [vmem:[#allocation12 + $0x1cc] ss:$16 sps:$4 sm:$0xff]   ;;  %v7954_v31 = vld [vmem:[#allocation13 + $0x3c8] ss:$16 sps:$4 sm:$0xff]  }
 0x29c   : > { %5058 = vmatprep.subr.bf16.mxu0 %v7899_v39  ;;  %v7957_v33 = vld [vmem:[#allocation12 + $0x1c8] ss:$16 sps:$4 sm:$0xff]   ;;  %v7962_v35 = vld [vmem:[#allocation13 + $0x3ac] ss:$16 sps:$4 sm:$0xff]  }
 0x29d   : > { %v3311_v41 = vadd.f32 %v3299_v43, %v3215_v51  ;;  %v8892_v62 = vpack.c.bf16 %v3310_v54, %v3306_v58  ;;  %v7965_v36 = vld [vmem:[#allocation12 + $0x1ac] ss:$16 sps:$4 sm:$0xff]   ;;  %v7960_v39 = vld [vmem:[#allocation13 + $0x3a8] ss:$16 sps:$4 sm:$0xff]  }
 0x29e   : > { %v7963_v42 = vld [vmem:[#allocation12 + $0x1a8] ss:$16 sps:$4 sm:$0xff]   ;;  %v7968_v43 = vld [vmem:[#allocation13 + $0x38c] ss:$16 sps:$4 sm:$0xff]  }
 0x29f   : > { %5059 = vmatpush2.bf16.msra.mxu0 %v7897_v52  ;;  %v3447_v59 = vpack.c.bf16 %v3311_v41, %v3307_v57  ;;  %v7971_v44 = vld [vmem:[#allocation12 + $0x18c] ss:$16 sps:$4 sm:$0xff]   ;;  %v7966_v45 = vld [vmem:[#allocation13 + $0x388] ss:$16 sps:$4 sm:$0xff]  }
 0x2a0   : > { %5114 = vmatprep.subr.bf16.mxu0 %v7905_v55  ;;  %v7969_v46 = vld [vmem:[#allocation12 + $0x188] ss:$16 sps:$4 sm:$0xff]   ;;  %v7974_v48 = vld [vmem:[#allocation13 + $0x36c] ss:$16 sps:$4 sm:$0xff]  }
 0x2a1   : > { %4291 = vmatprep.mubr.bf16.mxu1 %v3447_v59  ;;  %v7977_v50 = vld [vmem:[#allocation12 + $0x16c] ss:$16 sps:$4 sm:$0xff]   ;;  %v7972_v51 = vld [vmem:[#allocation13 + $0x368] ss:$16 sps:$4 sm:$0xff]  }
 0x2a2   : > { %5061 = vmatmul.mubr.bf16.vlgmr.msra.gmra.mxu0 %v8864_v16  ;;  %4292 = vmatmul.mubr.bf16.vlgmr.msra.gmra.mxu1 %v8892_v62  ;;  %v7975_v52 = vld [vmem:[#allocation12 + $0x168] ss:$16 sps:$4 sm:$0xff]   ;;  %v7980_v54 = vld [vmem:[#allocation13 + $0x34c] ss:$16 sps:$4 sm:$0xff]  }
 0x2a3   : > { %4346 = vmatpush1.bf16.msra.mxu1 %v7900_v60  ;;  %5115 = vmatpush1.bf16.msra.mxu0 %v7903_v61  ;;  %v7983_v55 = vld [vmem:[#allocation12 + $0x14c] ss:$16 sps:$4 sm:$0xff]   ;;  %v7978_v57 = vld [vmem:[#allocation13 + $0x348] ss:$16 sps:$4 sm:$0xff]  }
 0x2a4   : > { %5146 = vmatprep.mubr.bf16.mxu0 %v8868_v22  ;;  %4377 = vmatprep.mubr.bf16.mxu1 %v3447_v59  ;;  %v7926_v22 = vld [vmem:[#allocation13 + $0x26c] ss:$16 sps:$4 sm:$0xff]   ;;  %v7981_v41 = vld [vmem:[#allocation12 + $0x148] ss:$16 sps:$4 sm:$0xff]  }
 0x2a5   : > { %4347 = vmatprep.subr.bf16.mxu1 %v7908_v63  ;;  %5116 = vmatprep.subr.bf16.mxu0 %v7911_v47  ;;  %v7986_v58 = vld [vmem:[#allocation13 + $0x32c] ss:$16 sps:$4 sm:$0xff]   ;;  %v7984_v60 = vld [vmem:[#allocation13 + $0x328] ss:$16 sps:$4 sm:$0xff]  }
 0x2a6   : > { %v7989_v59 = vld [vmem:[#allocation12 + $0x12c] ss:$16 sps:$4 sm:$0xff]   ;;  %v7987_v61 = vld [vmem:[#allocation12 + $0x128] ss:$16 sps:$4 sm:$0xff]  }
 0x2a7   : > { %4348 = vmatpush1.bf16.msra.mxu1 %v7906_v0  ;;  %5117 = vmatpush1.bf16.msra.mxu0 %v7909_v1  ;;  %v7992_v63 = vld [vmem:[#allocation13 + $0x30c] ss:$16 sps:$4 sm:$0xff]   ;;  %v7990_v0 = vld [vmem:[#allocation13 + $0x308] ss:$16 sps:$4 sm:$0xff]  }
 0x2a8   : > { %4349 = vmatprep.subr.bf16.mxu1 %v7914_v2  ;;  %5118 = vmatprep.subr.bf16.mxu0 %v7917_v3  ;;  %v7995_v47 = vld [vmem:[#allocation12 + $0x10c] ss:$16 sps:$4 sm:$0xff]   ;;  %v7993_v1 = vld [vmem:[#allocation12 + $0x108] ss:$16 sps:$4 sm:$0xff]   ;;  %v7998_v2 = vld [vmem:[#allocation12 + $0x2e4] ss:$16 sps:$4 sm:$0xff]  }
 0x2a9   : > { %v7996_v3 = vld [vmem:[#allocation12 + $0x2e0] ss:$16 sps:$4 sm:$0xff]  }
 0x2ab   : > { %4350 = vmatpush1.bf16.msra.mxu1 %v7912_v4  ;;  %5119 = vmatpush1.bf16.msra.mxu0 %v7915_v5  ;;  %v8001_v4 = vld [vmem:[#allocation12 + $0x2c4] ss:$16 sps:$4 sm:$0xff]   ;;  %v7999_v5 = vld [vmem:[#allocation12 + $0x2c0] ss:$16 sps:$4 sm:$0xff]  }
 0x2ac   : > { %4351 = vmatprep.subr.bf16.mxu1 %v7920_v6  ;;  %5120 = vmatprep.subr.bf16.mxu0 %v7923_v7  ;;  %v8004_v6 = vld [vmem:[#allocation12 + $0x2a4] ss:$16 sps:$4 sm:$0xff]   ;;  %v8002_v7 = vld [vmem:[#allocation12 + $0x2a0] ss:$16 sps:$4 sm:$0xff]  }
 0x2af   : > { %4352 = vmatpush1.bf16.msra.mxu1 %v7918_v19  ;;  %5121 = vmatpush1.bf16.msra.mxu0 %v7921_v20  ;;  %v8007_v19 = vld [vmem:[#allocation12 + $0x284] ss:$16 sps:$4 sm:$0xff]   ;;  %v8005_v20 = vld [vmem:[#allocation12 + $0x280] ss:$16 sps:$4 sm:$0xff]  }
 0x2b0   : > { %4353 = vmatprep.subr.bf16.mxu1 %v7926_v22  ;;  %5122 = vmatprep.subr.bf16.mxu0 %v7929_v8  ;;  %v8010_v22 = vld [vmem:[#allocation12 + $0x264] ss:$16 sps:$4 sm:$0xff]   ;;  %v8008_v8 = vld [vmem:[#allocation12 + $0x260] ss:$16 sps:$4 sm:$0xff]  }
 0x2b3   : > { %4354 = vmatpush1.bf16.msra.mxu1 %v7924_v9  ;;  %5123 = vmatpush1.bf16.msra.mxu0 %v7927_v10  ;;  %v8016_v9 = vld [vmem:[#allocation12 + $0x224] ss:$16 sps:$4 sm:$0xff]   ;;  %v8014_v10 = vld [vmem:[#allocation12 + $0x220] ss:$16 sps:$4 sm:$0xff]  }
 0x2b4   : > { %4355 = vmatprep.subr.bf16.mxu1 %v7932_v11  ;;  %5124 = vmatprep.subr.bf16.mxu0 %v7935_v12  ;;  %v8019_v11 = vld [vmem:[#allocation12 + $0x204] ss:$16 sps:$4 sm:$0xff]   ;;  %v8017_v12 = vld [vmem:[#allocation12 + $0x200] ss:$16 sps:$4 sm:$0xff]  }
 0x2b7   : > { %4356 = vmatpush1.bf16.msra.mxu1 %v7930_v13  ;;  %5125 = vmatpush1.bf16.msra.mxu0 %v7933_v14  ;;  %v8022_v13 = vld [vmem:[#allocation12 + $0x3e4] ss:$16 sps:$4 sm:$0xff]   ;;  %v8020_v14 = vld [vmem:[#allocation12 + $0x3e0] ss:$16 sps:$4 sm:$0xff]  }
 0x2b8   : > { %4357 = vmatprep.subr.bf16.mxu1 %v7938_v15  ;;  %5126 = vmatprep.subr.bf16.mxu0 %v7941_v32  ;;  %v8025_v15 = vld [vmem:[#allocation12 + $0x3c4] ss:$16 sps:$4 sm:$0xff]   ;;  %v8023_v32 = vld [vmem:[#allocation12 + $0x3c0] ss:$16 sps:$4 sm:$0xff]  }
 0x2bb   : > { %4358 = vmatpush1.bf16.msra.mxu1 %v7936_v34  ;;  %5127 = vmatpush1.bf16.msra.mxu0 %v7939_v18  ;;  %v8028_v34 = vld [vmem:[#allocation12 + $0x3a4] ss:$16 sps:$4 sm:$0xff]   ;;  %v8026_v18 = vld [vmem:[#allocation12 + $0x3a0] ss:$16 sps:$4 sm:$0xff]  }
 0x2bc   : > { %4359 = vmatprep.subr.bf16.mxu1 %v7944_v21  ;;  %5128 = vmatprep.subr.bf16.mxu0 %v7947_v24  ;;  %v8031_v21 = vld [vmem:[#allocation12 + $0x384] ss:$16 sps:$4 sm:$0xff]   ;;  %v8029_v24 = vld [vmem:[#allocation12 + $0x380] ss:$16 sps:$4 sm:$0xff]  }
 0x2bf   : > { %4360 = vmatpush1.bf16.msra.mxu1 %v7942_v25  ;;  %5129 = vmatpush1.bf16.msra.mxu0 %v7945_v26  ;;  %v8034_v25 = vld [vmem:[#allocation12 + $0x364] ss:$16 sps:$4 sm:$0xff]   ;;  %v8032_v26 = vld [vmem:[#allocation12 + $0x360] ss:$16 sps:$4 sm:$0xff]  }
 0x2c0   : > { %4361 = vmatprep.subr.bf16.mxu1 %v7950_v27  ;;  %5130 = vmatprep.subr.bf16.mxu0 %v7953_v28  ;;  %v8037_v27 = vld [vmem:[#allocation12 + $0x344] ss:$16 sps:$4 sm:$0xff]   ;;  %v8035_v28 = vld [vmem:[#allocation12 + $0x340] ss:$16 sps:$4 sm:$0xff]  }
 0x2c3   : > { %4362 = vmatpush2.bf16.msra.mxu1 %v7948_v29  ;;  %5131 = vmatpush2.bf16.msra.mxu0 %v7951_v30  ;;  %v8040_v29 = vld [vmem:[#allocation12 + $0x324] ss:$16 sps:$4 sm:$0xff]   ;;  %v8038_v30 = vld [vmem:[#allocation12 + $0x320] ss:$16 sps:$4 sm:$0xff]  }
 0x2c4   : > { %4363 = vmatprep.subr.bf16.mxu1 %v7956_v37  ;;  %5132 = vmatprep.subr.bf16.mxu0 %v7959_v38  ;;  %v8043_v37 = vld [vmem:[#allocation12 + $0x304] ss:$16 sps:$4 sm:$0xff]   ;;  %v8041_v38 = vld [vmem:[#allocation12 + $0x300] ss:$16 sps:$4 sm:$0xff]  }
 0x2c7   : > { %4364 = vmatpush2.bf16.msra.mxu1 %v7954_v31  ;;  %5133 = vmatpush2.bf16.msra.mxu0 %v7957_v33  ;;  %v8046_v31 = vld [vmem:[#allocation12 + $0x2ec] ss:$16 sps:$4 sm:$0xff]   ;;  %v8044_v33 = vld [vmem:[#allocation12 + $0x2e8] ss:$16 sps:$4 sm:$0xff]  }
 0x2c8   : > { %4365 = vmatprep.subr.bf16.mxu1 %v7962_v35  ;;  %5134 = vmatprep.subr.bf16.mxu0 %v7965_v36  ;;  %v8049_v35 = vld [vmem:[#allocation12 + $0x2cc] ss:$16 sps:$4 sm:$0xff]   ;;  %v8047_v36 = vld [vmem:[#allocation12 + $0x2c8] ss:$16 sps:$4 sm:$0xff]  }
 0x2cb   : > { %4366 = vmatpush2.bf16.msra.mxu1 %v7960_v39  ;;  %5135 = vmatpush2.bf16.msra.mxu0 %v7963_v42  ;;  %v8052_v39 = vld [vmem:[#allocation12 + $0x2ac] ss:$16 sps:$4 sm:$0xff]   ;;  %v8050_v42 = vld [vmem:[#allocation12 + $0x2a8] ss:$16 sps:$4 sm:$0xff]  }
 0x2cc   : > { %4367 = vmatprep.subr.bf16.mxu1 %v7968_v43  ;;  %5136 = vmatprep.subr.bf16.mxu0 %v7971_v44  ;;  %v8055_v43 = vld [vmem:[#allocation12 + $0x28c] ss:$16 sps:$4 sm:$0xff]   ;;  %v8053_v44 = vld [vmem:[#allocation12 + $0x288] ss:$16 sps:$4 sm:$0xff]  }
 0x2cf   : > { %4368 = vmatpush2.bf16.msra.mxu1 %v7966_v45  ;;  %5137 = vmatpush2.bf16.msra.mxu0 %v7969_v46  ;;  %v8092_v45 = vld [vmem:[#allocation15 + $0x70] ss:$8 sps:$4 sm:$0xff]   ;;  %v8094_v46 = vld [vmem:[#allocation15 + $0x74] ss:$8 sps:$4 sm:$0xff]  }
 0x2d0   : > { %4369 = vmatprep.subr.bf16.mxu1 %v7974_v48  ;;  %5138 = vmatprep.subr.bf16.mxu0 %v7977_v50  ;;  %v8058_v48 = vld [vmem:[#allocation12 + $0x26c] ss:$16 sps:$4 sm:$0xff]  }
 0x2d1   : > { %v8097_v50 = vld [vmem:[#allocation15 + $0x64] ss:$8 sps:$4 sm:$0xff]  }
 0x2d3   : > { %4370 = vmatpush2.bf16.msra.mxu1 %v7972_v51  ;;  %5139 = vmatpush2.bf16.msra.mxu0 %v7975_v52  ;;  %v8095_v51 = vld [vmem:[#allocation15 + $0x60] ss:$8 sps:$4 sm:$0xff]  }
 0x2d4   : > { %4371 = vmatprep.subr.bf16.mxu1 %v7980_v54  ;;  %5140 = vmatprep.subr.bf16.mxu0 %v7983_v55  ;;  %v8056_v52 = vld [vmem:[#allocation12 + $0x268] ss:$16 sps:$4 sm:$0xff]   ;;  %v8061_v54 = vld [vmem:[#allocation12 + $0x24c] ss:$16 sps:$4 sm:$0xff]  }
 0x2d5   : > { %v8098_v55 = vld [vmem:[#allocation15 + $0x50] ss:$8 sps:$4 sm:$0xff]  }
 0x2d7   : > { %4372 = vmatpush2.bf16.msra.mxu1 %v7978_v57  ;;  %5141 = vmatpush2.bf16.msra.mxu0 %v7981_v41  ;;  %v8059_v57 = vld [vmem:[#allocation12 + $0x248] ss:$16 sps:$4 sm:$0xff]   ;;  %v8103_v41 = vld [vmem:[#allocation15 + $0x44] ss:$8 sps:$4 sm:$0xff]  }
 0x2d8   : > { %4373 = vmatprep.subr.bf16.mxu1 %v7986_v58  ;;  %5142 = vmatprep.subr.bf16.mxu0 %v7989_v59  ;;  %v8064_v58 = vld [vmem:[#allocation12 + $0x22c] ss:$16 sps:$4 sm:$0xff]   ;;  %v8101_v59 = vld [vmem:[#allocation15 + $0x40] ss:$8 sps:$4 sm:$0xff]  }
 0x2db   : > { %4374 = vmatpush2.bf16.msra.mxu1 %v7984_v60  ;;  %5143 = vmatpush2.bf16.msra.mxu0 %v7987_v61  ;;  %v8062_v60 = vld [vmem:[#allocation12 + $0x228] ss:$16 sps:$4 sm:$0xff]   ;;  %v8106_v61 = vld [vmem:[#allocation15 + $0x34] ss:$8 sps:$4 sm:$0xff]  }
 0x2dc   : > { %4375 = vmatprep.subr.bf16.mxu1 %v7992_v63  ;;  %5144 = vmatprep.subr.bf16.mxu0 %v7995_v47  ;;  %v8067_v63 = vld [vmem:[#allocation12 + $0x20c] ss:$16 sps:$4 sm:$0xff]   ;;  %v8104_v47 = vld [vmem:[#allocation15 + $0x30] ss:$8 sps:$4 sm:$0xff]  }
 0x2df   : > { %4376 = vmatpush2.bf16.msra.mxu1 %v7990_v0  ;;  %5145 = vmatpush2.bf16.msra.mxu0 %v7993_v1  ;;  %v8065_v0 = vld [vmem:[#allocation12 + $0x208] ss:$16 sps:$4 sm:$0xff]   ;;  %v8109_v1 = vld [vmem:[#allocation15 + $0x24] ss:$8 sps:$4 sm:$0xff]  }
 0x2e0   : > { %5071 = vmatprep.subr.bf16.mxu1 %v7998_v2  ;;  %5638 = vmatprep.subr.bf16.mxu0 %v8094_v46  ;;  %v8070_v2 = vld [vmem:[#allocation12 + $0x3ec] ss:$16 sps:$4 sm:$0xff]   ;;  %v8146_v46 = vld [vmem:[#allocation15 + $0x150] ss:$8 sps:$4 sm:$0xff]  }
 0x2e2   : > { %4378 = vmatmul.mubr.bf16.vlgmr.msra.gmra.mxu1 %v8892_v62  ;;  %5147 = vmatmul.mubr.bf16.vlgmr.msra.gmra.mxu0 %v8864_v16  ;;  %v8013_v62 = vld [vmem:[#allocation12 + $0x244] ss:$16 sps:$4 sm:$0xff]   ;;  %v8011_v16 = vld [vmem:[#allocation12 + $0x240] ss:$16 sps:$4 sm:$0xff]  }
 0x2e3   : > { %5072 = vmatpush1.bf16.msra.mxu1 %v7996_v3  ;;  %5103 = vmatprep.mubr.bf16.mxu1 %v8870_v23  ;;  %v8107_v3 = vld [vmem:[#allocation15 + $0x20] ss:$8 sps:$4 sm:$0xff]  }
 0x2e4   : > { %5073 = vmatprep.subr.bf16.mxu1 %v8001_v4  ;;  %5639 = vmatpush1.bf16.msra.mxu0 %v8092_v45  ;;  %v8068_v4 = vld [vmem:[#allocation12 + $0x3e8] ss:$16 sps:$4 sm:$0xff]   ;;  %v8148_v45 = vld [vmem:[#allocation15 + $0x154] ss:$8 sps:$4 sm:$0xff]  }
 0x2e5   : > { %5640 = vmatprep.subr.bf16.mxu0 %v8097_v50  ;;  %v8149_v50 = vld [vmem:[#allocation15 + $0x140] ss:$8 sps:$4 sm:$0xff]  }
 0x2e7   : > { %5074 = vmatpush1.bf16.msra.mxu1 %v7999_v5  ;;  %v8112_v5 = vld [vmem:[#allocation15 + $0x14] ss:$8 sps:$4 sm:$0xff]  }
 0x2e8   : > { %5075 = vmatprep.subr.bf16.mxu1 %v8004_v6  ;;  %5641 = vmatpush1.bf16.msra.mxu0 %v8095_v51  ;;  %v8073_v6 = vld [vmem:[#allocation12 + $0x3cc] ss:$16 sps:$4 sm:$0xff]  }
 0x2e9   : > { %v8154_v51 = vld [vmem:[#allocation15 + $0x134] ss:$8 sps:$4 sm:$0xff]  }
 0x2eb   : > { %5076 = vmatpush1.bf16.msra.mxu1 %v8002_v7  ;;  %v8110_v7 = vld [vmem:[#allocation15 + $0x10] ss:$8 sps:$4 sm:$0xff]  }
 0x2ec   : > { %5077 = vmatprep.subr.bf16.mxu1 %v8007_v19  ;;  %v8071_v19 = vld [vmem:[#allocation12 + $0x3c8] ss:$16 sps:$4 sm:$0xff]  }
 0x2ef   : > { %5078 = vmatpush1.bf16.msra.mxu1 %v8005_v20  ;;  %v8115_v20 = vld [vmem:[#allocation15 + $0x4] ss:$8 sps:$4 sm:$0xff]  }
 0x2f0   : > { %5079 = vmatprep.subr.bf16.mxu1 %v8010_v22  ;;  %v8076_v22 = vld [vmem:[#allocation12 + $0x3ac] ss:$16 sps:$4 sm:$0xff]  }
 0x2f3   : > { %5080 = vmatpush1.bf16.msra.mxu1 %v8008_v8  ;;  %v8113_v8 = vld [vmem:[#allocation15] ss:$8 sps:$4 sm:$0xff]  }
 0x2f4   : > { %5081 = vmatprep.subr.bf16.mxu1 %v8013_v62  ;;  %v8074_v62 = vld [vmem:[#allocation12 + $0x3a8] ss:$16 sps:$4 sm:$0xff]  }
 0x2f7   : > { %5082 = vmatpush1.bf16.msra.mxu1 %v8011_v16  ;;  %v8118_v16 = vld [vmem:[#allocation15 + $0xf4] ss:$8 sps:$4 sm:$0xff]  }
 0x2f8   : > { %5083 = vmatprep.subr.bf16.mxu1 %v8016_v9  ;;  %v8079_v9 = vld [vmem:[#allocation12 + $0x38c] ss:$16 sps:$4 sm:$0xff]  }
 0x2fb   : > { %5084 = vmatpush1.bf16.msra.mxu1 %v8014_v10  ;;  %v8116_v10 = vld [vmem:[#allocation15 + $0xf0] ss:$8 sps:$4 sm:$0xff]  }
 0x2fc   : > { %5085 = vmatprep.subr.bf16.mxu1 %v8019_v11  ;;  %v8077_v11 = vld [vmem:[#allocation12 + $0x388] ss:$16 sps:$4 sm:$0xff]  }
 0x2ff   : > { %5086 = vmatpush1.bf16.msra.mxu1 %v8017_v12  ;;  %v8121_v12 = vld [vmem:[#allocation15 + $0xe4] ss:$8 sps:$4 sm:$0xff]  }
 0x300   : > { %5087 = vmatprep.subr.bf16.mxu1 %v8022_v13  ;;  %v8082_v13 = vld [vmem:[#allocation12 + $0x36c] ss:$16 sps:$4 sm:$0xff]  }
 0x303   : > { %5088 = vmatpush2.bf16.msra.mxu1 %v8020_v14  ;;  %v8119_v14 = vld [vmem:[#allocation15 + $0xe0] ss:$8 sps:$4 sm:$0xff]  }
 0x304   : > { %5089 = vmatprep.subr.bf16.mxu1 %v8025_v15  ;;  %v8080_v15 = vld [vmem:[#allocation12 + $0x368] ss:$16 sps:$4 sm:$0xff]  }
 0x307   : > { %5090 = vmatpush2.bf16.msra.mxu1 %v8023_v32  ;;  %v8124_v32 = vld [vmem:[#allocation15 + $0xd4] ss:$8 sps:$4 sm:$0xff]  }
 0x308   : > { %5091 = vmatprep.subr.bf16.mxu1 %v8028_v34  ;;  %v8085_v34 = vld [vmem:[#allocation12 + $0x34c] ss:$16 sps:$4 sm:$0xff]  }
 0x30b   : > { %5092 = vmatpush2.bf16.msra.mxu1 %v8026_v18  ;;  %v8122_v18 = vld [vmem:[#allocation15 + $0xd0] ss:$8 sps:$4 sm:$0xff]  }
 0x30c   : > { %5093 = vmatprep.subr.bf16.mxu1 %v8031_v21  ;;  %v8083_v21 = vld [vmem:[#allocation12 + $0x348] ss:$16 sps:$4 sm:$0xff]  }
 0x30f   : > { %5094 = vmatpush2.bf16.msra.mxu1 %v8029_v24  ;;  %v8127_v24 = vld [vmem:[#allocation15 + $0xc4] ss:$8 sps:$4 sm:$0xff]  }
 0x310   : > { %5095 = vmatprep.subr.bf16.mxu1 %v8034_v25  ;;  %v8088_v25 = vld [vmem:[#allocation12 + $0x32c] ss:$16 sps:$4 sm:$0xff]  }
 0x313   : > { %5096 = vmatpush2.bf16.msra.mxu1 %v8032_v26  ;;  %v8125_v26 = vld [vmem:[#allocation15 + $0xc0] ss:$8 sps:$4 sm:$0xff]  }
 0x314   : > { %5097 = vmatprep.subr.bf16.mxu1 %v8037_v27  ;;  %v8086_v27 = vld [vmem:[#allocation12 + $0x328] ss:$16 sps:$4 sm:$0xff]  }
 0x317   : > { %5098 = vmatpush2.bf16.msra.mxu1 %v8035_v28  ;;  %v8091_v28 = vld [vmem:[#allocation12 + $0x30c] ss:$16 sps:$4 sm:$0xff]  }
 0x318   : > { %5099 = vmatprep.subr.bf16.mxu1 %v8040_v29  ;;  %v8089_v29 = vld [vmem:[#allocation12 + $0x308] ss:$16 sps:$4 sm:$0xff]  }
 0x31b   : > { %5100 = vmatpush2.bf16.msra.mxu1 %v8038_v30  ;;  %v8130_v30 = vld [vmem:[#allocation15 + $0xb4] ss:$8 sps:$4 sm:$0xff]  }
 0x31c   : > { %5101 = vmatprep.subr.bf16.mxu1 %v8043_v37  ;;  %v8128_v37 = vld [vmem:[#allocation15 + $0xb0] ss:$8 sps:$4 sm:$0xff]  }
 0x31f   : > { %5102 = vmatpush2.bf16.msra.mxu1 %v8041_v38  ;;  %v8133_v38 = vld [vmem:[#allocation15 + $0xa4] ss:$8 sps:$4 sm:$0xff]  }
 0x320   : > { %5157 = vmatprep.subr.bf16.mxu1 %v8046_v31  ;;  %v8131_v31 = vld [vmem:[#allocation15 + $0xa0] ss:$8 sps:$4 sm:$0xff]  }
 0x322   : > { %5104 = vmatmul.mubr.bf16.vlgmr.msra.gmra.mxu1 %v8866_v17 }
 0x323   : > { %5158 = vmatpush1.bf16.msra.mxu1 %v8044_v33  ;;  %5189 = vmatprep.mubr.bf16.mxu1 %v8870_v23  ;;  %v8100_v23 = vld [vmem:[#allocation15 + $0x54] ss:$8 sps:$4 sm:$0xff]  }
 0x324   : > { %5159 = vmatprep.subr.bf16.mxu1 %v8049_v35  ;;  %5642 = vmatprep.subr.bf16.mxu0 %v8100_v23  ;;  %v8136_v33 = vld [vmem:[#allocation15 + $0x94] ss:$8 sps:$4 sm:$0xff]   ;;  %v8134_v35 = vld [vmem:[#allocation15 + $0x90] ss:$8 sps:$4 sm:$0xff]   ;;  %v8157_v23 = vld [vmem:[#allocation15 + $0x124] ss:$8 sps:$4 sm:$0xff]  }
 0x325   : > { %5643 = vmatpush1.bf16.msra.mxu0 %v8098_v55  ;;  %v8160_v55 = vld [vmem:[#allocation15 + $0x114] ss:$8 sps:$4 sm:$0xff]  }
 0x326   : > { %5644 = vmatprep.subr.bf16.mxu0 %v8103_v41  ;;  %v8163_v41 = vld [vmem:[#allocation15 + $0x104] ss:$8 sps:$4 sm:$0xff]  }
 0x327   : > { %5160 = vmatpush1.bf16.msra.mxu1 %v8047_v36  ;;  %v8137_v36 = vld [vmem:[#allocation15 + $0x80] ss:$8 sps:$4 sm:$0xff]  }
 0x328   : > { %5161 = vmatprep.subr.bf16.mxu1 %v8052_v39  ;;  %v8139_v39 = vld [vmem:[#allocation15 + $0x84] ss:$8 sps:$4 sm:$0xff]  }
 0x329   : > { %5645 = vmatpush1.bf16.msra.mxu0 %v8101_v59  ;;  %v8166_v59 = vld [vmem:[#allocation15 + $0x1f4] ss:$8 sps:$4 sm:$0xff]  }
 0x32a   : > { %5646 = vmatprep.subr.bf16.mxu0 %v8106_v61  ;;  %v8169_v61 = vld [vmem:[#allocation15 + $0x1e4] ss:$8 sps:$4 sm:$0xff]  }
 0x32b   : > { %5162 = vmatpush1.bf16.msra.mxu1 %v8050_v42  ;;  %v8142_v42 = vld [vmem:[#allocation15 + $0x174] ss:$8 sps:$4 sm:$0xff]  }
 0x32c   : > { %5163 = vmatprep.subr.bf16.mxu1 %v8055_v43  ;;  %v8140_v43 = vld [vmem:[#allocation15 + $0x170] ss:$8 sps:$4 sm:$0xff]  }
 0x32d   : > { %5647 = vmatpush1.bf16.msra.mxu0 %v8104_v47  ;;  %v8172_v47 = vld [vmem:[#allocation15 + $0x1d4] ss:$8 sps:$4 sm:$0xff]  }
 0x32e   : > { %5648 = vmatprep.subr.bf16.mxu0 %v8109_v1  ;;  %v8175_v1 = vld [vmem:[#allocation15 + $0x1c4] ss:$8 sps:$4 sm:$0xff]  }
 0x32f   : > { %5164 = vmatpush1.bf16.msra.mxu1 %v8053_v44  ;;  %v8145_v44 = vld [vmem:[#allocation15 + $0x164] ss:$8 sps:$4 sm:$0xff]  }
 0x330   : > { %5165 = vmatprep.subr.bf16.mxu1 %v8058_v48  ;;  %v8151_v48 = vld [vmem:[#allocation15 + $0x144] ss:$8 sps:$4 sm:$0xff]  }
 0x331   : > { %5649 = vmatpush1.bf16.msra.mxu0 %v8107_v3  ;;  %v8178_v3 = vld [vmem:[#allocation15 + $0x1b4] ss:$8 sps:$4 sm:$0xff]  }
 0x332   : > { %5650 = vmatprep.subr.bf16.mxu0 %v8112_v5  ;;  %v8181_v5 = vld [vmem:[#allocation15 + $0x1a4] ss:$8 sps:$4 sm:$0xff]  }
 0x333   : > { %5166 = vmatpush1.bf16.msra.mxu1 %v8056_v52  ;;  %v8152_v52 = vld [vmem:[#allocation15 + $0x130] ss:$8 sps:$4 sm:$0xff]  }
 0x334   : > { %5167 = vmatprep.subr.bf16.mxu1 %v8061_v54  ;;  %v8155_v54 = vld [vmem:[#allocation15 + $0x120] ss:$8 sps:$4 sm:$0xff]  }
 0x335   : > { %5651 = vmatpush1.bf16.msra.mxu0 %v8110_v7  ;;  %v8184_v7 = vld [vmem:[#allocation15 + $0x194] ss:$8 sps:$4 sm:$0xff]  }
 0x336   : > { %5652 = vmatprep.subr.bf16.mxu0 %v8115_v20  ;;  %v8185_v20 = vld [vmem:[#allocation15 + $0x180] ss:$8 sps:$4 sm:$0xff]  }
 0x337   : > { %5168 = vmatpush1.bf16.msra.mxu1 %v8059_v57  ;;  %v8158_v57 = vld [vmem:[#allocation15 + $0x110] ss:$8 sps:$4 sm:$0xff]  }
 0x338   : > { %5169 = vmatprep.subr.bf16.mxu1 %v8064_v58  ;;  %v8161_v58 = vld [vmem:[#allocation15 + $0x100] ss:$8 sps:$4 sm:$0xff]  }
 0x339   : > { %5653 = vmatpush1.bf16.msra.mxu0 %v8113_v8  ;;  %v4250_v8 = vpop.f32.mrf.mxu0 }
 0x33a   : > { %5654 = vmatprep.subr.bf16.mxu0 %v8118_v16 }
 0x33b   : > { %5170 = vmatpush1.bf16.msra.mxu1 %v8062_v60  ;;  %v8164_v60 = vld [vmem:[#allocation15 + $0x1f0] ss:$8 sps:$4 sm:$0xff]  }
 0x33c   : > { %5171 = vmatprep.subr.bf16.mxu1 %v8067_v63  ;;  %v8167_v63 = vld [vmem:[#allocation15 + $0x1e0] ss:$8 sps:$4 sm:$0xff]  }
 0x33d   : > { %5655 = vmatpush2.bf16.msra.mxu0 %v8116_v10 }
 0x33e   : > { %5656 = vmatprep.subr.bf16.mxu0 %v8121_v12 }
 0x33f   : > { %5172 = vmatpush1.bf16.msra.mxu1 %v8065_v0  ;;  %v8170_v0 = vld [vmem:[#allocation15 + $0x1d0] ss:$8 sps:$4 sm:$0xff]  }
 0x340   : > { %5173 = vmatprep.subr.bf16.mxu1 %v8070_v2  ;;  %v8173_v2 = vld [vmem:[#allocation15 + $0x1c0] ss:$8 sps:$4 sm:$0xff]  }
 0x341   : > { %5657 = vmatpush2.bf16.msra.mxu0 %v8119_v14 }
 0x342   : > { %5658 = vmatprep.subr.bf16.mxu0 %v8124_v32 }
 0x343   : > { %5174 = vmatpush2.bf16.msra.mxu1 %v8068_v4  ;;  %v8176_v4 = vld [vmem:[#allocation15 + $0x1b0] ss:$8 sps:$4 sm:$0xff]  }
 0x344   : > { %5175 = vmatprep.subr.bf16.mxu1 %v8073_v6  ;;  %v8179_v6 = vld [vmem:[#allocation15 + $0x1a0] ss:$8 sps:$4 sm:$0xff]  }
 0x345   : > { %5659 = vmatpush2.bf16.msra.mxu0 %v8122_v18 }
 0x346   : > { %5660 = vmatprep.subr.bf16.mxu0 %v8127_v24 }
 0x347   : > { %5176 = vmatpush2.bf16.msra.mxu1 %v8071_v19  ;;  %v8182_v19 = vld [vmem:[#allocation15 + $0x190] ss:$8 sps:$4 sm:$0xff]  }
 0x348   : > { %5177 = vmatprep.subr.bf16.mxu1 %v8076_v22  ;;  %v8187_v22 = vld [vmem:[#allocation15 + $0x184] ss:$8 sps:$4 sm:$0xff]  }
 0x349   : > { %5661 = vmatpush2.bf16.msra.mxu0 %v8125_v26 }
 0x34a   : > { %5662 = vmatprep.subr.bf16.mxu0 %v8130_v30 }
 0x34b   : > { %5178 = vmatpush2.bf16.msra.mxu1 %v8074_v62  ;;  %v4252_v62 = vpop.f32.mrf.mxu0 }
 0x34c   : > { %5179 = vmatprep.subr.bf16.mxu1 %v8079_v9 }
 0x34d   : > { %5663 = vmatpush2.bf16.msra.mxu0 %v8128_v37  ;;  %v4254_v16 = vpop.f32.mrf.mxu0 }
 0x34e   : > { %5664 = vmatprep.subr.bf16.mxu0 %v8133_v38 }
 0x34f   : > { %5180 = vmatpush2.bf16.msra.mxu1 %v8077_v11  ;;  %v4256_v10 = vpop.f32.mrf.mxu0 }
 0x350   : > { %5181 = vmatprep.subr.bf16.mxu1 %v8082_v13 }
 0x351   : > { %5665 = vmatpush2.bf16.msra.mxu0 %v8131_v31  ;;  %v4336_v12 = vpop.f32.mrf.mxu0 }
 0x352   : > { %5666 = vmatprep.subr.bf16.mxu0 %v8136_v33  ;;  %v5200_v33 = vld [vmem:[%s9065_s8] sm:$0xf] }
 0x353   : > { %5182 = vmatpush2.bf16.msra.mxu1 %v8080_v15  ;;  %v4338_v14 = vpop.f32.mrf.mxu0 }
 0x354   : > { %5183 = vmatprep.subr.bf16.mxu1 %v8085_v34 }
 0x355   : > { %5667 = vmatpush2.bf16.msra.mxu0 %v8134_v35  ;;  %v4340_v32 = vpop.f32.mrf.mxu0 }
 0x356   : > { %5668 = vmatprep.subr.bf16.mxu0 %v8139_v39 }
 0x357   : > { %5184 = vmatpush2.bf16.msra.mxu1 %v8083_v21  ;;  %v4342_v18 = vpop.f32.mrf.mxu0 }
 0x358   : > { %5185 = vmatprep.subr.bf16.mxu1 %v8088_v25 }
 0x359   : > { %5669 = vmatpush2.bf16.msra.mxu0 %v8137_v36 }
 0x35b   : > { %5186 = vmatpush2.bf16.msra.mxu1 %v8086_v27 }
 0x35c   : > { %5187 = vmatprep.subr.bf16.mxu1 %v8091_v28 }
 0x35f   : > { %5188 = vmatpush2.bf16.msra.mxu1 %v8089_v29 }
 0x360   : > { %5681 = vmatprep.subr.bf16.mxu1 %v8142_v42 }
 0x362   : > { %5190 = vmatmul.mubr.bf16.vlgmr.msra.gmra.mxu1 %v8866_v17  ;;  %v8143_v17 = vld [vmem:[#allocation15 + $0x160] ss:$8 sps:$4 sm:$0xff]   ;;  %v4293_v9 = vpop.f32.mrf.mxu1  ;;  %v5062_v24 = vpop.f32.mrf.mxu0 }
 0x363   : > { %5682 = vmatpush1.bf16.msra.mxu1 %v8140_v43  ;;  %v4294_v28 = vadd.f32 %v4293_v9, %v4250_v8  ;;  %v5209_v43 = vrot.slane %v5200_v33, %v8855_v40  ;;  %v5213_v8 = vrot.slane %v5200_v33, %v8845_v49 }
 0x364   : > { %5683 = vmatprep.subr.bf16.mxu1 %v8145_v44  ;;  %v4295_v11 = vpop.f32.mrf.mxu1  ;;  %v5064_v26 = vpop.f32.mrf.mxu0 }
 0x365   : > { %v4296_v27 = vadd.f32 %v4295_v11, %v4252_v62  ;;  %v5063_v36 = vadd.f32 %v5062_v24, %v4294_v28 }
 0x366   : > { %v4297_v13 = vpop.f32.mrf.mxu1  ;;  %v5066_v37 = vpop.f32.mrf.mxu0 }
 0x367   : > { %5684 = vmatpush1.bf16.msra.mxu1 %v8143_v17  ;;  %v4298_v30 = vadd.f32 %v4297_v13, %v4254_v16  ;;  %v5065_v35 = vadd.f32 %v5064_v26, %v4296_v27 }
 0x368   : > { %5685 = vmatprep.subr.bf16.mxu1 %v8148_v45  ;;  %v4299_v15 = vpop.f32.mrf.mxu1  ;;  %v5068_v17 = vpop.f32.mrf.mxu0 }
 0x369   : > { %v4300_v31 = vadd.f32 %v4299_v15, %v4256_v10  ;;  %v5067_v44 = vadd.f32 %v5066_v37, %v4298_v30  ;;  %v5217_v10 = vrot.slane %v5200_v33, %v8850_v53  ;;  %v8188_v53 = vld [vmem:[%s9068_s11 + $0x78] sm:$0xff]   ;;  %v8190_v37 = vld [vmem:[%s9068_s11 + $0x70] sm:$0xff]  }
 0x36a   : > { %v8189_v30 = vld [vmem:[%s9068_s11 + $0x38] sm:$0xff]   ;;  %7040 = vmatprep.subr.bf16.mxu0 %v8188_v53  ;;  %v8214_v53 = vld [vmem:[%s9119_s0 + $0x8] sm:$0xff]  }
 0x36b   : > { %5686 = vmatpush1.bf16.msra.mxu1 %v8146_v46  ;;  %v5205_v46 = vrot.slane %v5200_v33, %v8852_v56  ;;  %v8193_v33 = vld [vmem:[%s9068_s11 + $0x28] sm:$0xff]  }
 0x36c   : > { %5687 = vmatprep.subr.bf16.mxu1 %v8151_v48 }
 0x36f   : > { %5688 = vmatpush1.bf16.msra.mxu1 %v8149_v50 }
 0x370   : > { %5689 = vmatprep.subr.bf16.mxu1 %v8154_v51  ;;  %v5069_v51 = vadd.f32 %v5068_v17, %v4300_v31  ;;  %v8192_v31 = vld [vmem:[%s9068_s11 + $0x68] sm:$0xff]  }
 0x371   : > { %v8200_v17 = vld [vmem:[%s9068_s11 + $0x48] sm:$0xff]  }
 0x373   : > { %5690 = vmatpush1.bf16.msra.mxu1 %v8152_v52 }
 0x374   : > { %5691 = vmatprep.subr.bf16.mxu1 %v8157_v23 }
 0x377   : > { %5692 = vmatpush1.bf16.msra.mxu1 %v8155_v54 }
 0x378   : > { %5693 = vmatprep.subr.bf16.mxu1 %v8160_v55 }
 0x37b   : > { %5694 = vmatpush1.bf16.msra.mxu1 %v8158_v57 }
 0x37c   : > { %5695 = vmatprep.subr.bf16.mxu1 %v8163_v41 }
 0x37f   : > { %5696 = vmatpush1.bf16.msra.mxu1 %v8161_v58 }
 0x380   : > { %5697 = vmatprep.subr.bf16.mxu1 %v8166_v59 }
 0x383   : > { %5698 = vmatpush2.bf16.msra.mxu1 %v8164_v60 }
 0x384   : > { %5699 = vmatprep.subr.bf16.mxu1 %v8169_v61 }
 0x387   : > { %5700 = vmatpush2.bf16.msra.mxu1 %v8167_v63 }
 0x388   : > { %5701 = vmatprep.subr.bf16.mxu1 %v8172_v47 }
 0x38b   : > { %5702 = vmatpush2.bf16.msra.mxu1 %v8170_v0 }
 0x38c   : > { %5703 = vmatprep.subr.bf16.mxu1 %v8175_v1 }
 0x38f   : > { %5704 = vmatpush2.bf16.msra.mxu1 %v8173_v2 }
 0x390   : > { %5705 = vmatprep.subr.bf16.mxu1 %v8178_v3 }
 0x393   : > { %5706 = vmatpush2.bf16.msra.mxu1 %v8176_v4 }
 0x394   : > { %5707 = vmatprep.subr.bf16.mxu1 %v8181_v5 }
 0x397   : > { %5708 = vmatpush2.bf16.msra.mxu1 %v8179_v6 }
 0x398   : > { %5709 = vmatprep.subr.bf16.mxu1 %v8184_v7 }
 0x39b   : > { %5710 = vmatpush2.bf16.msra.mxu1 %v8182_v19 }
 0x39c   : > { %5711 = vmatprep.subr.bf16.mxu1 %v8187_v22 }
 0x39f   : > { %5712 = vmatpush2.bf16.msra.mxu1 %v8185_v20 }
 0x3a2   : > { %v4379_v34 = vpop.f32.mrf.mxu1  ;;  %v5148_v0 = vpop.f32.mrf.mxu0 }
 0x3a3   : > { %v4380_v1 = vadd.f32 %v4379_v34, %v4336_v12 }
 0x3a4   : > { %v4381_v21 = vpop.f32.mrf.mxu1  ;;  %v5150_v2 = vpop.f32.mrf.mxu0 }
 0x3a5   : > { %v4382_v3 = vadd.f32 %v4381_v21, %v4338_v14  ;;  %v5149_v4 = vadd.f32 %v5148_v0, %v4380_v1 }
 0x3a6   : > { %v4383_v25 = vpop.f32.mrf.mxu1  ;;  %v5152_v6 = vpop.f32.mrf.mxu0 }
 0x3a7   : > { %v4384_v5 = vadd.f32 %v4383_v25, %v4340_v32  ;;  %v5151_v19 = vadd.f32 %v5150_v2, %v4382_v3 }
 0x3a8   : > { %v4385_v29 = vpop.f32.mrf.mxu1  ;;  %v5154_v11 = vpop.f32.mrf.mxu0 }
 0x3a9   : > { %v4386_v20 = vadd.f32 %v4385_v29, %v4342_v18  ;;  %v5153_v16 = vadd.f32 %v5152_v6, %v4384_v5 }
 0x3ab   : > { %v5155_v15 = vadd.f32 %v5154_v11, %v4386_v20  ;;  %v8210_v11 = vld [vmem:[%s9070_s13 + $0x8] sm:$0xff]  }
 0x3e2   : > { %v5105_v38 = vpop.f32.mrf.mxu1 }
 0x3e3   : > { %v5106_v45 = vadd.f32 %v5105_v38, %v5063_v36  ;;  %v8191_v38 = vld [vmem:[%s9068_s11 + $0x30] sm:$0xff]   ;;  %v8195_v36 = vld [vmem:[%s9068_s11 + $0x20] sm:$0xff]  }
 0x3e4   : > { %v5107_v39 = vpop.f32.mrf.mxu1 }
 0x3e5   : > { %v5108_v42 = vadd.f32 %v5107_v39, %v5065_v35  ;;  %v5222_v57 = vadd.f32 %v5205_v46, %v5106_v45  ;;  %v8194_v35 = vld [vmem:[%s9068_s11 + $0x60] sm:$0xff]   ;;  %v8196_v39 = vld [vmem:[%s9068_s11 + $0x58] sm:$0xff]   ;;  %v8201_v45 = vld [vmem:[%s9068_s11 + $0x8] sm:$0xff]  }
 0x3e6   : > { %v5109_v48 = vpop.f32.mrf.mxu1 }
 0x3e7   : > { %v5110_v50 = vadd.f32 %v5109_v48, %v5067_v44  ;;  %v5223_v23 = vadd.f32 %v5209_v43, %v5108_v42  ;;  %v5230_v61 = vmax.f32 %v5222_v57, 0.0  ;;  %v8197_v42 = vld [vmem:[%s9068_s11 + $0x18] sm:$0xff]   ;;  %v8199_v44 = vld [vmem:[%s9068_s11 + $0x10] sm:$0xff]   ;;  %v8203_v48 = vld [vmem:[%s9068_s11] sm:$0xff]  }
 0x3e8   : > { %v5111_v52 = vpop.f32.mrf.mxu1 }
 0x3e9   : > { %v5226_v54 = vadd.f32 %v5205_v46, %v5110_v50  ;;  %v5112_v55 = vadd.f32 %v5111_v52, %v5069_v51  ;;  %v5231_v59 = vmax.f32 %v5223_v23, 0.0  ;;  %v8202_v46 = vld [vmem:[%s9068_s11 + $0x40] sm:$0xff]   ;;  %v8204_v50 = vld [vmem:[%s9070_s13 + $0x38] sm:$0xff]   ;;  %v8499_v51 = vmov 0.0   ;;  %v8205_v52 = vld [vmem:[%s9070_s13 + $0x30] sm:$0xff]  }
 0x3ea   : > { %7076 = vmatprep.subr.bf16.mxu1 %v8499_v51  ;;  %v8206_v23 = vld [vmem:[%s9070_s13 + $0x28] sm:$0xff]  }
 0x3eb   : > { %v5227_v41 = vadd.f32 %v5209_v43, %v5112_v55  ;;  %v5234_v58 = vmax.f32 %v5226_v54, 0.0  ;;  %v8198_v43 = vld [vmem:[%s9068_s11 + $0x50] sm:$0xff]   ;;  %v8207_v54 = vld [vmem:[%s9070_s13 + $0x20] sm:$0xff]  }
 0x3ed   : > { %v5235_v60 = vmax.f32 %v5227_v41, 0.0  ;;  %v5238_v47 = vpack.c.bf16 %v5234_v58, %v5230_v61  ;;  %v5306_v41 = vld [vmem:[%s9118_s27] sm:$0x3]  ;;  %s9121_s27 = sld [smem:[#allocation34_spill]] }
 0x3ef   : > { %v5239_v63 = vpack.c.bf16 %v5235_v60, %v5231_v59  ;;  %v5315_v59 = vrot.slane %v5306_v41, %v8855_v40  ;;  %v5311_v60 = vrot.slane %v5306_v41, %v8852_v56  ;;  %v8208_v56 = vld [vmem:[%s9070_s13 + $0x18] sm:$0xff]  }
 0x3f1   : > { %5670 = vmatprep.mubr.bf16.mxu0 %v5239_v63 }
 0x3f2   : > { %5671 = vmatmul.mubr.bf16.vlgmr.msra.gmra.mxu0 %v5238_v47 }
 0x3f3   : > { %7041 = vmatpush3.bf16.msra.mxu0 %v8189_v30  ;;  %v8215_v30 = vld [vmem:[%s9119_s0] sm:$0xff]  }
 0x3f4   : > { %7042 = vmatprep.subr.bf16.mxu0 %v8190_v37  ;;  %v7013_v37 = vld [vmem:[%s9121_s27] ss:$0 sm:$0xff] }
 0x3f7   : > { %7043 = vmatpush3.bf16.msra.mxu0 %v8191_v38 }
 0x3f8   : > { %7044 = vmatprep.subr.bf16.mxu0 %v8192_v31 }
 0x3fb   : > { %7045 = vmatpush3.bf16.msra.mxu0 %v8193_v33 }
 0x3fc   : > { %7046 = vmatprep.subr.bf16.mxu0 %v8194_v35 }
 0x3ff   : > { %7047 = vmatpush3.bf16.msra.mxu0 %v8195_v36 }
 0x400   : > { %7048 = vmatprep.subr.bf16.mxu0 %v8196_v39 }
 0x403   : > { %7049 = vmatpush3.bf16.msra.mxu0 %v8197_v42 }
 0x404   : > { %7050 = vmatprep.subr.bf16.mxu0 %v8198_v43 }
 0x407   : > { %7051 = vmatpush3.bf16.msra.mxu0 %v8199_v44 }
 0x408   : > { %7052 = vmatprep.subr.bf16.mxu0 %v8200_v17  ;;  %v7022_v17 = vld [vmem:[%s9123_s12] ss:$0 sm:$0xff] }
 0x40b   : > { %7053 = vmatpush3.bf16.msra.mxu0 %v8201_v45 }
 0x40c   : > { %7054 = vmatprep.subr.bf16.mxu0 %v8202_v46 }
 0x40f   : > { %7055 = vmatpush3.bf16.msra.mxu0 %v8203_v48 }
 0x410   : > { %7096 = vmatprep.subr.bf16.mxu0 %v8499_v51 }
 0x422   : > { %v5191_v7 = vpop.f32.mrf.mxu1 }
 0x423   : > { %v5192_v22 = vadd.f32 %v5191_v7, %v5149_v4 }
 0x424   : > { %v5193_v62 = vpop.f32.mrf.mxu1 }
 0x425   : > { %v5194_v9 = vadd.f32 %v5193_v62, %v5151_v19  ;;  %v5224_v12 = vadd.f32 %v5213_v8, %v5192_v22 }
 0x426   : > { %v5195_v13 = vpop.f32.mrf.mxu1 }
 0x427   : > { %v5196_v34 = vadd.f32 %v5195_v13, %v5153_v16  ;;  %v5225_v21 = vadd.f32 %v5217_v10, %v5194_v9  ;;  %v5232_v25 = vmax.f32 %v5224_v12, 0.0  ;;  %v8211_v13 = vld [vmem:[%s9070_s13] sm:$0xff]  }
 0x428   : > { %v5197_v14 = vpop.f32.mrf.mxu1 }
 0x429   : > { %v5228_v32 = vadd.f32 %v5213_v8, %v5196_v34  ;;  %v5198_v24 = vadd.f32 %v5197_v14, %v5155_v15  ;;  %v5233_v27 = vmax.f32 %v5225_v21, 0.0  ;;  %v8212_v15 = vld [vmem:[%s9119_s0 + $0x18] sm:$0xff]   ;;  %v6996_v21 = vld [vmem:[%s9120_s15] ss:$0 sm:$0xff]  ;;  %s9125_s15 = sld [smem:[#allocation37_spill]] }
 0x42b   : > { %v5236_v26 = vmax.f32 %v5228_v32, 0.0  ;;  %v5229_v18 = vadd.f32 %v5217_v10, %v5198_v24  ;;  %v8209_v10 = vld [vmem:[%s9070_s13 + $0x10] sm:$0xff]  }
 0x42d   : > { %v5240_v28 = vpack.c.bf16 %v5236_v26, %v5232_v25  ;;  %v5237_v49 = vmax.f32 %v5229_v18, 0.0 }
 0x42f   : > { %v5241_v29 = vpack.c.bf16 %v5237_v49, %v5233_v27 }
 0x431   : > { %5713 = vmatprep.mubr.bf16.mxu1 %v5241_v29  ;;  %v8213_v29 = vld [vmem:[%s9119_s0 + $0x10] sm:$0xff]  }
 0x432   : > { %5714 = vmatmul.mubr.bf16.vlgmr.msra.gmra.mxu1 %v5240_v28 }
 0x433   : > { %7077 = vmatpush3.bf16.msra.mxu1 %v8204_v50  ;;  %7092 = vmatprep.mubr.msk.bf16.mxu1 %vm8500_vm0, %v8499_v51 }
 0x434   : > { %7078 = vmatprep.subr.bf16.mxu1 %v8499_v51 }
 0x437   : > { %7079 = vmatpush3.bf16.msra.mxu1 %v8205_v52 }
 0x438   : > { %7080 = vmatprep.subr.bf16.mxu1 %v8499_v51 }
 0x43b   : > { %7081 = vmatpush3.bf16.msra.mxu1 %v8206_v23 }
 0x43c   : > { %7082 = vmatprep.subr.bf16.mxu1 %v8499_v51 }
 0x43f   : > { %7083 = vmatpush3.bf16.msra.mxu1 %v8207_v54 }
 0x440   : > { %7084 = vmatprep.subr.bf16.mxu1 %v8499_v51 }
 0x443   : > { %7085 = vmatpush3.bf16.msra.mxu1 %v8208_v56 }
 0x444   : > { %7086 = vmatprep.subr.bf16.mxu1 %v8499_v51 }
 0x447   : > { %7087 = vmatpush3.bf16.msra.mxu1 %v8209_v10 }
 0x448   : > { %7088 = vmatprep.subr.bf16.mxu1 %v8499_v51 }
 0x44b   : > { %7089 = vmatpush3.bf16.msra.mxu1 %v8210_v11 }
 0x44c   : > { %7090 = vmatprep.subr.bf16.mxu1 %v8499_v51 }
 0x44f   : > { %7091 = vmatpush3.bf16.msra.mxu1 %v8211_v13 }
 0x4b2   : > { %v5672_v55 = vpop.f32.mrf.mxu0 }
 0x4b3   : > { %v5673_v2 = vadd.f32 %v5672_v55, %v5311_v60 }
 0x4b4   : > { %v5674_v57 = vpop.f32.mrf.mxu0 }
 0x4b5   : > { %v5675_v0 = vadd.f32 %v5674_v57, %v5315_v59 }
 0x4b6   : > { %v5676_v58 = vpop.f32.mrf.mxu0 }
 0x4b7   : > { %v5677_v1 = vadd.f32 %v5676_v58, %v5311_v60  ;;  %v7030_v60 = vld [vmem:[%s9125_s15] ss:$0 sm:$0xff] }
 0x4b8   : > { %v5678_v63 = vpop.f32.mrf.mxu0 }
 0x4b9   : > { %v5679_v4 = vadd.f32 %v5678_v63, %v5315_v59 }
 0x4f2   : > { %v5715_v61 = vpop.f32.mrf.mxu1 }
 0x4f3   : > { %v5716_v7 = vadd.f32 %v5715_v61, %v5673_v2 }
 0x4f4   : > { %v5717_v47 = vpop.f32.mrf.mxu1 }
 0x4f5   : > { %v5718_v5 = vadd.f32 %v5717_v47, %v5675_v0  ;;  %v5724_v16 = vmax.f32 %v5716_v7, 0.0 }
 0x4f6   : > { %v5719_v3 = vpop.f32.mrf.mxu1 }
 0x4f7   : > { %v5720_v6 = vadd.f32 %v5719_v3, %v5677_v1  ;;  %v5725_v8 = vmax.f32 %v5718_v5, 0.0  ;;  %v7031_v3 = vld [vmem:[#allocation4] ss:$0 sm:$0xff] }
 0x4f8   : > { %v5721_v19 = vpop.f32.mrf.mxu1 }
 0x4f9   : > { %v5722_v20 = vadd.f32 %v5721_v19, %v5679_v4  ;;  %v5726_v22 = vmax.f32 %v5720_v6, 0.0 }
 0x4fb   : > { %v5727_v62 = vmax.f32 %v5722_v20, 0.0  ;;  %v5728_v9 = vpack.c.bf16 %v5726_v22, %v5724_v16 }
 0x4fd   : > { %v5729_v40 = vpack.c.bf16 %v5727_v62, %v5725_v8 }
 0x4ff   : > { %5897 = vmatprep.mubr.bf16.mxu0 %v5729_v40 }
 0x500   : > { %5898 = vmatmul.mubr.bf16.vlgmr.msra.gmra.mxu0 %v5728_v9 }
 0x501   : > { %7104 = vmatprep.mubr.msk.bf16.mxu0 %vm8500_vm0, %v8499_v51  ;;  %7097 = vmatpush3.bf16.msra.mxu0 %v8212_v15 }
 0x502   : > { %7098 = vmatprep.subr.bf16.mxu0 %v8499_v51 }
 0x505   : > { %7099 = vmatpush3.bf16.msra.mxu0 %v8213_v29 }
 0x506   : > { %7100 = vmatprep.subr.bf16.mxu0 %v8499_v51 }
 0x509   : > { %7101 = vmatpush3.bf16.msra.mxu0 %v8214_v53 }
 0x50a   : > { %7102 = vmatprep.subr.bf16.mxu0 %v8499_v51 }
 0x50d   : > { %7103 = vmatpush3.bf16.msra.mxu0 %v8215_v30 }
 0x5c0   : > { %v7056_v12 = vpop.f32.mrf.mxu0 }
 0x5c2   : > { %v7057_v34 = vpop.f32.mrf.mxu0 }
 0x5c3   : > { %v7058_v14 = vadd.f32 %v7057_v34, %v7056_v12 }
 0x5c4   : > { %v7059_v32 = vpop.f32.mrf.mxu0 }
 0x5c5   : > { %v5900_v25 = vadd.f32 %v7058_v14, %v6996_v21 }
 0x5c6   : > { %v7060_v24 = vpop.f32.mrf.mxu0 }
 0x5c7   : > { %v7061_v26 = vadd.f32 %v7060_v24, %v7059_v32  ;;  %v5906_v27 = vmax.f32 %v5900_v25, 0.0 }
 0x5c9   : > { %v5903_v18 = vadd.f32 %v7061_v26, %v6996_v21 }
 0x5cb   : > { %v5907_v28 = vmax.f32 %v5903_v18, 0.0 }
 0x5cd   : > { %v5908_v49 = vpack.c.bf16 %v5907_v28, %v5906_v27 }
 0x5cf   : > { %7093 = vmatmul.mubr.bf16.vlgmr.msra.gmra.mxu1 %v5908_v49 }
 0x68f   : > { %v6014_v38 = vpop.f32.mrf.mxu1 }
 0x690   : > { %v6015_v33 = vadd.f32 %v7013_v37, %v6014_v38 }
 0x691   : > { %v7094_v31 = vpop.f32.mrf.mxu1 }
 0x692   : > { %v6021_v42 = vmax.f32 %v6015_v33, 0.0 }
 0x693   : > { %v6017_v35 = vpop.f32.mrf.mxu1 }
 0x694   : > { %v6018_v36 = vadd.f32 %v7013_v37, %v6017_v35 }
 0x695   : > { %v7095_v39 = vpop.f32.mrf.mxu1 }
 0x696   : > { %v6022_v43 = vmax.f32 %v6018_v36, 0.0 }
 0x698   : > { %v6023_v44 = vpack.c.bf16 %v6022_v43, %v6021_v42 }
 0x69a   : > { %7105 = vmatmul.mubr.msk.bf16.vlgmr.msra.gmra.mxu0 %vm6063_vm1, %v6023_v44 }
 0x75a   : > { %v6101_v45 = vpop.f32.mrf.mxu0 }
 0x75b   : > { %v6102_v46 = vadd.f32 %v7022_v17, %v6101_v45 }
 0x75c   : > { %v7106_v48 = vpop.f32.mrf.mxu0 }
 0x75d   : > { %v7028_v50 = vmul.f32 -1.442695, %v6102_v46 }
 0x75e   : > { %v6104_v52 = vpop.f32.mrf.mxu0 }
 0x75f   : > { %8216 = vpow2.f32 %v7028_v50  ;;  %v6105_v23 = vadd.f32 %v7022_v17, %v6104_v52 }
 0x760   : > { %v7107_v54 = vpop.f32.mrf.mxu0 }
 0x761   : > { %v7029_v55 = vmul.f32 -1.442695, %v6105_v23 }
 0x763   : > { %8218 = vpow2.f32 %v7029_v55 }
 0x76c   : > { %v8217_v57 = vpop.eup %8216 }
 0x76d   : > { %v6114_v41 = vadd.f32 1.0, %v8217_v57 }
 0x76f   : > { %8220 = vrcp.f32 %v6114_v41 }
 0x770   : > { %v8219_v58 = vpop.eup %8218 }
 0x771   : > { %v6115_v59 = vadd.f32 1.0, %v8219_v58 }
 0x773   : > { %8222 = vrcp.f32 %v6115_v59 }
 0x77c   : > { %v8221_v61 = vpop.eup %8220 }
 0x77d   : > { %v6127_v63 = vmul.f32 %v8221_v61, %v7030_v60  ;;  %6157 = vst.msk [vmem:[%s9026_s9] sm:$0xff] %vm6129_vm2, %v8221_v61 }
 0x77f   : > { %v6130_v47 = vsel %vm6129_vm2, %v6127_v63, 0.0 }
 0x780   : > { %v8223_v0 = vpop.eup %8222  ;;  %6131 = vadd.xlane.f32.xlu0 %v6130_v47 }
 0x781   : > { %6158 = vst.msk [vmem:[%s9026_s9 + $0x8] sm:$0xff] %vm6129_vm2, %v8223_v0  ;;  %v6128_v1 = vmul.f32 %v8223_v0, %v7030_v60 }
 0x783   : > { %v6133_v2 = vsel %vm6129_vm2, %v6128_v1, 0.0 }
 0x784   : > { %6134 = vadd.xlane.f32.xlu0 %v6133_v2 }
 0x809   : > { %v6132_v4 = vpop.xlane.xlu0 %6131 }
 0x80a   : > { %v6143_v5 = vadd.f32 %v7031_v3, %v6132_v4 }
 0x80c   : > { %v7032_v6 = vmul.f32 -1.442695, %v6143_v5 }
 0x80d   : > { %v6135_v7 = vpop.xlane.xlu0 %6134 }
 0x80e   : > { %8224 = vpow2.f32 %v7032_v6  ;;  %v6144_v19 = vadd.f32 %v7031_v3, %v6135_v7 }
 0x810   : > { %v7033_v20 = vmul.f32 -1.442695, %v6144_v19 }
 0x812   : > { %8226 = vpow2.f32 %v7033_v20 }
 0x81b   : > { %v8225_v22 = vpop.eup %8224 }
 0x81c   : > { %v6151_v8 = vadd.f32 1.0, %v8225_v22 }
 0x81e   : > { %8228 = vrcp.f32 %v6151_v8 }
 0x81f   : > { %v8227_v62 = vpop.eup %8226 }
 0x820   : > { %v6152_v16 = vadd.f32 1.0, %v8227_v62 }
 0x822   : > { %8230 = vrcp.f32 %v6152_v16 }
 0x82b   : > { %v8229_v40 = vpop.eup %8228 }
 0x82c   : > { %6161 = vrot.lane.b32.xlu1 %v8229_v40, %s8501_s30 }
 0x82f   : > { %v8231_v9 = vpop.eup %8230 }
 0x830   : > { %6163 = vrot.lane.b32.xlu1 %v8231_v9, %s8501_s30 }
 0x89e   : > { %v6162_v56 = vpop.permute.xlu1 %6161 }
 0x89f   : > { %6168 = vst.msk [vmem:[%s9026_s9] sm:$0xff] %vm6167_vm3, %v6162_v56 }
 0x8a0   : > { %6171 = vst.msk [vmem:[%s9026_s9] sm:$0xff] %vm6170_vm4, %v8499_v51 }
 0x8a2   : > { %v6164_v10 = vpop.permute.xlu1 %6163 }
 0x8a3   : > { %6169 = vst.msk [vmem:[%s9026_s9 + $0x8] sm:$0xff] %vm6167_vm3, %v6164_v10 }
 0x8a4   : > { %6172 = vst.msk [vmem:[%s9026_s9 + $0x8] sm:$0xff] %vm6170_vm4, %v8499_v51 }
 0x8a5 PF: > { %s39_s23 = sadd.s32 1, %s8484_s23   ;;  %s9126_s10 = sld [smem:[#allocation21_spill]] }
 0x8a6   : > { %p36_p3 = scmp.ge.s32.totalorder %s39_s23, 4   ;;  %s9127_s1 = sld [smem:[#allocation24_spill]] }
 0x8a7   : > { %s9128_s16 = sld [smem:[#allocation23_spill]]  ;;  %s9129_s20 = smov %s8468_s21 }
 0x8a8   : > { %s9131_s22 = smov %s8480_s2 }
 0x8a9   :  { %38 = sbr.rel (!%p36_p3) target bundleno = 23 (0x17), region = 179 }
 0x8ab   : > { %s9130_s21 = smov %s9126_s10 }
 0x8ad   : > { %s9132_s2 = smov %s9128_s16 }
 0x8ae   :  { %6195 = vsyncpa [#allocation6], 1 }
 0x8af   :  { %6197 = vsyncpa [#allocation6 + $0x1], 1 }
 0x8b0   :  { %6198 = vsyncpa [#allocation8], 1 }
 0x8b1   :  { %6200 = vsyncpa [#allocation8 + $0x1], 1 }
 0x8b2   :  { %6201 = vsyncpa [#allocation11], 1 }
 0x8b3   :  { %6202 = vsyncpa [#allocation14], 1 }

</bundles_post_ra>
